<compile_context>
chip_gen: v7x
topology: tpu7x:2x2x1
jax: 0.10.0
libtpu: 0.0.40
codegen_flags: <defaults>
</compile_context>

<pallas_src>
import functools
from collections import OrderedDict

import jax
import jax.numpy as jnp
from jax import lax
from jax.experimental import pallas as pl
from jax.experimental.pallas import tpu as pltpu

KSIZE = 5
PAD = 2


def _round_up(x, m):
    return (x + m - 1) // m * m


def _heads_kernel(x_ref, wdw_ref, b1_ref, wpw_ref, b2_ref, wcls_ref, bcls_ref,
                  out_ref, xpad_ref, *, cin):
    # x_ref:    (H, W*Cin)              one batch element, W collapsed into lanes
    # wdw_ref:  (heads, 25, W*Cin)      depthwise taps, BN scale folded, tiled over w
    # b1_ref:   (heads, 1,  W*Cin)      BN shift after the depthwise conv
    # wpw_ref:  (heads, W*Cin, W*Ch)    bf16 block-diag pointwise weights (BN scale folded)
    # b2_ref:   (heads, 1,  W*Ch)       BN shift after the pointwise conv
    # wcls_ref: (heads, W*Ch, W*npad)   bf16 block-diag classifier weights (zero padded)
    # bcls_ref: (heads, 1,  W*npad)     classifier bias (zero padded, tiled over w)
    # out_ref:  (heads, H, W*npad)      lane-dense logits for this batch element
    # xpad_ref: (Hp, LANES)             zero-haloed input slab (VMEM scratch)
    H, LV = x_ref.shape                         # LV = W * cin
    Hp, LANES = xpad_ref.shape
    num_heads = out_ref.shape[0]
    row0 = _round_up(PAD, 8)                    # aligned interior row offset
    lane0 = _round_up(PAD * cin, 128)           # aligned interior lane offset
    f32 = jnp.float32

    # ---- (re)build the zero halo + interior each batch step.  All stores are
    # (8,128)-aligned; only the thin halo strips are written (not the full
    # slab).  Done every step (not gated on program_id), so the batch grid
    # axis stays safe under megacore sharding.
    xpad_ref[:row0, :] = jnp.zeros((row0, LANES), f32)
    xpad_ref[row0 + H:, :] = jnp.zeros((Hp - row0 - H, LANES), f32)
    xpad_ref[:, :lane0] = jnp.zeros((Hp, lane0), f32)
    xpad_ref[:, lane0 + LV:] = jnp.zeros((Hp, LANES - lane0 - LV), f32)
    xpad_ref[row0:row0 + H, lane0:lane0 + LV] = x_ref[...]

    # ---- depthwise 5x5 cross-correlation on the VPU (f32; v5e has no bf16
    # VALU).  Lane index = w*cin + c, so all 128 lanes carry data.  Each tap is
    # a static offset-window read of the padded slab; the misaligned offsets
    # become sublane/lane rotates on the XLU, overlapping the VALU FMAs.  The
    # window is shared by both heads (read once per tap).
    accs = [jnp.zeros((H, LV), f32) for _ in range(num_heads)]
    for dy in range(KSIZE):
        r0 = row0 - PAD + dy
        for dx in range(KSIZE):
            c0 = lane0 + (dx - PAD) * cin
            win = xpad_ref[r0:r0 + H, c0:c0 + LV]            # (H, W*cin)
            k = dy * KSIZE + dx
            for hd in range(num_heads):
                accs[hd] = accs[hd] + win * wdw_ref[hd, k:k + 1, :]

    # ---- per-head pointwise 1x1 + classifier 1x1 on the MXU: bf16 operands,
    # f32 accumulation.  Block-diagonal weights keep everything in the
    # lane-collapsed layout (no lane->sublane reshape of activations).
    for hd in range(num_heads):
        h1 = jnp.maximum(accs[hd] + b1_ref[hd], 0.0)                 # (H, W*cin)
        h2 = jnp.dot(h1.astype(jnp.bfloat16), wpw_ref[hd],
                     preferred_element_type=f32)                     # (H, W*Ch)
        h2 = jnp.maximum(h2 + b2_ref[hd], 0.0)
        logits = jnp.dot(h2.astype(jnp.bfloat16), wcls_ref[hd],
                         preferred_element_type=f32)                 # (H, W*npad)
        out_ref[hd] = (logits + bcls_ref[hd]).astype(out_ref.dtype)


def _run_heads(x_coll, stk, *, cin):
    N, H, LV = x_coll.shape
    num_heads = stk["w_dw"].shape[0]
    wnp = stk["b_cls"].shape[2]
    row0 = _round_up(PAD, 8)
    lane0 = _round_up(PAD * cin, 128)
    hp = _round_up(row0 + H + PAD, 8)
    lanes = _round_up(lane0 + LV + PAD * cin, 128)

    def full_spec(arr):
        # Full-array block with a constant index map: DMA'd once, stays
        # resident in VMEM across all grid steps (no per-step weight refetch).
        return pl.BlockSpec(arr.shape, lambda n, _nd=arr.ndim: (0,) * _nd)

    kernel = functools.partial(_heads_kernel, cin=cin)
    return pl.pallas_call(
        kernel,
        out_shape=jax.ShapeDtypeStruct((N, num_heads, H, wnp), jnp.float32),
        grid_spec=pltpu.PrefetchScalarGridSpec(
            num_scalar_prefetch=0,
            grid=(N,),
            in_specs=[
                pl.BlockSpec((None, H, LV), lambda n: (n, 0, 0)),
                full_spec(stk["w_dw"]),
                full_spec(stk["b1"]),
                full_spec(stk["w_pw_blk"]),
                full_spec(stk["b2"]),
                full_spec(stk["w_cls_blk"]),
                full_spec(stk["b_cls"]),
            ],
            out_specs=pl.BlockSpec((None, num_heads, H, wnp),
                                   lambda n: (n, 0, 0, 0)),
            scratch_shapes=[pltpu.VMEM((hp, lanes), jnp.float32)],
        ),
        compiler_params=pltpu.CompilerParams(
            dimension_semantics=("parallel",)),
    )(x_coll, stk["w_dw"], stk["b1"], stk["w_pw_blk"], stk["b2"],
      stk["w_cls_blk"], stk["b_cls"])


def _fold_bn(gamma, beta, running_mean, running_var, eps):
    """Fold eval-mode BatchNorm into per-channel (scale, shift)."""
    scale = gamma / jnp.sqrt(running_var + eps)
    shift = beta - running_mean * scale
    return scale, shift


def init_params(key, decoder_channels, head_channels, num_classes, class_key, eps=1e-5):
    """Deterministic synthetic parameters.  Eval-mode BN is folded: the
    per-channel scales are multiplied into the conv weights, only the shifts
    are kept as separate biases."""
    params = OrderedDict()
    for i, ck in enumerate(class_key):
        key, *ks = jax.random.split(key, 9)
        Cin, Ch, Nout = decoder_channels, head_channels, num_classes[i]
        w_dw = 0.1 * jax.random.normal(ks[0], (KSIZE * KSIZE, Cin), jnp.float32)
        gamma1 = 1.0 + 0.1 * jax.random.normal(ks[1], (1, Cin), jnp.float32)
        beta1 = 0.1 * jax.random.normal(ks[2], (1, Cin), jnp.float32)
        w_pw = 0.1 * jax.random.normal(ks[3], (Cin, Ch), jnp.float32)
        gamma2 = 1.0 + 0.1 * jax.random.normal(ks[4], (1, Ch), jnp.float32)
        beta2 = 0.1 * jax.random.normal(ks[5], (1, Ch), jnp.float32)
        w_cls = 0.1 * jax.random.normal(ks[6], (Ch, Nout), jnp.float32)
        b_cls = 0.1 * jax.random.normal(ks[7], (1, Nout), jnp.float32)
        # PyTorch-default running stats (mean=0, var=1); real checkpoints should
        # pass their actual running_mean / running_var here instead.
        s1, b1 = _fold_bn(gamma1, beta1, jnp.zeros((1, Cin)), jnp.ones((1, Cin)), eps)
        s2, b2 = _fold_bn(gamma2, beta2, jnp.zeros((1, Ch)), jnp.ones((1, Ch)), eps)
        params[ck] = dict(
            w_dw=w_dw * s1,        # (25, Cin): BN scale folded into the taps
            b1=b1,                 # (1, Cin)
            w_pw=w_pw * s2,        # (Cin, Ch): BN scale folded into the columns
            b2=b2,                 # (1, Ch)
            w_cls=w_cls, b_cls=b_cls,
        )
    return params


def _stack_heads(params, class_key, num_classes, W):
    """Stack per-head weights and retile them for the lane-collapsed kernel
    layout: depthwise taps / BN shifts are tiled over w along the lane axis,
    the 1x1 convs become bf16 block-diagonal matrices (kron(I_W, W)), and the
    classifier is zero-padded to a common, 8-aligned nout."""
    nout_pad = _round_up(max(num_classes), 8)
    eye_w = jnp.eye(W, dtype=jnp.float32)
    w_dw, b1, w_pw_blk, b2, w_cls_blk, b_cls = [], [], [], [], [], []
    for i, ck in enumerate(class_key):
        p = params[ck]
        pad_n = nout_pad - num_classes[i]
        w_dw.append(jnp.tile(p["w_dw"], (1, W)))                         # (25, W*Cin)
        b1.append(jnp.tile(p["b1"], (1, W)))                             # (1,  W*Cin)
        w_pw_blk.append(jnp.kron(eye_w, p["w_pw"]).astype(jnp.bfloat16))  # (W*Cin, W*Ch)
        b2.append(jnp.tile(p["b2"], (1, W)))                             # (1,  W*Ch)
        wc = jnp.pad(p["w_cls"], ((0, 0), (0, pad_n)))                   # (Ch, npad)
        bc = jnp.pad(p["b_cls"], ((0, 0), (0, pad_n)))                   # (1,  npad)
        w_cls_blk.append(jnp.kron(eye_w, wc).astype(jnp.bfloat16))       # (W*Ch, W*npad)
        b_cls.append(jnp.tile(bc, (1, W)))                               # (1,  W*npad)
    stk = dict(w_dw=jnp.stack(w_dw), b1=jnp.stack(b1),
               w_pw_blk=jnp.stack(w_pw_blk), b2=jnp.stack(b2),
               w_cls_blk=jnp.stack(w_cls_blk), b_cls=jnp.stack(b_cls))
    return stk, nout_pad


def single_panoptic_deeplab_head(x_nchw, params, class_key, num_classes):
    """Mirror of SinglePanopticDeepLabHead.forward: OrderedDict of NCHW preds."""
    N, cin, H, W = x_nchw.shape
    # Tiling assumptions of the fused kernel (satisfied by the demo config).
    assert H % 8 == 0, "H must be a multiple of 8 (sublane tile)"
    assert (W * cin) % 128 == 0, "W*Cin must be a multiple of 128 (lane tile)"
    stk, nout_pad = _stack_heads(params, class_key, num_classes, W)
    # channels-last, then collapse W into the lane axis (free reshape).
    x_coll = jnp.transpose(x_nchw, (0, 2, 3, 1)).reshape(N, H, W * cin)
    out = _run_heads(x_coll, stk, cin=cin)                  # (N, heads, H, W*npad)
    out = out.reshape(N, len(class_key), H, W, nout_pad)
    pred = OrderedDict()
    for i, ck in enumerate(class_key):
        pred[ck] = jnp.transpose(out[:, i, :, :, :num_classes[i]], (0, 3, 1, 2))
    return pred


def _ref_head(x_nhwc, p, nout):
    """Pure-JAX reference (same folded parameters).  Matmul operands are cast
    to bf16 (f32 accumulation) to match the kernel's MXU precision."""
    Cin = x_nhwc.shape[-1]
    wdw_hwio = p["w_dw"].reshape(KSIZE, KSIZE, Cin)[:, :, None, :]   # (5,5,1,Cin)
    dn = lax.conv_dimension_numbers(x_nhwc.shape, wdw_hwio.shape, ("NHWC", "HWIO", "NHWC"))
    y = lax.conv_general_dilated(x_nhwc, wdw_hwio, (1, 1), [(PAD, PAD), (PAD, PAD)],
                                 dimension_numbers=dn, feature_group_count=Cin,
                                 precision=lax.Precision.HIGHEST)
    y = jnp.maximum(y + p["b1"], 0.0)
    y = jnp.einsum("nhwc,cd->nhwd", y.astype(jnp.bfloat16),
                   p["w_pw"].astype(jnp.bfloat16),
                   preferred_element_type=jnp.float32)
    y = jnp.maximum(y + p["b2"], 0.0)
    y = jnp.einsum("nhwc,cd->nhwd", y.astype(jnp.bfloat16),
                   p["w_cls"].astype(jnp.bfloat16),
                   preferred_element_type=jnp.float32) + p["b_cls"]
    return jnp.transpose(y, (0, 3, 1, 2))  # NCHW


if __name__ == "__main__":
    N, decoder_channels, H, W = 2, 32, 16, 16
    head_channels = 32
    num_classes = [1, 2]                  # e.g. instance head: center + offset
    class_key = ["center", "offset"]

    key = jax.random.PRNGKey(0)
    kx, kp = jax.random.split(key)
    x = jax.random.normal(kx, (N, decoder_channels, H, W), jnp.float32)
    params = init_params(kp, decoder_channels, head_channels, num_classes, class_key)

    pred = single_panoptic_deeplab_head(x, params, class_key, num_classes)
    pred = {k: jax.block_until_ready(v) for k, v in pred.items()}

    # Correctness check against a precision-matched pure-JAX reference.
    x_nhwc = jnp.transpose(x, (0, 2, 3, 1))
    ok = True
    errs = {}
    for i, ck in enumerate(class_key):
        assert pred[ck].shape == (N, num_classes[i], H, W)
        ref = _ref_head(x_nhwc, params[ck], num_classes[i])
        err = float(jnp.max(jnp.abs(pred[ck] - ref)))
        errs[ck] = err
        ok = ok and (err < 2e-2)

    if ok:
        print("KERNEL_OK")
    else:
        print("max abs errors:", errs)
</pallas_src>

<mosaic_0001>
module attributes {stable_mosaic.version = 11 : i64} {
  func.func @_heads_kernel(%arg0: i32, %arg1: memref<1x16x512xf32, #tpu.memory_space<vmem>>, %arg2: memref<2x25x512xf32, #tpu.memory_space<vmem>>, %arg3: memref<2x1x512xf32, #tpu.memory_space<vmem>>, %arg4: memref<2x512x512xbf16, #tpu.memory_space<vmem>>, %arg5: memref<2x1x512xf32, #tpu.memory_space<vmem>>, %arg6: memref<2x512x128xbf16, #tpu.memory_space<vmem>>, %arg7: memref<2x1x128xf32, #tpu.memory_space<vmem>>, %arg8: memref<1x2x16x128xf32, #tpu.memory_space<vmem>>, %arg9: memref<32x768xf32, #tpu.memory_space<vmem>>) attributes {dimension_semantics = [#tpu.dimension_semantics<parallel>], iteration_bounds = array<i64: 2>, scalar_prefetch = 0 : i64, scratch_operands = 1 : i64, tpu.core_type = #tpu.core_type<tc>, window_params = [{transform_indices = @transform_0, window_bounds = array<i64: 1, 16, 512>}, {pipeline_mode = #tpu.pipeline_mode<synchronous>, transform_indices = @transform_1, window_bounds = array<i64: 2, 25, 512>}, {pipeline_mode = #tpu.pipeline_mode<synchronous>, transform_indices = @transform_2, window_bounds = array<i64: 2, 1, 512>}, {pipeline_mode = #tpu.pipeline_mode<synchronous>, transform_indices = @transform_3, window_bounds = array<i64: 2, 512, 512>}, {pipeline_mode = #tpu.pipeline_mode<synchronous>, transform_indices = @transform_4, window_bounds = array<i64: 2, 1, 512>}, {pipeline_mode = #tpu.pipeline_mode<synchronous>, transform_indices = @transform_5, window_bounds = array<i64: 2, 512, 128>}, {pipeline_mode = #tpu.pipeline_mode<synchronous>, transform_indices = @transform_6, window_bounds = array<i64: 2, 1, 128>}, {transform_indices = @transform_7, window_bounds = array<i64: 1, 2, 16, 128>}]} {
    %cst = arith.constant 0.000000e+00 : f32
    %0 = vector.broadcast %cst : f32 to vector<8x768xf32>
    %c0 = arith.constant 0 : index
    %c0_0 = arith.constant 0 : index
    %1 = vector.load %arg9[%c0, %c0_0] : memref<32x768xf32, #tpu.memory_space<vmem>>, vector<8x768xf32>
    tpu.vector_store %arg9[%c0, %c0_0], %0 {strides = array<i32>} : memref<32x768xf32, #tpu.memory_space<vmem>>, vector<8x768xf32>,
    %cst_1 = arith.constant 0.000000e+00 : f32
    %2 = vector.broadcast %cst_1 : f32 to vector<8x768xf32>
    %c24 = arith.constant 24 : index
    %c0_2 = arith.constant 0 : index
    %3 = vector.load %arg9[%c24, %c0_2] : memref<32x768xf32, #tpu.memory_space<vmem>>, vector<8x768xf32>
    tpu.vector_store %arg9[%c24, %c0_2], %2 {strides = array<i32>} : memref<32x768xf32, #tpu.memory_space<vmem>>, vector<8x768xf32>,
    %cst_3 = arith.constant 0.000000e+00 : f32
    %4 = vector.broadcast %cst_3 : f32 to vector<32x128xf32>
    %c0_4 = arith.constant 0 : index
    %c0_5 = arith.constant 0 : index
    %5 = vector.load %arg9[%c0_4, %c0_5] : memref<32x768xf32, #tpu.memory_space<vmem>>, vector<32x128xf32>
    tpu.vector_store %arg9[%c0_4, %c0_5], %4 {strides = array<i32>} : memref<32x768xf32, #tpu.memory_space<vmem>>, vector<32x128xf32>,
    %cst_6 = arith.constant 0.000000e+00 : f32
    %6 = vector.broadcast %cst_6 : f32 to vector<32x128xf32>
    %c0_7 = arith.constant 0 : index
    %c640 = arith.constant 640 : index
    %7 = vector.load %arg9[%c0_7, %c640] : memref<32x768xf32, #tpu.memory_space<vmem>>, vector<32x128xf32>
    tpu.vector_store %arg9[%c0_7, %c640], %6 {strides = array<i32>} : memref<32x768xf32, #tpu.memory_space<vmem>>, vector<32x128xf32>,
    %c0_8 = arith.constant 0 : index
    %c0_9 = arith.constant 0 : index
    %c0_10 = arith.constant 0 : index
    %8 = vector.load %arg1[%c0_8, %c0_9, %c0_10] : memref<1x16x512xf32, #tpu.memory_space<vmem>>, vector<1x16x512xf32>
    %9 = vector.shape_cast %8 : vector<1x16x512xf32> to vector<16x512xf32>
    %c8 = arith.constant 8 : index
    %c128 = arith.constant 128 : index
    %10 = vector.load %arg9[%c8, %c128] : memref<32x768xf32, #tpu.memory_space<vmem>>, vector<16x512xf32>
    tpu.vector_store %arg9[%c8, %c128], %9 {strides = array<i32>} : memref<32x768xf32, #tpu.memory_space<vmem>>, vector<16x512xf32>,
    %cst_11 = arith.constant 0.000000e+00 : f32
    %11 = vector.broadcast %cst_11 : f32 to vector<16x512xf32>
    %cst_12 = arith.constant 0.000000e+00 : f32
    %12 = vector.broadcast %cst_12 : f32 to vector<16x512xf32>
    %c6 = arith.constant 6 : index
    %c64 = arith.constant 64 : index
    %13 = vector.load %arg9[%c6, %c64] : memref<32x768xf32, #tpu.memory_space<vmem>>, vector<16x512xf32>
    %c0_13 = arith.constant 0 : index
    %c0_14 = arith.constant 0 : index
    %c0_15 = arith.constant 0 : index
    %14 = vector.load %arg2[%c0_13, %c0_14, %c0_15] : memref<2x25x512xf32, #tpu.memory_space<vmem>>, vector<1x1x512xf32>
    %15 = vector.shape_cast %14 : vector<1x1x512xf32> to vector<1x512xf32>
    %16 = vector.broadcast %15 : vector<1x512xf32> to vector<16x512xf32>
    %17 = arith.mulf %13, %16 : vector<16x512xf32>
    %18 = arith.addf %11, %17 : vector<16x512xf32>
    %c1 = arith.constant 1 : index
    %c0_16 = arith.constant 0 : index
    %c0_17 = arith.constant 0 : index
    %19 = vector.load %arg2[%c1, %c0_16, %c0_17] : memref<2x25x512xf32, #tpu.memory_space<vmem>>, vector<1x1x512xf32>
    %20 = vector.shape_cast %19 : vector<1x1x512xf32> to vector<1x512xf32>
    %21 = vector.broadcast %20 : vector<1x512xf32> to vector<16x512xf32>
    %22 = arith.mulf %13, %21 : vector<16x512xf32>
    %23 = arith.addf %12, %22 : vector<16x512xf32>
    %c6_18 = arith.constant 6 : index
    %c96 = arith.constant 96 : index
    %24 = vector.load %arg9[%c6_18, %c96] : memref<32x768xf32, #tpu.memory_space<vmem>>, vector<16x512xf32>
    %c0_19 = arith.constant 0 : index
    %c1_20 = arith.constant 1 : index
    %c0_21 = arith.constant 0 : index
    %25 = vector.load %arg2[%c0_19, %c1_20, %c0_21] : memref<2x25x512xf32, #tpu.memory_space<vmem>>, vector<1x1x512xf32>
    %26 = vector.shape_cast %25 : vector<1x1x512xf32> to vector<1x512xf32>
    %27 = vector.broadcast %26 : vector<1x512xf32> to vector<16x512xf32>
    %28 = arith.mulf %24, %27 : vector<16x512xf32>
    %29 = arith.addf %18, %28 : vector<16x512xf32>
    %c1_22 = arith.constant 1 : index
    %c1_23 = arith.constant 1 : index
    %c0_24 = arith.constant 0 : index
    %30 = vector.load %arg2[%c1_22, %c1_23, %c0_24] : memref<2x25x512xf32, #tpu.memory_space<vmem>>, vector<1x1x512xf32>
    %31 = vector.shape_cast %30 : vector<1x1x512xf32> to vector<1x512xf32>
    %32 = vector.broadcast %31 : vector<1x512xf32> to vector<16x512xf32>
    %33 = arith.mulf %24, %32 : vector<16x512xf32>
    %34 = arith.addf %23, %33 : vector<16x512xf32>
    %c6_25 = arith.constant 6 : index
    %c128_26 = arith.constant 128 : index
    %35 = vector.load %arg9[%c6_25, %c128_26] : memref<32x768xf32, #tpu.memory_space<vmem>>, vector<16x512xf32>
    %c0_27 = arith.constant 0 : index
    %c2 = arith.constant 2 : index
    %c0_28 = arith.constant 0 : index
    %36 = vector.load %arg2[%c0_27, %c2, %c0_28] : memref<2x25x512xf32, #tpu.memory_space<vmem>>, vector<1x1x512xf32>
    %37 = vector.shape_cast %36 : vector<1x1x512xf32> to vector<1x512xf32>
    %38 = vector.broadcast %37 : vector<1x512xf32> to vector<16x512xf32>
    %39 = arith.mulf %35, %38 : vector<16x512xf32>
    %40 = arith.addf %29, %39 : vector<16x512xf32>
    %c1_29 = arith.constant 1 : index
    %c2_30 = arith.constant 2 : index
    %c0_31 = arith.constant 0 : index
    %41 = vector.load %arg2[%c1_29, %c2_30, %c0_31] : memref<2x25x512xf32, #tpu.memory_space<vmem>>, vector<1x1x512xf32>
    %42 = vector.shape_cast %41 : vector<1x1x512xf32> to vector<1x512xf32>
    %43 = vector.broadcast %42 : vector<1x512xf32> to vector<16x512xf32>
    %44 = arith.mulf %35, %43 : vector<16x512xf32>
    %45 = arith.addf %34, %44 : vector<16x512xf32>
    %c6_32 = arith.constant 6 : index
    %c160 = arith.constant 160 : index
    %46 = vector.load %arg9[%c6_32, %c160] : memref<32x768xf32, #tpu.memory_space<vmem>>, vector<16x512xf32>
    %c0_33 = arith.constant 0 : index
    %c3 = arith.constant 3 : index
    %c0_34 = arith.constant 0 : index
    %47 = vector.load %arg2[%c0_33, %c3, %c0_34] : memref<2x25x512xf32, #tpu.memory_space<vmem>>, vector<1x1x512xf32>
    %48 = vector.shape_cast %47 : vector<1x1x512xf32> to vector<1x512xf32>
    %49 = vector.broadcast %48 : vector<1x512xf32> to vector<16x512xf32>
    %50 = arith.mulf %46, %49 : vector<16x512xf32>
    %51 = arith.addf %40, %50 : vector<16x512xf32>
    %c1_35 = arith.constant 1 : index
    %c3_36 = arith.constant 3 : index
    %c0_37 = arith.constant 0 : index
    %52 = vector.load %arg2[%c1_35, %c3_36, %c0_37] : memref<2x25x512xf32, #tpu.memory_space<vmem>>, vector<1x1x512xf32>
    %53 = vector.shape_cast %52 : vector<1x1x512xf32> to vector<1x512xf32>
    %54 = vector.broadcast %53 : vector<1x512xf32> to vector<16x512xf32>
    %55 = arith.mulf %46, %54 : vector<16x512xf32>
    %56 = arith.addf %45, %55 : vector<16x512xf32>
    %c6_38 = arith.constant 6 : index
    %c192 = arith.constant 192 : index
    %57 = vector.load %arg9[%c6_38, %c192] : memref<32x768xf32, #tpu.memory_space<vmem>>, vector<16x512xf32>
    %c0_39 = arith.constant 0 : index
    %c4 = arith.constant 4 : index
    %c0_40 = arith.constant 0 : index
    %58 = vector.load %arg2[%c0_39, %c4, %c0_40] : memref<2x25x512xf32, #tpu.memory_space<vmem>>, vector<1x1x512xf32>
    %59 = vector.shape_cast %58 : vector<1x1x512xf32> to vector<1x512xf32>
    %60 = vector.broadcast %59 : vector<1x512xf32> to vector<16x512xf32>
    %61 = arith.mulf %57, %60 : vector<16x512xf32>
    %62 = arith.addf %51, %61 : vector<16x512xf32>
    %c1_41 = arith.constant 1 : index
    %c4_42 = arith.constant 4 : index
    %c0_43 = arith.constant 0 : index
    %63 = vector.load %arg2[%c1_41, %c4_42, %c0_43] : memref<2x25x512xf32, #tpu.memory_space<vmem>>, vector<1x1x512xf32>
    %64 = vector.shape_cast %63 : vector<1x1x512xf32> to vector<1x512xf32>
    %65 = vector.broadcast %64 : vector<1x512xf32> to vector<16x512xf32>
    %66 = arith.mulf %57, %65 : vector<16x512xf32>
    %67 = arith.addf %56, %66 : vector<16x512xf32>
    %c7 = arith.constant 7 : index
    %c64_44 = arith.constant 64 : index
    %68 = vector.load %arg9[%c7, %c64_44] : memref<32x768xf32, #tpu.memory_space<vmem>>, vector<16x512xf32>
    %c0_45 = arith.constant 0 : index
    %c5 = arith.constant 5 : index
    %c0_46 = arith.constant 0 : index
    %69 = vector.load %arg2[%c0_45, %c5, %c0_46] : memref<2x25x512xf32, #tpu.memory_space<vmem>>, vector<1x1x512xf32>
    %70 = vector.shape_cast %69 : vector<1x1x512xf32> to vector<1x512xf32>
    %71 = vector.broadcast %70 : vector<1x512xf32> to vector<16x512xf32>
    %72 = arith.mulf %68, %71 : vector<16x512xf32>
    %73 = arith.addf %62, %72 : vector<16x512xf32>
    %c1_47 = arith.constant 1 : index
    %c5_48 = arith.constant 5 : index
    %c0_49 = arith.constant 0 : index
    %74 = vector.load %arg2[%c1_47, %c5_48, %c0_49] : memref<2x25x512xf32, #tpu.memory_space<vmem>>, vector<1x1x512xf32>
    %75 = vector.shape_cast %74 : vector<1x1x512xf32> to vector<1x512xf32>
    %76 = vector.broadcast %75 : vector<1x512xf32> to vector<16x512xf32>
    %77 = arith.mulf %68, %76 : vector<16x512xf32>
    %78 = arith.addf %67, %77 : vector<16x512xf32>
    %c7_50 = arith.constant 7 : index
    %c96_51 = arith.constant 96 : index
    %79 = vector.load %arg9[%c7_50, %c96_51] : memref<32x768xf32, #tpu.memory_space<vmem>>, vector<16x512xf32>
    %c0_52 = arith.constant 0 : index
    %c6_53 = arith.constant 6 : index
    %c0_54 = arith.constant 0 : index
    %80 = vector.load %arg2[%c0_52, %c6_53, %c0_54] : memref<2x25x512xf32, #tpu.memory_space<vmem>>, vector<1x1x512xf32>
    %81 = vector.shape_cast %80 : vector<1x1x512xf32> to vector<1x512xf32>
    %82 = vector.broadcast %81 : vector<1x512xf32> to vector<16x512xf32>
    %83 = arith.mulf %79, %82 : vector<16x512xf32>
    %84 = arith.addf %73, %83 : vector<16x512xf32>
    %c1_55 = arith.constant 1 : index
    %c6_56 = arith.constant 6 : index
    %c0_57 = arith.constant 0 : index
    %85 = vector.load %arg2[%c1_55, %c6_56, %c0_57] : memref<2x25x512xf32, #tpu.memory_space<vmem>>, vector<1x1x512xf32>
    %86 = vector.shape_cast %85 : vector<1x1x512xf32> to vector<1x512xf32>
    %87 = vector.broadcast %86 : vector<1x512xf32> to vector<16x512xf32>
    %88 = arith.mulf %79, %87 : vector<16x512xf32>
    %89 = arith.addf %78, %88 : vector<16x512xf32>
    %c7_58 = arith.constant 7 : index
    %c128_59 = arith.constant 128 : index
    %90 = vector.load %arg9[%c7_58, %c128_59] : memref<32x768xf32, #tpu.memory_space<vmem>>, vector<16x512xf32>
    %c0_60 = arith.constant 0 : index
    %c7_61 = arith.constant 7 : index
    %c0_62 = arith.constant 0 : index
    %91 = vector.load %arg2[%c0_60, %c7_61, %c0_62] : memref<2x25x512xf32, #tpu.memory_space<vmem>>, vector<1x1x512xf32>
    %92 = vector.shape_cast %91 : vector<1x1x512xf32> to vector<1x512xf32>
    %93 = vector.broadcast %92 : vector<1x512xf32> to vector<16x512xf32>
    %94 = arith.mulf %90, %93 : vector<16x512xf32>
    %95 = arith.addf %84, %94 : vector<16x512xf32>
    %c1_63 = arith.constant 1 : index
    %c7_64 = arith.constant 7 : index
    %c0_65 = arith.constant 0 : index
    %96 = vector.load %arg2[%c1_63, %c7_64, %c0_65] : memref<2x25x512xf32, #tpu.memory_space<vmem>>, vector<1x1x512xf32>
    %97 = vector.shape_cast %96 : vector<1x1x512xf32> to vector<1x512xf32>
    %98 = vector.broadcast %97 : vector<1x512xf32> to vector<16x512xf32>
    %99 = arith.mulf %90, %98 : vector<16x512xf32>
    %100 = arith.addf %89, %99 : vector<16x512xf32>
    %c7_66 = arith.constant 7 : index
    %c160_67 = arith.constant 160 : index
    %101 = vector.load %arg9[%c7_66, %c160_67] : memref<32x768xf32, #tpu.memory_space<vmem>>, vector<16x512xf32>
    %c0_68 = arith.constant 0 : index
    %c8_69 = arith.constant 8 : index
    %c0_70 = arith.constant 0 : index
    %102 = vector.load %arg2[%c0_68, %c8_69, %c0_70] : memref<2x25x512xf32, #tpu.memory_space<vmem>>, vector<1x1x512xf32>
    %103 = vector.shape_cast %102 : vector<1x1x512xf32> to vector<1x512xf32>
    %104 = vector.broadcast %103 : vector<1x512xf32> to vector<16x512xf32>
    %105 = arith.mulf %101, %104 : vector<16x512xf32>
    %106 = arith.addf %95, %105 : vector<16x512xf32>
    %c1_71 = arith.constant 1 : index
    %c8_72 = arith.constant 8 : index
    %c0_73 = arith.constant 0 : index
    %107 = vector.load %arg2[%c1_71, %c8_72, %c0_73] : memref<2x25x512xf32, #tpu.memory_space<vmem>>, vector<1x1x512xf32>
    %108 = vector.shape_cast %107 : vector<1x1x512xf32> to vector<1x512xf32>
    %109 = vector.broadcast %108 : vector<1x512xf32> to vector<16x512xf32>
    %110 = arith.mulf %101, %109 : vector<16x512xf32>
    %111 = arith.addf %100, %110 : vector<16x512xf32>
    %c7_74 = arith.constant 7 : index
    %c192_75 = arith.constant 192 : index
    %112 = vector.load %arg9[%c7_74, %c192_75] : memref<32x768xf32, #tpu.memory_space<vmem>>, vector<16x512xf32>
    %c0_76 = arith.constant 0 : index
    %c9 = arith.constant 9 : index
    %c0_77 = arith.constant 0 : index
    %113 = vector.load %arg2[%c0_76, %c9, %c0_77] : memref<2x25x512xf32, #tpu.memory_space<vmem>>, vector<1x1x512xf32>
    %114 = vector.shape_cast %113 : vector<1x1x512xf32> to vector<1x512xf32>
    %115 = vector.broadcast %114 : vector<1x512xf32> to vector<16x512xf32>
    %116 = arith.mulf %112, %115 : vector<16x512xf32>
    %117 = arith.addf %106, %116 : vector<16x512xf32>
    %c1_78 = arith.constant 1 : index
    %c9_79 = arith.constant 9 : index
    %c0_80 = arith.constant 0 : index
    %118 = vector.load %arg2[%c1_78, %c9_79, %c0_80] : memref<2x25x512xf32, #tpu.memory_space<vmem>>, vector<1x1x512xf32>
    %119 = vector.shape_cast %118 : vector<1x1x512xf32> to vector<1x512xf32>
    %120 = vector.broadcast %119 : vector<1x512xf32> to vector<16x512xf32>
    %121 = arith.mulf %112, %120 : vector<16x512xf32>
    %122 = arith.addf %111, %121 : vector<16x512xf32>
    %c8_81 = arith.constant 8 : index
    %c64_82 = arith.constant 64 : index
    %123 = vector.load %arg9[%c8_81, %c64_82] : memref<32x768xf32, #tpu.memory_space<vmem>>, vector<16x512xf32>
    %c0_83 = arith.constant 0 : index
    %c10 = arith.constant 10 : index
    %c0_84 = arith.constant 0 : index
    %124 = vector.load %arg2[%c0_83, %c10, %c0_84] : memref<2x25x512xf32, #tpu.memory_space<vmem>>, vector<1x1x512xf32>
    %125 = vector.shape_cast %124 : vector<1x1x512xf32> to vector<1x512xf32>
    %126 = vector.broadcast %125 : vector<1x512xf32> to vector<16x512xf32>
    %127 = arith.mulf %123, %126 : vector<16x512xf32>
    %128 = arith.addf %117, %127 : vector<16x512xf32>
    %c1_85 = arith.constant 1 : index
    %c10_86 = arith.constant 10 : index
    %c0_87 = arith.constant 0 : index
    %129 = vector.load %arg2[%c1_85, %c10_86, %c0_87] : memref<2x25x512xf32, #tpu.memory_space<vmem>>, vector<1x1x512xf32>
    %130 = vector.shape_cast %129 : vector<1x1x512xf32> to vector<1x512xf32>
    %131 = vector.broadcast %130 : vector<1x512xf32> to vector<16x512xf32>
    %132 = arith.mulf %123, %131 : vector<16x512xf32>
    %133 = arith.addf %122, %132 : vector<16x512xf32>
    %c8_88 = arith.constant 8 : index
    %c96_89 = arith.constant 96 : index
    %134 = vector.load %arg9[%c8_88, %c96_89] : memref<32x768xf32, #tpu.memory_space<vmem>>, vector<16x512xf32>
    %c0_90 = arith.constant 0 : index
    %c11 = arith.constant 11 : index
    %c0_91 = arith.constant 0 : index
    %135 = vector.load %arg2[%c0_90, %c11, %c0_91] : memref<2x25x512xf32, #tpu.memory_space<vmem>>, vector<1x1x512xf32>
    %136 = vector.shape_cast %135 : vector<1x1x512xf32> to vector<1x512xf32>
    %137 = vector.broadcast %136 : vector<1x512xf32> to vector<16x512xf32>
    %138 = arith.mulf %134, %137 : vector<16x512xf32>
    %139 = arith.addf %128, %138 : vector<16x512xf32>
    %c1_92 = arith.constant 1 : index
    %c11_93 = arith.constant 11 : index
    %c0_94 = arith.constant 0 : index
    %140 = vector.load %arg2[%c1_92, %c11_93, %c0_94] : memref<2x25x512xf32, #tpu.memory_space<vmem>>, vector<1x1x512xf32>
    %141 = vector.shape_cast %140 : vector<1x1x512xf32> to vector<1x512xf32>
    %142 = vector.broadcast %141 : vector<1x512xf32> to vector<16x512xf32>
    %143 = arith.mulf %134, %142 : vector<16x512xf32>
    %144 = arith.addf %133, %143 : vector<16x512xf32>
    %c8_95 = arith.constant 8 : index
    %c128_96 = arith.constant 128 : index
    %145 = vector.load %arg9[%c8_95, %c128_96] : memref<32x768xf32, #tpu.memory_space<vmem>>, vector<16x512xf32>
    %c0_97 = arith.constant 0 : index
    %c12 = arith.constant 12 : index
    %c0_98 = arith.constant 0 : index
    %146 = vector.load %arg2[%c0_97, %c12, %c0_98] : memref<2x25x512xf32, #tpu.memory_space<vmem>>, vector<1x1x512xf32>
    %147 = vector.shape_cast %146 : vector<1x1x512xf32> to vector<1x512xf32>
    %148 = vector.broadcast %147 : vector<1x512xf32> to vector<16x512xf32>
    %149 = arith.mulf %145, %148 : vector<16x512xf32>
    %150 = arith.addf %139, %149 : vector<16x512xf32>
    %c1_99 = arith.constant 1 : index
    %c12_100 = arith.constant 12 : index
    %c0_101 = arith.constant 0 : index
    %151 = vector.load %arg2[%c1_99, %c12_100, %c0_101] : memref<2x25x512xf32, #tpu.memory_space<vmem>>, vector<1x1x512xf32>
    %152 = vector.shape_cast %151 : vector<1x1x512xf32> to vector<1x512xf32>
    %153 = vector.broadcast %152 : vector<1x512xf32> to vector<16x512xf32>
    %154 = arith.mulf %145, %153 : vector<16x512xf32>
    %155 = arith.addf %144, %154 : vector<16x512xf32>
    %c8_102 = arith.constant 8 : index
    %c160_103 = arith.constant 160 : index
    %156 = vector.load %arg9[%c8_102, %c160_103] : memref<32x768xf32, #tpu.memory_space<vmem>>, vector<16x512xf32>
    %c0_104 = arith.constant 0 : index
    %c13 = arith.constant 13 : index
    %c0_105 = arith.constant 0 : index
    %157 = vector.load %arg2[%c0_104, %c13, %c0_105] : memref<2x25x512xf32, #tpu.memory_space<vmem>>, vector<1x1x512xf32>
    %158 = vector.shape_cast %157 : vector<1x1x512xf32> to vector<1x512xf32>
    %159 = vector.broadcast %158 : vector<1x512xf32> to vector<16x512xf32>
    %160 = arith.mulf %156, %159 : vector<16x512xf32>
    %161 = arith.addf %150, %160 : vector<16x512xf32>
    %c1_106 = arith.constant 1 : index
    %c13_107 = arith.constant 13 : index
    %c0_108 = arith.constant 0 : index
    %162 = vector.load %arg2[%c1_106, %c13_107, %c0_108] : memref<2x25x512xf32, #tpu.memory_space<vmem>>, vector<1x1x512xf32>
    %163 = vector.shape_cast %162 : vector<1x1x512xf32> to vector<1x512xf32>
    %164 = vector.broadcast %163 : vector<1x512xf32> to vector<16x512xf32>
    %165 = arith.mulf %156, %164 : vector<16x512xf32>
    %166 = arith.addf %155, %165 : vector<16x512xf32>
    %c8_109 = arith.constant 8 : index
    %c192_110 = arith.constant 192 : index
    %167 = vector.load %arg9[%c8_109, %c192_110] : memref<32x768xf32, #tpu.memory_space<vmem>>, vector<16x512xf32>
    %c0_111 = arith.constant 0 : index
    %c14 = arith.constant 14 : index
    %c0_112 = arith.constant 0 : index
    %168 = vector.load %arg2[%c0_111, %c14, %c0_112] : memref<2x25x512xf32, #tpu.memory_space<vmem>>, vector<1x1x512xf32>
    %169 = vector.shape_cast %168 : vector<1x1x512xf32> to vector<1x512xf32>
    %170 = vector.broadcast %169 : vector<1x512xf32> to vector<16x512xf32>
    %171 = arith.mulf %167, %170 : vector<16x512xf32>
    %172 = arith.addf %161, %171 : vector<16x512xf32>
    %c1_113 = arith.constant 1 : index
    %c14_114 = arith.constant 14 : index
    %c0_115 = arith.constant 0 : index
    %173 = vector.load %arg2[%c1_113, %c14_114, %c0_115] : memref<2x25x512xf32, #tpu.memory_space<vmem>>, vector<1x1x512xf32>
    %174 = vector.shape_cast %173 : vector<1x1x512xf32> to vector<1x512xf32>
    %175 = vector.broadcast %174 : vector<1x512xf32> to vector<16x512xf32>
    %176 = arith.mulf %167, %175 : vector<16x512xf32>
    %177 = arith.addf %166, %176 : vector<16x512xf32>
    %c9_116 = arith.constant 9 : index
    %c64_117 = arith.constant 64 : index
    %178 = vector.load %arg9[%c9_116, %c64_117] : memref<32x768xf32, #tpu.memory_space<vmem>>, vector<16x512xf32>
    %c0_118 = arith.constant 0 : index
    %c15 = arith.constant 15 : index
    %c0_119 = arith.constant 0 : index
    %179 = vector.load %arg2[%c0_118, %c15, %c0_119] : memref<2x25x512xf32, #tpu.memory_space<vmem>>, vector<1x1x512xf32>
    %180 = vector.shape_cast %179 : vector<1x1x512xf32> to vector<1x512xf32>
    %181 = vector.broadcast %180 : vector<1x512xf32> to vector<16x512xf32>
    %182 = arith.mulf %178, %181 : vector<16x512xf32>
    %183 = arith.addf %172, %182 : vector<16x512xf32>
    %c1_120 = arith.constant 1 : index
    %c15_121 = arith.constant 15 : index
    %c0_122 = arith.constant 0 : index
    %184 = vector.load %arg2[%c1_120, %c15_121, %c0_122] : memref<2x25x512xf32, #tpu.memory_space<vmem>>, vector<1x1x512xf32>
    %185 = vector.shape_cast %184 : vector<1x1x512xf32> to vector<1x512xf32>
    %186 = vector.broadcast %185 : vector<1x512xf32> to vector<16x512xf32>
    %187 = arith.mulf %178, %186 : vector<16x512xf32>
    %188 = arith.addf %177, %187 : vector<16x512xf32>
    %c9_123 = arith.constant 9 : index
    %c96_124 = arith.constant 96 : index
    %189 = vector.load %arg9[%c9_123, %c96_124] : memref<32x768xf32, #tpu.memory_space<vmem>>, vector<16x512xf32>
    %c0_125 = arith.constant 0 : index
    %c16 = arith.constant 16 : index
    %c0_126 = arith.constant 0 : index
    %190 = vector.load %arg2[%c0_125, %c16, %c0_126] : memref<2x25x512xf32, #tpu.memory_space<vmem>>, vector<1x1x512xf32>
    %191 = vector.shape_cast %190 : vector<1x1x512xf32> to vector<1x512xf32>
    %192 = vector.broadcast %191 : vector<1x512xf32> to vector<16x512xf32>
    %193 = arith.mulf %189, %192 : vector<16x512xf32>
    %194 = arith.addf %183, %193 : vector<16x512xf32>
    %c1_127 = arith.constant 1 : index
    %c16_128 = arith.constant 16 : index
    %c0_129 = arith.constant 0 : index
    %195 = vector.load %arg2[%c1_127, %c16_128, %c0_129] : memref<2x25x512xf32, #tpu.memory_space<vmem>>, vector<1x1x512xf32>
    %196 = vector.shape_cast %195 : vector<1x1x512xf32> to vector<1x512xf32>
    %197 = vector.broadcast %196 : vector<1x512xf32> to vector<16x512xf32>
    %198 = arith.mulf %189, %197 : vector<16x512xf32>
    %199 = arith.addf %188, %198 : vector<16x512xf32>
    %c9_130 = arith.constant 9 : index
    %c128_131 = arith.constant 128 : index
    %200 = vector.load %arg9[%c9_130, %c128_131] : memref<32x768xf32, #tpu.memory_space<vmem>>, vector<16x512xf32>
    %c0_132 = arith.constant 0 : index
    %c17 = arith.constant 17 : index
    %c0_133 = arith.constant 0 : index
    %201 = vector.load %arg2[%c0_132, %c17, %c0_133] : memref<2x25x512xf32, #tpu.memory_space<vmem>>, vector<1x1x512xf32>
    %202 = vector.shape_cast %201 : vector<1x1x512xf32> to vector<1x512xf32>
    %203 = vector.broadcast %202 : vector<1x512xf32> to vector<16x512xf32>
    %204 = arith.mulf %200, %203 : vector<16x512xf32>
    %205 = arith.addf %194, %204 : vector<16x512xf32>
    %c1_134 = arith.constant 1 : index
    %c17_135 = arith.constant 17 : index
    %c0_136 = arith.constant 0 : index
    %206 = vector.load %arg2[%c1_134, %c17_135, %c0_136] : memref<2x25x512xf32, #tpu.memory_space<vmem>>, vector<1x1x512xf32>
    %207 = vector.shape_cast %206 : vector<1x1x512xf32> to vector<1x512xf32>
    %208 = vector.broadcast %207 : vector<1x512xf32> to vector<16x512xf32>
    %209 = arith.mulf %200, %208 : vector<16x512xf32>
    %210 = arith.addf %199, %209 : vector<16x512xf32>
    %c9_137 = arith.constant 9 : index
    %c160_138 = arith.constant 160 : index
    %211 = vector.load %arg9[%c9_137, %c160_138] : memref<32x768xf32, #tpu.memory_space<vmem>>, vector<16x512xf32>
    %c0_139 = arith.constant 0 : index
    %c18 = arith.constant 18 : index
    %c0_140 = arith.constant 0 : index
    %212 = vector.load %arg2[%c0_139, %c18, %c0_140] : memref<2x25x512xf32, #tpu.memory_space<vmem>>, vector<1x1x512xf32>
    %213 = vector.shape_cast %212 : vector<1x1x512xf32> to vector<1x512xf32>
    %214 = vector.broadcast %213 : vector<1x512xf32> to vector<16x512xf32>
    %215 = arith.mulf %211, %214 : vector<16x512xf32>
    %216 = arith.addf %205, %215 : vector<16x512xf32>
    %c1_141 = arith.constant 1 : index
    %c18_142 = arith.constant 18 : index
    %c0_143 = arith.constant 0 : index
    %217 = vector.load %arg2[%c1_141, %c18_142, %c0_143] : memref<2x25x512xf32, #tpu.memory_space<vmem>>, vector<1x1x512xf32>
    %218 = vector.shape_cast %217 : vector<1x1x512xf32> to vector<1x512xf32>
    %219 = vector.broadcast %218 : vector<1x512xf32> to vector<16x512xf32>
    %220 = arith.mulf %211, %219 : vector<16x512xf32>
    %221 = arith.addf %210, %220 : vector<16x512xf32>
    %c9_144 = arith.constant 9 : index
    %c192_145 = arith.constant 192 : index
    %222 = vector.load %arg9[%c9_144, %c192_145] : memref<32x768xf32, #tpu.memory_space<vmem>>, vector<16x512xf32>
    %c0_146 = arith.constant 0 : index
    %c19 = arith.constant 19 : index
    %c0_147 = arith.constant 0 : index
    %223 = vector.load %arg2[%c0_146, %c19, %c0_147] : memref<2x25x512xf32, #tpu.memory_space<vmem>>, vector<1x1x512xf32>
    %224 = vector.shape_cast %223 : vector<1x1x512xf32> to vector<1x512xf32>
    %225 = vector.broadcast %224 : vector<1x512xf32> to vector<16x512xf32>
    %226 = arith.mulf %222, %225 : vector<16x512xf32>
    %227 = arith.addf %216, %226 : vector<16x512xf32>
    %c1_148 = arith.constant 1 : index
    %c19_149 = arith.constant 19 : index
    %c0_150 = arith.constant 0 : index
    %228 = vector.load %arg2[%c1_148, %c19_149, %c0_150] : memref<2x25x512xf32, #tpu.memory_space<vmem>>, vector<1x1x512xf32>
    %229 = vector.shape_cast %228 : vector<1x1x512xf32> to vector<1x512xf32>
    %230 = vector.broadcast %229 : vector<1x512xf32> to vector<16x512xf32>
    %231 = arith.mulf %222, %230 : vector<16x512xf32>
    %232 = arith.addf %221, %231 : vector<16x512xf32>
    %c10_151 = arith.constant 10 : index
    %c64_152 = arith.constant 64 : index
    %233 = vector.load %arg9[%c10_151, %c64_152] : memref<32x768xf32, #tpu.memory_space<vmem>>, vector<16x512xf32>
    %c0_153 = arith.constant 0 : index
    %c20 = arith.constant 20 : index
    %c0_154 = arith.constant 0 : index
    %234 = vector.load %arg2[%c0_153, %c20, %c0_154] : memref<2x25x512xf32, #tpu.memory_space<vmem>>, vector<1x1x512xf32>
    %235 = vector.shape_cast %234 : vector<1x1x512xf32> to vector<1x512xf32>
    %236 = vector.broadcast %235 : vector<1x512xf32> to vector<16x512xf32>
    %237 = arith.mulf %233, %236 : vector<16x512xf32>
    %238 = arith.addf %227, %237 : vector<16x512xf32>
    %c1_155 = arith.constant 1 : index
    %c20_156 = arith.constant 20 : index
    %c0_157 = arith.constant 0 : index
    %239 = vector.load %arg2[%c1_155, %c20_156, %c0_157] : memref<2x25x512xf32, #tpu.memory_space<vmem>>, vector<1x1x512xf32>
    %240 = vector.shape_cast %239 : vector<1x1x512xf32> to vector<1x512xf32>
    %241 = vector.broadcast %240 : vector<1x512xf32> to vector<16x512xf32>
    %242 = arith.mulf %233, %241 : vector<16x512xf32>
    %243 = arith.addf %232, %242 : vector<16x512xf32>
    %c10_158 = arith.constant 10 : index
    %c96_159 = arith.constant 96 : index
    %244 = vector.load %arg9[%c10_158, %c96_159] : memref<32x768xf32, #tpu.memory_space<vmem>>, vector<16x512xf32>
    %c0_160 = arith.constant 0 : index
    %c21 = arith.constant 21 : index
    %c0_161 = arith.constant 0 : index
    %245 = vector.load %arg2[%c0_160, %c21, %c0_161] : memref<2x25x512xf32, #tpu.memory_space<vmem>>, vector<1x1x512xf32>
    %246 = vector.shape_cast %245 : vector<1x1x512xf32> to vector<1x512xf32>
    %247 = vector.broadcast %246 : vector<1x512xf32> to vector<16x512xf32>
    %248 = arith.mulf %244, %247 : vector<16x512xf32>
    %249 = arith.addf %238, %248 : vector<16x512xf32>
    %c1_162 = arith.constant 1 : index
    %c21_163 = arith.constant 21 : index
    %c0_164 = arith.constant 0 : index
    %250 = vector.load %arg2[%c1_162, %c21_163, %c0_164] : memref<2x25x512xf32, #tpu.memory_space<vmem>>, vector<1x1x512xf32>
    %251 = vector.shape_cast %250 : vector<1x1x512xf32> to vector<1x512xf32>
    %252 = vector.broadcast %251 : vector<1x512xf32> to vector<16x512xf32>
    %253 = arith.mulf %244, %252 : vector<16x512xf32>
    %254 = arith.addf %243, %253 : vector<16x512xf32>
    %c10_165 = arith.constant 10 : index
    %c128_166 = arith.constant 128 : index
    %255 = vector.load %arg9[%c10_165, %c128_166] : memref<32x768xf32, #tpu.memory_space<vmem>>, vector<16x512xf32>
    %c0_167 = arith.constant 0 : index
    %c22 = arith.constant 22 : index
    %c0_168 = arith.constant 0 : index
    %256 = vector.load %arg2[%c0_167, %c22, %c0_168] : memref<2x25x512xf32, #tpu.memory_space<vmem>>, vector<1x1x512xf32>
    %257 = vector.shape_cast %256 : vector<1x1x512xf32> to vector<1x512xf32>
    %258 = vector.broadcast %257 : vector<1x512xf32> to vector<16x512xf32>
    %259 = arith.mulf %255, %258 : vector<16x512xf32>
    %260 = arith.addf %249, %259 : vector<16x512xf32>
    %c1_169 = arith.constant 1 : index
    %c22_170 = arith.constant 22 : index
    %c0_171 = arith.constant 0 : index
    %261 = vector.load %arg2[%c1_169, %c22_170, %c0_171] : memref<2x25x512xf32, #tpu.memory_space<vmem>>, vector<1x1x512xf32>
    %262 = vector.shape_cast %261 : vector<1x1x512xf32> to vector<1x512xf32>
    %263 = vector.broadcast %262 : vector<1x512xf32> to vector<16x512xf32>
    %264 = arith.mulf %255, %263 : vector<16x512xf32>
    %265 = arith.addf %254, %264 : vector<16x512xf32>
    %c10_172 = arith.constant 10 : index
    %c160_173 = arith.constant 160 : index
    %266 = vector.load %arg9[%c10_172, %c160_173] : memref<32x768xf32, #tpu.memory_space<vmem>>, vector<16x512xf32>
    %c0_174 = arith.constant 0 : index
    %c23 = arith.constant 23 : index
    %c0_175 = arith.constant 0 : index
    %267 = vector.load %arg2[%c0_174, %c23, %c0_175] : memref<2x25x512xf32, #tpu.memory_space<vmem>>, vector<1x1x512xf32>
    %268 = vector.shape_cast %267 : vector<1x1x512xf32> to vector<1x512xf32>
    %269 = vector.broadcast %268 : vector<1x512xf32> to vector<16x512xf32>
    %270 = arith.mulf %266, %269 : vector<16x512xf32>
    %271 = arith.addf %260, %270 : vector<16x512xf32>
    %c1_176 = arith.constant 1 : index
    %c23_177 = arith.constant 23 : index
    %c0_178 = arith.constant 0 : index
    %272 = vector.load %arg2[%c1_176, %c23_177, %c0_178] : memref<2x25x512xf32, #tpu.memory_space<vmem>>, vector<1x1x512xf32>
    %273 = vector.shape_cast %272 : vector<1x1x512xf32> to vector<1x512xf32>
    %274 = vector.broadcast %273 : vector<1x512xf32> to vector<16x512xf32>
    %275 = arith.mulf %266, %274 : vector<16x512xf32>
    %276 = arith.addf %265, %275 : vector<16x512xf32>
    %c10_179 = arith.constant 10 : index
    %c192_180 = arith.constant 192 : index
    %277 = vector.load %arg9[%c10_179, %c192_180] : memref<32x768xf32, #tpu.memory_space<vmem>>, vector<16x512xf32>
    %c0_181 = arith.constant 0 : index
    %c24_182 = arith.constant 24 : index
    %c0_183 = arith.constant 0 : index
    %278 = vector.load %arg2[%c0_181, %c24_182, %c0_183] : memref<2x25x512xf32, #tpu.memory_space<vmem>>, vector<1x1x512xf32>
    %279 = vector.shape_cast %278 : vector<1x1x512xf32> to vector<1x512xf32>
    %280 = vector.broadcast %279 : vector<1x512xf32> to vector<16x512xf32>
    %281 = arith.mulf %277, %280 : vector<16x512xf32>
    %282 = arith.addf %271, %281 : vector<16x512xf32>
    %c1_184 = arith.constant 1 : index
    %c24_185 = arith.constant 24 : index
    %c0_186 = arith.constant 0 : index
    %283 = vector.load %arg2[%c1_184, %c24_185, %c0_186] : memref<2x25x512xf32, #tpu.memory_space<vmem>>, vector<1x1x512xf32>
    %284 = vector.shape_cast %283 : vector<1x1x512xf32> to vector<1x512xf32>
    %285 = vector.broadcast %284 : vector<1x512xf32> to vector<16x512xf32>
    %286 = arith.mulf %277, %285 : vector<16x512xf32>
    %287 = arith.addf %276, %286 : vector<16x512xf32>
    %c0_187 = arith.constant 0 : index
    %c0_188 = arith.constant 0 : index
    %c0_189 = arith.constant 0 : index
    %288 = vector.load %arg3[%c0_187, %c0_188, %c0_189] : memref<2x1x512xf32, #tpu.memory_space<vmem>>, vector<1x1x512xf32>
    %289 = vector.shape_cast %288 : vector<1x1x512xf32> to vector<1x512xf32>
    %290 = vector.broadcast %289 : vector<1x512xf32> to vector<16x512xf32>
    %291 = arith.addf %282, %290 : vector<16x512xf32>
    %cst_190 = arith.constant 0.000000e+00 : f32
    %292 = vector.broadcast %cst_190 : f32 to vector<16x512xf32>
    %293 = arith.maximumf %291, %292 : vector<16x512xf32>
    %294 = arith.truncf %293 : vector<16x512xf32> to vector<16x512xbf16>
    %c0_191 = arith.constant 0 : index
    %c0_192 = arith.constant 0 : index
    %c0_193 = arith.constant 0 : index
    %295 = vector.load %arg4[%c0_191, %c0_192, %c0_193] : memref<2x512x512xbf16, #tpu.memory_space<vmem>>, vector<1x512x512xbf16>
    %296 = vector.shape_cast %295 : vector<1x512x512xbf16> to vector<512x512xbf16>
    %cst_194 = arith.constant dense<0.000000e+00> : vector<16x512xf32>
    %297 = tpu.matmul %294, %296, %cst_194 {dimension_numbers = #tpu.dot_dimension_numbers<[1], [0], [0], [1], [0, 0, 1, 1], [], []>} : vector<16x512xbf16>, vector<512x512xbf16>, vector<16x512xf32> -> vector<16x512xf32>
    %c0_195 = arith.constant 0 : index
    %c0_196 = arith.constant 0 : index
    %c0_197 = arith.constant 0 : index
    %298 = vector.load %arg5[%c0_195, %c0_196, %c0_197] : memref<2x1x512xf32, #tpu.memory_space<vmem>>, vector<1x1x512xf32>
    %299 = vector.shape_cast %298 : vector<1x1x512xf32> to vector<1x512xf32>
    %300 = vector.broadcast %299 : vector<1x512xf32> to vector<16x512xf32>
    %301 = arith.addf %297, %300 : vector<16x512xf32>
    %cst_198 = arith.constant 0.000000e+00 : f32
    %302 = vector.broadcast %cst_198 : f32 to vector<16x512xf32>
    %303 = arith.maximumf %301, %302 : vector<16x512xf32>
    %304 = arith.truncf %303 : vector<16x512xf32> to vector<16x512xbf16>
    %c0_199 = arith.constant 0 : index
    %c0_200 = arith.constant 0 : index
    %c0_201 = arith.constant 0 : index
    %305 = vector.load %arg6[%c0_199, %c0_200, %c0_201] : memref<2x512x128xbf16, #tpu.memory_space<vmem>>, vector<1x512x128xbf16>
    %306 = vector.shape_cast %305 : vector<1x512x128xbf16> to vector<512x128xbf16>
    %cst_202 = arith.constant dense<0.000000e+00> : vector<16x128xf32>
    %307 = tpu.matmul %304, %306, %cst_202 {dimension_numbers = #tpu.dot_dimension_numbers<[1], [0], [0], [1], [0, 0, 1, 1], [], []>} : vector<16x512xbf16>, vector<512x128xbf16>, vector<16x128xf32> -> vector<16x128xf32>
    %c0_203 = arith.constant 0 : index
    %c0_204 = arith.constant 0 : index
    %c0_205 = arith.constant 0 : index
    %308 = vector.load %arg7[%c0_203, %c0_204, %c0_205] : memref<2x1x128xf32, #tpu.memory_space<vmem>>, vector<1x1x128xf32>
    %309 = vector.shape_cast %308 : vector<1x1x128xf32> to vector<1x128xf32>
    %310 = vector.broadcast %309 : vector<1x128xf32> to vector<16x128xf32>
    %311 = arith.addf %307, %310 : vector<16x128xf32>
    %c0_206 = arith.constant 0 : index
    %c0_207 = arith.constant 0 : index
    %c0_208 = arith.constant 0 : index
    %c0_209 = arith.constant 0 : index
    %312 = vector.load %arg8[%c0_206, %c0_207, %c0_208, %c0_209] : memref<1x2x16x128xf32, #tpu.memory_space<vmem>>, vector<1x1x16x128xf32>
    %313 = vector.shape_cast %312 : vector<1x1x16x128xf32> to vector<16x128xf32>
    %314 = vector.shape_cast %311 : vector<16x128xf32> to vector<1x1x16x128xf32>
    tpu.vector_store %arg8[%c0_206, %c0_207, %c0_208, %c0_209], %314 {strides = array<i32>} : memref<1x2x16x128xf32, #tpu.memory_space<vmem>>, vector<1x1x16x128xf32>,
    %c1_210 = arith.constant 1 : index
    %c0_211 = arith.constant 0 : index
    %c0_212 = arith.constant 0 : index
    %315 = vector.load %arg3[%c1_210, %c0_211, %c0_212] : memref<2x1x512xf32, #tpu.memory_space<vmem>>, vector<1x1x512xf32>
    %316 = vector.shape_cast %315 : vector<1x1x512xf32> to vector<1x512xf32>
    %317 = vector.broadcast %316 : vector<1x512xf32> to vector<16x512xf32>
    %318 = arith.addf %287, %317 : vector<16x512xf32>
    %cst_213 = arith.constant 0.000000e+00 : f32
    %319 = vector.broadcast %cst_213 : f32 to vector<16x512xf32>
    %320 = arith.maximumf %318, %319 : vector<16x512xf32>
    %321 = arith.truncf %320 : vector<16x512xf32> to vector<16x512xbf16>
    %c1_214 = arith.constant 1 : index
    %c0_215 = arith.constant 0 : index
    %c0_216 = arith.constant 0 : index
    %322 = vector.load %arg4[%c1_214, %c0_215, %c0_216] : memref<2x512x512xbf16, #tpu.memory_space<vmem>>, vector<1x512x512xbf16>
    %323 = vector.shape_cast %322 : vector<1x512x512xbf16> to vector<512x512xbf16>
    %cst_217 = arith.constant dense<0.000000e+00> : vector<16x512xf32>
    %324 = tpu.matmul %321, %323, %cst_217 {dimension_numbers = #tpu.dot_dimension_numbers<[1], [0], [0], [1], [0, 0, 1, 1], [], []>} : vector<16x512xbf16>, vector<512x512xbf16>, vector<16x512xf32> -> vector<16x512xf32>
    %c1_218 = arith.constant 1 : index
    %c0_219 = arith.constant 0 : index
    %c0_220 = arith.constant 0 : index
    %325 = vector.load %arg5[%c1_218, %c0_219, %c0_220] : memref<2x1x512xf32, #tpu.memory_space<vmem>>, vector<1x1x512xf32>
    %326 = vector.shape_cast %325 : vector<1x1x512xf32> to vector<1x512xf32>
    %327 = vector.broadcast %326 : vector<1x512xf32> to vector<16x512xf32>
    %328 = arith.addf %324, %327 : vector<16x512xf32>
    %cst_221 = arith.constant 0.000000e+00 : f32
    %329 = vector.broadcast %cst_221 : f32 to vector<16x512xf32>
    %330 = arith.maximumf %328, %329 : vector<16x512xf32>
    %331 = arith.truncf %330 : vector<16x512xf32> to vector<16x512xbf16>
    %c1_222 = arith.constant 1 : index
    %c0_223 = arith.constant 0 : index
    %c0_224 = arith.constant 0 : index
    %332 = vector.load %arg6[%c1_222, %c0_223, %c0_224] : memref<2x512x128xbf16, #tpu.memory_space<vmem>>, vector<1x512x128xbf16>
    %333 = vector.shape_cast %332 : vector<1x512x128xbf16> to vector<512x128xbf16>
    %cst_225 = arith.constant dense<0.000000e+00> : vector<16x128xf32>
    %334 = tpu.matmul %331, %333, %cst_225 {dimension_numbers = #tpu.dot_dimension_numbers<[1], [0], [0], [1], [0, 0, 1, 1], [], []>} : vector<16x512xbf16>, vector<512x128xbf16>, vector<16x128xf32> -> vector<16x128xf32>
    %c1_226 = arith.constant 1 : index
    %c0_227 = arith.constant 0 : index
    %c0_228 = arith.constant 0 : index
    %335 = vector.load %arg7[%c1_226, %c0_227, %c0_228] : memref<2x1x128xf32, #tpu.memory_space<vmem>>, vector<1x1x128xf32>
    %336 = vector.shape_cast %335 : vector<1x1x128xf32> to vector<1x128xf32>
    %337 = vector.broadcast %336 : vector<1x128xf32> to vector<16x128xf32>
    %338 = arith.addf %334, %337 : vector<16x128xf32>
    %c0_229 = arith.constant 0 : index
    %c1_230 = arith.constant 1 : index
    %c0_231 = arith.constant 0 : index
    %c0_232 = arith.constant 0 : index
    %339 = vector.load %arg8[%c0_229, %c1_230, %c0_231, %c0_232] : memref<1x2x16x128xf32, #tpu.memory_space<vmem>>, vector<1x1x16x128xf32>
    %340 = vector.shape_cast %339 : vector<1x1x16x128xf32> to vector<16x128xf32>
    %341 = vector.shape_cast %338 : vector<16x128xf32> to vector<1x1x16x128xf32>
    tpu.vector_store %arg8[%c0_229, %c1_230, %c0_231, %c0_232], %341 {strides = array<i32>} : memref<1x2x16x128xf32, #tpu.memory_space<vmem>>, vector<1x1x16x128xf32>,
    return
  }
  func.func @transform_0(%arg0: i32) -> (i32, i32, i32) {
    %c0_i32 = arith.constant 0 : i32
    %c0_i32_0 = arith.constant 0 : i32
    %c0_i32_1 = arith.constant 0 : i32
    return %arg0, %c0_i32, %c0_i32_0 : i32, i32, i32
  }
  func.func @transform_1(%arg0: i32) -> (i32, i32, i32) {
    %c0_i32 = arith.constant 0 : i32
    %c0_i32_0 = arith.constant 0 : i32
    %c0_i32_1 = arith.constant 0 : i32
    %c0_i32_2 = arith.constant 0 : i32
    return %c0_i32, %c0_i32_0, %c0_i32_1 : i32, i32, i32
  }
  func.func @transform_2(%arg0: i32) -> (i32, i32, i32) {
    %c0_i32 = arith.constant 0 : i32
    %c0_i32_0 = arith.constant 0 : i32
    %c0_i32_1 = arith.constant 0 : i32
    %c0_i32_2 = arith.constant 0 : i32
    return %c0_i32, %c0_i32_0, %c0_i32_1 : i32, i32, i32
  }
  func.func @transform_3(%arg0: i32) -> (i32, i32, i32) {
    %c0_i32 = arith.constant 0 : i32
    %c0_i32_0 = arith.constant 0 : i32
    %c0_i32_1 = arith.constant 0 : i32
    %c0_i32_2 = arith.constant 0 : i32
    return %c0_i32, %c0_i32_0, %c0_i32_1 : i32, i32, i32
  }
  func.func @transform_4(%arg0: i32) -> (i32, i32, i32) {
    %c0_i32 = arith.constant 0 : i32
    %c0_i32_0 = arith.constant 0 : i32
    %c0_i32_1 = arith.constant 0 : i32
    %c0_i32_2 = arith.constant 0 : i32
    return %c0_i32, %c0_i32_0, %c0_i32_1 : i32, i32, i32
  }
  func.func @transform_5(%arg0: i32) -> (i32, i32, i32) {
    %c0_i32 = arith.constant 0 : i32
    %c0_i32_0 = arith.constant 0 : i32
    %c0_i32_1 = arith.constant 0 : i32
    %c0_i32_2 = arith.constant 0 : i32
    return %c0_i32, %c0_i32_0, %c0_i32_1 : i32, i32, i32
  }
  func.func @transform_6(%arg0: i32) -> (i32, i32, i32) {
    %c0_i32 = arith.constant 0 : i32
    %c0_i32_0 = arith.constant 0 : i32
    %c0_i32_1 = arith.constant 0 : i32
    %c0_i32_2 = arith.constant 0 : i32
    return %c0_i32, %c0_i32_0, %c0_i32_1 : i32, i32, i32
  }
  func.func @transform_7(%arg0: i32) -> (i32, i32, i32, i32) {
    %c0_i32 = arith.constant 0 : i32
    %c0_i32_0 = arith.constant 0 : i32
    %c0_i32_1 = arith.constant 0 : i32
    %c0_i32_2 = arith.constant 0 : i32
    return %arg0, %c0_i32, %c0_i32_0, %c0_i32_1 : i32, i32, i32, i32
  }
}

</mosaic_0001>

<bundles_post_ra>
// kernel: tpu_custom_call.1
= control target key start
LH: loop header
LB: loop body
LE: loop exit
PB: predicated region body
PF: predicated region fallthrough
CT: control target
= control target key end

     0   :  { %12 = vsyncpa [#allocation4], 0  ;;  %s18188_s0 = inlined_call_operand.vmem [shape: f32[2,16,512], index: 0, kind: input, shape index: {}]   ;;  %s18189_s1 = inlined_call_operand.vmem [shape: f32[2,25,512], index: 1, kind: input, shape index: {}]   ;;  %s18190_s2 = inlined_call_operand.vmem [shape: f32[2,1,512], index: 2, kind: input, shape index: {}]   ;;  %s18191_s3 = inlined_call_operand.hbm [shape: bf16[2,512,512], index: 3, kind: input, shape index: {}]   ;;  %s18192_s4 = inlined_call_operand.vmem [shape: f32[2,1,512], index: 4, kind: input, shape index: {}]   ;;  %s18193_s5 = inlined_call_operand.hbm [shape: bf16[2,512,128], index: 5, kind: input, shape index: {}]   ;;  %s18194_s6 = inlined_call_operand.vmem [shape: f32[2,1,128], index: 6, kind: input, shape index: {}]   ;;  %s18195_s7 = inlined_call_operand.hbm [shape: f32[2,2,16,128], index: 7, kind: output, shape index: {}]  }
   0x1   :  { %13 = vsyncpa [#allocation7], 0 }
   0x2   :  { %14 = vsyncpa [#allocation5], 0 }
   0x3   :  { %16 = vsyncpa [#allocation5 + $0x1], 0  ;;  %s11336_s24 = smov 0   ;;  %s11338_s25 = smov 0  }
   0x4   :  { %s11340_s26 = smov 0   ;;  %s11342_s27 = smov 0  }
   0x5 LB: > { %s11357_s28 = sadd.s32 4294967295, %s11281_s27   ;;  %s9825_s29 = sadd.s32 4294967294, %s11281_s27   ;;  %s11281_s27 = sphi %s11342_s27, %s19773_s27   ;;  %s11277_s26 = sphi %s11340_s26, %s19772_s26   ;;  %s11273_s25 = sphi %s11338_s25, %s19771_s25   ;;  %s11269_s24 = sphi %s11336_s24, %s19770_s24  }
   0x6   : > { %s11361_s30 = sadd.s32 1, %s11281_s27   ;;  %s181_s8 = sadd.s32 1, %s11277_s26 }
   0x7   : > { %s178_s9 = ssub.s32 %s11281_s27, %s11361_s30  ;;  %p191_p0 = scmp.ne.s32.totalorder %s11277_s26, %s11273_s25 }
   0x8   : > { %p179_p1 = scmp.eq.s32.totalorder %s178_s9, 0  ;;  %p192_p2 = scmp.eq.s32.totalorder %s11357_s28, 1 }
   0x9   : > { %p197_p3 = scmp.ne.s32.totalorder %s11273_s25, %s11269_s24  ;;  %p198_p4 = scmp.eq.s32.totalorder %s9825_s29, 1 }
   0xa   : > { %s11372_s10 = scalar_select %p179_p1, %s11277_s26, %s181_s8  }
   0xb   : > { %p11374_p5 = por %p192_p2, %p191_p0  ;;  %p11378_p6 = por %p198_p4, %p197_p3 }
   0xc   : > { %18621 = sst [smem:[#allocation12_spill]] %s11372_s10  ;;  %p9826_p7 = scmp.ge.s32.totalorder %s11281_s27, 1 }
   0xd   : > { %s18622_s11 = scalar_select %p11374_p5, 1, 0 }
   0xe   : > { %s18623_s12 = scalar_select %p11378_p6, 1, 0 }
   0xf   : > { %p205_p8 = scmp.lt.s32.totalorder %s11281_s27, 3  ;;  %p18196_p9 = scmp.eq.s32.totalorder %s11357_s28, 0 }
  0x10   : > { %s11283_s14 = smov [#allocation3]   ;;  %s11284_s17 = smov [#allocation6]  }
  0x11   : > { %p11385_p10 = pnand %p9826_p7, %p205_p8  ;;  %s223_s15 = sshll.u32 %s11283_s14, 4  ;;  %s224_s15 = int_to_ptr.vmem [resolvable:$true] %s223_s15 }
  0x12   : > { %s239_s18 = sshll.u32 %s11284_s17, 4  ;;  %s11155_s21 = scalar_lea.hbm %s18191_s3, 32768  ;;  %s11397_s18 = int_to_ptr.vmem [resolvable:$true] %s239_s18 }
  0x13   : > { %s18624_s13 = scalar_select %p11385_p10, 1, 0 }
  0x14   : > { %p10349_p11 = pneg %p11385_p10  ;;  %p11156_p13 = scmp.ne.s32.totalorder %s18191_s3, %s11155_s21 }
  0x15   : > { %p11162_p3 = scmp.lt.u32.totalorder %s11155_s21, %s18191_s3 }
  0x16   : > { %p11393_p12 = pnand %p18196_p9, %p10349_p11 }
  0x18   : > { %p11157_p0 = pneg %p11393_p12 }
  0x1a   : > { %p11158_p1 = pnand %p11157_p0, %p11156_p13 }
  0x1c   : > { %p11159_p2 = pneg %p11158_p1 }
  0x1e   : > { %p11164_p4 = pnand %p11162_p3, %p11159_p2 }
  0x20   : > { %11167 = shalt.err (!%p11164_p4)
}
  0x21   : > { %s11168_s9 = scalar_lea.vmem %s224_s15, 32768  ;;  %p11176_p9 = scmp.lt.s32.totalorder %s224_s15, %s224_s15 }
  0x22   : > { %p11169_p7 = scmp.ne.s32.totalorder %s224_s15, %s11168_s9  ;;  %p11177_p6 = scmp.lt.s32.totalorder %s11168_s9, %s11168_s9 }
  0x24   : > { %p11171_p8 = pnand %p11169_p7, %p11157_p0  ;;  %p11178_p5 = por %p11177_p6, %p11176_p9 }
  0x26   : > { %p11172_p11 = pneg %p11171_p8 }
  0x28   : > { %p11179_p10 = pnand %p11178_p5, %p11172_p11 }
  0x2a   : > { %11182 = shalt.err (!%p11179_p10)
}
  0x2b   : > { %s11285_s14 = smov 256   ;;  %s11286_s17 = smov 16  }
  0x2c   : > { %10352 = dma.hbm_to_vmem [thread:$0]  (!%p11393_p12), %s18191_s3, 32768, %s224_s15, [#allocation4], %s11285_s14, %s11285_s14, %s11286_s17  }
  0x2d   : > { %s11183_s23 = scalar_lea.hbm %s18193_s5, 8192 }
  0x2e   : > { %p11184_p13 = scmp.ne.s32.totalorder %s18193_s5, %s11183_s23  ;;  %p11190_p9 = scmp.lt.u32.totalorder %s11183_s23, %s18193_s5 }
  0x30   : > { %p11186_p5 = pnand %p11184_p13, %p11157_p0 }
  0x32   : > { %p11187_p6 = pneg %p11186_p5 }
  0x34   : > { %p11192_p10 = pnand %p11190_p9, %p11187_p6 }
  0x36   : > { %11195 = shalt.err (!%p11192_p10)
}
  0x37   : > { %s11196_s15 = scalar_lea.vmem %s11397_s18, 8192  ;;  %p11204_p4 = scmp.lt.s32.totalorder %s11397_s18, %s11397_s18 }
  0x38   : > { %p11197_p1 = scmp.ne.s32.totalorder %s11397_s18, %s11196_s15  ;;  %p11205_p7 = scmp.lt.s32.totalorder %s11196_s15, %s11196_s15 }
  0x3a   : > { %p11199_p2 = pnand %p11197_p1, %p11157_p0  ;;  %p11206_p8 = por %p11205_p7, %p11204_p4 }
  0x3c   : > { %p11200_p3 = pneg %p11199_p2 }
  0x3e   : > { %p11207_p11 = pnand %p11206_p8, %p11200_p3 }
  0x40   : > { %11210 = shalt.err (!%p11207_p11)
}
  0x41   : > { %s11287_s10 = smov 64   ;;  %s11288_s14 = smov 4  }
  0x42   : > { %10355 = dma.hbm_to_vmem [thread:$0]  (!%p11393_p12), %s18193_s5, 8192, %s11397_s18, [#allocation7], %s11287_s10, %s11287_s10, %s11288_s14  }
  0x43   : > { %p18626_p13 = scmp.ne.s32.totalorder %s18624_s13, 0 }
  0x45   : > { %266 = sbr.rel (%p18626_p13) target bundleno = 2214 (0x8a6), region = 48 }
  0x4c   : > { %p18627_p0 = scmp.eq.s32.totalorder %s11357_s28, 0 }
  0x4e   : > { %11256 = dma.done.wait (%p18627_p0), [#allocation4], 32768   ;;  %p18628_p5 = pmov %p18627_p0 }
  0x4f   : > { %p18629_p6 = pmov %p18627_p0 }
  0x50   : > { %11258 = vsyncadd (%p18628_p5), [#allocation4], 4294934528 }
  0x51   : > { %11260 = dma.done.wait (%p18629_p6), [#allocation7], 8192   ;;  %p18630_p9 = pmov %p18627_p0 }
  0x52   : > { %v361_v0 = vlaneseq  ;;  %v11289_v1 = vmov 0.0   ;;  %p302_p12 = scmp.lt.s32.totalorder %s11357_s28, 1  ;;  %v359_v7 = vld [vmem:[%s18189_s1] ss:$8 sm:$0xf]  ;;  %s11290_s29 = smov 64  }
  0x53   : > { %11262 = vsyncadd (%p18630_p9), [#allocation7], 4294959104  ;;  %310 = vst [vmem:[#allocation2 + $0x10] sm:$0xff] %v11289_v1  ;;  %v9836_v13 = vld [vmem:[%s18189_s1 + $0x80] ss:$8 sm:$0xf] }
  0x54   : > { %309 = vst [vmem:[#allocation2 + $0x8] sm:$0xff] %v11289_v1  ;;  %311 = vst [vmem:[#allocation2 + $0x18] sm:$0xff] %v11289_v1  ;;  %v362_v2 = vshrl.u32 %v361_v0, 7  ;;  %s303_s13 = scalar_select %p302_p12, %s11357_s28, 1  ;;  %vm516_vm0 = vcmask 785408   ;;  %vm1014_vm1 = vcmask 261120  }
  0x55   : > { %312 = vst [vmem:[#allocation2 + $0x20] sm:$0xff] %v11289_v1  ;;  %315 = vst [vmem:[#allocation2 + $0x98] sm:$0xff] %v11289_v1  ;;  %v9837_v23 = vld [vmem:[%s18189_s1 + $0x1] ss:$8 sm:$0xf]  ;;  %s11291_s19 = smov 96  }
  0x56   : > { %316 = vst [vmem:[#allocation2 + $0xa0] sm:$0xff] %v11289_v1  ;;  %317 = vst [vmem:[#allocation2 + $0xa8] sm:$0xff] %v11289_v1  ;;  %v11458_v3 = vsub.s32 2, %v362_v2  ;;  %v11460_v4 = vsub.s32 0, %v362_v2  ;;  %s10217_s16 = sshll.u32 %s303_s13, 6  ;;  %v11462_v5 = vsub.s32 3, %v362_v2 }
  0x57   : > { %318 = vst [vmem:[#allocation2 + $0xb0] sm:$0xff] %v11289_v1  ;;  %321 = vst [vmem:[#allocation2 + $0x30] sm:$0xff] %v11289_v1  ;;  %v11464_v6 = vsub.s32 1, %v362_v2  ;;  %s306_s21 = scalar_lea.vmem %s18188_s0, %s10217_s16  ;;  %v9838_v28 = vld [vmem:[%s18189_s1 + $0x81] ss:$8 sm:$0xf] }
  0x58   : > { %322 = vst [vmem:[#allocation2 + $0x60] sm:$0xff] %v11289_v1  ;;  %325 = vst [vmem:[#allocation2 + $0x58] sm:$0xff] %v11289_v1  ;;  %v372_v8 = vrot.slane %v359_v7, %v11458_v3  ;;  %v364_v9 = vrot.slane %v359_v7, %v11460_v4  ;;  %v11474_v10 = vld [vmem:[%s306_s21 + $0x8] sm:$0xff]  ;;  %v376_v11 = vrot.slane %v359_v7, %v11462_v5  ;;  %v328_v14 = vld [vmem:[%s306_s21] sm:$0xff]  ;;  %s11292_s23 = smov 32   ;;  %vm1467_vm2 = vcmask 1046528  }
  0x59   : > { %326 = vst [vmem:[#allocation2 + $0x88] sm:$0xff] %v11289_v1  ;;  %320 = vst [vmem:[#allocation2] sm:$0xff] %v11289_v1  ;;  %v368_v12 = vrot.slane %v359_v7, %v11464_v6  ;;  %v11484_v15 = vld [vmem:[%s306_s21 + $0x18] sm:$0xff]  ;;  %v11486_v16 = vld [vmem:[%s306_s21 + $0x10] sm:$0xff]  ;;  %v434_v19 = vrot.slane %v9836_v13, %v11464_v6  ;;  %v430_v20 = vrot.slane %v9836_v13, %v11460_v4  ;;  %vm2853_vm3 = vcmask 1045504   ;;  %s299_s13 = sand.u32 1, %s11273_s25  }
  0x5a   : > { %323 = vst [vmem:[#allocation2 + $0x90] sm:$0xff] %v11289_v1  ;;  %324 = vst [vmem:[#allocation2 + $0x28] sm:$0xff] %v11289_v1  ;;  %381 = vrot.lane.b32.xlu1 %v372_v8, %s11290_s29  ;;  %377 = vrot.lane.b32.xlu0 %v364_v9, %s11290_s29  ;;  %v332_v17 = vld [vmem:[%s306_s21 + $0x20] sm:$0xff]  ;;  %v333_v18 = vld [vmem:[%s306_s21 + $0x28] sm:$0xff]  ;;  %v442_v24 = vrot.slane %v9836_v13, %v11462_v5  ;;  %v438_v25 = vrot.slane %v9836_v13, %v11458_v3  ;;  %vm4071_vm4 = vcmask 1044480   ;;  %vm385_vm5 = vcmask 523264  }
  0x5b   : > { %327 = vst [vmem:[#allocation2 + $0xb8] sm:$0xff] %v11289_v1  ;;  %18631 = vst [vmem:[#allocation13_spill] sm:$0xff] %v11458_v3  ;;  %v334_v21 = vld [vmem:[%s306_s21 + $0x30] sm:$0xff]  ;;  %v335_v22 = vld [vmem:[%s306_s21 + $0x38] sm:$0xff]  ;;  %v499_v26 = vrot.slane %v9837_v23, %v11464_v6  ;;  %v495_v27 = vrot.slane %v9837_v23, %v11460_v4  ;;  %v507_v29 = vrot.slane %v9837_v23, %v11462_v5  ;;  %vm5485_vm6 = vcmask 1043456   ;;  %s17706_s16 = sshll.u32 %s299_s13, 5 }
  0x5c   : > { %18632 = vst [vmem:[#allocation14_spill] sm:$0xff] %v11460_v4  ;;  %18633 = vst [vmem:[#allocation15_spill] sm:$0xff] %v11462_v5  ;;  %v503_v30 = vrot.slane %v9837_v23, %v11458_v3  ;;  %v9839_v31 = vld [vmem:[%s18189_s1 + $0x2] ss:$8 sm:$0xf]  ;;  %v633_v32 = vrot.slane %v9838_v28, %v11460_v4  ;;  %v637_v33 = vrot.slane %v9838_v28, %v11464_v6  ;;  %s10218_s9 = sshll.u32 %s11357_s28, 9 }
  0x5d   : > { %18634 = vst [vmem:[#allocation16_spill] sm:$0xff] %v11464_v6  ;;  %337 = vst [vmem:[#allocation2 + $0x40] sm:$0xff] %v11474_v10  ;;  %v641_v34 = vrot.slane %v9838_v28, %v11458_v3  ;;  %v11520_v35 = vld [vmem:[#allocation2 + $0x10] sm:$0xc0]  ;;  %v11522_v36 = vld [vmem:[#allocation2 + $0x8] sm:$0xc0]  ;;  %v645_v37 = vrot.slane %v9838_v28, %v11462_v5  ;;  %v11528_v38 = vrot.slane %v9839_v31, %v11464_v6  ;;  %s18142_s14 = scalar_lea.hbm %s18195_s7, %s10218_s9 }
  0x5e   : > { %336 = vst [vmem:[#allocation2 + $0x38] sm:$0xff] %v328_v14  ;;  %339 = vst [vmem:[#allocation2 + $0x50] sm:$0xff] %v11484_v15  ;;  %383 = vrot.lane.b32.xlu1 %v376_v11, %s11290_s29  ;;  %379 = vrot.lane.b32.xlu0 %v368_v12, %s11290_s29  ;;  %v11531_v39 = vrot.slane %v9839_v31, %v11460_v4  ;;  %v11533_v40 = vld [vmem:[#allocation2 + $0x20] sm:$0xc0]  ;;  %v11536_v41 = vrot.slane %v9839_v31, %v11462_v5  ;;  %v11538_v42 = vld [vmem:[#allocation2 + $0x18] sm:$0xc0] }
  0x5f   : > { %338 = vst [vmem:[#allocation2 + $0x48] sm:$0xff] %v11486_v16  ;;  %340 = vst [vmem:[#allocation2 + $0x68] sm:$0xff] %v332_v17  ;;  %v788_v43 = vmul.f32 %v11528_v38, %v11520_v35  ;;  %v11547_v45 = vrot.slane %v9839_v31, %v11458_v3  ;;  %v792_v48 = vmul.f32 %v11528_v38, %v11474_v10  ;;  %v9841_v50 = vld [vmem:[%s18189_s1 + $0x3] ss:$8 sm:$0xf]  ;;  %s18147_s17 = scalar_lea.sflag [#allocation5], %s299_s13 }
  0x60   : > { %341 = vst [vmem:[#allocation2 + $0x70] sm:$0xff] %v333_v18  ;;  %342 = vst [vmem:[#allocation2 + $0x78] sm:$0xff] %v334_v21  ;;  %v787_v44 = vmul.f32 %v11531_v39, %v11522_v36  ;;  %v790_v46 = vmul.f32 %v11536_v41, %v11533_v40  ;;  %v791_v49 = vmul.f32 %v11531_v39, %v328_v14  ;;  %v9847_v53 = vld [vmem:[%s18189_s1 + $0x6] ss:$8 sm:$0xf]  ;;  %p19767_p1 = scmp.ne.s32.totalorder %s18622_s11, 0 }
  0x61   : > { %343 = vst [vmem:[#allocation2 + $0x80] sm:$0xff] %v335_v22  ;;  %18635 = vst [vmem:[#allocation17_spill] sm:$0xff] %v11536_v41  ;;  %v789_v47 = vmul.f32 %v11547_v45, %v11538_v42  ;;  %v794_v51 = vmul.f32 %v11536_v41, %v11484_v15  ;;  %v793_v52 = vmul.f32 %v11547_v45, %v11486_v16  ;;  %v9851_v58 = vld [vmem:[%s18189_s1 + $0x20] ss:$8 sm:$0xf]  ;;  %s11293_s28 = smov [#allocation8]  }
  0x62   : > { %445 = vrot.lane.b32.xlu1 %v434_v19, %s11290_s29  ;;  %443 = vrot.lane.b32.xlu0 %v430_v20, %s11290_s29  ;;  %v997_v54 = vrot.slane %v9841_v50, %v11464_v6  ;;  %v993_v55 = vrot.slane %v9841_v50, %v11460_v4  ;;  %v1649_v56 = vrot.slane %v9847_v53, %v11460_v4  ;;  %v11594_v63 = vld [vmem:[%s18189_s1 + $0x23] ss:$8 sm:$0xf]  ;;  %v344_v17 = vld [vmem:[#allocation2] sm:$0xc0]  ;;  %s11215_s18 = sshll.u32 %s11293_s28, 4  ;;  %s11216_s18 = int_to_ptr.vmem [resolvable:$false] %s11215_s18 }
  0x63   : > { %v1001_v57 = vrot.slane %v9841_v50, %v11458_v3  ;;  %v1657_v59 = vrot.slane %v9847_v53, %v11458_v3  ;;  %v1653_v60 = vrot.slane %v9847_v53, %v11464_v6  ;;  %v2235_v61 = vrot.slane %v9851_v58, %v11460_v4  ;;  %s11217_s20 = scalar_lea.vmem %s11216_s18, 1024 }
  0x64   : > { %v1661_v62 = vrot.slane %v9847_v53, %v11462_v5  ;;  %v2243_v0 = vrot.slane %v9851_v58, %v11458_v3  ;;  %v2239_v1 = vrot.slane %v9851_v58, %v11464_v6  ;;  %v3009_v2 = vrot.slane %v11594_v63, %v11464_v6 }
  0x65   : > { %v3005_v7 = vrot.slane %v11594_v63, %v11460_v4  ;;  %v11650_v53 = vld [vmem:[#allocation2 + $0x38] sm:$0xff] }
  0x66   : > { %449 = vrot.lane.b32.xlu1 %v442_v24, %s11290_s29  ;;  %447 = vrot.lane.b32.xlu0 %v438_v25, %s11290_s29 }
  0x6a   : > { %510 = vrot.lane.b32.xlu1 %v499_v26, %s11291_s19  ;;  %508 = vrot.lane.b32.xlu0 %v495_v27, %s11291_s19  ;;  %v354_v26 = vld [vmem:[#allocation2 + $0x60] sm:$0x3f] }
  0x6e   : > { %514 = vrot.lane.b32.xlu1 %v507_v29, %s11291_s19  ;;  %512 = vrot.lane.b32.xlu0 %v503_v30, %s11291_s19 }
  0x72   : > { %646 = vrot.lane.b32.xlu1 %v633_v32, %s11291_s19  ;;  %648 = vrot.lane.b32.xlu0 %v637_v33, %s11291_s19  ;;  %v358_v32 = vld [vmem:[#allocation2 + $0x80] sm:$0x3f] }
  0x76   : > { %650 = vrot.lane.b32.xlu1 %v641_v34, %s11291_s19  ;;  %652 = vrot.lane.b32.xlu0 %v645_v37, %s11291_s19  ;;  %v11635_v37 = vld [vmem:[#allocation2 + $0x10] sm:$0xff] }
  0x7a   : > { %813 = vrot.lane.b32.xlu1 %v788_v43, %s11290_s29  ;;  %811 = vrot.lane.b32.xlu0 %v787_v44, %s11290_s29 }
  0x7e   : > { %817 = vrot.lane.b32.xlu1 %v790_v46, %s11290_s29  ;;  %815 = vrot.lane.b32.xlu0 %v789_v47, %s11290_s29  ;;  %v10858_v46 = vld [vmem:[#allocation2 + $0x50] sm:$0xff] }
  0x82   : > { %821 = vrot.lane.b32.xlu1 %v792_v48, %s11290_s29  ;;  %819 = vrot.lane.b32.xlu0 %v791_v49, %s11290_s29 }
  0x86   : > { %825 = vrot.lane.b32.xlu1 %v794_v51, %s11290_s29  ;;  %823 = vrot.lane.b32.xlu0 %v793_v52, %s11290_s29 }
  0x8a   : > { %1008 = vrot.lane.b32.xlu1 %v997_v54, %s11292_s23  ;;  %1006 = vrot.lane.b32.xlu0 %v993_v55, %s11292_s23  ;;  %v11655_v55 = vld [vmem:[#allocation2 + $0x40] sm:$0xff] }
  0x8e   : > { %1662 = vrot.lane.b32.xlu1 %v1649_v56, %s11291_s19  ;;  %1010 = vrot.lane.b32.xlu0 %v1001_v57, %s11292_s23  ;;  %v11658_v57 = vld [vmem:[#allocation2 + $0x48] sm:$0xff] }
  0x92   : > { %1666 = vrot.lane.b32.xlu1 %v1657_v59, %s11291_s19  ;;  %1664 = vrot.lane.b32.xlu0 %v1653_v60, %s11291_s19  ;;  %v11663_v59 = vld [vmem:[#allocation2 + $0x68] sm:$0x3f]  ;;  %v11665_v60 = vld [vmem:[#allocation2 + $0x70] sm:$0x3f] }
  0x96   : > { %2248 = vrot.lane.b32.xlu1 %v2235_v61, %s11292_s23  ;;  %1668 = vrot.lane.b32.xlu0 %v1661_v62, %s11291_s19 }
  0x9a   : > { %2252 = vrot.lane.b32.xlu1 %v2243_v0, %s11292_s23  ;;  %2250 = vrot.lane.b32.xlu0 %v2239_v1, %s11292_s23 }
  0x9e   : > { %3020 = vrot.lane.b32.xlu1 %v3009_v2, %s11291_s19  ;;  %3018 = vrot.lane.b32.xlu0 %v3005_v7, %s11291_s19  ;;  %v11672_v2 = vld [vmem:[#allocation2 + $0x78] sm:$0x3f] }
  0xcc   : > { %v11608_v8 = vpop.permute.xlu1 %381  ;;  %v11610_v9 = vpop.permute.xlu0 %377 }
  0xcd   : > { %18636 = vst [vmem:[#allocation18_spill] sm:$0xff] %v11608_v8 }
  0xd0   : > { %v11612_v10 = vpop.permute.xlu1 %383  ;;  %v11614_v11 = vpop.permute.xlu0 %379 }
  0xd1   : > { %18637 = vst [vmem:[#allocation19_spill] sm:$0xff] %v11612_v10 }
  0xd4   : > { %v11616_v12 = vpop.permute.xlu1 %445  ;;  %v11618_v13 = vpop.permute.xlu0 %443 }
  0xd5   : > { %18638 = vst [vmem:[#allocation20_spill] sm:$0xff] %v11616_v12  ;;  %18639 = vst [vmem:[#allocation21_spill] sm:$0xff] %v11618_v13 }
  0xd8   : > { %v11620_v14 = vpop.permute.xlu1 %449  ;;  %v11622_v16 = vpop.permute.xlu0 %447 }
  0xd9   : > { %18640 = vst [vmem:[#allocation22_spill] sm:$0xff] %v11620_v14  ;;  %18641 = vst [vmem:[#allocation23_spill] sm:$0xff] %v11622_v16 }
  0xdc   : > { %v511_v18 = vpop.permute.xlu1 %510  ;;  %v509_v19 = vpop.permute.xlu0 %508 }
  0xdd   : > { %v530_v20 = vmul.f32 0.0, %v509_v19  ;;  %v525_v21 = vmul.f32 %v509_v19, %v344_v17  ;;  %v535_v30 = vmul.f32 %v509_v19, %v354_v26  ;;  %v517_v48 = vsel %vm516_vm0, %v509_v19, %v511_v18 }
  0xde   : > { %v526_v49 = vmul.f32 %v517_v48, %v11522_v36  ;;  %v531_v54 = vmul.f32 %v11650_v53, %v517_v48  ;;  %v536_v61 = vmul.f32 %v517_v48, %v11663_v59 }
  0xdf   : > { %565 = vrot.lane.b32.xlu1 %v530_v20, %s11291_s19  ;;  %555 = vrot.lane.b32.xlu0 %v525_v21, %s11291_s19 }
  0xe0   : > { %v515_v22 = vpop.permute.xlu1 %514  ;;  %v513_v23 = vpop.permute.xlu0 %512 }
  0xe1   : > { %v534_v24 = vmul.f32 %v515_v22, %v11484_v15  ;;  %v529_v25 = vmul.f32 %v515_v22, %v11533_v40  ;;  %v539_v15 = vmul.f32 %v515_v22, %v358_v32  ;;  %v519_v51 = vsel %vm516_vm0, %v513_v23, %v515_v22 }
  0xe2   : > { %v528_v52 = vmul.f32 %v519_v51, %v11538_v42  ;;  %v533_v58 = vmul.f32 %v11658_v57, %v519_v51  ;;  %v538_v7 = vmul.f32 %v519_v51, %v11672_v2 }
  0xe3   : > { %573 = vrot.lane.b32.xlu1 %v534_v24, %s11291_s19  ;;  %563 = vrot.lane.b32.xlu0 %v529_v25, %s11291_s19 }
  0xe4   : > { %v647_v27 = vpop.permute.xlu1 %646  ;;  %v649_v28 = vpop.permute.xlu0 %648 }
  0xe5   : > { %v662_v29 = vmul.f32 %v647_v27, %v344_v17  ;;  %v672_v34 = vmul.f32 %v647_v27, %v354_v26  ;;  %v667_v43 = vmul.f32 %v11635_v37, %v647_v27  ;;  %v654_v0 = vsel %vm516_vm0, %v647_v27, %v649_v28 }
  0xe6   : > { %v663_v17 = vmul.f32 %v654_v0, %v11522_v36  ;;  %v668_v22 = vmul.f32 %v11650_v53, %v654_v0  ;;  %v673_v24 = vmul.f32 %v654_v0, %v11663_v59  ;;  %v3017_v27 = vrot.slane %v11594_v63, %v11462_v5 }
  0xe7   : > { %692 = vrot.lane.b32.xlu1 %v662_v29, %s11291_s19  ;;  %575 = vrot.lane.b32.xlu0 %v535_v30, %s11291_s19  ;;  %v11707_v29 = vld [vmem:[%s18189_s1 + $0x25] ss:$8 sm:$0xf] }
  0xe8   : > { %v653_v31 = vpop.permute.xlu0 %652  ;;  %v651_v1 = vpop.permute.xlu1 %650  ;;  %v3522_v30 = vrot.slane %v11707_v29, %v11464_v6 }
  0xe9   : > { %v666_v33 = vmul.f32 %v653_v31, %v11533_v40  ;;  %v676_v44 = vmul.f32 %v653_v31, %v358_v32  ;;  %v671_v47 = vmul.f32 %v10858_v46, %v653_v31  ;;  %v518_v40 = vsel %vm516_vm0, %v511_v18, %v513_v23 }
  0xea   : > { %v527_v50 = vmul.f32 %v518_v40, %v11520_v35  ;;  %v532_v56 = vmul.f32 %v11655_v55, %v518_v40  ;;  %v537_v62 = vmul.f32 %v518_v40, %v11665_v60  ;;  %v655_v18 = vsel %vm516_vm0, %v649_v28, %v651_v1  ;;  %v9871_v40 = vld [vmem:[%s18189_s1 + $0x42] ss:$8 sm:$0xf] }
  0xeb   : > { %700 = vrot.lane.b32.xlu1 %v666_v33, %s11291_s19  ;;  %583 = vrot.lane.b32.xlu0 %v539_v15, %s11291_s19  ;;  %v656_v19 = vsel %vm516_vm0, %v651_v1, %v653_v31  ;;  %v664_v20 = vmul.f32 %v655_v18, %v11520_v35  ;;  %v669_v36 = vmul.f32 %v11655_v55, %v655_v18 }
  0xec   : > { %v665_v21 = vmul.f32 %v656_v19, %v11538_v42  ;;  %v670_v23 = vmul.f32 %v11658_v57, %v656_v19  ;;  %v674_v35 = vmul.f32 %v655_v18, %v11665_v60  ;;  %v675_v42 = vmul.f32 %v656_v19, %v11672_v2  ;;  %v11694_v25 = vpop.permute.xlu1 %813  ;;  %v11696_v26 = vpop.permute.xlu0 %811  ;;  %v9881_v19 = vld [vmem:[%s18189_s1 + $0x47] ss:$8 sm:$0xf] }
  0xed   : > { %v3013_v28 = vrot.slane %v11594_v63, %v11458_v3  ;;  %v3518_v31 = vrot.slane %v11707_v29, %v11460_v4  ;;  %v9867_v63 = vld [vmem:[%s18189_s1 + $0x40] ss:$8 sm:$0xf]  ;;  %v4852_v48 = vrot.slane %v9871_v40, %v11460_v4 }
  0xee   : > { %v4253_v15 = vrot.slane %v9867_v63, %v11460_v4  ;;  %v4261_v46 = vrot.slane %v9867_v63, %v11458_v3 }
  0xef   : > { %712 = vrot.lane.b32.xlu1 %v672_v34, %s11291_s19  ;;  %702 = vrot.lane.b32.xlu0 %v667_v43, %s11291_s19  ;;  %v3526_v34 = vrot.slane %v11707_v29, %v11458_v3 }
  0xf0   : > { %v11715_v32 = vpop.permute.xlu1 %817  ;;  %v11717_v33 = vpop.permute.xlu0 %815 }
  0xf1   : > { %18642 = vst [vmem:[#allocation24_spill] sm:$0xff] %v11715_v32  ;;  %18643 = vst [vmem:[#allocation25_spill] sm:$0xff] %v11717_v33 }
  0xf3   : > { %720 = vrot.lane.b32.xlu1 %v676_v44, %s11291_s19  ;;  %710 = vrot.lane.b32.xlu0 %v671_v47, %s11291_s19  ;;  %v4257_v47 = vrot.slane %v9867_v63, %v11464_v6 }
  0xf4   : > { %v11727_v43 = vpop.permute.xlu1 %821  ;;  %v11729_v44 = vpop.permute.xlu0 %819 }
  0xf7   : > { %557 = vrot.lane.b32.xlu1 %v526_v49, %s11291_s19  ;;  %559 = vrot.lane.b32.xlu0 %v527_v50, %s11291_s19  ;;  %v4265_v49 = vrot.slane %v9867_v63, %v11462_v5 }
  0xf8   : > { %v11742_v50 = vpop.permute.xlu1 %825  ;;  %v11744_v51 = vpop.permute.xlu0 %823 }
  0xf9   : > { %18644 = vst [vmem:[#allocation26_spill] sm:$0xff] %v11742_v50  ;;  %18645 = vst [vmem:[#allocation27_spill] sm:$0xff] %v11744_v51 }
  0xfb   : > { %561 = vrot.lane.b32.xlu1 %v528_v52, %s11291_s19  ;;  %567 = vrot.lane.b32.xlu0 %v531_v54, %s11291_s19  ;;  %v4860_v52 = vrot.slane %v9871_v40, %v11458_v3  ;;  %v4856_v54 = vrot.slane %v9871_v40, %v11464_v6 }
  0xff   : > { %569 = vrot.lane.b32.xlu1 %v532_v56, %s11291_s19  ;;  %571 = vrot.lane.b32.xlu0 %v533_v58, %s11291_s19  ;;  %v9877_v56 = vld [vmem:[%s18189_s1 + $0x45] ss:$8 sm:$0xf]  ;;  %v1009_v58 = vpop.permute.xlu1 %1008 }
 0x100   : > { %v5667_v0 = vrot.slane %v9877_v56, %v11460_v4  ;;  %v5679_v1 = vrot.slane %v9877_v56, %v11462_v5 }
 0x103   : > { %577 = vrot.lane.b32.xlu1 %v536_v61, %s11291_s19  ;;  %579 = vrot.lane.b32.xlu0 %v537_v62, %s11291_s19  ;;  %v1007_v61 = vpop.permute.xlu0 %1006  ;;  %v5671_v62 = vrot.slane %v9877_v56, %v11464_v6 }
 0x107   : > { %581 = vrot.lane.b32.xlu1 %v538_v7, %s11291_s19  ;;  %694 = vrot.lane.b32.xlu0 %v663_v17, %s11291_s19  ;;  %v5675_v7 = vrot.slane %v9877_v56, %v11458_v3  ;;  %v11761_v17 = vpop.permute.xlu1 %1662  ;;  %v11763_v18 = vpop.permute.xlu0 %1010 }
 0x108   : > { %18646 = vst [vmem:[#allocation28_spill] sm:$0xff] %v11763_v18 }
 0x10b   : > { %696 = vrot.lane.b32.xlu1 %v664_v20, %s11291_s19  ;;  %698 = vrot.lane.b32.xlu0 %v665_v21, %s11291_s19  ;;  %v6265_v20 = vrot.slane %v9881_v19, %v11464_v6  ;;  %v6261_v21 = vrot.slane %v9881_v19, %v11460_v4 }
 0x10f   : > { %704 = vrot.lane.b32.xlu1 %v668_v22, %s11291_s19  ;;  %706 = vrot.lane.b32.xlu0 %v669_v36, %s11291_s19  ;;  %v11772_v22 = vpop.permute.xlu1 %1666  ;;  %v1665_v36 = vpop.permute.xlu0 %1664 }
 0x113   : > { %708 = vrot.lane.b32.xlu1 %v670_v23, %s11291_s19  ;;  %714 = vrot.lane.b32.xlu0 %v673_v24, %s11291_s19  ;;  %v795_v23 = vmul.f32 %v11531_v39, %v11663_v59  ;;  %v6269_v24 = vrot.slane %v9881_v19, %v11458_v3  ;;  %v9845_v39 = vld [vmem:[%s18189_s1 + $0x5] ss:$8 sm:$0xf] }
 0x117   : > { %716 = vrot.lane.b32.xlu1 %v674_v35, %s11291_s19  ;;  %718 = vrot.lane.b32.xlu0 %v675_v42, %s11291_s19  ;;  %v797_v35 = vmul.f32 %v11547_v45, %v11672_v2  ;;  %v796_v42 = vmul.f32 %v11528_v38, %v11665_v60  ;;  %v1416_v38 = vrot.slane %v9845_v39, %v11458_v3 }
 0x11b   : > { %3024 = vrot.lane.b32.xlu1 %v3017_v27, %s11291_s19  ;;  %3022 = vrot.lane.b32.xlu0 %v3013_v28, %s11291_s19  ;;  %v11785_v27 = vpop.permute.xlu1 %2248  ;;  %v11787_v28 = vpop.permute.xlu0 %1668 }
 0x11f   : > { %3533 = vrot.lane.b32.xlu1 %v3522_v30, %s11292_s23  ;;  %3531 = vrot.lane.b32.xlu0 %v3518_v31, %s11292_s23  ;;  %v1412_v30 = vrot.slane %v9845_v39, %v11464_v6  ;;  %v1408_v31 = vrot.slane %v9845_v39, %v11460_v4  ;;  %v11796_v45 = vpop.permute.xlu1 %2252  ;;  %v11798_v63 = vpop.permute.xlu0 %2250 }
 0x120   : > { %18647 = vst [vmem:[#allocation29_spill] sm:$0xff] %v11796_v45 }
 0x123   : > { %4266 = vrot.lane.b32.xlu1 %v4253_v15, %s11291_s19  ;;  %3535 = vrot.lane.b32.xlu0 %v3526_v34, %s11292_s23  ;;  %v10862_v15 = vld [vmem:[#allocation2 + $0x8] sm:$0xc0]  ;;  %v11808_v40 = vpop.permute.xlu1 %3020 }
 0x124   : > { %v1023_v34 = vmul.f32 %v10862_v15, %v1007_v61 }
 0x127   : > { %4270 = vrot.lane.b32.xlu1 %v4261_v46, %s11291_s19  ;;  %4268 = vrot.lane.b32.xlu0 %v4257_v47, %s11291_s19  ;;  %v1016_v46 = vsel %vm1014_vm1, %v1009_v58, %v11763_v18  ;;  %v1015_v47 = vsel %vm1014_vm1, %v1007_v61, %v1009_v58 }
 0x128   : > { %v1029_v58 = vmul.f32 %v11655_v55, %v1015_v47  ;;  %v1034_v39 = vmul.f32 %v1015_v47, %v11665_v60 }
 0x12b   : > { %4865 = vrot.lane.b32.xlu1 %v4852_v48, %s11292_s23  ;;  %4272 = vrot.lane.b32.xlu0 %v4265_v49, %s11291_s19  ;;  %v11810_v48 = vpop.permute.xlu0 %3018  ;;  %v10863_v49 = vld [vmem:[#allocation2 + $0x18] sm:$0xc0] }
 0x12f   : > { %4869 = vrot.lane.b32.xlu1 %v4860_v52, %s11292_s23  ;;  %4867 = vrot.lane.b32.xlu0 %v4856_v54, %s11292_s23  ;;  %v1025_v52 = vmul.f32 %v10863_v49, %v1016_v46  ;;  %v10864_v54 = vld [vmem:[#allocation2 + $0x10] sm:$0xc0] }
 0x130   : > { %v1024_v56 = vmul.f32 %v10864_v54, %v1015_v47  ;;  %v11857_v47 = vld [vmem:[#allocation2 + $0x68] sm:$0x7f]  ;;  %v11864_v54 = vld [vmem:[#allocation2 + $0x18] sm:$0x80] }
 0x133   : > { %5682 = vrot.lane.b32.xlu1 %v5671_v62, %s11291_s19  ;;  %5680 = vrot.lane.b32.xlu0 %v5667_v0, %s11291_s19 }
 0x137   : > { %5686 = vrot.lane.b32.xlu1 %v5679_v1, %s11291_s19  ;;  %5684 = vrot.lane.b32.xlu0 %v5675_v7, %s11291_s19  ;;  %v1028_v1 = vmul.f32 %v11650_v53, %v1007_v61 }
 0x13b   : > { %6276 = vrot.lane.b32.xlu1 %v6265_v20, %s11292_s23  ;;  %6274 = vrot.lane.b32.xlu0 %v6261_v21, %s11292_s23  ;;  %v1033_v20 = vmul.f32 %v1007_v61, %v11663_v59  ;;  %v1030_v21 = vmul.f32 %v11658_v57, %v1016_v46  ;;  %v1671_v59 = vsel %vm516_vm0, %v1665_v36, %v11772_v22  ;;  %v11843_v61 = vld [vmem:[#allocation2 + $0x8] sm:$0x80] }
 0x13c   : > { %v1685_v15 = vmul.f32 %v11655_v55, %v1671_v59 }
 0x13f   : > { %827 = vrot.lane.b32.xlu1 %v795_v23, %s11290_s29  ;;  %6278 = vrot.lane.b32.xlu0 %v6269_v24, %s11292_s23  ;;  %v9843_v23 = vld [vmem:[%s18189_s1 + $0x4] ss:$8 sm:$0xf]  ;;  %v1035_v24 = vmul.f32 %v1016_v46, %v11672_v2 }
 0x140   : > { %v1272_v2 = vrot.slane %v9843_v23, %v11464_v6 }
 0x143   : > { %831 = vrot.lane.b32.xlu1 %v797_v35, %s11290_s29  ;;  %829 = vrot.lane.b32.xlu0 %v796_v42, %s11290_s29 }
 0x147   : > { %1423 = vrot.lane.b32.xlu1 %v1412_v30, %s11290_s29  ;;  %1421 = vrot.lane.b32.xlu0 %v1408_v31, %s11290_s29  ;;  %v11839_v30 = vld [vmem:[#allocation2 + $0x10] sm:$0x80]  ;;  %v1670_v31 = vsel %vm516_vm0, %v11761_v17, %v1665_v36 }
 0x148   : > { %v1680_v60 = vmul.f32 %v1671_v59, %v11839_v30  ;;  %v1679_v36 = vmul.f32 %v1670_v31, %v11843_v61  ;;  %v1684_v49 = vmul.f32 %v11650_v53, %v1670_v31 }
 0x14b   : > { %1053 = vrot.lane.b32.xlu1 %v1023_v34, %s11292_s23  ;;  %1425 = vrot.lane.b32.xlu0 %v1416_v38, %s11290_s29  ;;  %v1268_v38 = vrot.slane %v9843_v23, %v11460_v4 }
 0x14f   : > { %1057 = vrot.lane.b32.xlu1 %v1025_v52, %s11292_s23  ;;  %1055 = vrot.lane.b32.xlu0 %v1024_v56, %s11292_s23  ;;  %v1672_v52 = vsel %vm516_vm0, %v11772_v22, %v11787_v28  ;;  %v10865_v56 = vld [vmem:[%s18189_s1 + $0x3] ss:$8 sm:$0xf] }
 0x150   : > { %v1686_v14 = vmul.f32 %v11658_v57, %v1672_v52 }
 0x151   : > { %v11814_v62 = vpop.permute.xlu1 %565  ;;  %v11816_v0 = vpop.permute.xlu0 %555 }
 0x153   : > { %1065 = vrot.lane.b32.xlu1 %v1029_v58, %s11292_s23  ;;  %1063 = vrot.lane.b32.xlu0 %v1028_v1, %s11292_s23  ;;  %v1005_v58 = vrot.slane %v10865_v56, %v11462_v5  ;;  %v1276_v1 = vrot.slane %v9843_v23, %v11458_v3  ;;  %v11882_v56 = vld [vmem:[#allocation2 + $0x78] sm:$0x7f] }
 0x154   : > { %v1691_v16 = vmul.f32 %v1672_v52, %v11882_v56 }
 0x155   : > { %v11822_v7 = vpop.permute.xlu1 %573  ;;  %v11824_v19 = vpop.permute.xlu0 %563 }
 0x156   : > { %18648 = vst [vmem:[#allocation30_spill] sm:$0xff] %v11822_v7  ;;  %18649 = vst [vmem:[#allocation31_spill] sm:$0xff] %v11824_v19 }
 0x157   : > { %1073 = vrot.lane.b32.xlu1 %v1033_v20, %s11292_s23  ;;  %1067 = vrot.lane.b32.xlu0 %v1030_v21, %s11292_s23  ;;  %v1689_v20 = vmul.f32 %v1670_v31, %v11857_v47  ;;  %v1714_v21 = vrot.slane %v1680_v60, 1 }
 0x159   : > { %v11834_v35 = vpop.permute.xlu1 %692  ;;  %v11836_v42 = vpop.permute.xlu0 %575  ;;  %v1725_v31 = vrot.slane %v1689_v20, 1 }
 0x15a   : > { %18650 = vst [vmem:[#allocation32_spill] sm:$0xff] %v11834_v35  ;;  %18651 = vst [vmem:[#allocation33_spill] sm:$0xff] %v11836_v42  ;;  %v1712_v35 = vrot.slane %v1684_v49, 1 }
 0x15b   : > { %1077 = vrot.lane.b32.xlu1 %v1035_v24, %s11292_s23  ;;  %1075 = vrot.lane.b32.xlu0 %v1034_v39, %s11292_s23  ;;  %v1715_v24 = vrot.slane %v1685_v15, 1 }
 0x15c   : > { %v1726_v20 = vsel %vm1467_vm2, %v1712_v35, %v1725_v31 }
 0x15d   : > { %v11853_v34 = vpop.permute.xlu1 %700  ;;  %v11855_v46 = vpop.permute.xlu0 %583 }
 0x15e   : > { %18652 = vst [vmem:[#allocation34_spill] sm:$0xff] %v11853_v34  ;;  %18653 = vst [vmem:[#allocation35_spill] sm:$0xff] %v11855_v46  ;;  %v1681_v34 = vmul.f32 %v1672_v52, %v11864_v54 }
 0x15f   : > { %1283 = vrot.lane.b32.xlu1 %v1272_v2, %s11290_s29  ;;  %1281 = vrot.lane.b32.xlu0 %v1268_v38, %s11290_s29  ;;  %v11878_v2 = vld [vmem:[#allocation2 + $0x70] sm:$0x7f]  ;;  %v1711_v38 = vrot.slane %v1679_v36, 1  ;;  %v1716_v36 = vsel %vm1467_vm2, %v1714_v21, %v1715_v24  ;;  %v1729_v21 = vrot.slane %v1691_v16, 1  ;;  %v1397_v16 = vld [vmem:[#allocation2 + $0x60] sm:$0x7f] }
 0x160   : > { %v1690_v23 = vmul.f32 %v1671_v59, %v11878_v2 }
 0x161   : > { %v11874_v39 = vpop.permute.xlu1 %712  ;;  %v11876_v22 = vpop.permute.xlu0 %702  ;;  %v1713_v49 = vsel %vm1467_vm2, %v1711_v38, %v1712_v35  ;;  %v1683_v35 = vmul.f32 %v11635_v37, %v11761_v17 }
 0x162   : > { %18654 = vst [vmem:[#allocation36_spill] sm:$0xff] %v11874_v39  ;;  %18655 = vst [vmem:[#allocation37_spill] sm:$0xff] %v11876_v22  ;;  %v1717_v39 = vrot.slane %v1681_v34, 1  ;;  %v1718_v22 = vrot.slane %v1686_v14, 1  ;;  %v1392_v14 = vld [vmem:[#allocation2] sm:$0x80] }
 0x163   : > { %1012 = vrot.lane.b32.xlu1 %v1005_v58, %s11292_s23  ;;  %1285 = vrot.lane.b32.xlu0 %v1276_v1, %s11290_s29  ;;  %v1727_v1 = vrot.slane %v1690_v23, 1  ;;  %v1678_v23 = vmul.f32 %v11761_v17, %v1392_v14 }
 0x164   : > { %v1730_v38 = vsel %vm1467_vm2, %v1718_v22, %v1729_v21 }
 0x165   : > { %v11887_v60 = vpop.permute.xlu1 %720  ;;  %v11889_v15 = vpop.permute.xlu0 %710 }
 0x166   : > { %18656 = vst [vmem:[#allocation38_spill] sm:$0xff] %v11887_v60  ;;  %18657 = vst [vmem:[#allocation39_spill] sm:$0xff] %v11889_v15  ;;  %v1719_v60 = vsel %vm1467_vm2, %v1717_v39, %v1718_v22  ;;  %v9849_v39 = vld [vmem:[%s18189_s1 + $0x7] ss:$8 sm:$0xf]  ;;  %v1708_v22 = vrot.slane %v1678_v23, 1 }
 0x167   : > { %1737 = vrot.lane.b32.xlu1 %v1716_v36, %s11291_s19  ;;  %1735 = vrot.lane.b32.xlu0 %v1713_v49, %s11291_s19  ;;  %v1728_v36 = vsel %vm1467_vm2, %v1715_v24, %v1727_v1  ;;  %v1709_v24 = vrot.slane %v1683_v35, 1  ;;  %v1973_v14 = vrot.slane %v9849_v39, %v11460_v4  ;;  %v1981_v23 = vrot.slane %v9849_v39, %v11458_v3 }
 0x168   : > { %v1977_v35 = vrot.slane %v9849_v39, %v11464_v6 }
 0x169   : > { %v11896_v58 = vpop.permute.xlu1 %557  ;;  %v11898_v59 = vpop.permute.xlu0 %559  ;;  %v1710_v15 = vsel %vm1467_vm2, %v1708_v22, %v1709_v24  ;;  %v1992_v50 = vmul.f32 %v1981_v23, %v11864_v54  ;;  %v1996_v39 = vmul.f32 %v11658_v57, %v1981_v23  ;;  %v1998_v18 = vmul.f32 %v1973_v14, %v11857_v47 }
 0x16a   : > { %v1991_v32 = vmul.f32 %v1977_v35, %v11839_v30  ;;  %v1999_v41 = vmul.f32 %v1977_v35, %v11878_v2 }
 0x16b   : > { %1745 = vrot.lane.b32.xlu1 %v1726_v20, %s11291_s19  ;;  %1739 = vrot.lane.b32.xlu0 %v1719_v60, %s11291_s19  ;;  %v1688_v20 = vmul.f32 %v11761_v17, %v1397_v16  ;;  %v9853_v17 = vld [vmem:[%s18189_s1 + $0x21] ss:$8 sm:$0xf] }
 0x16c   : > { %v2017_v19 = vrot.slane %v1991_v32, 1 }
 0x16d   : > { %v11904_v34 = vpop.permute.xlu1 %561  ;;  %v11906_v52 = vpop.permute.xlu0 %567  ;;  %v1723_v13 = vrot.slane %v1688_v20, 1  ;;  %v2559_v20 = vrot.slane %v9853_v17, %v11460_v4 }
 0x16e   : > { %18658 = vst [vmem:[#allocation40_spill] sm:$0xff] %v11904_v34 }
 0x16f   : > { %1749 = vrot.lane.b32.xlu1 %v1730_v38, %s11291_s19  ;;  %1747 = vrot.lane.b32.xlu0 %v1728_v36, %s11291_s19 }
 0x171   : > { %v11918_v60 = vpop.permute.xlu1 %569  ;;  %v11920_v49 = vpop.permute.xlu0 %571 }
 0x172   : > { %18659 = vst [vmem:[#allocation41_spill] sm:$0xff] %v11920_v49 }
 0x173   : > { %1757 = vrot.lane.b32.xlu1 %v1727_v1, %s11291_s19  ;;  %1755 = vrot.lane.b32.xlu0 %v1725_v31, %s11291_s19  ;;  %v1990_v1 = vmul.f32 %v1973_v14, %v11843_v61  ;;  %v1994_v31 = vmul.f32 %v11650_v53, %v1973_v14  ;;  %v2000_v14 = vmul.f32 %v1981_v23, %v11882_v56 }
 0x175   : > { %v11926_v38 = vpop.permute.xlu1 %577  ;;  %v11928_v36 = vpop.permute.xlu0 %579  ;;  %v2014_v12 = vrot.slane %v1990_v1, 1  ;;  %v2015_v46 = vrot.slane %v1994_v31, 1  ;;  %v2567_v1 = vrot.slane %v9853_v17, %v11458_v3  ;;  %v2020_v31 = vrot.slane %v1992_v50, 1 }
 0x176   : > { %18660 = vst [vmem:[#allocation42_spill] sm:$0xff] %v11928_v36  ;;  %v2028_v50 = vrot.slane %v1999_v41, 1  ;;  %v2030_v41 = vrot.slane %v2000_v14, 1  ;;  %v12097_v36 = vld [vmem:[#allocation2 + $0x78] sm:$0xff] }
 0x177   : > { %1733 = vrot.lane.b32.xlu1 %v1710_v15, %s11291_s19  ;;  %1759 = vrot.lane.b32.xlu0 %v1729_v21, %s11291_s19  ;;  %v1724_v15 = vsel %vm1467_vm2, %v1709_v24, %v1723_v13  ;;  %v2563_v21 = vrot.slane %v9853_v17, %v11464_v6 }
 0x179   : > { %v11940_v16 = vpop.permute.xlu1 %581  ;;  %v11942_v22 = vpop.permute.xlu0 %694 }
 0x17a   : > { %18661 = vst [vmem:[#allocation43_spill] sm:$0xff] %v11940_v16  ;;  %18662 = vst [vmem:[#allocation44_spill] sm:$0xff] %v11942_v22  ;;  %v1995_v22 = vmul.f32 %v11655_v55, %v1977_v35 }
 0x17b   : > { %1753 = vrot.lane.b32.xlu1 %v1723_v13, %s11291_s19  ;;  %1743 = vrot.lane.b32.xlu0 %v1724_v15, %s11291_s19  ;;  %v2016_v13 = vsel %vm1467_vm2, %v2014_v12, %v2015_v46  ;;  %v2021_v15 = vrot.slane %v1996_v39, 1 }
 0x17c   : > { %v2018_v10 = vrot.slane %v1995_v22, 1 }
 0x17d   : > { %v11953_v7 = vpop.permute.xlu1 %696  ;;  %v11955_v24 = vpop.permute.xlu0 %698  ;;  %v2022_v12 = vsel %vm1467_vm2, %v2020_v31, %v2021_v15  ;;  %v2031_v23 = vsel %vm1467_vm2, %v2021_v15, %v2030_v41  ;;  %v2256_v31 = vsel %vm1014_vm1, %v11785_v27, %v11798_v63 }
 0x17e   : > { %18663 = vst [vmem:[#allocation45_spill] sm:$0xff] %v11953_v7  ;;  %18664 = vst [vmem:[#allocation46_spill] sm:$0xff] %v11955_v24  ;;  %v2019_v17 = vsel %vm1467_vm2, %v2017_v19, %v2018_v10  ;;  %v2029_v35 = vsel %vm1467_vm2, %v2018_v10, %v2028_v50  ;;  %v9855_v10 = vld [vmem:[%s18189_s1 + $0x22] ss:$8 sm:$0xf] }
 0x17f   : > { %2574 = vrot.lane.b32.xlu1 %v2563_v21, %s11290_s29  ;;  %2572 = vrot.lane.b32.xlu0 %v2559_v20, %s11290_s29  ;;  %v2026_v21 = vrot.slane %v1998_v18, 1  ;;  %v2804_v15 = vrot.slane %v9855_v10, %v11460_v4 }
 0x181   : > { %v11963_v16 = vpop.permute.xlu1 %704  ;;  %v11965_v7 = vpop.permute.xlu0 %706  ;;  %v2027_v20 = vsel %vm1467_vm2, %v2015_v46, %v2026_v21 }
 0x182   : > { %18665 = vst [vmem:[#allocation47_spill] sm:$0xff] %v11963_v16  ;;  %18666 = vst [vmem:[#allocation48_spill] sm:$0xff] %v11965_v7 }
 0x183   : > { %2034 = vrot.lane.b32.xlu1 %v2016_v13, %s11290_s29  ;;  %2576 = vrot.lane.b32.xlu0 %v2567_v1, %s11290_s29 }
 0x185   : > { %v11971_v32 = vpop.permute.xlu1 %708  ;;  %v11973_v22 = vpop.permute.xlu0 %714 }
 0x186   : > { %18667 = vst [vmem:[#allocation49_spill] sm:$0xff] %v11971_v32  ;;  %18668 = vst [vmem:[#allocation50_spill] sm:$0xff] %v11973_v22 }
 0x187   : > { %2038 = vrot.lane.b32.xlu1 %v2022_v12, %s11290_s29  ;;  %2036 = vrot.lane.b32.xlu0 %v2019_v17, %s11290_s29  ;;  %v10866_v12 = vld [vmem:[%s18189_s1 + $0x20] ss:$8 sm:$0xf] }
 0x188   : > { %v2247_v17 = vrot.slane %v10866_v12, %v11462_v5  ;;  %v2257_v12 = vsel %vm1014_vm1, %v11798_v63, %v11796_v45 }
 0x189   : > { %v11980_v39 = vpop.permute.xlu1 %716  ;;  %v11982_v13 = vpop.permute.xlu0 %718  ;;  %v2266_v32 = vmul.f32 %v2257_v12, %v11864_v54  ;;  %v2271_v7 = vmul.f32 %v11658_v57, %v2257_v12 }
 0x18a   : > { %18669 = vst [vmem:[#allocation51_spill] sm:$0xff] %v11980_v39  ;;  %18670 = vst [vmem:[#allocation52_spill] sm:$0xff] %v11982_v13 }
 0x18b   : > { %2044 = vrot.lane.b32.xlu1 %v2029_v35, %s11290_s29  ;;  %2042 = vrot.lane.b32.xlu0 %v2027_v20, %s11290_s29  ;;  %v2265_v35 = vmul.f32 %v2256_v31, %v11839_v30  ;;  %v2270_v20 = vmul.f32 %v11655_v55, %v2256_v31  ;;  %v2808_v30 = vrot.slane %v9855_v10, %v11464_v6  ;;  %v2301_v54 = vrot.slane %v2271_v7, 1 }
 0x18d   : > { %v11986_v18 = vpop.permute.xlu1 %3024  ;;  %v11988_v19 = vpop.permute.xlu0 %3022  ;;  %v2298_v22 = vrot.slane %v2270_v20, 1 }
 0x18f   : > { %2050 = vrot.lane.b32.xlu1 %v2026_v21, %s11290_s29  ;;  %2046 = vrot.lane.b32.xlu0 %v2031_v23, %s11290_s29  ;;  %v2269_v23 = vmul.f32 %v11650_v53, %v11785_v27 }
 0x191   : > { %v11996_v46 = vpop.permute.xlu1 %3533  ;;  %v11998_v1 = vpop.permute.xlu0 %3531  ;;  %v2295_v16 = vrot.slane %v2269_v23, 1 }
 0x193   : > { %2054 = vrot.lane.b32.xlu1 %v2030_v41, %s11290_s29  ;;  %2052 = vrot.lane.b32.xlu0 %v2028_v50, %s11290_s29  ;;  %v2812_v41 = vrot.slane %v9855_v10, %v11458_v3  ;;  %v2264_v50 = vmul.f32 %v11785_v27, %v11843_v61  ;;  %v2274_v61 = vmul.f32 %v11785_v27, %v11857_v47  ;;  %v2300_v47 = vrot.slane %v2266_v32, 1 }
 0x194   : > { %v2275_v27 = vmul.f32 %v2256_v31, %v11878_v2  ;;  %v3026_v31 = vsel %vm516_vm0, %v11810_v48, %v11808_v40 }
 0x195   : > { %v12010_v21 = vpop.permute.xlu1 %4266  ;;  %v12012_v14 = vpop.permute.xlu0 %3535  ;;  %v2294_v63 = vrot.slane %v2264_v50, 1  ;;  %v2309_v24 = vrot.slane %v2274_v61, 1  ;;  %v2302_v2 = vsel %vm1467_vm2, %v2300_v47, %v2301_v54  ;;  %v3035_v61 = vmul.f32 %v11650_v53, %v3026_v31 }
 0x196   : > { %18671 = vst [vmem:[#allocation53_spill] sm:$0xff] %v12012_v14 }
 0x197   : > { %2817 = vrot.lane.b32.xlu1 %v2804_v15, %s11290_s29  ;;  %2254 = vrot.lane.b32.xlu0 %v2247_v17, %s11292_s23  ;;  %v2297_v15 = vrot.slane %v2265_v35, 1  ;;  %v2276_v35 = vmul.f32 %v2257_v12, %v11882_v56  ;;  %v2310_v56 = vsel %vm1467_vm2, %v2295_v16, %v2309_v24  ;;  %v2311_v12 = vrot.slane %v2275_v27, 1 }
 0x198   : > { %v3027_v27 = vsel %vm516_vm0, %v11808_v40, %v11988_v19 }
 0x199   : > { %v12027_v13 = vpop.permute.xlu1 %4270  ;;  %v12029_v39 = vpop.permute.xlu0 %4268  ;;  %v2299_v20 = vsel %vm1467_vm2, %v2297_v15, %v2298_v22 }
 0x19b   : > { %2821 = vrot.lane.b32.xlu1 %v2812_v41, %s11290_s29  ;;  %2819 = vrot.lane.b32.xlu0 %v2808_v30, %s11290_s29  ;;  %v2296_v41 = vsel %vm1467_vm2, %v2294_v63, %v2295_v16  ;;  %v2313_v30 = vrot.slane %v2276_v35, 1  ;;  %v2312_v16 = vsel %vm1467_vm2, %v2298_v22, %v2311_v12  ;;  %v3055_v22 = vrot.slane %v3035_v61, 2 }
 0x19d   : > { %v12037_v10 = vpop.permute.xlu1 %4865  ;;  %v12039_v17 = vpop.permute.xlu0 %4272  ;;  %v2314_v15 = vsel %vm1467_vm2, %v2301_v54, %v2313_v30 }
 0x19e   : > { %18672 = vst [vmem:[#allocation54_spill] sm:$0xff] %v12039_v17 }
 0x19f   : > { %2321 = vrot.lane.b32.xlu1 %v2299_v20, %s11292_s23  ;;  %2319 = vrot.lane.b32.xlu0 %v2296_v41, %s11292_s23  ;;  %v3028_v20 = vsel %vm516_vm0, %v11988_v19, %v11986_v18 }
 0x1a0   : > { %v3037_v47 = vmul.f32 %v11658_v57, %v3028_v20 }
 0x1a1   : > { %v12047_v50 = vpop.permute.xlu1 %4869  ;;  %v12049_v23 = vpop.permute.xlu0 %4867 }
 0x1a2   : > { %18673 = vst [vmem:[#allocation55_spill] sm:$0xff] %v12047_v50 }
 0x1a3   : > { %2329 = vrot.lane.b32.xlu1 %v2310_v56, %s11292_s23  ;;  %2323 = vrot.lane.b32.xlu0 %v2302_v2, %s11292_s23  ;;  %v3036_v56 = vmul.f32 %v11655_v55, %v3027_v27  ;;  %v12085_v2 = vld [vmem:[#allocation2 + $0x70] sm:$0xff] }
 0x1a5   : > { %v12055_v7 = vpop.permute.xlu1 %5682  ;;  %v12057_v32 = vpop.permute.xlu0 %5680  ;;  %v3056_v61 = vrot.slane %v3036_v56, 2 }
 0x1a7   : > { %2333 = vrot.lane.b32.xlu1 %v2314_v15, %s11292_s23  ;;  %2331 = vrot.lane.b32.xlu0 %v2312_v16, %s11292_s23  ;;  %v3041_v15 = vmul.f32 %v12085_v2, %v3027_v27  ;;  %v12088_v16 = vld [vmem:[#allocation2 + $0x68] sm:$0xff]  ;;  %v3042_v27 = vmul.f32 %v12097_v36, %v3028_v20 }
 0x1a8   : > { %v3040_v40 = vmul.f32 %v12088_v16, %v3026_v31 }
 0x1a9   : > { %v12067_v63 = vpop.permute.xlu1 %5686  ;;  %v12069_v35 = vpop.permute.xlu0 %5684  ;;  %v3063_v45 = vrot.slane %v3041_v15, 2 }
 0x1aa   : > { %18674 = vst [vmem:[#allocation56_spill] sm:$0xff] %v12067_v63 }
 0x1ab   : > { %2341 = vrot.lane.b32.xlu1 %v2311_v12, %s11292_s23  ;;  %2339 = vrot.lane.b32.xlu0 %v2309_v24, %s11292_s23  ;;  %v3057_v24 = vrot.slane %v3037_v47, 2  ;;  %v3064_v47 = vsel %vm2853_vm3, %v3056_v61, %v3063_v45 }
 0x1ad   : > { %v12080_v54 = vpop.permute.xlu1 %6276  ;;  %v12082_v41 = vpop.permute.xlu0 %6274 }
 0x1ae   : > { %18675 = vst [vmem:[#allocation57_spill] sm:$0xff] %v12082_v41  ;;  %v3061_v41 = vrot.slane %v3040_v40, 2  ;;  %v3034_v40 = vmul.f32 %v11635_v37, %v11810_v48  ;;  %v9859_v37 = vld [vmem:[%s18189_s1 + $0x24] ss:$8 sm:$0xf] }
 0x1af   : > { %3071 = vrot.lane.b32.xlu1 %v3055_v22, %s11291_s19  ;;  %2343 = vrot.lane.b32.xlu0 %v2313_v30, %s11292_s23 }
 0x1b0   : > { %v3062_v56 = vsel %vm2853_vm3, %v3055_v22, %v3061_v41 }
 0x1b1   : > { %v12093_v19 = vpop.permute.xlu1 %827  ;;  %v12095_v12 = vpop.permute.xlu0 %6278 }
 0x1b2   : > { %18676 = vst [vmem:[#allocation58_spill] sm:$0xff] %v12093_v19  ;;  %18677 = vst [vmem:[#allocation59_spill] sm:$0xff] %v12095_v12  ;;  %v3065_v19 = vrot.slane %v3042_v27, 2  ;;  %v3054_v27 = vrot.slane %v3034_v40, 2 }
 0x1b3   : > { %3075 = vrot.lane.b32.xlu1 %v3057_v24, %s11291_s19  ;;  %3073 = vrot.lane.b32.xlu0 %v3056_v61, %s11291_s19 }
 0x1b5   : > { %v12102_v31 = vpop.permute.xlu1 %831  ;;  %v12104_v30 = vpop.permute.xlu0 %829 }
 0x1b6   : > { %18678 = vst [vmem:[#allocation60_spill] sm:$0xff] %v12102_v31  ;;  %18679 = vst [vmem:[#allocation61_spill] sm:$0xff] %v12104_v30  ;;  %v3066_v31 = vsel %vm2853_vm3, %v3057_v24, %v3065_v19 }
 0x1b7   : > { %3083 = vrot.lane.b32.xlu1 %v3064_v47, %s11291_s19  ;;  %3081 = vrot.lane.b32.xlu0 %v3062_v56, %s11291_s19  ;;  %v9863_v47 = vld [vmem:[%s18189_s1 + $0x26] ss:$8 sm:$0xf] }
 0x1b8   : > { %v3802_v24 = vrot.slane %v9863_v47, %v11460_v4  ;;  %v3810_v40 = vrot.slane %v9863_v47, %v11458_v3 }
 0x1b9   : > { %v12110_v15 = vpop.permute.xlu1 %1423  ;;  %v12112_v20 = vpop.permute.xlu0 %1421 }
 0x1ba   : > { %18680 = vst [vmem:[#allocation62_spill] sm:$0xff] %v12110_v15  ;;  %18681 = vst [vmem:[#allocation63_spill] sm:$0xff] %v12112_v20 }
 0x1bb   : > { %3091 = vrot.lane.b32.xlu1 %v3061_v41, %s11291_s19  ;;  %3085 = vrot.lane.b32.xlu0 %v3066_v31, %s11291_s19 }
 0x1bd   : > { %v12119_v61 = vpop.permute.xlu1 %1053  ;;  %v12121_v22 = vpop.permute.xlu0 %1425 }
 0x1be   : > { %18682 = vst [vmem:[#allocation64_spill] sm:$0xff] %v12119_v61  ;;  %18683 = vst [vmem:[#allocation65_spill] sm:$0xff] %v12121_v22  ;;  %v3297_v22 = vrot.slane %v9859_v37, %v11458_v3 }
 0x1bf   : > { %3095 = vrot.lane.b32.xlu1 %v3065_v19, %s11291_s19  ;;  %3093 = vrot.lane.b32.xlu0 %v3063_v45, %s11291_s19  ;;  %v3293_v19 = vrot.slane %v9859_v37, %v11464_v6  ;;  %v3289_v45 = vrot.slane %v9859_v37, %v11460_v4 }
 0x1c1   : > { %v12131_v48 = vpop.permute.xlu1 %1057  ;;  %v12133_v41 = vpop.permute.xlu0 %1055  ;;  %v3306_v61 = vmul.f32 %v11650_v53, %v3289_v45  ;;  %v3310_v30 = vmul.f32 %v12088_v16, %v3289_v45  ;;  %v3311_v45 = vmul.f32 %v12085_v2, %v3293_v19 }
 0x1c2   : > { %18684 = vst [vmem:[#allocation66_spill] sm:$0xff] %v12131_v48  ;;  %18685 = vst [vmem:[#allocation67_spill] sm:$0xff] %v12133_v41  ;;  %v3307_v48 = vmul.f32 %v11655_v55, %v3293_v19  ;;  %v3806_v41 = vrot.slane %v9863_v47, %v11464_v6  ;;  %v3312_v47 = vmul.f32 %v12097_v36, %v3297_v22 }
 0x1c3   : > { %3079 = vrot.lane.b32.xlu1 %v3054_v27, %s11291_s19  ;;  %3069 = vrot.lane.b32.xlu0 %v3054_v27, %s11291_s19  ;;  %v3326_v15 = vrot.slane %v3310_v30, 2  ;;  %v3328_v30 = vrot.slane %v3311_v45, 2  ;;  %v3530_v45 = vrot.slane %v11707_v29, %v11462_v5  ;;  %v3547_v29 = vmul.f32 %v11650_v53, %v11998_v1 }
 0x1c5   : > { %v12140_v31 = vpop.permute.xlu1 %1065  ;;  %v12142_v56 = vpop.permute.xlu0 %1063 }
 0x1c6   : > { %18686 = vst [vmem:[#allocation68_spill] sm:$0xff] %v12140_v31  ;;  %18687 = vst [vmem:[#allocation69_spill] sm:$0xff] %v12142_v56  ;;  %v3322_v56 = vrot.slane %v3306_v61, 2 }
 0x1c7   : > { %3815 = vrot.lane.b32.xlu1 %v3802_v24, %s11290_s29  ;;  %3089 = vrot.lane.b32.xlu0 %v3054_v27, %s11291_s19  ;;  %v3323_v24 = vrot.slane %v3307_v48, 2  ;;  %v3308_v27 = vmul.f32 %v11658_v57, %v3297_v22 }
 0x1c8   : > { %v3327_v48 = vsel %vm2853_vm3, %v3322_v56, %v3326_v15 }
 0x1c9   : > { %v12152_v20 = vpop.permute.xlu1 %1073  ;;  %v12154_v31 = vpop.permute.xlu0 %1067 }
 0x1ca   : > { %18688 = vst [vmem:[#allocation70_spill] sm:$0xff] %v12152_v20  ;;  %18689 = vst [vmem:[#allocation71_spill] sm:$0xff] %v12154_v31 }
 0x1cb   : > { %3819 = vrot.lane.b32.xlu1 %v3810_v40, %s11290_s29  ;;  %3817 = vrot.lane.b32.xlu0 %v3806_v41, %s11290_s29  ;;  %v3324_v40 = vrot.slane %v3308_v27, 2  ;;  %v3330_v41 = vrot.slane %v3312_v47, 2  ;;  %v3329_v27 = vsel %vm2853_vm3, %v3323_v24, %v3328_v30 }
 0x1cd   : > { %v12160_v42 = vpop.permute.xlu1 %1077  ;;  %v12162_v37 = vpop.permute.xlu0 %1075  ;;  %v3331_v22 = vsel %vm2853_vm3, %v3324_v40, %v3330_v41 }
 0x1ce   : > { %18690 = vst [vmem:[#allocation72_spill] sm:$0xff] %v12160_v42  ;;  %18691 = vst [vmem:[#allocation73_spill] sm:$0xff] %v12162_v37  ;;  %v12295_v37 = vld [vmem:[#allocation2 + $0xa8] sm:$0x1] }
 0x1cf   : > { %3336 = vrot.lane.b32.xlu1 %v3323_v24, %s11290_s29  ;;  %3334 = vrot.lane.b32.xlu0 %v3322_v56, %s11290_s29 }
 0x1d1   : > { %v12168_v61 = vpop.permute.xlu1 %1283  ;;  %v12170_v31 = vpop.permute.xlu0 %1281 }
 0x1d2   : > { %18692 = vst [vmem:[#allocation74_spill] sm:$0xff] %v12168_v61  ;;  %18693 = vst [vmem:[#allocation75_spill] sm:$0xff] %v12170_v31 }
 0x1d3   : > { %3342 = vrot.lane.b32.xlu1 %v3327_v48, %s11290_s29  ;;  %3338 = vrot.lane.b32.xlu0 %v3324_v40, %s11290_s29  ;;  %v9865_v40 = vld [vmem:[%s18189_s1 + $0x27] ss:$8 sm:$0xf] }
 0x1d5   : > { %v12175_v19 = vpop.permute.xlu1 %1012  ;;  %v12177_v42 = vpop.permute.xlu0 %1285 }
 0x1d6   : > { %18694 = vst [vmem:[#allocation76_spill] sm:$0xff] %v12175_v19  ;;  %18695 = vst [vmem:[#allocation77_spill] sm:$0xff] %v12177_v42 }
 0x1d7   : > { %3346 = vrot.lane.b32.xlu1 %v3331_v22, %s11290_s29  ;;  %3344 = vrot.lane.b32.xlu0 %v3329_v27, %s11290_s29  ;;  %v4016_v22 = vrot.slane %v9865_v40, %v11464_v6 }
 0x1d9   : > { %v12182_v56 = vpop.permute.xlu1 %1737  ;;  %v12184_v47 = vpop.permute.xlu0 %1735 }
 0x1da   : > { %18696 = vst [vmem:[#allocation78_spill] sm:$0xff] %v12182_v56  ;;  %18697 = vst [vmem:[#allocation79_spill] sm:$0xff] %v12184_v47  ;;  %v12279_v56 = vld [vmem:[#allocation2 + $0xa0] sm:$0x1] }
 0x1db   : > { %3352 = vrot.lane.b32.xlu1 %v3328_v30, %s11290_s29  ;;  %3350 = vrot.lane.b32.xlu0 %v3326_v15, %s11290_s29  ;;  %v4012_v30 = vrot.slane %v9865_v40, %v11460_v4 }
 0x1dd   : > { %v12193_v24 = vpop.permute.xlu1 %1745  ;;  %v12195_v48 = vpop.permute.xlu0 %1739 }
 0x1de   : > { %18698 = vst [vmem:[#allocation80_spill] sm:$0xff] %v12193_v24  ;;  %18699 = vst [vmem:[#allocation81_spill] sm:$0xff] %v12195_v48  ;;  %v3540_v24 = vsel %vm1014_vm1, %v11996_v46, %v12012_v14  ;;  %v3567_v48 = vrot.slane %v3547_v29, 2 }
 0x1df   : > { %3537 = vrot.lane.b32.xlu1 %v3530_v45, %s11292_s23  ;;  %3354 = vrot.lane.b32.xlu0 %v3330_v41, %s11290_s29  ;;  %v3539_v45 = vsel %vm1014_vm1, %v11998_v1, %v11996_v46  ;;  %v4020_v41 = vrot.slane %v9865_v40, %v11458_v3  ;;  %v3549_v53 = vmul.f32 %v11658_v57, %v3540_v24 }
 0x1e0   : > { %v3548_v47 = vmul.f32 %v11655_v55, %v3539_v45  ;;  %v3553_v14 = vmul.f32 %v12085_v2, %v3539_v45  ;;  %v3552_v46 = vmul.f32 %v12088_v16, %v11998_v1 }
 0x1e1   : > { %v12203_v15 = vpop.permute.xlu1 %1749  ;;  %v12205_v27 = vpop.permute.xlu0 %1747 }
 0x1e2   : > { %18700 = vst [vmem:[#allocation82_spill] sm:$0xff] %v12203_v15  ;;  %18701 = vst [vmem:[#allocation83_spill] sm:$0xff] %v12205_v27  ;;  %v3568_v57 = vrot.slane %v3548_v47, 2  ;;  %v3574_v29 = vrot.slane %v3553_v14, 2 }
 0x1e3   : > { %4027 = vrot.lane.b32.xlu1 %v4016_v22, %s11290_s29  ;;  %4025 = vrot.lane.b32.xlu0 %v4012_v30, %s11290_s29  ;;  %v3569_v22 = vrot.slane %v3549_v53, 2 }
 0x1e4   : > { %v3575_v45 = vsel %vm2853_vm3, %v3568_v57, %v3574_v29 }
 0x1e5   : > { %v12217_v15 = vpop.permute.xlu1 %1757  ;;  %v12219_v27 = vpop.permute.xlu0 %1755 }
 0x1e6   : > { %18702 = vst [vmem:[#allocation84_spill] sm:$0xff] %v12217_v15  ;;  %18703 = vst [vmem:[#allocation85_spill] sm:$0xff] %v12219_v27  ;;  %v3572_v15 = vrot.slane %v3552_v46, 2  ;;  %v3554_v27 = vmul.f32 %v12097_v36, %v3540_v24  ;;  %v12246_v24 = vld [vmem:[#allocation2 + $0x40] sm:$0xfe]  ;;  %v4275_v46 = vsel %vm516_vm0, %v12029_v39, %v12027_v13 }
 0x1e7   : > { %3582 = vrot.lane.b32.xlu1 %v3567_v48, %s11292_s23  ;;  %4029 = vrot.lane.b32.xlu0 %v4020_v41, %s11290_s29 }
 0x1e8   : > { %v3576_v41 = vrot.slane %v3554_v27, 2  ;;  %v3573_v53 = vsel %vm2853_vm3, %v3567_v48, %v3572_v15  ;;  %v4274_v27 = vsel %vm516_vm0, %v12010_v21, %v12029_v39  ;;  %v4276_v39 = vsel %vm516_vm0, %v12027_v13, %v12039_v17 }
 0x1e9   : > { %v12227_v40 = vpop.permute.xlu1 %1733  ;;  %v12229_v30 = vpop.permute.xlu0 %1759  ;;  %v4289_v13 = vmul.f32 %v12085_v2, %v4275_v46 }
 0x1ea   : > { %18704 = vst [vmem:[#allocation86_spill] sm:$0xff] %v12227_v40  ;;  %18705 = vst [vmem:[#allocation87_spill] sm:$0xff] %v12229_v30  ;;  %v3577_v48 = vsel %vm2853_vm3, %v3569_v22, %v3576_v41  ;;  %v4288_v30 = vmul.f32 %v12088_v16, %v4274_v27 }
 0x1eb   : > { %3586 = vrot.lane.b32.xlu1 %v3569_v22, %s11292_s23  ;;  %3584 = vrot.lane.b32.xlu0 %v3568_v57, %s11292_s23  ;;  %v4284_v57 = vmul.f32 %v4275_v46, %v12246_v24  ;;  %v4321_v42 = vrot.slane %v4289_v13, 3 }
 0x1ed   : > { %v12234_v55 = vpop.permute.xlu1 %1753  ;;  %v12236_v1 = vpop.permute.xlu0 %1743  ;;  %v4314_v22 = vrot.slane %v4284_v57, 3 }
 0x1ee   : > { %18706 = vst [vmem:[#allocation88_spill] sm:$0xff] %v12234_v55  ;;  %18707 = vst [vmem:[#allocation89_spill] sm:$0xff] %v12236_v1  ;;  %v12251_v1 = vld [vmem:[#allocation2 + $0x38] sm:$0xfe] }
 0x1ef   : > { %3594 = vrot.lane.b32.xlu1 %v3575_v45, %s11292_s23  ;;  %3592 = vrot.lane.b32.xlu0 %v3573_v53, %s11292_s23  ;;  %v4283_v55 = vmul.f32 %v4274_v27, %v12251_v1 }
 0x1f1   : > { %v12242_v14 = vpop.permute.xlu1 %2574  ;;  %v12244_v47 = vpop.permute.xlu0 %2572  ;;  %v4313_v40 = vrot.slane %v4283_v55, 3 }
 0x1f2   : > { %18708 = vst [vmem:[#allocation90_spill] sm:$0xff] %v12242_v14  ;;  %18709 = vst [vmem:[#allocation91_spill] sm:$0xff] %v12244_v47  ;;  %v4290_v14 = vmul.f32 %v12097_v36, %v4276_v39 }
 0x1f3   : > { %3602 = vrot.lane.b32.xlu1 %v3572_v15, %s11292_s23  ;;  %3596 = vrot.lane.b32.xlu0 %v3577_v48, %s11292_s23  ;;  %v12270_v15 = vld [vmem:[#allocation2 + $0x48] sm:$0xfe] }
 0x1f4   : > { %v4285_v47 = vmul.f32 %v4276_v39, %v12270_v15 }
 0x1f5   : > { %v12260_v45 = vpop.permute.xlu1 %2034  ;;  %v12262_v53 = vpop.permute.xlu0 %2576 }
 0x1f6   : > { %18710 = vst [vmem:[#allocation92_spill] sm:$0xff] %v12260_v45  ;;  %18711 = vst [vmem:[#allocation93_spill] sm:$0xff] %v12262_v53  ;;  %v4319_v53 = vrot.slane %v4288_v30, 3  ;;  %v4294_v30 = vmul.f32 %v4275_v46, %v12279_v56 }
 0x1f7   : > { %3606 = vrot.lane.b32.xlu1 %v3576_v41, %s11292_s23  ;;  %3604 = vrot.lane.b32.xlu0 %v3574_v29, %s11292_s23  ;;  %v12283_v41 = vld [vmem:[#allocation2 + $0x98] sm:$0x1] }
 0x1f8   : > { %v4320_v55 = vsel %vm4071_vm4, %v4313_v40, %v4319_v53  ;;  %v4293_v19 = vmul.f32 %v4274_v27, %v12283_v41  ;;  %v4001_v27 = vld [vmem:[#allocation2 + $0x90] sm:$0x1] }
 0x1f9   : > { %v12273_v48 = vpop.permute.xlu1 %2038  ;;  %v12275_v45 = vpop.permute.xlu0 %2036 }
 0x1fa   : > { %18712 = vst [vmem:[#allocation94_spill] sm:$0xff] %v12273_v48  ;;  %18713 = vst [vmem:[#allocation95_spill] sm:$0xff] %v12275_v45  ;;  %v4315_v48 = vrot.slane %v4285_v47, 3  ;;  %v4323_v45 = vrot.slane %v4290_v14, 3  ;;  %v4322_v14 = vsel %vm4071_vm4, %v4314_v22, %v4321_v42  ;;  %v4295_v47 = vmul.f32 %v4276_v39, %v12295_v37 }
 0x1fb   : > { %4341 = vrot.lane.b32.xlu1 %v4314_v22, %s11291_s19  ;;  %4339 = vrot.lane.b32.xlu0 %v4313_v40, %s11291_s19  ;;  %v4329_v40 = vrot.slane %v4293_v19, 3  ;;  %v4292_v22 = vmul.f32 %v12010_v21, %v4001_v27 }
 0x1fc   : > { %v4324_v46 = vsel %vm4071_vm4, %v4315_v48, %v4323_v45 }
 0x1fd   : > { %v12286_v29 = vpop.permute.xlu1 %2044  ;;  %v12288_v57 = vpop.permute.xlu0 %2042  ;;  %v4330_v39 = vsel %vm4071_vm4, %v4319_v53, %v4329_v40  ;;  %v9873_v53 = vld [vmem:[%s18189_s1 + $0x43] ss:$8 sm:$0xf] }
 0x1fe   : > { %18714 = vst [vmem:[#allocation96_spill] sm:$0xff] %v12286_v29  ;;  %18715 = vst [vmem:[#allocation97_spill] sm:$0xff] %v12288_v57  ;;  %v4331_v29 = vrot.slane %v4294_v30, 3  ;;  %v3996_v57 = vld [vmem:[#allocation2 + $0x30] sm:$0xfe] }
 0x1ff   : > { %4349 = vrot.lane.b32.xlu1 %v4320_v55, %s11291_s19  ;;  %4343 = vrot.lane.b32.xlu0 %v4315_v48, %s11291_s19  ;;  %v4282_v55 = vmul.f32 %v12010_v21, %v3996_v57  ;;  %v12312_v48 = vld [vmem:[#allocation2 + $0x10] sm:$0xff] }
 0x200   : > { %v4287_v19 = vmul.f32 %v12312_v48, %v12010_v21  ;;  %v9869_v57 = vld [vmem:[%s18189_s1 + $0x41] ss:$8 sm:$0xf] }
 0x201   : > { %v12297_v31 = vpop.permute.xlu1 %2050  ;;  %v12299_v61 = vpop.permute.xlu0 %2046 }
 0x202   : > { %18716 = vst [vmem:[#allocation98_spill] sm:$0xff] %v12297_v31  ;;  %18717 = vst [vmem:[#allocation99_spill] sm:$0xff] %v12299_v61  ;;  %v4332_v31 = vsel %vm4071_vm4, %v4321_v42, %v4331_v29  ;;  %v4312_v42 = vrot.slane %v4282_v55, 3 }
 0x203   : > { %4353 = vrot.lane.b32.xlu1 %v4324_v46, %s11291_s19  ;;  %4351 = vrot.lane.b32.xlu0 %v4322_v14, %s11291_s19  ;;  %v4333_v46 = vrot.slane %v4295_v47, 3 }
 0x205   : > { %v12306_v13 = vpop.permute.xlu1 %2054  ;;  %v12309_v30 = vpop.permute.xlu0 %2052  ;;  %v4334_v21 = vsel %vm4071_vm4, %v4323_v45, %v4333_v46  ;;  %v5180_v45 = vrot.slane %v9873_v53, %v11464_v6  ;;  %v4581_v46 = vrot.slane %v9869_v57, %v11464_v6 }
 0x206   : > { %18718 = vst [vmem:[#allocation100_spill] sm:$0xff] %v12306_v13  ;;  %18719 = vst [vmem:[#allocation101_spill] sm:$0xff] %v12309_v30  ;;  %v4317_v13 = vrot.slane %v4287_v19, 3  ;;  %v4327_v30 = vrot.slane %v4292_v22, 3  ;;  %v4585_v22 = vrot.slane %v9869_v57, %v11458_v3 }
 0x207   : > { %4361 = vrot.lane.b32.xlu1 %v4332_v31, %s11291_s19  ;;  %4359 = vrot.lane.b32.xlu0 %v4330_v39, %s11291_s19  ;;  %v4577_v31 = vrot.slane %v9869_v57, %v11460_v4  ;;  %v5176_v39 = vrot.slane %v9873_v53, %v11460_v4 }
 0x208   : > { %v4328_v27 = vsel %vm4071_vm4, %v4317_v13, %v4327_v30  ;;  %v4318_v55 = vsel %vm4071_vm4, %v4312_v42, %v4317_v13  ;;  %v4596_v13 = vmul.f32 %v4585_v22, %v12270_v15 }
 0x209   : > { %v12323_v14 = vpop.permute.xlu1 %2817  ;;  %v12325_v29 = vpop.permute.xlu0 %2254  ;;  %v4594_v19 = vmul.f32 %v4577_v31, %v12251_v1  ;;  %v5184_v1 = vrot.slane %v9873_v53, %v11458_v3  ;;  %v4598_v57 = vmul.f32 %v12088_v16, %v4577_v31 }
 0x20a   : > { %18720 = vst [vmem:[#allocation102_spill] sm:$0xff] %v12323_v14  ;;  %18721 = vst [vmem:[#allocation103_spill] sm:$0xff] %v12325_v29 }
 0x20b   : > { %4337 = vrot.lane.b32.xlu1 %v4312_v42, %s11291_s19  ;;  %4363 = vrot.lane.b32.xlu0 %v4334_v21, %s11291_s19  ;;  %v4618_v30 = vrot.slane %v4594_v19, 3  ;;  %v4595_v42 = vmul.f32 %v4581_v46, %v12246_v24  ;;  %v4622_v24 = vrot.slane %v4598_v57, 3 }
 0x20d   : > { %v12334_v40 = vpop.permute.xlu1 %2821  ;;  %v12336_v47 = vpop.permute.xlu0 %2819  ;;  %v4619_v15 = vrot.slane %v4595_v42, 3 }
 0x20e   : > { %18722 = vst [vmem:[#allocation104_spill] sm:$0xff] %v12334_v40  ;;  %18723 = vst [vmem:[#allocation105_spill] sm:$0xff] %v12336_v47 }
 0x20f   : > { %4357 = vrot.lane.b32.xlu1 %v4328_v27, %s11291_s19  ;;  %4347 = vrot.lane.b32.xlu0 %v4318_v55, %s11291_s19  ;;  %v4599_v27 = vmul.f32 %v12085_v2, %v4581_v46 }
 0x211   : > { %v12347_v21 = vpop.permute.xlu1 %2321  ;;  %v12349_v40 = vpop.permute.xlu0 %2319  ;;  %v4624_v19 = vrot.slane %v4599_v27, 3  ;;  %v4603_v27 = vmul.f32 %v4581_v46, %v12279_v56 }
 0x212   : > { %18724 = vst [vmem:[#allocation106_spill] sm:$0xff] %v12347_v21  ;;  %18725 = vst [vmem:[#allocation107_spill] sm:$0xff] %v12349_v40  ;;  %v4600_v40 = vmul.f32 %v12097_v36, %v4585_v22 }
 0x213   : > { %5191 = vrot.lane.b32.xlu1 %v5180_v45, %s11290_s29  ;;  %5189 = vrot.lane.b32.xlu0 %v5176_v39, %s11290_s29  ;;  %v4620_v45 = vrot.slane %v4596_v13, 3  ;;  %v4602_v39 = vmul.f32 %v4577_v31, %v12283_v41  ;;  %v4623_v41 = vsel %vm4071_vm4, %v4618_v30, %v4622_v24 }
 0x214   : > { %v4626_v31 = vrot.slane %v4600_v40, 3  ;;  %v9875_v40 = vld [vmem:[%s18189_s1 + $0x44] ss:$8 sm:$0xf] }
 0x215   : > { %v12357_v55 = vpop.permute.xlu1 %2329  ;;  %v12360_v21 = vpop.permute.xlu0 %2323  ;;  %v4630_v13 = vrot.slane %v4602_v39, 3 }
 0x216   : > { %18726 = vst [vmem:[#allocation108_spill] sm:$0xff] %v12357_v55  ;;  %18727 = vst [vmem:[#allocation109_spill] sm:$0xff] %v12360_v21  ;;  %v4625_v55 = vsel %vm4071_vm4, %v4619_v15, %v4624_v19  ;;  %v12509_v21 = vsel %vm516_vm0, %v12069_v35, %v12067_v63 }
 0x217   : > { %4638 = vrot.lane.b32.xlu1 %v4618_v30, %s11290_s29  ;;  %5193 = vrot.lane.b32.xlu0 %v5184_v1, %s11290_s29  ;;  %v4604_v1 = vmul.f32 %v4585_v22, %v12295_v37  ;;  %v4627_v37 = vsel %vm4071_vm4, %v4620_v45, %v4626_v31  ;;  %v4632_v22 = vrot.slane %v4603_v27, 3  ;;  %v12415_v27 = vld [vmem:[#allocation2 + $0x68] sm:$0xff] }
 0x219   : > { %v12365_v53 = vpop.permute.xlu1 %2333  ;;  %v12368_v47 = vpop.permute.xlu0 %2331  ;;  %v4633_v30 = vsel %vm4071_vm4, %v4624_v19, %v4632_v22  ;;  %v4873_v19 = vsel %vm1014_vm1, %v12037_v10, %v12049_v23 }
 0x21a   : > { %18728 = vst [vmem:[#allocation110_spill] sm:$0xff] %v12365_v53  ;;  %18729 = vst [vmem:[#allocation111_spill] sm:$0xff] %v12368_v47  ;;  %v4631_v53 = vsel %vm4071_vm4, %v4622_v24, %v4630_v13  ;;  %v4634_v47 = vrot.slane %v4604_v1, 3  ;;  %v4832_v13 = vld [vmem:[#allocation2 + $0x40] sm:$0xfe] }
 0x21b   : > { %4642 = vrot.lane.b32.xlu1 %v4620_v45, %s11290_s29  ;;  %4640 = vrot.lane.b32.xlu0 %v4619_v15, %s11290_s29  ;;  %v5426_v45 = vrot.slane %v9875_v40, %v11460_v4  ;;  %v4882_v22 = vmul.f32 %v4873_v19, %v4832_v13 }
 0x21c   : > { %v4635_v56 = vsel %vm4071_vm4, %v4626_v31, %v4634_v47  ;;  %v10871_v47 = vld [vmem:[%s18189_s1 + $0x42] ss:$8 sm:$0xf] }
 0x21d   : > { %v12374_v42 = vpop.permute.xlu1 %2341  ;;  %v12378_v57 = vpop.permute.xlu0 %2339  ;;  %v4831_v31 = vld [vmem:[#allocation2 + $0x38] sm:$0xfe]  ;;  %v4912_v13 = vrot.slane %v4882_v22, 3 }
 0x21e   : > { %18730 = vst [vmem:[#allocation112_spill] sm:$0xff] %v12374_v42  ;;  %18731 = vst [vmem:[#allocation113_spill] sm:$0xff] %v12378_v57  ;;  %v4843_v57 = vld [vmem:[#allocation2 + $0xa8] sm:$0x1] }
 0x21f   : > { %4648 = vrot.lane.b32.xlu1 %v4625_v55, %s11290_s29  ;;  %4646 = vrot.lane.b32.xlu0 %v4623_v41, %s11290_s29  ;;  %v5434_v41 = vrot.slane %v9875_v40, %v11458_v3 }
 0x221   : > { %v12383_v15 = vpop.permute.xlu1 %3071  ;;  %v12386_v39 = vpop.permute.xlu0 %2343 }
 0x222   : > { %18732 = vst [vmem:[#allocation114_spill] sm:$0xff] %v12383_v15  ;;  %18733 = vst [vmem:[#allocation115_spill] sm:$0xff] %v12386_v39  ;;  %v4842_v39 = vld [vmem:[#allocation2 + $0xa0] sm:$0x1] }
 0x223   : > { %4654 = vrot.lane.b32.xlu1 %v4631_v53, %s11290_s29  ;;  %4650 = vrot.lane.b32.xlu0 %v4627_v37, %s11290_s29  ;;  %v4864_v53 = vrot.slane %v10871_v47, %v11462_v5  ;;  %v5430_v37 = vrot.slane %v9875_v40, %v11464_v6  ;;  %v4881_v47 = vmul.f32 %v12037_v10, %v4831_v31  ;;  %v12434_v40 = vld [vmem:[#allocation2 + $0x70] sm:$0xff]  ;;  %v12520_v5 = vld [vmem:[#allocation2 + $0x40] sm:$0xfc] }
 0x224   : > { %v4892_v22 = vmul.f32 %v4873_v19, %v4842_v39 }
 0x225   : > { %v12394_v46 = vpop.permute.xlu1 %3075  ;;  %v12397_v55 = vpop.permute.xlu0 %3073  ;;  %v4911_v15 = vrot.slane %v4881_v47, 3 }
 0x226   : > { %18734 = vst [vmem:[#allocation116_spill] sm:$0xff] %v12394_v46  ;;  %18735 = vst [vmem:[#allocation117_spill] sm:$0xff] %v12397_v55 }
 0x227   : > { %4658 = vrot.lane.b32.xlu1 %v4635_v56, %s11290_s29  ;;  %4656 = vrot.lane.b32.xlu0 %v4633_v30, %s11290_s29 }
 0x229   : > { %v12406_v24 = vpop.permute.xlu1 %3083  ;;  %v12411_v1 = vpop.permute.xlu0 %3081 }
 0x22a   : > { %18736 = vst [vmem:[#allocation118_spill] sm:$0xff] %v12406_v24  ;;  %18737 = vst [vmem:[#allocation119_spill] sm:$0xff] %v12411_v1  ;;  %v12426_v1 = vmul.f32 %v12037_v10, %v12415_v27  ;;  %v12428_v24 = vld [vmem:[#allocation2 + $0x78] sm:$0xff] }
 0x22b   : > { %5439 = vrot.lane.b32.xlu1 %v5426_v45, %s11290_s29  ;;  %4871 = vrot.lane.b32.xlu0 %v4864_v53, %s11292_s23  ;;  %v4833_v45 = vld [vmem:[#allocation2 + $0x48] sm:$0xfe]  ;;  %v4874_v53 = vsel %vm1014_vm1, %v12049_v23, %v12047_v50  ;;  %v4887_v23 = vmul.f32 %v4873_v19, %v12434_v40  ;;  %v387_v19 = vsel %vm385_vm5, %v11614_v11, %v11608_v8  ;;  %v10872_v8 = vld [vmem:[#allocation2] sm:$0xc0] }
 0x22c   : > { %v4883_v31 = vmul.f32 %v4874_v53, %v4833_v45  ;;  %v4916_v55 = vrot.slane %v12426_v1, 3 }
 0x22d   : > { %v12419_v56 = vpop.permute.xlu1 %3091  ;;  %v12421_v30 = vpop.permute.xlu0 %3085  ;;  %v4918_v1 = vrot.slane %v4887_v23, 3 }
 0x22e   : > { %18738 = vst [vmem:[#allocation120_spill] sm:$0xff] %v12419_v56  ;;  %18739 = vst [vmem:[#allocation121_spill] sm:$0xff] %v12421_v30  ;;  %v12440_v30 = vmul.f32 %v4874_v53, %v12428_v24  ;;  %v4913_v45 = vrot.slane %v4883_v31, 3  ;;  %v4917_v47 = vsel %vm4071_vm4, %v4911_v15, %v4916_v55  ;;  %v4928_v31 = vrot.slane %v4892_v22, 3  ;;  %v12479_v22 = vld [vmem:[#allocation2 + $0x20] sm:$0x80] }
 0x22f   : > { %5443 = vrot.lane.b32.xlu1 %v5434_v41, %s11290_s29  ;;  %5441 = vrot.lane.b32.xlu0 %v5430_v37, %s11290_s29  ;;  %v4841_v41 = vld [vmem:[#allocation2 + $0x98] sm:$0x1]  ;;  %18746 = vst [vmem:[#allocation128_spill] sm:$0xff] %v12479_v22 }
 0x230   : > { %v18287_v50 = vrot.slane %v12440_v30, 3  ;;  %v4929_v61 = vsel %vm4071_vm4, %v4918_v1, %v4928_v31 }
 0x231   : > { %v12437_v56 = vpop.permute.xlu1 %3095  ;;  %v12442_v46 = vpop.permute.xlu0 %3093 }
 0x232   : > { %18740 = vst [vmem:[#allocation122_spill] sm:$0xff] %v12437_v56  ;;  %18741 = vst [vmem:[#allocation123_spill] sm:$0xff] %v12442_v46  ;;  %v4891_v46 = vmul.f32 %v12037_v10, %v4841_v41  ;;  %v4921_v23 = vsel %vm4071_vm4, %v4913_v45, %v18287_v50  ;;  %v12475_v41 = vld [vmem:[#allocation2 + $0x38] sm:$0xfc]  ;;  %v12489_v50 = vld [vmem:[#allocation2 + $0x8] sm:$0xc0] }
 0x233   : > { %4938 = vrot.lane.b32.xlu1 %v4912_v13, %s11292_s23  ;;  %4936 = vrot.lane.b32.xlu0 %v4911_v15, %s11292_s23  ;;  %v12468_v15 = vsel %vm516_vm0, %v12057_v32, %v12055_v7  ;;  %18748 = vst [vmem:[#allocation130_spill] sm:$0xff] %v12489_v50 }
 0x234   : > { %v12502_v42 = vmul.f32 %v12468_v15, %v12475_v41  ;;  %v12584_v63 = vmul.f32 %v12088_v16, %v12468_v15 }
 0x235   : > { %v12448_v37 = vpop.permute.xlu1 %3079  ;;  %v12451_v56 = vpop.permute.xlu0 %3069 }
 0x236   : > { %18742 = vst [vmem:[#allocation124_spill] sm:$0xff] %v12448_v37  ;;  %18743 = vst [vmem:[#allocation125_spill] sm:$0xff] %v12451_v56  ;;  %v386_v37 = vsel %vm385_vm5, %v11610_v9, %v11614_v11  ;;  %v4919_v56 = vsel %vm4071_vm4, %v4912_v13, %v4918_v1  ;;  %v4926_v11 = vrot.slane %v4891_v46, 3  ;;  %v10875_v13 = vld [vmem:[#allocation2 + $0x60] sm:$0x3f] }
 0x237   : > { %4946 = vrot.lane.b32.xlu1 %v4917_v47, %s11292_s23  ;;  %4940 = vrot.lane.b32.xlu0 %v4913_v45, %s11292_s23  ;;  %v4893_v47 = vmul.f32 %v4874_v53, %v4843_v57  ;;  %v12487_v45 = vld [vmem:[#allocation2 + $0x80] sm:$0x7f]  ;;  %v395_v57 = vmul.f32 %v12489_v50, %v386_v37  ;;  %v12492_v53 = vld [vmem:[#allocation2 + $0x10] sm:$0xc0] }
 0x238   : > { %18747 = vst [vmem:[#allocation129_spill] sm:$0xff] %v12487_v45  ;;  %18749 = vst [vmem:[#allocation131_spill] sm:$0xff] %v12492_v53  ;;  %v396_v46 = vmul.f32 %v12492_v53, %v387_v19  ;;  %v12525_v53 = vsel %vm516_vm0, %v12055_v7, %v12069_v35  ;;  %v4927_v1 = vsel %vm4071_vm4, %v4916_v55, %v4926_v11  ;;  %v12543_v7 = vld [vmem:[#allocation2 + $0x68] sm:$0x3f] }
 0x239   : > { %v12460_v39 = vpop.permute.xlu1 %3815  ;;  %v12470_v10 = vpop.permute.xlu0 %3089  ;;  %v4930_v14 = vrot.slane %v4893_v47, 3  ;;  %v12531_v31 = vmul.f32 %v11787_v28, %v12487_v45  ;;  %v12538_v47 = vld [vmem:[#allocation2 + $0x40] sm:$0xff]  ;;  %18753 = vst [vmem:[#allocation135_spill] sm:$0xff] %v12543_v7  ;;  %v12546_v35 = vmul.f32 %v12543_v7, %v386_v37  ;;  %v585_v55 = vsel %vm516_vm0, %v11816_v0, %v11896_v58 }
 0x23a   : > { %18744 = vst [vmem:[#allocation126_spill] sm:$0xff] %v12460_v39  ;;  %18745 = vst [vmem:[#allocation127_spill] sm:$0xff] %v12470_v10  ;;  %v394_v39 = vmul.f32 %v10872_v8, %v11610_v9  ;;  %v12484_v10 = vmul.f32 %v12312_v48, %v11610_v9  ;;  %v12541_v50 = vmul.f32 %v12538_v47, %v387_v19  ;;  %v5727_v7 = vrot.slane %v12502_v42, 4 }
 0x23b   : > { %4950 = vrot.lane.b32.xlu1 %v4921_v23, %s11292_s23  ;;  %4948 = vrot.lane.b32.xlu0 %v4919_v56, %s11292_s23  ;;  %v12496_v23 = vmul.f32 %v10875_v13, %v11610_v9  ;;  %v12504_v56 = vld [vmem:[#allocation2 + $0x48] sm:$0xfc]  ;;  %v1682_v9 = vmul.f32 %v11787_v28, %v12479_v22  ;;  %v12516_v13 = vld [vmem:[#allocation2 + $0x50] sm:$0xff]  ;;  %18752 = vst [vmem:[#allocation134_spill] sm:$0xff] %v12531_v31 }
 0x23c   : > { %v586_v11 = vsel %vm516_vm0, %v11896_v58, %v11898_v59  ;;  %v12562_v45 = vmul.f32 %v12509_v21, %v12504_v56  ;;  %v835_v58 = vsel %vm385_vm5, %v11696_v26, %v11694_v25 }
 0x23d   : > { %v12498_v8 = vpop.permute.xlu1 %3819  ;;  %v12511_v29 = vpop.permute.xlu0 %3817  ;;  %v613_v17 = vadd.f32 %v586_v11, %v395_v57 }
 0x23e   : > { %18750 = vst [vmem:[#allocation132_spill] sm:$0xff] %v12498_v8  ;;  %18751 = vst [vmem:[#allocation133_spill] sm:$0xff] %v12511_v29  ;;  %v1687_v8 = vmul.f32 %v12516_v13, %v11787_v28  ;;  %v12533_v29 = vld [vmem:[#allocation2 + $0x38] sm:$0xff] }
 0x23f   : > { %4958 = vrot.lane.b32.xlu1 %v4929_v61, %s11292_s23  ;;  %v12536_v22 = vmul.f32 %v12533_v29, %v386_v37  ;;  %v12548_v61 = vld [vmem:[#allocation2 + $0x70] sm:$0x3f]  ;;  %4956 = vrot.lane.b32.xlu0 %v4927_v1, %s11292_s23  ;;  %v12571_v1 = vmul.f32 %v12085_v2, %v12525_v53  ;;  %v12586_v2 = vld [vmem:[#allocation2 + $0x98] sm:$0x3] }
 0x240   : > { %18754 = vst [vmem:[#allocation136_spill] sm:$0xff] %v12548_v61  ;;  %v12551_v28 = vmul.f32 %v12548_v61, %v387_v19  ;;  %v5698_v19 = vmul.f32 %v12525_v53, %v12520_v5  ;;  %v1720_v61 = vrot.slane %v1682_v9, 1  ;;  %v1721_v20 = vrot.slane %v1687_v8, 1 }
 0x241   : > { %v12564_v37 = vpop.permute.xlu1 %3336  ;;  %v12573_v0 = vpop.permute.xlu0 %3334  ;;  %v836_v8 = vsel %vm385_vm5, %v11694_v25, %v11717_v33  ;;  %v612_v9 = vadd.f32 %v585_v55, %v394_v39  ;;  %v589_v25 = vsel %vm516_vm0, %v11814_v62, %v11906_v52  ;;  %v5729_v39 = vrot.slane %v12562_v45, 4 }
 0x242   : > { %18755 = vst [vmem:[#allocation137_spill] sm:$0xff] %v12564_v37  ;;  %18756 = vst [vmem:[#allocation138_spill] sm:$0xff] %v12573_v0  ;;  %v18757_v37 = vrot.slane %v12440_v30, 3  ;;  %v587_v30 = vsel %vm516_vm0, %v11898_v59, %v11904_v34  ;;  %v5728_v59 = vrot.slane %v5698_v19, 4  ;;  %v12618_v0 = vsel %vm1467_vm2, %v1720_v61, %v1721_v20  ;;  %v12634_v61 = vld [vmem:[#allocation2 + $0xa0] sm:$0x3] }
 0x243   : > { %5753 = vrot.lane.b32.xlu1 %v5727_v7, %s11291_s19  ;;  %18760 = vst [vmem:[#allocation141_spill] sm:$0xff] %v12618_v0  ;;  %v12624_v62 = vmul.f32 %v12097_v36, %v12509_v21  ;;  %v5733_v45 = vrot.slane %v12584_v63, 4  ;;  %v18761_v19 = vrot.slane %v12531_v31, 1  ;;  %v590_v63 = vsel %vm516_vm0, %v11906_v52, %v11918_v60  ;;  %v6247_v52 = vld [vmem:[#allocation2 + $0x48] sm:$0xfc] }
 0x244   : > { %v4931_v42 = vsel %vm4071_vm4, %v18757_v37, %v4930_v14  ;;  %v12599_v14 = vsel %vm385_vm5, %v11729_v44, %v11727_v43  ;;  %v12604_v37 = vsel %vm385_vm5, %v11727_v43, %v11744_v51  ;;  %v614_v43 = vadd.f32 %v587_v30, %v396_v46  ;;  %v12620_v51 = vld [vmem:[#allocation2 + $0xa8] sm:$0x3] }
 0x245   : > { %4960 = vrot.lane.b32.xlu0 %v4931_v42, %s11292_s23  ;;  %v12610_v57 = vpop.permute.xlu1 %3342  ;;  %v12613_v11 = vpop.permute.xlu0 %3338  ;;  %v5707_v42 = vmul.f32 %v12468_v15, %v12586_v2  ;;  %v12631_v55 = vsel %vm1467_vm2, %v1721_v20, %v18761_v19  ;;  %v617_v15 = vadd.f32 %v589_v25, %v12484_v10  ;;  %v12637_v46 = vadd.f32 %v11696_v26, %v612_v9  ;;  %v12652_v25 = vld [vmem:[#allocation2 + $0x80] sm:$0xff] }
 0x246   : > { %18758 = vst [vmem:[#allocation139_spill] sm:$0xff] %v12610_v57  ;;  %18759 = vst [vmem:[#allocation140_spill] sm:$0xff] %v12613_v11  ;;  %v12639_v30 = vadd.f32 %v835_v58, %v613_v17  ;;  %v591_v20 = vsel %vm516_vm0, %v11918_v60, %v11920_v49  ;;  %v12650_v10 = vmul.f32 %v12516_v13, %v11986_v18  ;;  %v18768_v19 = vrot.slane %v12571_v1, 4  ;;  %v5410_v57 = vld [vmem:[#allocation2 + $0x30] sm:$0xfc]  ;;  %v18769_v11 = vld [vmem:[#allocation33_spill] sm:$0xff] }
 0x247   : > { %5757 = vrot.lane.b32.xlu1 %v5729_v39, %s11291_s19  ;;  %18762 = vst [vmem:[#allocation142_spill] sm:$0xff] %v12631_v55  ;;  %18764 = vst [vmem:[#allocation144_spill] sm:$0xff] %v12652_v25  ;;  %v12656_v26 = vmul.f32 %v12652_v25, %v11986_v18  ;;  %v5709_v58 = vmul.f32 %v12509_v21, %v12620_v51  ;;  %v6283_v60 = vsel %vm1014_vm1, %v12080_v54, %v12095_v12 }
 0x248   : > { %18763 = vst [vmem:[#allocation143_spill] sm:$0xff] %v12650_v10  ;;  %v5736_v33 = vsel %vm5485_vm6, %v5728_v59, %v18768_v19  ;;  %v5743_v49 = vrot.slane %v5707_v42, 4  ;;  %v5708_v18 = vmul.f32 %v12525_v53, %v12634_v61  ;;  %v5737_v34 = vrot.slane %v12624_v62, 4  ;;  %v18770_v42 = vld [vmem:[#allocation42_spill] sm:$0xff] }
 0x249   : > { %5755 = vrot.lane.b32.xlu0 %v5728_v59, %s11291_s19  ;;  %18765 = vst [vmem:[#allocation145_spill] sm:$0xff] %v12656_v26  ;;  %v12658_v17 = vpop.permute.xlu1 %3346  ;;  %v12665_v9 = vpop.permute.xlu0 %3344  ;;  %v5734_v21 = vsel %vm5485_vm6, %v5727_v7, %v5733_v45  ;;  %v618_v12 = vadd.f32 %v590_v63, %v12536_v22  ;;  %v593_v59 = vsel %vm516_vm0, %v18769_v11, %v11926_v38  ;;  %v18321_v22 = vrot.slane %v12656_v26, 2  ;;  %v6252_v11 = vld [vmem:[#allocation2 + $0xa8] sm:$0x3] }
 0x24a   : > { %18766 = vst [vmem:[#allocation146_spill] sm:$0xff] %v12658_v17  ;;  %18767 = vst [vmem:[#allocation147_spill] sm:$0xff] %v12665_v9  ;;  %v12673_v17 = vadd.f32 %v836_v8, %v614_v43  ;;  %v619_v9 = vadd.f32 %v591_v20, %v12541_v50  ;;  %v594_v53 = vsel %vm516_vm0, %v11926_v38, %v18770_v42  ;;  %v18771_v8 = vld [vmem:[#allocation43_spill] sm:$0xff]  ;;  %v5747_v62 = vrot.slane %v5709_v58, 4 }
 0x24b   : > { %5765 = vrot.lane.b32.xlu1 %v5736_v33, %s11291_s19  ;;  %v595_v33 = vsel %vm516_vm0, %v18770_v42, %v18771_v8  ;;  %v12691_v43 = vmul.f32 %v6283_v60, %v6247_v52  ;;  %v5744_v38 = vsel %vm5485_vm6, %v5733_v45, %v5743_v49  ;;  %v5696_v20 = vmul.f32 %v12057_v32, %v5410_v57  ;;  %v12784_v8 = vld [vmem:[#allocation2 + $0x68] sm:$0x7f] }
 0x24c   : > { %v12701_v19 = vmul.f32 %v12312_v48, %v12057_v32  ;;  %v12704_v42 = vmul.f32 %v6283_v60, %v12428_v24  ;;  %v12707_v52 = vadd.f32 %v11729_v44, %v617_v15  ;;  %v5738_v58 = vsel %vm5485_vm6, %v5729_v39, %v5737_v34  ;;  %v5415_v24 = vld [vmem:[#allocation2 + $0x90] sm:$0x3] }
 0x24d   : > { %5763 = vrot.lane.b32.xlu0 %v5734_v21, %s11291_s19  ;;  %v12693_v50 = vpop.permute.xlu1 %3352  ;;  %v12695_v63 = vpop.permute.xlu0 %3350  ;;  %v5745_v21 = vrot.slane %v5708_v18, 4  ;;  %v622_v7 = vadd.f32 %v593_v59, %v12496_v23  ;;  %v623_v49 = vadd.f32 %v594_v53, %v12546_v35  ;;  %v12714_v57 = vadd.f32 %v12599_v14, %v618_v12  ;;  %v18777_v35 = vld [vmem:[#allocation62_spill] sm:$0xff]  ;;  %v18778_v14 = vld [vmem:[#allocation63_spill] sm:$0xff]  ;;  %v18783_v18 = vld [vmem:[#allocation57_spill] sm:$0xff] }
 0x24e   : > { %18772 = vst [vmem:[#allocation33_spill] sm:$0xff] %v12693_v50  ;;  %18773 = vst [vmem:[#allocation42_spill] sm:$0xff] %v12695_v63  ;;  %v12717_v45 = vadd.f32 %v12604_v37, %v619_v9  ;;  %v624_v44 = vadd.f32 %v595_v33, %v12551_v28  ;;  %v12721_v15 = vmul.f32 %v6283_v60, %v6252_v11  ;;  %v18775_v23 = vrot.slane %v12650_v10, 2  ;;  %v18780_v33 = vld [vmem:[#allocation61_spill] sm:$0xff]  ;;  %v18781_v11 = vld [vmem:[#allocation58_spill] sm:$0xff] }
 0x24f   : > { %5773 = vrot.lane.b32.xlu1 %v5744_v38, %s11291_s19  ;;  %v1429_v37 = vsel %vm385_vm5, %v18778_v14, %v18777_v35  ;;  %v5748_v28 = vsel %vm5485_vm6, %v5737_v34, %v5747_v62  ;;  %v5726_v60 = vrot.slane %v5696_v20, 4  ;;  %v5731_v59 = vrot.slane %v12701_v19, 4  ;;  %v18784_v20 = vld [vmem:[#allocation60_spill] sm:$0xff]  ;;  %v10882_v53 = vld [vmem:[#allocation2] sm:$0x80] }
 0x250   : > { %v12731_v12 = vsel %vm2853_vm3, %v18775_v23, %v18321_v22  ;;  %v841_v38 = vsel %vm385_vm5, %v18781_v11, %v18780_v33  ;;  %v5706_v22 = vmul.f32 %v12057_v32, %v5415_v24  ;;  %v12752_v34 = vsel %vm1014_vm1, %v18783_v18, %v12080_v54  ;;  %v12765_v32 = vld [vmem:[%s18189_s1 + $0x60] ss:$8 sm:$0xf]  ;;  %v9879_v54 = vld [vmem:[%s18189_s1 + $0x46] ss:$8 sm:$0xf] }
 0x251   : > { %5767 = vrot.lane.b32.xlu0 %v5738_v58, %s11291_s19  ;;  %v12724_v39 = vpop.permute.xlu1 %3537  ;;  %18776 = vst [vmem:[#allocation149_spill] sm:$0xff] %v12731_v12  ;;  %v12736_v9 = vpop.permute.xlu0 %3354  ;;  %v18782_v58 = vrot.slane %v12571_v1, 4  ;;  %v12755_v62 = vadd.f32 %v18781_v11, %v622_v7  ;;  %v842_v19 = vsel %vm385_vm5, %v18780_v33, %v18784_v20  ;;  %v12770_v1 = vld [vmem:[#allocation2 + $0x8] sm:$0x80]  ;;  %v1443_v24 = vmul.f32 %v12533_v29, %v1429_v37 }
 0x252   : > { %18774 = vst [vmem:[#allocation148_spill] sm:$0xff] %v12724_v39  ;;  %18779 = vst [vmem:[#allocation62_spill] sm:$0xff] %v12736_v9  ;;  %v1438_v7 = vmul.f32 %v12770_v1, %v1429_v37  ;;  %v12782_v20 = vadd.f32 %v841_v38, %v623_v49  ;;  %v12787_v12 = vmul.f32 %v12784_v8, %v1429_v37  ;;  %v18787_v9 = vld [vmem:[#allocation65_spill] sm:$0xff]  ;;  %v5741_v49 = vrot.slane %v5706_v22, 4 }
 0x253   : > { %5777 = vrot.lane.b32.xlu1 %v5748_v28, %s11291_s19  ;;  %v5746_v23 = vsel %vm5485_vm6, %v18782_v58, %v5745_v21  ;;  %v1437_v28 = vmul.f32 %v10882_v53, %v18778_v14  ;;  %v1442_v21 = vmul.f32 %v12312_v48, %v18778_v14  ;;  %v10884_v53 = vld [vmem:[#allocation2 + $0x60] sm:$0x7f]  ;;  %v5732_v10 = vsel %vm5485_vm6, %v5726_v60, %v5731_v59 }
 0x254   : > { %v12777_v33 = vmul.f32 %v10884_v53, %v18778_v14  ;;  %v6246_v58 = vld [vmem:[#allocation2 + $0x40] sm:$0xfc]  ;;  %v1430_v14 = vsel %vm385_vm5, %v18777_v35, %v18787_v9  ;;  %v6585_v53 = vrot.slane %v12765_v32, %v11460_v4  ;;  %v12799_v38 = vrot.slane %v9879_v54, %v11464_v6 }
 0x255   : > { %5775 = vrot.lane.b32.xlu0 %v5746_v23, %s11291_s19  ;;  %v12779_v11 = vpop.permute.xlu1 %4027  ;;  %v12789_v26 = vpop.permute.xlu0 %4025  ;;  %v6245_v23 = vld [vmem:[#allocation2 + $0x38] sm:$0xfc]  ;;  %v12801_v37 = vadd.f32 %v842_v19, %v624_v44  ;;  %v1468_v63 = vrot.slane %v1437_v28, 1  ;;  %v12805_v50 = vrot.slane %v9879_v54, %v11460_v4  ;;  %v12808_v35 = vmul.f32 %v12752_v34, %v6246_v58  ;;  %v12814_v44 = vld [vmem:[#allocation2 + $0x10] sm:$0x80] }
 0x256   : > { %18785 = vst [vmem:[#allocation63_spill] sm:$0xff] %v12779_v11  ;;  %18786 = vst [vmem:[#allocation61_spill] sm:$0xff] %v12789_v26  ;;  %v1471_v9 = vrot.slane %v1438_v7, 1  ;;  %v1472_v26 = vrot.slane %v1443_v24, 1  ;;  %v1439_v19 = vmul.f32 %v12814_v44, %v1430_v14  ;;  %v12821_v58 = vmul.f32 %v18783_v18, %v6245_v23  ;;  %v18790_v7 = vld [vmem:[#allocation64_spill] sm:$0xff] }
 0x257   : > { %5761 = vrot.lane.b32.xlu1 %v5732_v10, %s11291_s19  ;;  %v1469_v10 = vrot.slane %v1442_v21, 1  ;;  %v12825_v21 = vadd.f32 %v18790_v7, %v12637_v46  ;;  %v5742_v24 = vsel %vm5485_vm6, %v5731_v59, %v5741_v49  ;;  %v6593_v39 = vrot.slane %v12765_v32, %v11458_v3  ;;  %v12847_v49 = vld [vmem:[#allocation2 + $0x70] sm:$0x7f] }
 0x258   : > { %v12833_v22 = vmul.f32 %v12799_v38, %v12520_v5  ;;  %v6589_v23 = vrot.slane %v12765_v32, %v11464_v6  ;;  %v6008_v46 = vmul.f32 %v12805_v50, %v12475_v41  ;;  %v12845_v59 = vrot.slane %v9879_v54, %v11458_v3  ;;  %18791 = vst [vmem:[#allocation64_spill] sm:$0xff] %v12847_v49  ;;  %v18797_v6 = vld [vmem:[#allocation66_spill] sm:$0xff]  ;;  %v18803_v3 = vld [vmem:[#allocation69_spill] sm:$0xff] }
 0x259   : > { %5751 = vrot.lane.b32.xlu0 %v5726_v60, %s11291_s19  ;;  %v12811_v11 = vpop.permute.xlu1 %3582  ;;  %v1444_v60 = vmul.f32 %v12538_v47, %v1430_v14  ;;  %v12818_v28 = vpop.permute.xlu0 %4029  ;;  %v12850_v5 = vmul.f32 %v12847_v49, %v1430_v14  ;;  %v12856_v32 = vsel %vm1467_vm2, %v1468_v63, %v1469_v10  ;;  %v18792_v41 = vrot.slane %v12777_v33, 1  ;;  %v18796_v63 = vld [vmem:[#allocation67_spill] sm:$0xff] }
 0x25a   : > { %18788 = vst [vmem:[#allocation58_spill] sm:$0xff] %v12811_v11  ;;  %18789 = vst [vmem:[#allocation57_spill] sm:$0xff] %v12818_v28  ;;  %v1474_v54 = vrot.slane %v1439_v19, 1  ;;  %v18794_v55 = vrot.slane %v12787_v12, 1  ;;  %v1083_v0 = vsel %vm1014_vm1, %v18790_v7, %v18796_v63  ;;  %v6033_v19 = vrot.slane %v12833_v22, 4 }
 0x25b   : > { %6598 = vrot.lane.b32.xlu1 %v6585_v53, %s11290_s29  ;;  %v12842_v53 = vmul.f32 %v12088_v16, %v12805_v50  ;;  %v12861_v28 = vsel %vm1467_vm2, %v1469_v10, %v18792_v41  ;;  %v1475_v11 = vrot.slane %v1444_v60, 1  ;;  %v1084_v10 = vsel %vm1014_vm1, %v18796_v63, %v18797_v6  ;;  %v6250_v60 = vld [vmem:[#allocation2 + $0x98] sm:$0x3]  ;;  %v12940_v49 = vld [vmem:[#allocation2 + $0xb0] sm:$0x1] }
 0x25c   : > { %v12868_v14 = vsel %vm1467_vm2, %v1472_v26, %v18794_v55  ;;  %v6295_v55 = vmul.f32 %v18783_v18, %v12415_v27  ;;  %v6032_v41 = vrot.slane %v6008_v46, 4  ;;  %v6010_v7 = vmul.f32 %v12845_v59, %v12504_v56  ;;  %v12896_v27 = vld [vmem:[#allocation2 + $0x70] sm:$0xff] }
 0x25d   : > { %5771 = vrot.lane.b32.xlu0 %v5742_v24, %s11291_s19  ;;  %v12853_v24 = vsel %vm1467_vm2, %v1471_v9, %v1472_v26  ;;  %v12863_v16 = vpop.permute.xlu1 %3586  ;;  %v12870_v31 = vpop.permute.xlu0 %3584  ;;  %v6251_v26 = vld [vmem:[#allocation2 + $0xa0] sm:$0x3]  ;;  %v12889_v63 = vmul.f32 %v12097_v36, %v12845_v59  ;;  %18800 = vst [vmem:[#allocation153_spill] sm:$0xff] %v12896_v27  ;;  %v6296_v56 = vmul.f32 %v12752_v34, %v12434_v40 }
 0x25e   : > { %18793 = vst [vmem:[#allocation150_spill] sm:$0xff] %v12863_v16  ;;  %18795 = vst [vmem:[#allocation151_spill] sm:$0xff] %v12870_v31  ;;  %v12904_v9 = vadd.f32 %v1083_v0, %v12639_v30  ;;  %v12907_v36 = vadd.f32 %v1084_v10, %v12673_v17  ;;  %v6301_v22 = vmul.f32 %v12752_v34, %v6251_v26  ;;  %v18802_v31 = vld [vmem:[#allocation68_spill] sm:$0xff]  ;;  %v6325_v40 = vrot.slane %v6295_v55, 4  ;;  %v18804_v0 = vld [vmem:[#allocation54_spill] sm:$0xff] }
 0x25f   : > { %6602 = vrot.lane.b32.xlu1 %v6593_v39, %s11290_s29  ;;  %v12891_v39 = vld [vmem:[#allocation2 + $0x50] sm:$0xfe]  ;;  %v12917_v46 = vsel %vm1467_vm2, %v1474_v54, %v1475_v11  ;;  %v18806_v17 = vrot.slane %v12842_v53, 4  ;;  %v6034_v34 = vrot.slane %v6010_v7, 4  ;;  %v18347_v10 = vrot.slane %v12889_v63, 4  ;;  %18809 = vst [vmem:[#allocation54_spill] sm:$0xff] %v12940_v49 }
 0x260   : > { %18798 = vst [vmem:[#allocation67_spill] sm:$0xff] %v12891_v39  ;;  %v12922_v30 = vmul.f32 %v18804_v0, %v12891_v39  ;;  %v6017_v54 = vmul.f32 %v12799_v38, %v12634_v61  ;;  %v18807_v26 = vrot.slane %v12850_v5, 1  ;;  %v6327_v4 = vrot.slane %v6296_v56, 4 }
 0x261   : > { %6600 = vrot.lane.b32.xlu0 %v6589_v23, %s11290_s29  ;;  %v12894_v6 = vpop.permute.xlu1 %3594  ;;  %v6013_v23 = vmul.f32 %v12896_v27, %v12799_v38  ;;  %v12909_v16 = vpop.permute.xlu0 %3592  ;;  %v1087_v27 = vsel %vm1014_vm1, %v18803_v3, %v18802_v31  ;;  %v18811_v7 = vrot.slane %v12704_v42, 4  ;;  %v18812_v61 = vrot.slane %v12691_v43, 4 }
 0x262   : > { %18799 = vst [vmem:[#allocation152_spill] sm:$0xff] %v12894_v6  ;;  %18801 = vst [vmem:[#allocation154_spill] sm:$0xff] %v12909_v16  ;;  %v6300_v6 = vmul.f32 %v18783_v18, %v6250_v60  ;;  %v6037_v18 = vsel %vm5485_vm6, %v6032_v41, %v18806_v17  ;;  %v12934_v55 = vsel %vm1467_vm2, %v1475_v11, %v18807_v26  ;;  %v6337_v11 = vrot.slane %v6301_v22, 4 }
 0x263   : > { %6054 = vrot.lane.b32.xlu1 %v6033_v19, %s11290_s29  ;;  %18805 = vst [vmem:[#allocation68_spill] sm:$0xff] %v12922_v30  ;;  %v6038_v39 = vrot.slane %v6013_v23, 4  ;;  %v6016_v16 = vmul.f32 %v12805_v50, %v12586_v2  ;;  %v12949_v38 = vsel %vm5485_vm6, %v18812_v61, %v18811_v7  ;;  %v12953_v23 = vmul.f32 %v12652_v25, %v18804_v0  ;;  %v12973_v61 = vld [vmem:[#allocation2 + $0x50] sm:$0xfc] }
 0x264   : > { %v6335_v17 = vrot.slane %v6300_v6, 4  ;;  %v12957_v2 = vadd.f32 %v18803_v3, %v12707_v52  ;;  %v1116_v50 = vadd.f32 %v1087_v27, %v12714_v57  ;;  %v18813_v56 = vrot.slane %v12821_v58, 4  ;;  %18817 = vst [vmem:[#allocation157_spill] sm:$0xff] %v12973_v61 }
 0x265   : > { %6052 = vrot.lane.b32.xlu0 %v6032_v41, %s11290_s29  ;;  %v12936_v60 = vpop.permute.xlu1 %3602  ;;  %v12942_v41 = vpop.permute.xlu0 %3596  ;;  %v18814_v22 = vrot.slane %v12721_v15, 4  ;;  %v18815_v6 = vmov %v18811_v7  ;;  %v6041_v3 = vsel %vm5485_vm6, %v6034_v34, %v18347_v10  ;;  %v6046_v52 = vrot.slane %v6017_v54, 4  ;;  %v12982_v15 = vld [vmem:[#allocation2 + $0xb0] sm:$0x3] }
 0x266   : > { %18808 = vst [vmem:[#allocation69_spill] sm:$0xff] %v12936_v60  ;;  %18810 = vst [vmem:[#allocation155_spill] sm:$0xff] %v12942_v41  ;;  %v12964_v26 = vsel %vm5485_vm6, %v18813_v56, %v6325_v40  ;;  %v4296_v27 = vmul.f32 %v18804_v0, %v12940_v49  ;;  %v6044_v56 = vrot.slane %v6016_v16, 4  ;;  %v12997_v57 = vsel %vm5485_vm6, %v6327_v4, %v6337_v11  ;;  %v18824_v16 = vld [vmem:[#allocation56_spill] sm:$0xff]  ;;  %v18827_v49 = vld [vmem:[#allocation74_spill] sm:$0xff] }
 0x267   : > { %6060 = vrot.lane.b32.xlu1 %v6037_v18, %s11290_s29  ;;  %v12971_v7 = vsel %vm5485_vm6, %v18815_v6, %v18814_v22  ;;  %18818 = vst [vmem:[#allocation158_spill] sm:$0xff] %v12982_v15  ;;  %v6039_v18 = vsel %vm5485_vm6, %v6033_v19, %v6038_v39  ;;  %v6018_v22 = vmul.f32 %v12845_v59, %v12620_v51  ;;  %v18820_v6 = vrot.slane %v12808_v35, 4  ;;  %v18826_v51 = vld [vmem:[#allocation70_spill] sm:$0xff]  ;;  %v18829_v11 = vld [vmem:[#allocation71_spill] sm:$0xff] }
 0x268   : > { %18816 = vst [vmem:[#allocation156_spill] sm:$0xff] %v12971_v7  ;;  %18822 = vst [vmem:[#allocation161_spill] sm:$0xff] %v12997_v57  ;;  %v13000_v0 = vsel %vm5485_vm6, %v6325_v40, %v6335_v17  ;;  %v4325_v10 = vrot.slane %v12953_v23, 3  ;;  %v13005_v19 = vmul.f32 %v18824_v16, %v12973_v61  ;;  %v1120_v59 = vadd.f32 %v18826_v51, %v12755_v62  ;;  %v18830_v23 = vld [vmem:[#allocation130_spill] sm:$0xff]  ;;  %v18832_v41 = vld [vmem:[#allocation135_spill] sm:$0xff] }
 0x269   : > { %6056 = vrot.lane.b32.xlu0 %v6034_v34, %s11290_s29  ;;  %v12984_v42 = vpop.permute.xlu1 %3606  ;;  %v12992_v34 = vsel %vm5485_vm6, %v18820_v6, %v6327_v4  ;;  %v12994_v54 = vpop.permute.xlu0 %3604  ;;  %18823 = vst [vmem:[#allocation162_spill] sm:$0xff] %v13000_v0  ;;  %v18828_v6 = vld [vmem:[#allocation75_spill] sm:$0xff]  ;;  %v5705_v4 = vmul.f32 %v12652_v25, %v18824_v16  ;;  %v5710_v40 = vmul.f32 %v18824_v16, %v12982_v15  ;;  %v4335_v60 = vrot.slane %v4296_v27, 3 }
 0x26a   : > { %18819 = vst [vmem:[#allocation159_spill] sm:$0xff] %v12984_v42  ;;  %18821 = vst [vmem:[#allocation160_spill] sm:$0xff] %v12994_v54  ;;  %v1289_v42 = vsel %vm385_vm5, %v18828_v6, %v18827_v49  ;;  %v1088_v17 = vsel %vm1014_vm1, %v18802_v31, %v18829_v11  ;;  %v1297_v61 = vmul.f32 %v18830_v23, %v18828_v6  ;;  %v18831_v54 = vld [vmem:[#allocation73_spill] sm:$0xff]  ;;  %v18834_v15 = vrot.slane %v12842_v53, 4 }
 0x26b   : > { %18825 = vst [vmem:[#allocation56_spill] sm:$0xff] %v13005_v19  ;;  %6064 = vrot.lane.b32.xlu1 %v6041_v3, %s11290_s29  ;;  %v6047_v62 = vsel %vm5485_vm6, %v6038_v39, %v6046_v52  ;;  %v1091_v3 = vsel %vm1014_vm1, %v18826_v51, %v18831_v54  ;;  %v1307_v25 = vmul.f32 %v18832_v41, %v18828_v6  ;;  %v6048_v11 = vrot.slane %v6018_v22, 4  ;;  %v18835_v23 = vld [vmem:[#allocation77_spill] sm:$0xff]  ;;  %v18836_v39 = vld [vmem:[#allocation131_spill] sm:$0xff] }
 0x26c   : > { %v6045_v31 = vsel %vm5485_vm6, %v18834_v15, %v6044_v56  ;;  %v1298_v52 = vmul.f32 %v18836_v39, %v1289_v42  ;;  %v1303_v27 = vmul.f32 %v12538_v47, %v1289_v42  ;;  %v1302_v41 = vmul.f32 %v12533_v29, %v18828_v6  ;;  %v10889_v15 = vld [vmem:[%s18189_s1 + $0x47] ss:$8 sm:$0xf] }
 0x26d   : > { %6062 = vrot.lane.b32.xlu0 %v6039_v18, %s11290_s29  ;;  %v13029_v16 = vpop.permute.xlu1 %4341  ;;  %v1290_v18 = vsel %vm385_vm5, %v18827_v49, %v18835_v23  ;;  %v13039_v7 = vpop.permute.xlu0 %4339  ;;  %v18839_v49 = vld [vmem:[#allocation15_spill] sm:$0xff]  ;;  %v5739_v22 = vrot.slane %v5705_v4, 4  ;;  %v18840_v39 = vld [vmem:[#allocation72_spill] sm:$0xff]  ;;  %v1121_v51 = vadd.f32 %v1091_v3, %v12782_v20  ;;  %v1322_v57 = vadd.f32 %v1307_v25, %v1120_v59 }
 0x26e   : > { %18833 = vst [vmem:[#allocation70_spill] sm:$0xff] %v13029_v16  ;;  %18837 = vst [vmem:[#allocation74_spill] sm:$0xff] %v13039_v7  ;;  %v18838_v16 = vld [vmem:[#allocation136_spill] sm:$0xff]  ;;  %v6273_v56 = vrot.slane %v10889_v15, %v18839_v49  ;;  %v1092_v23 = vsel %vm1014_vm1, %v18831_v54, %v18840_v39  ;;  %v1312_v7 = vadd.f32 %v1297_v61, %v12825_v21  ;;  %v18843_v4 = vrot.slane %v12889_v63, 4 }
 0x26f   : > { %v1308_v53 = vmul.f32 %v18838_v16, %v1289_v42  ;;  %6070 = vrot.lane.b32.xlu1 %v6047_v62, %s11290_s29  ;;  %v5749_v42 = vrot.slane %v5710_v40, 4  ;;  %v10890_v6 = vld [vmem:[#allocation2 + $0x18] sm:$0xc0]  ;;  %v13056_v16 = vld [vmem:[#allocation2 + $0x48] sm:$0xff]  ;;  %v10892_v39 = vld [vmem:[#allocation2 + $0x78] sm:$0x3f]  ;;  %v1313_v21 = vadd.f32 %v1298_v52, %v12904_v9  ;;  %v1318_v61 = vadd.f32 %v1303_v27, %v1116_v50 }
 0x270   : > { %v1299_v62 = vmul.f32 %v10890_v6, %v1290_v18  ;;  %18841 = vst [vmem:[#allocation75_spill] sm:$0xff] %v13056_v16  ;;  %v1304_v0 = vmul.f32 %v13056_v16, %v1290_v18  ;;  %v6049_v54 = vsel %vm5485_vm6, %v18843_v4, %v6048_v11  ;;  %v1309_v20 = vmul.f32 %v10892_v39, %v1290_v18  ;;  %v18848_v50 = vld [vmem:[#allocation76_spill] sm:$0xff]  ;;  %v984_v52 = vld [vmem:[#allocation2 + $0x28] sm:$0xc0] }
 0x271   : > { %6068 = vrot.lane.b32.xlu0 %v6045_v31, %s11290_s29  ;;  %v13059_v15 = vpop.permute.xlu1 %4349  ;;  %v13065_v3 = vpop.permute.xlu0 %4343  ;;  %v18845_v40 = vrot.slane %v12922_v30, 3  ;;  %v1117_v25 = vadd.f32 %v1088_v17, %v12717_v45  ;;  %v1323_v59 = vadd.f32 %v1308_v53, %v1121_v51  ;;  %v1317_v6 = vadd.f32 %v1302_v41, %v12957_v2  ;;  %v18849_v11 = vld [vmem:[#allocation28_spill] sm:$0xff]  ;;  %v986_v41 = vld [vmem:[#allocation2 + $0x88] sm:$0x3f] }
 0x272   : > { %18842 = vst [vmem:[#allocation130_spill] sm:$0xff] %v13059_v15  ;;  %18844 = vst [vmem:[#allocation73_spill] sm:$0xff] %v13065_v3  ;;  %v13076_v63 = vsel %vm4071_vm4, %v4325_v10, %v4335_v60  ;;  %v1122_v9 = vadd.f32 %v1092_v23, %v12801_v37  ;;  %v1017_v18 = vsel %vm1014_vm1, %v18849_v11, %v18848_v50  ;;  %v18851_v45 = vrot.slane %v13005_v19, 4  ;;  %v18855_v39 = vld [vmem:[#allocation78_spill] sm:$0xff]  ;;  %v18923_v3 = vld [vmem:[#allocation112_spill] sm:$0xff] }
 0x273   : > { %v13070_v31 = vsel %vm4071_vm4, %v18845_v40, %v4325_v10  ;;  %6280 = vrot.lane.b32.xlu1 %v6273_v56, %s11292_s23  ;;  %18847 = vst [vmem:[#allocation131_spill] sm:$0xff] %v13076_v63  ;;  %v13084_v27 = vsel %vm5485_vm6, %v5739_v22, %v5749_v42  ;;  %v1314_v10 = vadd.f32 %v1299_v62, %v12907_v36  ;;  %v18853_v17 = vrot.slane %v12777_v33, 1  ;;  %v18856_v42 = vld [vmem:[#allocation79_spill] sm:$0xff]  ;;  %v10893_v62 = vld [vmem:[#allocation2 + $0x20] sm:$0xc0] }
 0x274   : > { %18846 = vst [vmem:[#allocation135_spill] sm:$0xff] %v13070_v31  ;;  %18850 = vst [vmem:[#allocation136_spill] sm:$0xff] %v13084_v27  ;;  %v13089_v2 = vsel %vm5485_vm6, %v18851_v45, %v5739_v22  ;;  %v1319_v60 = vadd.f32 %v1304_v0, %v1117_v25  ;;  %v13093_v37 = vadd.f32 %v12856_v32, %v1312_v7  ;;  %v18858_v32 = vrot.slane %v12787_v12, 1  ;;  %v18862_v25 = vld [vmem:[#allocation90_spill] sm:$0xff]  ;;  %v18901_v27 = vld [vmem:[#allocation100_spill] sm:$0xff] }
 0x275   : > { %6072 = vrot.lane.b32.xlu0 %v6049_v54, %s11290_s29  ;;  %18852 = vst [vmem:[#allocation76_spill] sm:$0xff] %v13089_v2  ;;  %v13097_v23 = vadd.f32 %v18853_v17, %v1322_v57  ;;  %v13099_v51 = vpop.permute.xlu1 %4353  ;;  %v1324_v53 = vadd.f32 %v1309_v20, %v1122_v9  ;;  %v1509_v56 = vadd.f32 %v12853_v24, %v1313_v21  ;;  %v13106_v0 = vpop.permute.xlu0 %4351  ;;  %v18859_v57 = vrot.slane %v12808_v35, 4  ;;  %v18860_v54 = vld [vmem:[#allocation81_spill] sm:$0xff]  ;;  %v18866_v9 = vld [vmem:[#allocation80_spill] sm:$0xff]  ;;  %v18902_v31 = vld [vmem:[#allocation103_spill] sm:$0xff] }
 0x276   : > { %18854 = vst [vmem:[#allocation28_spill] sm:$0xff] %v13099_v51  ;;  %v1764_v22 = vsel %vm516_vm0, %v18856_v42, %v18855_v39  ;;  %v1514_v36 = vadd.f32 %v12868_v14, %v1318_v61  ;;  %18857 = vst [vmem:[#allocation78_spill] sm:$0xff] %v13106_v0  ;;  %v1519_v7 = vadd.f32 %v18858_v32, %v1323_v59  ;;  %v18861_v12 = vrot.slane %v12821_v58, 4  ;;  %v18863_v59 = vld [vmem:[#allocation91_spill] sm:$0xff]  ;;  %v18904_v63 = vld [vmem:[#allocation13_spill] sm:$0xff] }
 0x277   : > { %v13111_v33 = vadd.f32 %v12861_v28, %v1317_v6  ;;  %6347 = vrot.lane.b32.xlu1 %v18859_v57, %s11292_s23  ;;  %v13117_v24 = vmul.f32 %v18848_v50, %v984_v52  ;;  %v13119_v4 = vmul.f32 %v10893_v62, %v1017_v18  ;;  %v1765_v14 = vsel %vm516_vm0, %v18855_v39, %v18860_v54  ;;  %v18867_v52 = vld [vmem:[#allocation82_spill] sm:$0xff]  ;;  %v13165_v39 = vld [vmem:[#allocation2 + $0x80] sm:$0x3f] }
 0x278   : > { %v13129_v28 = vmul.f32 %v12312_v48, %v18848_v50  ;;  %v13132_v35 = vmul.f32 %v12516_v13, %v1017_v18  ;;  %v13135_v20 = vmul.f32 %v18848_v50, %v986_v41  ;;  %v13137_v21 = vadd.f32 %v1764_v22, %v1509_v56  ;;  %v18865_v48 = vld [vmem:[#allocation83_spill] sm:$0xff]  ;;  %v18898_v54 = vld [vmem:[#allocation98_spill] sm:$0xff] }
 0x279   : > { %6345 = vrot.lane.b32.xlu0 %v18861_v12, %s11292_s23  ;;  %v1510_v61 = vadd.f32 %v12917_v46, %v1314_v10  ;;  %v1515_v40 = vadd.f32 %v12934_v55, %v1319_v60  ;;  %v2580_v58 = vsel %vm385_vm5, %v18863_v59, %v18862_v25  ;;  %v13144_v6 = vpop.permute.xlu1 %4361  ;;  %v1768_v11 = vsel %vm516_vm0, %v18866_v9, %v18865_v48  ;;  %v18869_v46 = vld [vmem:[#allocation93_spill] sm:$0xff]  ;;  %v13157_v10 = vpop.permute.xlu0 %4359 }
 0x27a   : > { %18864 = vst [vmem:[#allocation79_spill] sm:$0xff] %v13144_v6  ;;  %v1769_v50 = vsel %vm516_vm0, %v18865_v48, %v18867_v52  ;;  %v18868_v45 = vrot.slane %v12850_v5, 1  ;;  %v2581_v55 = vsel %vm385_vm5, %v18862_v25, %v18869_v46  ;;  %18870 = vst [vmem:[#allocation90_spill] sm:$0xff] %v13157_v10  ;;  %v2588_v41 = vmul.f32 %v12770_v1, %v18863_v59  ;;  %v18871_v1 = vld [vmem:[#allocation64_spill] sm:$0xff]  ;;  %v18874_v12 = vld [vmem:[#allocation85_spill] sm:$0xff] }
 0x27b   : > { %v1792_v60 = vadd.f32 %v1765_v14, %v1510_v61  ;;  %v2593_v56 = vmul.f32 %v12533_v29, %v18863_v59  ;;  %6355 = vrot.lane.b32.xlu1 %v12964_v26, %s11292_s23  ;;  %v13168_v5 = vmul.f32 %v13165_v39, %v1017_v18  ;;  %v2594_v22 = vmul.f32 %v12538_v47, %v2580_v58  ;;  %v18873_v18 = vld [vmem:[#allocation84_spill] sm:$0xff]  ;;  %v18922_v10 = vld [vmem:[#allocation110_spill] sm:$0xff] }
 0x27c   : > { %v1520_v17 = vadd.f32 %v18868_v45, %v1324_v53  ;;  %v2589_v53 = vmul.f32 %v12814_v44, %v2580_v58  ;;  %v13174_v32 = vmul.f32 %v12784_v8, %v18863_v59  ;;  %v13177_v57 = vmul.f32 %v18871_v1, %v2580_v58  ;;  %v10895_v61 = vld [vmem:[#allocation2 + $0x18] sm:$0x80]  ;;  %v18876_v8 = vld [vmem:[#allocation86_spill] sm:$0xff]  ;;  %v18877_v58 = vld [vmem:[#allocation87_spill] sm:$0xff] }
 0x27d   : > { %v18872_v62 = vrot.slane %v12691_v43, 4  ;;  %v1796_v26 = vadd.f32 %v1768_v11, %v1514_v36  ;;  %v13182_v14 = vadd.f32 %v1769_v50, %v1515_v40  ;;  %v1772_v44 = vsel %vm516_vm0, %v18874_v12, %v18873_v18  ;;  %v13187_v48 = vpop.permute.xlu1 %4337  ;;  %v10896_v40 = vld [vmem:[#allocation2 + $0x78] sm:$0x7f]  ;;  %v13198_v50 = vpop.permute.xlu0 %4363 }
 0x27e   : > { %v2590_v25 = vmul.f32 %v10895_v61, %v2581_v55  ;;  %18875 = vst [vmem:[#allocation91_spill] sm:$0xff] %v13187_v48  ;;  %v1763_v59 = vsel %vm516_vm0, %v18876_v8, %v18856_v42  ;;  %v1773_v43 = vsel %vm516_vm0, %v18873_v18, %v18877_v58  ;;  %v2595_v36 = vmul.f32 %v13056_v16, %v2581_v55  ;;  %v18879_v45 = vld [vmem:[#allocation88_spill] sm:$0xff]  ;;  %v18884_v58 = vld [vmem:[#allocation94_spill] sm:$0xff] }
 0x27f   : > { %6349 = vrot.lane.b32.xlu0 %v18872_v62, %s11292_s23  ;;  %v13196_v11 = vmul.f32 %v10896_v40, %v2581_v55  ;;  %18878 = vst [vmem:[#allocation83_spill] sm:$0xff] %v13198_v50  ;;  %v1771_v1 = vsel %vm516_vm0, %v18879_v45, %v18874_v12  ;;  %v18880_v62 = vld [vmem:[#allocation89_spill] sm:$0xff]  ;;  %v2618_v42 = vrot.slane %v2588_v41, 1  ;;  %v2619_v8 = vrot.slane %v2593_v56, 1  ;;  %6359 = vrot.lane.b32.xlu1 %v12949_v38, %s11292_s23  ;;  %v18883_v55 = vld [vmem:[#allocation92_spill] sm:$0xff] }
 0x280   : > { %v1767_v61 = vsel %vm516_vm0, %v18880_v62, %v18866_v9  ;;  %v2621_v18 = vrot.slane %v2589_v53, 1  ;;  %v2622_v52 = vrot.slane %v2594_v22, 1  ;;  %v6819_v12 = vld [vmem:[%s18190_s2] sm:$0xf]  ;;  %v1801_v45 = vadd.f32 %v1772_v44, %v1519_v7  ;;  %v18882_v22 = vld [vmem:[#allocation95_spill] sm:$0xff] }
 0x281   : > { %v1790_v9 = vadd.f32 %v1763_v59, %v13093_v37  ;;  %v1802_v41 = vadd.f32 %v1773_v43, %v1520_v17  ;;  %v2624_v56 = vrot.slane %v2590_v25, 1  ;;  %v13216_v62 = vpop.permute.xlu1 %4357  ;;  %v2625_v38 = vrot.slane %v2595_v36, 1  ;;  %v13225_v46 = vpop.permute.xlu0 %4347  ;;  %v18886_v44 = vld [vmem:[#allocation161_spill] sm:$0xff]  ;;  %v18887_v25 = vld [vmem:[#allocation14_spill] sm:$0xff] }
 0x282   : > { %18881 = vst [vmem:[#allocation80_spill] sm:$0xff] %v13216_v62  ;;  %v2058_v40 = vsel %vm385_vm5, %v18883_v55, %v18882_v22  ;;  %18885 = vst [vmem:[#allocation64_spill] sm:$0xff] %v13225_v46  ;;  %v1800_v7 = vadd.f32 %v1771_v1, %v13097_v23  ;;  %v1795_v37 = vadd.f32 %v1767_v61, %v13111_v33  ;;  %v18889_v23 = vrot.slane %v13177_v57, 1  ;;  %v18890_v1 = vld [vmem:[#allocation162_spill] sm:$0xff]  ;;  %v18905_v46 = vld [vmem:[#allocation156_spill] sm:$0xff] }
 0x283   : > { %6357 = vrot.lane.b32.xlu0 %v12992_v34, %s11292_s23  ;;  %v2059_v34 = vsel %vm385_vm5, %v18882_v22, %v18884_v58  ;;  %v2082_v17 = vadd.f32 %v18883_v55, %v1790_v9  ;;  %6367 = vrot.lane.b32.xlu1 %v18886_v44, %s11292_s23  ;;  %v6824_v59 = vrot.slane %v6819_v12, %v18887_v25  ;;  %v18888_v22 = vrot.slane %v13174_v32, 1  ;;  %v2227_v61 = vld [vmem:[#allocation2 + $0x28] sm:$0x80]  ;;  %v18892_v9 = vld [vmem:[#allocation97_spill] sm:$0xff]  ;;  %v13257_v25 = vld [vmem:[#allocation2 + $0x10] sm:$0xff] }
 0x284   : > { %v13234_v43 = vsel %vm1467_vm2, %v2618_v42, %v2619_v8  ;;  %v13237_v36 = vsel %vm1467_vm2, %v2621_v18, %v2622_v52  ;;  %v13247_v33 = vsel %vm1467_vm2, %v2622_v52, %v18889_v23  ;;  %v2083_v42 = vadd.f32 %v2058_v40, %v13137_v21  ;;  %v18891_v18 = vld [vmem:[#allocation96_spill] sm:$0xff]  ;;  %18893 = vst [vmem:[#allocation84_spill] sm:$0xff] %v13257_v25  ;;  %v18896_v52 = vld [vmem:[#allocation99_spill] sm:$0xff] }
 0x285   : > { %v13242_v53 = vsel %vm1467_vm2, %v2619_v8, %v18888_v22  ;;  %v13252_v55 = vadd.f32 %v2059_v34, %v1792_v60  ;;  %v2061_v44 = vsel %vm385_vm5, %v18892_v9, %v18891_v18  ;;  %v18894_v8 = vld [vmem:[#allocation102_spill] sm:$0xff]  ;;  %v13261_v58 = vpop.permute.xlu1 %5191  ;;  %v2062_v23 = vsel %vm385_vm5, %v18891_v18, %v18896_v52  ;;  %v13277_v2 = vpop.permute.xlu0 %5189  ;;  %v18903_v18 = vld [vmem:[#allocation29_spill] sm:$0xff]  ;;  %v18906_v62 = vld [vmem:[#allocation16_spill] sm:$0xff] }
 0x286   : > { %v2833_v22 = vmul.f32 %v13257_v25, %v18894_v8  ;;  %18895 = vst [vmem:[#allocation85_spill] sm:$0xff] %v13261_v58  ;;  %v13270_v60 = vsel %vm1467_vm2, %v2624_v56, %v2625_v38  ;;  %v18899_v40 = vrot.slane %v13196_v11, 1  ;;  %18900 = vst [vmem:[#allocation86_spill] sm:$0xff] %v13277_v2  ;;  %v2258_v52 = vsel %vm1014_vm1, %v18903_v18, %v18902_v31  ;;  %v18918_v2 = vld [vmem:[#allocation153_spill] sm:$0xff] }
 0x287   : > { %6365 = vrot.lane.b32.xlu0 %v18890_v1, %s11292_s23  ;;  %v18897_v1 = vld [vmem:[#allocation101_spill] sm:$0xff]  ;;  %6837 = vrot.lane.b32.xlu1 %v6824_v59, %s11290_s29  ;;  %v6832_v56 = vrot.slane %v6819_v12, %v18904_v63  ;;  %v13288_v30 = vmul.f32 %v18902_v31, %v2227_v61  ;;  %v6828_v50 = vrot.slane %v6819_v12, %v18906_v62  ;;  %v18909_v12 = vld [vmem:[#allocation104_spill] sm:$0xff] }
 0x288   : > { %v2064_v21 = vsel %vm385_vm5, %v18898_v54, %v18897_v1  ;;  %v13275_v34 = vsel %vm1467_vm2, %v2625_v38, %v18899_v40  ;;  %v2065_v19 = vsel %vm385_vm5, %v18897_v1, %v18901_v27  ;;  %v2087_v38 = vadd.f32 %v18892_v9, %v1795_v37  ;;  %v18907_v61 = vld [vmem:[#allocation105_spill] sm:$0xff]  ;;  %v2228_v9 = vld [vmem:[#allocation2 + $0x88] sm:$0x7f] }
 0x289   : > { %v2088_v40 = vadd.f32 %v2061_v44, %v1796_v26  ;;  %v13296_v1 = vmul.f32 %v13257_v25, %v18902_v31  ;;  %v2092_v18 = vadd.f32 %v18898_v54, %v1800_v7  ;;  %v2089_v59 = vadd.f32 %v2062_v23, %v13182_v14  ;;  %v13305_v26 = vpop.permute.xlu1 %4638  ;;  %v13310_v27 = vpop.permute.xlu0 %5193  ;;  %v18911_v54 = vld [vmem:[#allocation128_spill] sm:$0xff]  ;;  %v18924_v25 = vld [vmem:[#allocation113_spill] sm:$0xff] }
 0x28a   : > { %v13300_v63 = vrot.slane %v2833_v22, 2  ;;  %v2825_v37 = vsel %vm385_vm5, %v18894_v8, %v18907_v61  ;;  %18908 = vst [vmem:[#allocation88_spill] sm:$0xff] %v13305_v26  ;;  %v2094_v44 = vadd.f32 %v2065_v19, %v1802_v41  ;;  %v2826_v62 = vsel %vm385_vm5, %v18907_v61, %v18909_v12  ;;  %18910 = vst [vmem:[#allocation89_spill] sm:$0xff] %v13310_v27  ;;  %v10898_v14 = vld [vmem:[%s18189_s1 + $0x5] ss:$8 sm:$0xf] }
 0x28b   : > { %6369 = vrot.lane.b32.xlu0 %v18905_v46, %s11292_s23  ;;  %v2093_v46 = vadd.f32 %v2064_v21, %v1801_v45  ;;  %v2267_v7 = vmul.f32 %v2258_v52, %v18911_v54  ;;  %6841 = vrot.lane.b32.xlu1 %v6832_v56, %s11290_s29  ;;  %v1420_v8 = vrot.slane %v10898_v14, %v18839_v49  ;;  %v18912_v45 = vld [vmem:[#allocation129_spill] sm:$0xff]  ;;  %v2306_v41 = vrot.slane %v13288_v30, 1  ;;  %v13332_v26 = vld [vmem:[#allocation2 + $0x68] sm:$0xff]  ;;  %v18916_v27 = vld [vmem:[#allocation107_spill] sm:$0xff] }
 0x28c   : > { %v2272_v22 = vmul.f32 %v12516_v13, %v2258_v52  ;;  %v13320_v19 = vmul.f32 %v2258_v52, %v18912_v45  ;;  %v2834_v23 = vmul.f32 %v12533_v29, %v2825_v37  ;;  %v18913_v21 = vld [vmem:[#allocation17_spill] sm:$0xff]  ;;  %v2307_v61 = vrot.slane %v13296_v1, 1  ;;  %18914 = vst [vmem:[#allocation95_spill] sm:$0xff] %v13332_v26  ;;  %v18915_v30 = vld [vmem:[#allocation106_spill] sm:$0xff] }
 0x28d   : > { %v798_v56 = vmul.f32 %v13165_v39, %v18913_v21  ;;  %v13329_v12 = vmul.f32 %v18902_v31, %v2228_v9  ;;  %v2835_v14 = vmul.f32 %v12538_v47, %v2826_v62  ;;  %v13335_v52 = vmul.f32 %v13332_v26, %v2825_v37  ;;  %v18919_v1 = vld [vmem:[#allocation109_spill] sm:$0xff]  ;;  %v18920_v9 = vld [vmem:[#allocation111_spill] sm:$0xff]  ;;  %v18921_v21 = vld [vmem:[#allocation108_spill] sm:$0xff]  ;;  %v13354_v6 = vpop.permute.xlu0 %4640 }
 0x28e   : > { %v2349_v48 = vsel %vm1014_vm1, %v18916_v27, %v18915_v30  ;;  %v13343_v39 = vmul.f32 %v18918_v2, %v2826_v62  ;;  %v2350_v31 = vsel %vm1014_vm1, %v18915_v30, %v18919_v1  ;;  %v2353_v58 = vsel %vm1014_vm1, %v18921_v21, %v18920_v9 }
 0x28f   : > { %6839 = vrot.lane.b32.xlu0 %v6828_v50, %s11290_s29  ;;  %v13340_v50 = vpop.permute.xlu1 %4642  ;;  %v2354_v37 = vsel %vm1014_vm1, %v18920_v9, %v18922_v10  ;;  %v2376_v51 = vadd.f32 %v18916_v27, %v2082_v17  ;;  %1427 = vrot.lane.b32.xlu1 %v1420_v8, %s11290_s29  ;;  %v2303_v62 = vrot.slane %v2267_v7, 1  ;;  %v18377_v15 = vrot.slane %v13320_v19, 1 }
 0x290   : > { %18917 = vst [vmem:[#allocation92_spill] sm:$0xff] %v13340_v50  ;;  %v2304_v50 = vrot.slane %v2272_v22, 1  ;;  %v2855_v0 = vrot.slane %v2834_v23, 2  ;;  %v2377_v30 = vadd.f32 %v2349_v48, %v2083_v42  ;;  %v2381_v1 = vadd.f32 %v18921_v21, %v2087_v38 }
 0x291   : > { %v2357_v16 = vsel %vm1014_vm1, %v18924_v25, %v18923_v3  ;;  %v2856_v9 = vrot.slane %v2835_v14, 2  ;;  %v2378_v10 = vadd.f32 %v2350_v31, %v13252_v55  ;;  %v2382_v27 = vadd.f32 %v2353_v58, %v2088_v40  ;;  %v13370_v42 = vpop.permute.xlu0 %4646  ;;  %v18925_v14 = vld [vmem:[#allocation115_spill] sm:$0xff] }
 0x292   : > { %v2383_v17 = vadd.f32 %v2354_v37, %v2089_v59  ;;  %v2861_v7 = vrot.slane %v13335_v52, 2  ;;  %v2863_v22 = vrot.slane %v13343_v39, 2  ;;  %v2386_v48 = vadd.f32 %v18924_v25, %v2092_v18  ;;  %v10900_v55 = vld [vmem:[%s18189_s1 + $0x7] ss:$8 sm:$0xf] }
 0x293   : > { %833 = vrot.lane.b32.xlu0 %v798_v56, %s11290_s29  ;;  %v13365_v8 = vpop.permute.xlu1 %4648  ;;  %v18376_v38 = vrot.slane %v13329_v12, 1  ;;  %v2658_v23 = vadd.f32 %v13234_v43, %v2376_v51  ;;  %v2387_v56 = vadd.f32 %v2357_v16, %v2093_v46  ;;  %v2358_v58 = vsel %vm1014_vm1, %v18923_v3, %v18925_v14  ;;  %1061 = vrot.lane.b32.xlu1 %v13117_v24, %s11292_s23  ;;  %v18972_v14 = vld [vmem:[#allocation63_spill] sm:$0xff] }
 0x294   : > { %v1985_v25 = vrot.slane %v10900_v55, %v18839_v49  ;;  %v2659_v40 = vadd.f32 %v13237_v36, %v2377_v30  ;;  %v2663_v18 = vadd.f32 %v13242_v53, %v2381_v1  ;;  %v13388_v16 = vsel %vm1467_vm2, %v2303_v62, %v2304_v50  ;;  %v18933_v30 = vld [vmem:[#allocation114_spill] sm:$0xff]  ;;  %v18938_v55 = vld [vmem:[#allocation133_spill] sm:$0xff] }
 0x295   : > { %v13393_v3 = vsel %vm1467_vm2, %v2304_v50, %v18377_v15  ;;  %v2660_v51 = vadd.f32 %v13270_v60, %v2378_v10  ;;  %v2664_v24 = vadd.f32 %v13247_v33, %v2382_v27  ;;  %v2665_v43 = vadd.f32 %v13275_v34, %v2383_v17  ;;  %v13407_v39 = vpop.permute.xlu0 %4650 }
 0x296   : > { %v13401_v53 = vsel %vm1467_vm2, %v2306_v41, %v2307_v61  ;;  %v2388_v46 = vadd.f32 %v2358_v58, %v2094_v44  ;;  %v2862_v52 = vsel %vm2853_vm3, %v2855_v0, %v2861_v7  ;;  %v2864_v50 = vsel %vm2853_vm3, %v2856_v9, %v2863_v22  ;;  %18928 = vst [vmem:[#allocation162_spill] sm:$0xff] %v13407_v39 }
 0x297   : > { %1059 = vrot.lane.b32.xlu0 %v13119_v4, %s11292_s23  ;;  %v13398_v36 = vpop.permute.xlu1 %4654  ;;  %v18927_v4 = vrot.slane %v13174_v32, 1  ;;  %v18929_v10 = vrot.slane %v13177_v57, 1  ;;  %v13412_v60 = vadd.f32 %v13300_v63, %v2658_v23  ;;  %1071 = vrot.lane.b32.xlu1 %v13129_v28, %s11292_s23  ;;  %v1993_v34 = vmul.f32 %v1985_v25, %v18911_v54  ;;  %v18937_v23 = vld [vmem:[#allocation119_spill] sm:$0xff] }
 0x298   : > { %18926 = vst [vmem:[#allocation161_spill] sm:$0xff] %v13398_v36  ;;  %v13420_v32 = vsel %vm1467_vm2, %v2307_v61, %v18376_v38  ;;  %v2885_v44 = vadd.f32 %v2855_v0, %v2659_v40  ;;  %v13423_v41 = vadd.f32 %v13300_v63, %v2663_v18  ;;  %v1997_v57 = vmul.f32 %v12516_v13, %v1985_v25  ;;  %v10901_v0 = vld [vmem:[%s18189_s1 + $0x4] ss:$8 sm:$0xf] }
 0x299   : > { %v2668_v59 = vadd.f32 %v18927_v4, %v2386_v48  ;;  %v2669_v33 = vadd.f32 %v18929_v10, %v2387_v56  ;;  %v13429_v1 = vmul.f32 %v1985_v25, %v18912_v45  ;;  %v2886_v28 = vadd.f32 %v2856_v9, %v2660_v51  ;;  %v18934_v45 = vld [vmem:[#allocation116_spill] sm:$0xff]  ;;  %v13446_v17 = vpop.permute.xlu0 %4656  ;;  %v18936_v48 = vld [vmem:[#allocation118_spill] sm:$0xff]  ;;  %v18940_v18 = vld [vmem:[#allocation121_spill] sm:$0xff] }
 0x29a   : > { %v2890_v31 = vadd.f32 %v2862_v52, %v2664_v24  ;;  %v2891_v54 = vadd.f32 %v2864_v50, %v2665_v43  ;;  %v1280_v61 = vrot.slane %v10901_v0, %v18839_v49  ;;  %v18931_v37 = vrot.slane %v13196_v11, 1  ;;  %18935 = vst [vmem:[#allocation97_spill] sm:$0xff] %v13446_v17  ;;  %v18939_v11 = vld [vmem:[#allocation126_spill] sm:$0xff] }
 0x29b   : > { %1069 = vrot.lane.b32.xlu0 %v13132_v35, %s11292_s23  ;;  %v13431_v21 = vpop.permute.xlu1 %4658  ;;  %v18932_v35 = vld [vmem:[#allocation117_spill] sm:$0xff]  ;;  %v2894_v27 = vadd.f32 %v13300_v63, %v2668_v59  ;;  %v3104_v56 = vsel %vm516_vm0, %v18937_v23, %v18936_v48  ;;  %v2895_v58 = vadd.f32 %v2861_v7, %v2669_v33  ;;  %v3823_v25 = vsel %vm385_vm5, %v18939_v11, %v18938_v55  ;;  %v18941_v63 = vld [vmem:[#allocation132_spill] sm:$0xff]  ;;  %v18954_v38 = vld [vmem:[#allocation134_spill] sm:$0xff] }
 0x29c   : > { %18930 = vst [vmem:[#allocation96_spill] sm:$0xff] %v13431_v21  ;;  %v2670_v62 = vadd.f32 %v18931_v37, %v2388_v46  ;;  %v3100_v13 = vsel %vm516_vm0, %v18933_v30, %v18932_v35  ;;  %v3101_v9 = vsel %vm516_vm0, %v18932_v35, %v18934_v45  ;;  %1081 = vrot.lane.b32.xlu1 %v13135_v20, %s11292_s23  ;;  %v2023_v40 = vrot.slane %v1993_v34, 1  ;;  %v18943_v37 = vld [vmem:[#allocation141_spill] sm:$0xff]  ;;  %v18945_v35 = vld [vmem:[#allocation120_spill] sm:$0xff]  ;;  %v18978_v36 = vld [vmem:[#allocation62_spill] sm:$0xff] }
 0x29d   : > { %v3105_v51 = vsel %vm516_vm0, %v18936_v48, %v18940_v18  ;;  %v3824_v24 = vsel %vm385_vm5, %v18938_v55, %v18941_v63  ;;  %v2024_v7 = vrot.slane %v1997_v57, 1  ;;  %v18378_v43 = vrot.slane %v13429_v1, 1  ;;  %v13483_v33 = vpop.permute.xlu0 %4871  ;;  %v18970_v63 = vld [vmem:[#allocation84_spill] sm:$0xff] }
 0x29e   : > { %v3127_v4 = vadd.f32 %v3100_v13, %v2885_v44  ;;  %v13465_v59 = vadd.f32 %v3101_v9, %v2886_v28  ;;  %v13469_v20 = vmul.f32 %v12533_v29, %v18939_v11  ;;  %v13473_v46 = vmul.f32 %v13332_v26, %v18939_v11  ;;  %v10902_v29 = vld [vmem:[%s18189_s1 + $0x21] ss:$8 sm:$0xf] }
 0x29f   : > { %1079 = vrot.lane.b32.xlu0 %v13168_v5, %s11292_s23  ;;  %v13475_v52 = vpop.permute.xlu1 %5439  ;;  %v2896_v50 = vadd.f32 %v2863_v22, %v2670_v62  ;;  %v13478_v10 = vmul.f32 %v12538_v47, %v3823_v25  ;;  %v13481_v5 = vmul.f32 %v18918_v2, %v3823_v25  ;;  %v2571_v34 = vrot.slane %v10902_v29, %v18839_v49  ;;  %v18942_v28 = vld [vmem:[#allocation75_spill] sm:$0xff]  ;;  %v10903_v22 = vld [vmem:[#allocation2 + $0x78] sm:$0xff]  ;;  %v18946_v9 = vld [vmem:[#allocation125_spill] sm:$0xff] }
 0x2a0   : > { %v3132_v44 = vadd.f32 %v3104_v56, %v2890_v31  ;;  %v13489_v57 = vadd.f32 %v3105_v51, %v2891_v54  ;;  %v13492_v0 = vmul.f32 %v18942_v28, %v3824_v24  ;;  %v13494_v47 = vmul.f32 %v10903_v22, %v3824_v24  ;;  %1741 = vrot.lane.b32.xlu1 %v18943_v37, %s11291_s19  ;;  %v18944_v62 = vld [vmem:[#allocation123_spill] sm:$0xff]  ;;  %v18947_v56 = vld [vmem:[#allocation122_spill] sm:$0xff]  ;;  %v18948_v11 = vld [vmem:[#allocation124_spill] sm:$0xff] }
 0x2a1   : > { %v3108_v13 = vsel %vm516_vm0, %v18945_v35, %v18944_v62  ;;  %v3099_v48 = vsel %vm516_vm0, %v18946_v9, %v18933_v30  ;;  %v2025_v31 = vsel %vm1467_vm2, %v2023_v40, %v2024_v7  ;;  %v13509_v54 = vsel %vm1467_vm2, %v2024_v7, %v18378_v43  ;;  %v18950_v40 = vld [vmem:[#allocation127_spill] sm:$0xff]  ;;  %v13526_v28 = vpop.permute.xlu0 %5441 }
 0x2a2   : > { %v3109_v55 = vsel %vm516_vm0, %v18944_v62, %v18947_v56  ;;  %v3103_v25 = vsel %vm516_vm0, %v18948_v11, %v18937_v23  ;;  %v18380_v51 = vrot.slane %v13469_v20, 2  ;;  %v18379_v30 = vrot.slane %v13473_v46, 2  ;;  %18951 = vst [vmem:[#allocation101_spill] sm:$0xff] %v13526_v28  ;;  %v10904_v23 = vld [vmem:[%s18189_s1 + $0x24] ss:$8 sm:$0xf] }
 0x2a3   : > { %1287 = vrot.lane.b32.xlu0 %v1280_v61, %s11290_s29  ;;  %v13519_v61 = vpop.permute.xlu1 %5443  ;;  %v3107_v24 = vsel %vm516_vm0, %v18950_v40, %v18945_v35  ;;  %v3301_v22 = vrot.slane %v10904_v23, %v18839_v49  ;;  %v3126_v37 = vadd.f32 %v3099_v48, %v13412_v60  ;;  %v18952_v11 = vld [vmem:[#allocation137_spill] sm:$0xff]  ;;  %v18953_v35 = vld [vmem:[#allocation138_spill] sm:$0xff]  ;;  %v18955_v15 = vrot.slane %v18954_v38, 1  ;;  %v18957_v38 = vld [vmem:[#allocation148_spill] sm:$0xff] }
 0x2a4   : > { %18949 = vst [vmem:[#allocation102_spill] sm:$0xff] %v13519_v61  ;;  %v3358_v40 = vsel %vm385_vm5, %v18953_v35, %v18952_v11  ;;  %v3137_v43 = vadd.f32 %v3108_v13, %v2895_v58  ;;  %v3138_v7 = vadd.f32 %v3109_v55, %v2896_v50  ;;  %v3131_v29 = vadd.f32 %v3103_v25, %v13423_v41  ;;  %v18956_v23 = vld [vmem:[#allocation142_spill] sm:$0xff]  ;;  %v18976_v61 = vld [vmem:[#allocation33_spill] sm:$0xff] }
 0x2a5   : > { %1761 = vrot.lane.b32.xlu1 %v18955_v15, %s11291_s19  ;;  %v13547_v60 = vld [vmem:[%s18189_s1 + $0x22] ss:$8 sm:$0xf]  ;;  %v3136_v62 = vadd.f32 %v3107_v24, %v2894_v27  ;;  %v3382_v9 = vadd.f32 %v18953_v35, %v3126_v37  ;;  %v13560_v41 = vsel %vm2853_vm3, %v18380_v51, %v18379_v30  ;;  %v13564_v13 = vadd.f32 %v3358_v40, %v3127_v4  ;;  %v13573_v24 = vpop.permute.xlu0 %4936 }
 0x2a6   : > { %v18958_v15 = vld [vmem:[#allocation53_spill] sm:$0xff]  ;;  %v18960_v55 = vrot.slane %v13481_v5, 2  ;;  %v18961_v27 = vrot.slane %v13478_v10, 2  ;;  %18962 = vst [vmem:[#allocation103_spill] sm:$0xff] %v13573_v24  ;;  %v10906_v37 = vld [vmem:[#allocation2 + $0x50] sm:$0xff]  ;;  %v18964_v30 = vld [vmem:[#allocation140_spill] sm:$0xff] }
 0x2a7   : > { %1751 = vrot.lane.b32.xlu0 %v18956_v23, %s11291_s19  ;;  %v3541_v58 = vsel %vm1014_vm1, %v18958_v15, %v18957_v38  ;;  %v13562_v50 = vpop.permute.xlu1 %4938  ;;  %v13575_v35 = vmul.f32 %v10906_v37, %v3301_v22  ;;  %v18963_v23 = vld [vmem:[#allocation144_spill] sm:$0xff]  ;;  %v3359_v4 = vsel %vm385_vm5, %v18952_v11, %v18964_v30  ;;  %v18965_v40 = vld [vmem:[#allocation147_spill] sm:$0xff]  ;;  %v18967_v18 = vrot.slane %v13494_v47, 2  ;;  %v18969_v30 = vld [vmem:[#allocation146_spill] sm:$0xff] }
 0x2a8   : > { %18959 = vst [vmem:[#allocation98_spill] sm:$0xff] %v13562_v50  ;;  %v13571_v25 = vsel %vm2853_vm3, %v18961_v27, %v18960_v55  ;;  %v13578_v15 = vmul.f32 %v18963_v23, %v3301_v22  ;;  %v18966_v51 = vld [vmem:[#allocation139_spill] sm:$0xff]  ;;  %v18968_v55 = vrot.slane %v13492_v0, 2  ;;  %v3362_v56 = vsel %vm385_vm5, %v18965_v40, %v18969_v30  ;;  %v18973_v24 = vld [vmem:[#allocation61_spill] sm:$0xff]  ;;  %v18977_v28 = vld [vmem:[#allocation42_spill] sm:$0xff] }
 0x2a9   : > { %v3361_v48 = vsel %vm385_vm5, %v18966_v51, %v18965_v40  ;;  %2040 = vrot.lane.b32.xlu1 %v2025_v31, %s11290_s29  ;;  %v13597_v22 = vld [vmem:[%s18189_s1 + $0x26] ss:$8 sm:$0xf]  ;;  %v13604_v45 = vmul.f32 %v10906_v37, %v3541_v58  ;;  %v13613_v31 = vadd.f32 %v18966_v51, %v3131_v29  ;;  %v4033_v11 = vsel %vm385_vm5, %v18973_v24, %v18972_v14  ;;  %v10908_v37 = vld [vmem:[#allocation2 + $0x90] sm:$0x1] }
 0x2aa   : > { %v13591_v27 = vsel %vm2853_vm3, %v18968_v55, %v18967_v18  ;;  %v3551_v18 = vmul.f32 %v18970_v63, %v18957_v38  ;;  %v13609_v55 = vmul.f32 %v18963_v23, %v3541_v58  ;;  %v4046_v40 = vmul.f32 %v18970_v63, %v18973_v24  ;;  %v13624_v23 = vpop.permute.xlu0 %4940  ;;  %v10911_v51 = vld [vmem:[#allocation2 + $0x38] sm:$0xfe] }
 0x2ab   : > { %2578 = vrot.lane.b32.xlu0 %v2571_v34, %s11290_s29  ;;  %v4051_v30 = vmul.f32 %v10908_v37, %v18973_v24  ;;  %v13621_v50 = vpop.permute.xlu1 %4946  ;;  %v3384_v38 = vadd.f32 %v3359_v4, %v13465_v59  ;;  %v3388_v58 = vadd.f32 %v3361_v48, %v3132_v44  ;;  %18975 = vst [vmem:[#allocation105_spill] sm:$0xff] %v13624_v23  ;;  %v18979_v44 = vrot.slane %v13429_v1, 1 }
 0x2ac   : > { %18971 = vst [vmem:[#allocation29_spill] sm:$0xff] %v13609_v55  ;;  %18974 = vst [vmem:[#allocation156_spill] sm:$0xff] %v13621_v50  ;;  %v13629_v29 = vadd.f32 %v3362_v56, %v13489_v57  ;;  %v3364_v21 = vsel %vm385_vm5, %v18977_v28, %v18976_v61  ;;  %v3365_v37 = vsel %vm385_vm5, %v18976_v61, %v18978_v36  ;;  %v10909_v50 = vld [vmem:[#allocation2 + $0x30] sm:$0xfe]  ;;  %v13644_v57 = vrot.slane %v3551_v18, 2 }
 0x2ad   : > { %v13638_v59 = vmul.f32 %v10909_v50, %v18973_v24  ;;  %2056 = vrot.lane.b32.xlu1 %v18979_v44, %s11290_s29  ;;  %v13648_v4 = vmul.f32 %v13332_v26, %v4033_v11  ;;  %v10910_v61 = vld [vmem:[#allocation2 + $0x98] sm:$0x1]  ;;  %v4077_v50 = vrot.slane %v4046_v40, 3  ;;  %v4087_v24 = vrot.slane %v4051_v30, 3  ;;  %v18994_v26 = vld [vmem:[#allocation154_spill] sm:$0xff] }
 0x2ae   : > { %18980 = vst [vmem:[#allocation128_spill] sm:$0xff] %v13644_v57  ;;  %v13652_v34 = vmul.f32 %v10910_v61, %v4033_v11  ;;  %v13654_v1 = vmul.f32 %v10911_v51, %v4033_v11  ;;  %v3392_v18 = vadd.f32 %v18977_v28, %v3136_v62  ;;  %v3393_v48 = vadd.f32 %v3364_v21, %v3137_v43  ;;  %v13659_v56 = vpop.permute.xlu0 %4948  ;;  %v13671_v30 = vld [vmem:[%s18189_s1 + $0x27] ss:$8 sm:$0xf] }
 0x2af   : > { %2048 = vrot.lane.b32.xlu0 %v13509_v54, %s11290_s29  ;;  %v13656_v44 = vpop.permute.xlu1 %4950  ;;  %18982 = vst [vmem:[#allocation17_spill] sm:$0xff] %v13659_v56  ;;  %v18983_v36 = vrot.slane %v13578_v15, 2  ;;  %v18984_v23 = vrot.slane %v13575_v35, 2  ;;  %v3394_v40 = vadd.f32 %v3365_v37, %v3138_v7  ;;  %v18985_v28 = vld [vmem:[#allocation58_spill] sm:$0xff]  ;;  %v18986_v43 = vld [vmem:[#allocation57_spill] sm:$0xff]  ;;  %v4072_v51 = vrot.slane %v13638_v59, 3 }
 0x2b0   : > { %18981 = vst [vmem:[#allocation129_spill] sm:$0xff] %v13656_v44  ;;  %v3639_v21 = vadd.f32 %v18985_v28, %v3382_v9  ;;  %v4034_v62 = vsel %vm385_vm5, %v18972_v14, %v18986_v43  ;;  %v18988_v7 = vrot.slane %v13547_v60, %v18839_v49  ;;  %v18989_v9 = vrot.slane %v13609_v55, 2  ;;  %v18991_v59 = vld [vmem:[#allocation150_spill] sm:$0xff]  ;;  %v10914_v56 = vld [vmem:[#allocation2 + $0xa0] sm:$0x1] }
 0x2b1   : > { %v13666_v54 = vsel %vm2853_vm3, %v18984_v23, %v18983_v36  ;;  %2325 = vrot.lane.b32.xlu1 %v13388_v16, %s11292_s23  ;;  %v4079_v36 = vrot.slane %v13648_v4, 3  ;;  %v18987_v23 = vld [vmem:[#allocation151_spill] sm:$0xff]  ;;  %v18990_v14 = vrot.slane %v13604_v45, 2  ;;  %v4089_v16 = vrot.slane %v13652_v34, 3  ;;  %v19003_v57 = vld [vmem:[#allocation54_spill] sm:$0xff] }
 0x2b2   : > { %v3612_v61 = vsel %vm1014_vm1, %v18985_v28, %v18987_v23  ;;  %v3613_v4 = vsel %vm1014_vm1, %v18987_v23, %v18991_v59  ;;  %v4073_v28 = vrot.slane %v13654_v1, 3  ;;  %v13703_v11 = vsel %vm4071_vm4, %v4077_v50, %v4087_v24  ;;  %v13711_v55 = vpop.permute.xlu0 %4956 }
 0x2b3   : > { %2823 = vrot.lane.b32.xlu0 %v18988_v7, %s11290_s29  ;;  %v13695_v37 = vsel %vm2853_vm3, %v18990_v14, %v18989_v9  ;;  %v13705_v60 = vpop.permute.xlu1 %4958  ;;  %v10913_v7 = vld [vmem:[#allocation2 + $0x40] sm:$0xfe]  ;;  %v4048_v44 = vmul.f32 %v18918_v2, %v4034_v62  ;;  %v4053_v9 = vmul.f32 %v10914_v56, %v4034_v62  ;;  %v18993_v14 = vld [vmem:[#allocation152_spill] sm:$0xff]  ;;  %18995 = vst [vmem:[#allocation107_spill] sm:$0xff] %v13711_v55  ;;  %v18996_v23 = vrot.slane %v13469_v20, 2  ;;  %v18997_v55 = vld [vmem:[#allocation155_spill] sm:$0xff] }
 0x2b4   : > { %18992 = vst [vmem:[#allocation106_spill] sm:$0xff] %v13705_v60  ;;  %v4043_v43 = vmul.f32 %v10913_v7, %v4034_v62  ;;  %v3616_v34 = vsel %vm1014_vm1, %v18994_v26, %v18993_v14  ;;  %v3640_v24 = vadd.f32 %v3612_v61, %v13564_v13  ;;  %v4078_v59 = vsel %vm4071_vm4, %v4072_v51, %v4077_v50  ;;  %v10915_v2 = vld [vmem:[%s18189_s1 + $0x41] ss:$8 sm:$0xf] }
 0x2b5   : > { %v3881_v1 = vadd.f32 %v18996_v23, %v3639_v21  ;;  %2335 = vrot.lane.b32.xlu1 %v13393_v3, %s11292_s23  ;;  %v4589_v56 = vrot.slane %v10915_v2, %v18839_v49  ;;  %v3641_v62 = vadd.f32 %v3613_v4, %v3384_v38  ;;  %v3644_v7 = vadd.f32 %v18994_v26, %v13613_v31  ;;  %v18998_v13 = vld [vmem:[#allocation160_spill] sm:$0xff]  ;;  %v18999_v21 = vld [vmem:[#allocation69_spill] sm:$0xff]  ;;  %v19000_v61 = vld [vmem:[#allocation159_spill] sm:$0xff] }
 0x2b6   : > { %v3617_v20 = vsel %vm1014_vm1, %v18993_v14, %v18997_v55  ;;  %v3620_v50 = vsel %vm1014_vm1, %v18999_v21, %v18998_v13  ;;  %v3645_v3 = vadd.f32 %v3616_v34, %v3388_v58  ;;  %v3621_v23 = vsel %vm1014_vm1, %v18998_v13, %v19000_v61  ;;  %v13739_v26 = vld [vmem:[#allocation2 + $0x80] sm:$0xff] }
 0x2b7   : > { %2327 = vrot.lane.b32.xlu0 %v13401_v53, %s11292_s23  ;;  %v4080_v38 = vsel %vm4071_vm4, %v4073_v28, %v4079_v36  ;;  %v13737_v4 = vpop.permute.xlu1 %5753  ;;  %v4601_v31 = vmul.f32 %v13739_v26, %v4589_v56  ;;  %v4074_v14 = vrot.slane %v4043_v43, 3  ;;  %v4081_v2 = vrot.slane %v4048_v44, 3  ;;  %v13742_v60 = vpop.permute.xlu0 %4960 }
 0x2b8   : > { %19001 = vst [vmem:[#allocation153_spill] sm:$0xff] %v13737_v4  ;;  %v4091_v55 = vrot.slane %v4053_v9, 3  ;;  %19002 = vst [vmem:[#allocation111_spill] sm:$0xff] %v13742_v60  ;;  %v4605_v53 = vmul.f32 %v4589_v56, %v19003_v57  ;;  %v3649_v58 = vadd.f32 %v18999_v21, %v3392_v18  ;;  %v3646_v34 = vadd.f32 %v3617_v20, %v13629_v29  ;;  %v19005_v4 = vld [vmem:[#allocation67_spill] sm:$0xff] }
 0x2b9   : > { %v3650_v13 = vadd.f32 %v3620_v50, %v3393_v48  ;;  %v19004_v61 = vrot.slane %v13320_v19, 1  ;;  %v13751_v17 = vmul.f32 %v4589_v56, %v19005_v4  ;;  %v19006_v43 = vrot.slane %v13478_v10, 2  ;;  %v19016_v4 = vld [vmem:[#allocation73_spill] sm:$0xff] }
 0x2ba   : > { %v19007_v9 = vrot.slane %v13492_v0, 2  ;;  %v3886_v57 = vadd.f32 %v13560_v41, %v3644_v7  ;;  %v3651_v39 = vadd.f32 %v3621_v23, %v3394_v40  ;;  %v3887_v29 = vadd.f32 %v13571_v25, %v3645_v3  ;;  %v13773_v41 = vld [vmem:[%s18189_s1 + $0x43] ss:$8 sm:$0xf] }
 0x2bb   : > { %2345 = vrot.lane.b32.xlu1 %v19004_v61, %s11292_s23  ;;  %v3882_v44 = vadd.f32 %v19006_v43, %v3640_v24  ;;  %2337 = vrot.lane.b32.xlu0 %v13420_v32, %s11292_s23  ;;  %v4090_v19 = vsel %vm4071_vm4, %v4079_v36, %v4089_v16  ;;  %v13762_v48 = vadd.f32 %v4072_v51, %v3881_v1  ;;  %v13764_v18 = vpop.permute.xlu1 %5757  ;;  %v4628_v56 = vrot.slane %v4601_v31, 3  ;;  %v13768_v24 = vpop.permute.xlu0 %5755 }
 0x2bc   : > { %v3883_v60 = vadd.f32 %v19007_v9, %v3641_v62  ;;  %v4082_v10 = vsel %vm4071_vm4, %v4074_v14, %v4081_v2  ;;  %v4092_v0 = vsel %vm4071_vm4, %v4081_v2, %v4091_v55  ;;  %v4636_v25 = vrot.slane %v4605_v53, 3  ;;  %v19010_v55 = vld [vmem:[#allocation143_spill] sm:$0xff] }
 0x2bd   : > { %v19008_v40 = vrot.slane %v13473_v46, 2  ;;  %v3888_v36 = vadd.f32 %v13591_v27, %v3646_v34  ;;  %v19009_v16 = vrot.slane %v13481_v5, 2  ;;  %v19011_v62 = vrot.slane %v19010_v55, 2  ;;  %v19014_v27 = vld [vmem:[#allocation70_spill] sm:$0xff] }
 0x2be   : > { %v18400_v7 = vrot.slane %v13751_v17, 3  ;;  %v19012_v20 = vrot.slane %v13494_v47, 2  ;;  %v4113_v50 = vadd.f32 %v4073_v28, %v3882_v44  ;;  %v4114_v3 = vadd.f32 %v4074_v14, %v3883_v60  ;;  %v19015_v5 = vld [vmem:[#allocation74_spill] sm:$0xff]  ;;  %v19020_v28 = vld [vmem:[#allocation28_spill] sm:$0xff]  ;;  %v19021_v14 = vld [vmem:[#allocation79_spill] sm:$0xff] }
 0x2bf   : > { %v3891_v51 = vadd.f32 %v19008_v40, %v3649_v58  ;;  %v3892_v1 = vadd.f32 %v19009_v16, %v3650_v13  ;;  %3077 = vrot.lane.b32.xlu1 %v19011_v62, %s11291_s19  ;;  %v13788_v61 = vadd.f32 %v4078_v59, %v3886_v57  ;;  %v19013_v46 = vrot.slane %v13329_v12, 1  ;;  %v13799_v53 = vpop.permute.xlu1 %5765  ;;  %v19018_v47 = vld [vmem:[#allocation78_spill] sm:$0xff]  ;;  %v19024_v57 = vld [vmem:[#allocation145_spill] sm:$0xff] }
 0x2c0   : > { %v3893_v21 = vadd.f32 %v19012_v20, %v3651_v39  ;;  %v4368_v23 = vsel %vm516_vm0, %v19015_v5, %v19014_v27  ;;  %v4369_v31 = vsel %vm516_vm0, %v19014_v27, %v19016_v4  ;;  %v4118_v2 = vadd.f32 %v4080_v38, %v3887_v29  ;;  %19017 = vst [vmem:[#allocation108_spill] sm:$0xff] %v13799_v53  ;;  %v19019_v59 = vld [vmem:[#allocation130_spill] sm:$0xff]  ;;  %v13815_v38 = vpop.permute.xlu0 %5763  ;;  %v19047_v4 = vld [vmem:[#allocation64_spill] sm:$0xff] }
 0x2c1   : > { %2347 = vrot.lane.b32.xlu0 %v19013_v46, %s11292_s23  ;;  %v13804_v39 = vsel %vm4071_vm4, %v18400_v7, %v4628_v56  ;;  %v4372_v12 = vsel %vm516_vm0, %v19019_v59, %v19018_v47  ;;  %v4373_v60 = vsel %vm516_vm0, %v19018_v47, %v19020_v28  ;;  %v19022_v58 = vld [vmem:[#allocation90_spill] sm:$0xff]  ;;  %19023 = vst [vmem:[#allocation112_spill] sm:$0xff] %v13815_v38  ;;  %v19025_v29 = vrot.slane %v19024_v57, 2  ;;  %v13896_v7 = vld [vmem:[#allocation2 + $0x78] sm:$0xff]  ;;  %v19089_v38 = vld [vmem:[#allocation107_spill] sm:$0xff] }
 0x2c2   : > { %v4376_v34 = vsel %vm516_vm0, %v19022_v58, %v19021_v14  ;;  %v13818_v13 = vsel %vm4071_vm4, %v4628_v56, %v4636_v25  ;;  %v4119_v43 = vadd.f32 %v4082_v10, %v3888_v36  ;;  %v4123_v44 = vadd.f32 %v4090_v19, %v3892_v1  ;;  %v13829_v40 = vld [vmem:[%s18189_s1 + $0x44] ss:$8 sm:$0xf]  ;;  %19041 = vst [vmem:[#allocation126_spill] sm:$0xff] %v13896_v7  ;;  %v10438_v53 = vld [vmem:[#allocation3 + $0x88] ss:$16 sps:$4 sm:$0xff]  }
 0x2c3   : > { %v13821_v9 = vadd.f32 %v13703_v11, %v3891_v51  ;;  %3097 = vrot.lane.b32.xlu1 %v19025_v29, %s11291_s19  ;;  %19026 = vst [vmem:[#allocation113_spill] sm:$0xff] %v13829_v40  ;;  %v13833_v55 = vadd.f32 %v4368_v23, %v4113_v50  ;;  %v13835_v56 = vadd.f32 %v4369_v31, %v4114_v3  ;;  %v19027_v10 = vld [vmem:[#allocation85_spill] sm:$0xff]  ;;  %v19028_v11 = vld [vmem:[#allocation86_spill] sm:$0xff]  ;;  %v13848_v20 = vpop.permute.xlu1 %5773  ;;  %v19036_v29 = vrot.slane %v13575_v35, 2 }
 0x2c4   : > { %v4124_v19 = vadd.f32 %v4092_v0, %v3893_v21  ;;  %v5197_v25 = vsel %vm385_vm5, %v19028_v11, %v19027_v10  ;;  %v19029_v51 = vld [vmem:[#allocation149_spill] sm:$0xff]  ;;  %v13842_v36 = vadd.f32 %v4372_v12, %v4118_v2  ;;  %v13844_v1 = vadd.f32 %v4373_v60, %v4119_v43  ;;  %19030 = vst [vmem:[#allocation117_spill] sm:$0xff] %v13848_v20  ;;  %v19031_v21 = vld [vmem:[#allocation91_spill] sm:$0xff]  ;;  %v13857_v46 = vld [vmem:[#allocation2 + $0x68] sm:$0xff]  ;;  %v13867_v12 = vpop.permute.xlu0 %5767 }
 0x2c5   : > { %3087 = vrot.lane.b32.xlu0 %v19029_v51, %s11291_s19  ;;  %v13846_v62 = vadd.f32 %v4376_v34, %v4123_v44  ;;  %v10919_v50 = vld [vmem:[%s18189_s1 + $0x46] ss:$8 sm:$0xf]  ;;  %v4367_v3 = vsel %vm516_vm0, %v19031_v21, %v19015_v5  ;;  %19032 = vst [vmem:[#allocation114_spill] sm:$0xff] %v13857_v46  ;;  %v5210_v27 = vmul.f32 %v13857_v46, %v19028_v11  ;;  %19034 = vst [vmem:[#allocation118_spill] sm:$0xff] %v13867_v12 }
 0x2c6   : > { %v6003_v0 = vrot.slane %v10919_v50, %v18839_v49  ;;  %v19033_v23 = vld [vmem:[#allocation89_spill] sm:$0xff]  ;;  %v10921_v2 = vld [vmem:[#allocation2 + $0x38] sm:$0xfe]  ;;  %v13869_v60 = vld [vmem:[#allocation2 + $0x70] sm:$0xff] }
 0x2c7   : > { %v5198_v31 = vsel %vm385_vm5, %v19027_v10, %v19033_v23  ;;  %v13865_v47 = vmul.f32 %v10921_v2, %v19028_v11  ;;  %19035 = vst [vmem:[#allocation119_spill] sm:$0xff] %v13869_v60  ;;  %v5211_v34 = vmul.f32 %v13869_v60, %v5197_v25  ;;  %v10923_v5 = vld [vmem:[#allocation2 + $0x98] sm:$0x1]  ;;  %v10924_v44 = vld [vmem:[#allocation2 + $0x40] sm:$0xfe]  ;;  %3340 = vrot.lane.b32.xlu1 %v19036_v29, %s11290_s29  ;;  %v19038_v50 = vld [vmem:[#allocation83_spill] sm:$0xff]  ;;  %v13899_v28 = vpop.permute.xlu1 %5777 }
 0x2c8   : > { %v5215_v43 = vmul.f32 %v10923_v5, %v19028_v11  ;;  %v13873_v57 = vmul.f32 %v10924_v44, %v5197_v25  ;;  %v13881_v10 = vld [vmem:[%s18189_s1 + $0x60] ss:$8 sm:$0xf]  ;;  %v4377_v21 = vsel %vm516_vm0, %v19021_v14, %v19038_v50  ;;  %v19039_v5 = vrot.slane %v13597_v22, %v18839_v49  ;;  %v10927_v16 = vld [vmem:[#allocation2 + $0x48] sm:$0xfe]  ;;  %19042 = vst [vmem:[#allocation75_spill] sm:$0xff] %v13899_v28  ;;  %v13909_v50 = vpop.permute.xlu0 %5775 }
 0x2c9   : > { %19037 = vst [vmem:[#allocation133_spill] sm:$0xff] %v13881_v10  ;;  %v10926_v11 = vld [vmem:[#allocation2 + $0xa0] sm:$0x1]  ;;  %v6015_v35 = vmul.f32 %v13739_v26, %v6003_v0  ;;  %v19040_v44 = vld [vmem:[#allocation158_spill] sm:$0xff]  ;;  %v13894_v32 = vmul.f32 %v10927_v16, %v5198_v31  ;;  %v5212_v51 = vmul.f32 %v13896_v7, %v5198_v31  ;;  %v4394_v22 = vadd.f32 %v4367_v3, %v13762_v48  ;;  %v19045_v26 = vld [vmem:[#allocation80_spill] sm:$0xff] }
 0x2ca   : > { %v5216_v2 = vmul.f32 %v10926_v11, %v5197_v25  ;;  %3821 = vrot.lane.b32.xlu0 %v19039_v5, %s11290_s29  ;;  %v6019_v29 = vmul.f32 %v6003_v0, %v19040_v44  ;;  %v10929_v23 = vld [vmem:[#allocation2 + $0xa8] sm:$0x1]  ;;  %v19043_v25 = vld [vmem:[#allocation157_spill] sm:$0xff]  ;;  %v4375_v5 = vsel %vm516_vm0, %v19045_v26, %v19022_v58  ;;  %v5240_v44 = vrot.slane %v5210_v27, 3  ;;  %19046 = vst [vmem:[#allocation123_spill] sm:$0xff] %v13909_v50 }
 0x2cb   : > { %v5217_v14 = vmul.f32 %v10929_v23, %v5198_v31  ;;  %v13902_v11 = vmul.f32 %v6003_v0, %v19043_v25  ;;  %v4371_v23 = vsel %vm516_vm0, %v19047_v4, %v19019_v59  ;;  %v5242_v31 = vrot.slane %v5211_v34, 3  ;;  %v13923_v59 = vpop.permute.xlu1 %5761  ;;  %v19068_v7 = vld [vmem:[#allocation101_spill] sm:$0xff]  ;;  %v19088_v12 = vld [vmem:[#allocation106_spill] sm:$0xff] }
 0x2cc   : > { %v5250_v10 = vrot.slane %v5215_v43, 3  ;;  %v18402_v0 = vrot.slane %v13873_v57, 3  ;;  %v19048_v48 = vrot.slane %v13578_v15, 2  ;;  %v13918_v3 = vadd.f32 %v4377_v21, %v4124_v19  ;;  %19049 = vst [vmem:[#allocation120_spill] sm:$0xff] %v13923_v59  ;;  %v19050_v19 = vld [vmem:[#allocation88_spill] sm:$0xff]  ;;  %v19087_v46 = vld [vmem:[#allocation129_spill] sm:$0xff] }
 0x2cd   : > { %19044 = vst [vmem:[#allocation141_spill] sm:$0xff] %v13902_v11  ;;  %v5252_v58 = vrot.slane %v5216_v2, 3  ;;  %v6042_v27 = vrot.slane %v6015_v35, 4  ;;  %v6050_v25 = vrot.slane %v6019_v29, 4  ;;  %v5244_v16 = vrot.slane %v5212_v51, 3  ;;  %v13938_v35 = vpop.permute.xlu0 %5751 }
 0x2ce   : > { %3356 = vrot.lane.b32.xlu1 %v19048_v48, %s11290_s29  ;;  %3348 = vrot.lane.b32.xlu0 %v13666_v54, %s11290_s29  ;;  %v5254_v4 = vrot.slane %v5217_v14, 3  ;;  %v18403_v34 = vrot.slane %v13902_v11, 4  ;;  %v13927_v43 = vadd.f32 %v4375_v5, %v13821_v9  ;;  %v4399_v15 = vadd.f32 %v4371_v23, %v13788_v61  ;;  %19052 = vst [vmem:[#allocation125_spill] sm:$0xff] %v13938_v35  ;;  %v10409_v51 = vld [vmem:[#allocation3 + $0x4] ss:$16 sps:$4 sm:$0xff]   ;;  %v19053_v5 = vld [vmem:[#allocation92_spill] sm:$0xff] }
 0x2cf   : > { %v13931_v21 = vadd.f32 %v19050_v19, %v4394_v22  ;;  %v19051_v54 = vrot.slane %v13865_v47, 3  ;;  %v10411_v29 = vld [vmem:[#allocation3 + $0xc] ss:$16 sps:$4 sm:$0xff]   ;;  %v10413_v14 = vld [vmem:[#allocation3] ss:$16 sps:$4 sm:$0xff]   ;;  %v4662_v9 = vsel %vm385_vm5, %v19050_v19, %v13354_v6  ;;  %v4663_v61 = vsel %vm385_vm5, %v13354_v6, %v19053_v5  ;;  %7728 = vmatprep.subr.bf16.mxu0 %v10409_v51 }
 0x2d0   : > { %v13949_v22 = vsel %vm4071_vm4, %v18402_v0, %v5242_v31  ;;  %v13952_v23 = vsel %vm4071_vm4, %v5240_v44, %v5250_v10  ;;  %v19054_v48 = vrot.slane %v13604_v45, 2  ;;  %v13958_v26 = vsel %vm4071_vm4, %v5242_v31, %v5252_v58  ;;  %v4835_v19 = vld [vmem:[#allocation2 + $0x58] sm:$0xfe]  ;;  %v10930_v45 = vld [vmem:[#allocation2 + $0x30] sm:$0xfc]  ;;  %7814 = vmatprep.subr.bf16.mxu1 %v10411_v29  ;;  %7729 = vmatpush1.bf16.msra.mxu0 %v10413_v14  ;;  %v19064_v11 = vld [vmem:[#allocation161_spill] sm:$0xff] }
 0x2d1   : > { %v13936_v2 = vsel %vm4071_vm4, %v19051_v54, %v5240_v44  ;;  %v10414_v54 = vld [vmem:[#allocation3 + $0x8] ss:$16 sps:$4 sm:$0xff]   ;;  %v19055_v6 = vrot.slane %v13671_v30, %v18839_v49  ;;  %v13965_v0 = vsel %vm5485_vm6, %v6042_v27, %v6050_v25  ;;  %v13970_v10 = vsel %vm5485_vm6, %v18403_v34, %v6042_v27  ;;  %v10931_v30 = vld [vmem:[#allocation2 + $0x90] sm:$0x3]  ;;  %v13982_v25 = vpop.permute.xlu1 %6598  ;;  %v10415_v34 = vld [vmem:[#allocation3 + $0x24] ss:$16 sps:$4 sm:$0xff]  }
 0x2d2   : > { %3588 = vrot.lane.b32.xlu1 %v19054_v48, %s11292_s23  ;;  %19056 = vst [vmem:[#allocation124_spill] sm:$0xff] %v13965_v0  ;;  %19057 = vst [vmem:[#allocation127_spill] sm:$0xff] %v13970_v10  ;;  %v13973_v44 = vmul.f32 %v10930_v45, %v13475_v52  ;;  %v13977_v31 = vmul.f32 %v18970_v63, %v13475_v52  ;;  %v13980_v58 = vmul.f32 %v10931_v30, %v13475_v52  ;;  %v13998_v30 = vpop.permute.xlu0 %5771  ;;  %v10417_v29 = vld [vmem:[#allocation3 + $0x2c] ss:$16 sps:$4 sm:$0xff]   ;;  %v10419_v14 = vld [vmem:[#allocation3 + $0x20] ss:$16 sps:$4 sm:$0xff]  }
 0x2d3   : > { %4031 = vrot.lane.b32.xlu0 %v19055_v6, %s11290_s29  ;;  %v13985_v27 = vadd.f32 %v4662_v9, %v13833_v55  ;;  %v13988_v51 = vadd.f32 %v4663_v61, %v13835_v56  ;;  %v19058_v48 = vrot.slane %v13894_v32, 3  ;;  %v13996_v45 = vsel %vm4071_vm4, %v5244_v16, %v5254_v4  ;;  %19059 = vst [vmem:[#allocation137_spill] sm:$0xff] %v13998_v30  ;;  %v19060_v56 = vld [vmem:[#allocation55_spill] sm:$0xff]  ;;  %v19062_v10 = vld [vmem:[#allocation162_spill] sm:$0xff]  ;;  %v19063_v0 = vld [vmem:[#allocation97_spill] sm:$0xff] }
 0x2d4   : > { %7815 = vmatpush1.bf16.msra.mxu1 %v10414_v54  ;;  %v4665_v55 = vsel %vm385_vm5, %v13370_v42, %v13365_v8  ;;  %v4875_v9 = vsel %vm1014_vm1, %v19060_v56, %v13483_v33  ;;  %v4834_v61 = vld [vmem:[#allocation2 + $0x50] sm:$0xfe]  ;;  %v14013_v4 = vmul.f32 %v18970_v63, %v13483_v33  ;;  %v4845_v54 = vld [vmem:[#allocation2 + $0xb8] sm:$0x1]  ;;  %v14016_v5 = vadd.f32 %v13370_v42, %v4399_v15  ;;  %v14026_v30 = vld [vmem:[#allocation2 + $0x80] sm:$0xff] }
 0x2d5   : > { %v13993_v6 = vsel %vm4071_vm4, %v19058_v48, %v5244_v16  ;;  %v14009_v16 = vmul.f32 %v13483_v33, %v4835_v19  ;;  %v10420_v48 = vld [vmem:[#allocation3 + $0x28] ss:$16 sps:$4 sm:$0xff]   ;;  %v4666_v56 = vsel %vm385_vm5, %v13365_v8, %v19062_v10  ;;  %19066 = vst [vmem:[#allocation134_spill] sm:$0xff] %v14026_v30  ;;  %7730 = vmatprep.subr.bf16.mxu0 %v10415_v34  ;;  %v5491_v15 = vrot.slane %v13977_v31, 4  ;;  %v14034_v10 = vpop.permute.xlu1 %6602  ;;  %v4844_v59 = vld [vmem:[#allocation2 + $0xb0] sm:$0x1] }
 0x2d6   : > { %3598 = vrot.lane.b32.xlu1 %v13695_v37, %s11292_s23  ;;  %v4668_v37 = vsel %vm385_vm5, %v19064_v11, %v19063_v0  ;;  %v19065_v19 = vld [vmem:[#allocation128_spill] sm:$0xff]  ;;  %v5501_v8 = vrot.slane %v13980_v58, 4  ;;  %7816 = vmatprep.subr.bf16.mxu1 %v10417_v29  ;;  %v14037_v28 = vadd.f32 %v4665_v55, %v13842_v36  ;;  %v5447_v34 = vsel %vm385_vm5, %v13475_v52, %v19068_v7  ;;  %v14042_v60 = vpop.permute.xlu0 %6600  ;;  %v10421_v58 = vld [vmem:[#allocation3 + $0x44] ss:$16 sps:$4 sm:$0xff]   ;;  %v19069_v29 = vld [vmem:[#allocation102_spill] sm:$0xff] }
 0x2d7   : > { %19061 = vst [vmem:[#allocation138_spill] sm:$0xff] %v14009_v16  ;;  %3590 = vrot.lane.b32.xlu0 %v19065_v19, %s11292_s23  ;;  %v19067_v63 = vld [vmem:[#allocation96_spill] sm:$0xff]  ;;  %7731 = vmatpush1.bf16.msra.mxu0 %v10419_v14  ;;  %v14047_v31 = vmul.f32 %v13483_v33, %v4845_v54  ;;  %v5448_v36 = vsel %vm385_vm5, %v19068_v7, %v19069_v29  ;;  %v19070_v14 = vld [vmem:[#allocation29_spill] sm:$0xff]  ;;  %v19072_v33 = vrot.slane %v13973_v44, 4 }
 0x2d8   : > { %v4669_v35 = vsel %vm385_vm5, %v19063_v0, %v19067_v63  ;;  %v14044_v0 = vmul.f32 %v4875_v9, %v4834_v61  ;;  %7817 = vmatpush1.bf16.msra.mxu1 %v10420_v48  ;;  %v10423_v42 = vld [vmem:[#allocation3 + $0x4c] ss:$16 sps:$4 sm:$0xff]   ;;  %v10425_v63 = vld [vmem:[#allocation3 + $0x40] ss:$16 sps:$4 sm:$0xff]   ;;  %v19071_v55 = vrot.slane %v19070_v14, 2  ;;  %v14057_v61 = vmul.f32 %v4875_v9, %v14026_v30  ;;  %7732 = vmatprep.subr.bf16.mxu0 %v10421_v58 }
 0x2d9   : > { %v10426_v54 = vld [vmem:[#allocation3 + $0x48] ss:$16 sps:$4 sm:$0xff]   ;;  %v14062_v48 = vadd.f32 %v19064_v11, %v13927_v43  ;;  %v14065_v40 = vadd.f32 %v4666_v56, %v13844_v1  ;;  %v14068_v7 = vadd.f32 %v4668_v37, %v13846_v62  ;;  %v14071_v14 = vadd.f32 %v4669_v35, %v13918_v3  ;;  %v14082_v43 = vpop.permute.xlu1 %6054  ;;  %7818 = vmatprep.subr.bf16.mxu1 %v10423_v42  ;;  %v10933_v62 = vld [vmem:[#allocation2 + $0x40] sm:$0xfc]  ;;  %v19074_v35 = vld [vmem:[#allocation95_spill] sm:$0xff] }
 0x2da   : > { %3608 = vrot.lane.b32.xlu1 %v19071_v55, %s11292_s23  ;;  %v10932_v55 = vld [vmem:[#allocation2 + $0x38] sm:$0xfc]  ;;  %v14080_v11 = vsel %vm5485_vm6, %v19072_v33, %v5491_v15  ;;  %19073 = vst [vmem:[#allocation142_spill] sm:$0xff] %v14082_v43  ;;  %v14084_v1 = vmul.f32 %v4875_v9, %v4844_v59  ;;  %v14086_v3 = vmul.f32 %v10933_v62, %v5448_v36  ;;  %v10427_v29 = vld [vmem:[#allocation3 + $0x64] ss:$16 sps:$4 sm:$0xff]   ;;  %v4922_v62 = vrot.slane %v14057_v61, 3 }
 0x2db   : > { %3600 = vrot.lane.b32.xlu0 %v19065_v19, %s11292_s23  ;;  %v14075_v52 = vmul.f32 %v10932_v55, %v5447_v34  ;;  %v14089_v56 = vmul.f32 %v19074_v35, %v5447_v34  ;;  %v14092_v37 = vsel %vm5485_vm6, %v5491_v15, %v5501_v8  ;;  %v14094_v55 = vpop.permute.xlu0 %6052  ;;  %7733 = vmatpush1.bf16.msra.mxu0 %v10425_v63  ;;  %v10934_v59 = vld [vmem:[#allocation2 + $0x70] sm:$0xff]  ;;  %v19076_v42 = vld [vmem:[#allocation68_spill] sm:$0xff]  ;;  %v19078_v35 = vrot.slane %v14013_v4, 3 }
 0x2dc   : > { %19075 = vst [vmem:[#allocation148_spill] sm:$0xff] %v14094_v55  ;;  %7819 = vmatpush1.bf16.msra.mxu1 %v10426_v54  ;;  %v14097_v9 = vmul.f32 %v10934_v59, %v5448_v36  ;;  %v19077_v58 = vrot.slane %v19076_v42, 3  ;;  %v19079_v15 = vrot.slane %v14009_v16, 3  ;;  %v10429_v54 = vld [vmem:[#allocation3 + $0x6c] ss:$16 sps:$4 sm:$0xff]   ;;  %7734 = vmatprep.subr.bf16.mxu0 %v10427_v29  ;;  %v19083_v16 = vld [vmem:[#allocation105_spill] sm:$0xff] }
 0x2dd   : > { %v10431_v33 = vld [vmem:[#allocation3 + $0x60] ss:$16 sps:$4 sm:$0xff]   ;;  %v10935_v30 = vld [vmem:[#allocation2 + $0x98] sm:$0x3]  ;;  %v19081_v42 = vld [vmem:[#allocation98_spill] sm:$0xff]  ;;  %v14127_v20 = vpop.permute.xlu1 %6060  ;;  %v4932_v50 = vrot.slane %v14084_v1, 3  ;;  %7820 = vmatprep.subr.bf16.mxu1 %v10429_v54 }
 0x2de   : > { %4345 = vrot.lane.b32.xlu1 %v19077_v58, %s11291_s19  ;;  %v14108_v8 = vsel %vm4071_vm4, %v19079_v15, %v19078_v35  ;;  %v14111_v59 = vmul.f32 %v10935_v30, %v5447_v34  ;;  %v10936_v55 = vld [vmem:[#allocation2 + $0xa0] sm:$0x3]  ;;  %v19082_v58 = vld [vmem:[#allocation103_spill] sm:$0xff]  ;;  %v10432_v35 = vld [vmem:[#allocation3 + $0x68] ss:$16 sps:$4 sm:$0xff]   ;;  %v4967_v30 = vsel %vm1014_vm1, %v19081_v42, %v19083_v16  ;;  %19086 = vst [vmem:[#allocation144_spill] sm:$0xff] %v14127_v20 }
 0x2df   : > { %19080 = vst [vmem:[#allocation53_spill] sm:$0xff] %v14108_v8  ;;  %v14113_v43 = vmul.f32 %v10936_v55, %v5448_v36  ;;  %v4966_v61 = vsel %vm1014_vm1, %v19082_v58, %v19081_v42  ;;  %3610 = vrot.lane.b32.xlu0 %v19065_v19, %s11292_s23  ;;  %v10433_v15 = vld [vmem:[#allocation3 + $0x84] ss:$16 sps:$4 sm:$0xff]   ;;  %v10435_v8 = vld [vmem:[#allocation3 + $0x8c] ss:$16 sps:$4 sm:$0xff]   ;;  %v5493_v29 = vrot.slane %v14089_v56, 4  ;;  %v4974_v42 = vsel %vm1014_vm1, %v19089_v38, %v19088_v12  ;;  %v14138_v16 = vpop.permute.xlu0 %6056 }
 0x2e0   : > { %v19084_v34 = vld [vmem:[#allocation17_spill] sm:$0xff]  ;;  %v19085_v36 = vld [vmem:[#allocation156_spill] sm:$0xff]  ;;  %19090 = vst [vmem:[#allocation147_spill] sm:$0xff] %v14138_v16  ;;  %7735 = vmatpush1.bf16.msra.mxu0 %v10431_v33  ;;  %7821 = vmatpush1.bf16.msra.mxu1 %v10432_v35  ;;  %v5495_v1 = vrot.slane %v14097_v9, 4  ;;  %v4993_v54 = vadd.f32 %v19082_v58, %v13931_v21  ;;  %v4994_v56 = vadd.f32 %v4966_v61, %v13985_v27  ;;  %v19091_v19 = vld [vmem:[#allocation111_spill] sm:$0xff]  ;;  %v5503_v33 = vrot.slane %v14111_v59, 4 }
 0x2e1   : > { %v4970_v55 = vsel %vm1014_vm1, %v19085_v36, %v19084_v34  ;;  %v4971_v63 = vsel %vm1014_vm1, %v19084_v34, %v19087_v46  ;;  %v10437_v20 = vld [vmem:[#allocation3 + $0x80] ss:$16 sps:$4 sm:$0xff]   ;;  %v4975_v34 = vsel %vm1014_vm1, %v19088_v12, %v19091_v19  ;;  %7736 = vmatprep.subr.bf16.mxu0 %v10433_v15  ;;  %v4998_v35 = vadd.f32 %v19085_v36, %v14016_v5  ;;  %v14161_v58 = vpop.permute.xlu1 %6064 }
 0x2e2   : > { %v19092_v46 = vld [vmem:[#allocation131_spill] sm:$0xff]  ;;  %v4995_v9 = vadd.f32 %v4967_v30, %v13988_v51  ;;  %v4999_v16 = vadd.f32 %v4970_v55, %v14037_v28  ;;  %7822 = vmatprep.subr.bf16.mxu1 %v10435_v8  ;;  %v5505_v27 = vrot.slane %v14113_v43, 4  ;;  %v5000_v12 = vadd.f32 %v4971_v63, %v14065_v40  ;;  %19094 = vst [vmem:[#allocation139_spill] sm:$0xff] %v14161_v58  ;;  %v10441_v40 = vld [vmem:[#allocation3 + $0xac] ss:$16 sps:$4 sm:$0xff]  }
 0x2e3   : > { %4365 = vrot.lane.b32.xlu1 %v19092_v46, %s11291_s19  ;;  %v19093_v21 = vld [vmem:[#allocation135_spill] sm:$0xff]  ;;  %v5003_v46 = vadd.f32 %v19089_v38, %v14062_v48  ;;  %v5004_v59 = vadd.f32 %v4974_v42, %v14068_v7  ;;  %v5005_v5 = vadd.f32 %v4975_v34, %v14071_v14  ;;  %v19095_v51 = vrot.slane %v14075_v52, 4  ;;  %v14167_v61 = vpop.permute.xlu0 %6062 }
 0x2e4   : > { %4355 = vrot.lane.b32.xlu0 %v19093_v21, %s11291_s19  ;;  %v19096_v8 = vrot.slane %v14044_v0, 3  ;;  %7737 = vmatpush1.bf16.msra.mxu0 %v10437_v20  ;;  %v10439_v38 = vld [vmem:[#allocation3 + $0xa4] ss:$16 sps:$4 sm:$0xff]   ;;  %v10443_v48 = vld [vmem:[#allocation3 + $0xa0] ss:$16 sps:$4 sm:$0xff]   ;;  %v19097_v7 = vrot.slane %v13865_v47, 3  ;;  %v14185_v20 = vsel %vm4071_vm4, %v4922_v62, %v4932_v50  ;;  %v5280_v42 = vadd.f32 %v13936_v2, %v4998_v35 }
 0x2e5   : > { %v5494_v28 = vsel %vm5485_vm6, %v19095_v51, %v5493_v29  ;;  %7823 = vmatpush1.bf16.msra.mxu1 %v10438_v53  ;;  %v19098_v14 = vrot.slane %v13873_v57, 3  ;;  %v19099_v30 = vrot.slane %v14086_v3, 4  ;;  %v19100_v55 = vrot.slane %v13751_v17, 3  ;;  %v10444_v53 = vld [vmem:[#allocation3 + $0xa8] ss:$16 sps:$4 sm:$0xff]   ;;  %7738 = vmatprep.subr.bf16.mxu0 %v10439_v38  ;;  %v14199_v2 = vpop.permute.xlu1 %6070 }
 0x2e6   : > { %v14172_v43 = vsel %vm4071_vm4, %v19096_v8, %v4922_v62  ;;  %v5275_v63 = vadd.f32 %v19097_v7, %v4993_v54  ;;  %v19101_v47 = vrot.slane %v13894_v32, 3  ;;  %v5281_v57 = vadd.f32 %v13949_v22, %v4999_v16  ;;  %7824 = vmatprep.subr.bf16.mxu1 %v10441_v40  ;;  %v10453_v38 = vld [vmem:[#allocation3 + $0xec] ss:$16 sps:$4 sm:$0xff]   ;;  %v10455_v40 = vld [vmem:[#allocation3 + $0xe0] ss:$16 sps:$4 sm:$0xff]  }
 0x2e7   : > { %v5276_v15 = vadd.f32 %v19098_v14, %v4994_v56  ;;  %v5496_v36 = vsel %vm5485_vm6, %v19099_v30, %v5495_v1  ;;  %4644 = vrot.lane.b32.xlu1 %v19100_v55, %s11290_s29  ;;  %v19102_v56 = vrot.slane %v13773_v41, %v18839_v49  ;;  %v5282_v17 = vadd.f32 %v13993_v6, %v5000_v12  ;;  %v14203_v16 = vpop.permute.xlu0 %6068  ;;  %v19111_v7 = vld [vmem:[#allocation112_spill] sm:$0xff]  ;;  %v19112_v14 = vld [vmem:[#allocation118_spill] sm:$0xff] }
 0x2e8   : > { %v5277_v54 = vadd.f32 %v19101_v47, %v4995_v9  ;;  %v5285_v34 = vadd.f32 %v13952_v23, %v5003_v46  ;;  %v5286_v50 = vadd.f32 %v13958_v26, %v5004_v59  ;;  %v5504_v62 = vsel %vm5485_vm6, %v5493_v29, %v5503_v33  ;;  %7739 = vmatpush1.bf16.msra.mxu0 %v10443_v48  ;;  %v10445_v26 = vld [vmem:[#allocation3 + $0xc4] ss:$16 sps:$4 sm:$0xff]   ;;  %v10447_v23 = vld [vmem:[#allocation3 + $0xcc] ss:$16 sps:$4 sm:$0xff]   ;;  %v10449_v29 = vld [vmem:[#allocation3 + $0xc0] ss:$16 sps:$4 sm:$0xff]  }
 0x2e9   : > { %5195 = vrot.lane.b32.xlu0 %v19102_v56, %s11290_s29  ;;  %v5287_v32 = vadd.f32 %v13996_v45, %v5005_v5  ;;  %v5506_v22 = vsel %vm5485_vm6, %v5495_v1, %v5505_v27  ;;  %v19103_v41 = vrot.slane %v14047_v31, 3  ;;  %v19104_v35 = vrot.slane %v14013_v4, 3  ;;  %7825 = vmatpush1.bf16.msra.mxu1 %v10444_v53  ;;  %v19106_v45 = vld [vmem:[#allocation153_spill] sm:$0xff]  ;;  %v10450_v59 = vld [vmem:[#allocation3 + $0xc8] ss:$16 sps:$4 sm:$0xff]   ;;  %v14239_v3 = vpop.permute.xlu1 %6280 }
 0x2ea   : > { %v19105_v33 = vmov %v19095_v51  ;;  %v5782_v1 = vsel %vm516_vm0, %v19106_v45, %v13768_v24  ;;  %v5783_v31 = vsel %vm516_vm0, %v13768_v24, %v13764_v18  ;;  %v19107_v4 = vrot.slane %v13973_v44, 4  ;;  %7740 = vmatprep.subr.bf16.mxu0 %v10445_v26  ;;  %7826 = vmatprep.subr.bf16.mxu1 %v10447_v23  ;;  %v19110_v48 = vld [vmem:[#allocation108_spill] sm:$0xff]  ;;  %v19116_v47 = vld [vmem:[#allocation117_spill] sm:$0xff]  ;;  %v19120_v26 = vld [vmem:[#allocation126_spill] sm:$0xff] }
 0x2eb   : > { %v14210_v6 = vsel %vm4071_vm4, %v19104_v35, %v19103_v41  ;;  %v5527_v9 = vadd.f32 %v19105_v33, %v5276_v15  ;;  %4660 = vrot.lane.b32.xlu1 %v13818_v13, %s11290_s29  ;;  %v19108_v27 = vmov %v19099_v30  ;;  %v5532_v52 = vadd.f32 %v5494_v28, %v5281_v57  ;;  %v14248_v8 = vpop.permute.xlu0 %6072  ;;  %v19113_v30 = vld [vmem:[#allocation114_spill] sm:$0xff]  ;;  %v10937_v55 = vld [vmem:[#allocation2 + $0x38] sm:$0xfc]  ;;  %v10938_v57 = vld [vmem:[#allocation2 + $0x98] sm:$0x3] }
 0x2ec   : > { %v14222_v21 = vadd.f32 %v19107_v4, %v5275_v63  ;;  %v5528_v12 = vadd.f32 %v19108_v27, %v5277_v54  ;;  %v14229_v46 = vadd.f32 %v14080_v11, %v5280_v42  ;;  %v5533_v24 = vadd.f32 %v5496_v36, %v5282_v17  ;;  %19109 = vst [vmem:[#allocation84_spill] sm:$0xff] %v14248_v8  ;;  %v19115_v42 = vld [vmem:[#allocation123_spill] sm:$0xff]  ;;  %v10939_v17 = vld [vmem:[#allocation2 + $0x40] sm:$0xfc] }
 0x2ed   : > { %4652 = vrot.lane.b32.xlu0 %v13804_v39, %s11290_s29  ;;  %v5537_v5 = vadd.f32 %v5504_v62, %v5286_v50  ;;  %v14234_v44 = vadd.f32 %v14092_v37, %v5285_v34  ;;  %v6606_v13 = vsel %vm385_vm5, %v13982_v25, %v14042_v60  ;;  %v14241_v51 = vadd.f32 %v5782_v1, %v5527_v9  ;;  %v10451_v37 = vld [vmem:[#allocation3 + $0xe4] ss:$16 sps:$4 sm:$0xff]   ;;  %v19122_v1 = vld [vmem:[#allocation120_spill] sm:$0xff] }
 0x2ee   : > { %v14243_v11 = vadd.f32 %v5783_v31, %v5528_v12  ;;  %v5538_v28 = vadd.f32 %v5506_v22, %v5287_v32  ;;  %v6607_v39 = vsel %vm385_vm5, %v14042_v60, %v14034_v10  ;;  %7741 = vmatpush1.bf16.msra.mxu0 %v10449_v29  ;;  %v5786_v63 = vsel %vm516_vm0, %v19111_v7, %v19110_v48  ;;  %v19117_v50 = vld [vmem:[#allocation113_spill] sm:$0xff]  ;;  %v10940_v32 = vld [vmem:[#allocation2 + $0x48] sm:$0xfc]  ;;  %v19119_v41 = vld [vmem:[#allocation119_spill] sm:$0xff] }
 0x2ef   : > { %v5787_v15 = vsel %vm516_vm0, %v19110_v48, %v19112_v14  ;;  %v14258_v36 = vmul.f32 %v19113_v30, %v13982_v25  ;;  %v19114_v60 = vrot.slane %v14044_v0, 3  ;;  %v14264_v53 = vmul.f32 %v10937_v55, %v13982_v25  ;;  %7827 = vmatpush1.bf16.msra.mxu1 %v10450_v59  ;;  %v10456_v0 = vld [vmem:[#allocation3 + $0xe8] ss:$16 sps:$4 sm:$0xff]   ;;  %7742 = vmatprep.subr.bf16.mxu0 %v10451_v37  ;;  %v19121_v33 = vld [vmem:[#allocation75_spill] sm:$0xff]  ;;  %v19123_v4 = vld [vmem:[#allocation125_spill] sm:$0xff]  ;;  %v14297_v12 = vpop.permute.xlu0 %6345 }
 0x2f0   : > { %v5790_v54 = vsel %vm516_vm0, %v19116_v47, %v19115_v42  ;;  %v6624_v56 = vmul.f32 %v10938_v57, %v13982_v25  ;;  %v14270_v34 = vmul.f32 %v10939_v17, %v6606_v13  ;;  %v19118_v62 = vrot.slane %v19117_v50, %v18839_v49  ;;  %v14284_v25 = vpop.permute.xlu1 %6347  ;;  %7828 = vmatprep.subr.bf16.mxu1 %v10453_v38  ;;  %v10457_v59 = vld [vmem:[#allocation3 + $0x104] ss:$16 sps:$4 sm:$0xff]   ;;  %v10459_v37 = vld [vmem:[#allocation3 + $0x10c] ss:$16 sps:$4 sm:$0xff]   ;;  %v10461_v38 = vld [vmem:[#allocation3 + $0x100] ss:$16 sps:$4 sm:$0xff]  }
 0x2f1   : > { %4942 = vrot.lane.b32.xlu1 %v19114_v60, %s11292_s23  ;;  %v14276_v22 = vmul.f32 %v10940_v32, %v6607_v39  ;;  %v14279_v35 = vmul.f32 %v19119_v41, %v6606_v13  ;;  %v14282_v23 = vmul.f32 %v19120_v26, %v6607_v39  ;;  %v14286_v29 = vadd.f32 %v5786_v63, %v5532_v52  ;;  %v10941_v48 = vld [vmem:[#allocation2 + $0xa0] sm:$0x3]  ;;  %v10942_v30 = vld [vmem:[#allocation2 + $0xa8] sm:$0x3]  ;;  %v10463_v41 = vld [vmem:[#allocation3 + $0x124] ss:$16 sps:$4 sm:$0xff]  }
 0x2f2   : > { %5445 = vrot.lane.b32.xlu0 %v19118_v62, %s11290_s29  ;;  %v5791_v9 = vsel %vm516_vm0, %v19115_v42, %v19121_v33  ;;  %v5785_v31 = vsel %vm516_vm0, %v19122_v1, %v19111_v7  ;;  %v5781_v27 = vsel %vm516_vm0, %v19123_v4, %v19106_v45  ;;  %7743 = vmatpush1.bf16.msra.mxu0 %v10455_v40  ;;  %v6649_v52 = vrot.slane %v14258_v36, 4  ;;  %v19124_v57 = vld [vmem:[#allocation137_spill] sm:$0xff]  ;;  %v19125_v17 = vld [vmem:[#allocation138_spill] sm:$0xff] }
 0x2f3   : > { %v6625_v63 = vmul.f32 %v10941_v48, %v6606_v13  ;;  %v6626_v60 = vmul.f32 %v10942_v30, %v6607_v39  ;;  %v6644_v55 = vrot.slane %v14264_v53, 4  ;;  %v5815_v7 = vadd.f32 %v5787_v15, %v5533_v24  ;;  %7829 = vmatpush1.bf16.msra.mxu1 %v10456_v0  ;;  %v10462_v13 = vld [vmem:[#allocation3 + $0x108] ss:$16 sps:$4 sm:$0xff]   ;;  %7744 = vmatprep.subr.bf16.mxu0 %v10457_v59  ;;  %v14322_v32 = vpop.permute.xlu0 %6349  ;;  %v10467_v26 = vld [vmem:[#allocation3 + $0x120] ss:$16 sps:$4 sm:$0xff]  }
 0x2f4   : > { %v5819_v42 = vadd.f32 %v5790_v54, %v5537_v5  ;;  %v6659_v45 = vrot.slane %v6624_v56, 4  ;;  %v5789_v40 = vsel %vm516_vm0, %v19124_v57, %v19116_v47  ;;  %v19126_v50 = vrot.slane %v19125_v17, 3  ;;  %v14313_v24 = vpop.permute.xlu1 %6355  ;;  %7830 = vmatprep.subr.bf16.mxu1 %v10459_v37  ;;  %v19127_v54 = vld [vmem:[#allocation142_spill] sm:$0xff]  ;;  %v19128_v56 = vld [vmem:[#allocation148_spill] sm:$0xff]  ;;  %19129 = vst [vmem:[#allocation63_spill] sm:$0xff] %v14322_v32 }
 0x2f5   : > { %4952 = vrot.lane.b32.xlu1 %v14172_v43, %s11292_s23  ;;  %v6645_v39 = vrot.slane %v14270_v34, 4  ;;  %v6646_v36 = vrot.slane %v14276_v22, 4  ;;  %v6651_v62 = vrot.slane %v14279_v35, 4  ;;  %v6653_v43 = vrot.slane %v14282_v23, 4  ;;  %v10465_v35 = vld [vmem:[#allocation3 + $0x12c] ss:$16 sps:$4 sm:$0xff]  }
 0x2f6   : > { %4944 = vrot.lane.b32.xlu0 %v19126_v50, %s11292_s23  ;;  %v14315_v5 = vadd.f32 %v5791_v9, %v5538_v28  ;;  %v5813_v15 = vadd.f32 %v5785_v31, %v14229_v46  ;;  %v5808_v47 = vadd.f32 %v5781_v27, %v14222_v21  ;;  %v6076_v0 = vsel %vm385_vm5, %v19128_v56, %v19127_v54  ;;  %v19130_v28 = vld [vmem:[#allocation147_spill] sm:$0xff]  ;;  %v19131_v31 = vld [vmem:[#allocation53_spill] sm:$0xff]  ;;  %v10468_v27 = vld [vmem:[#allocation3 + $0x128] ss:$16 sps:$4 sm:$0xff]  }
 0x2f7   : > { %7745 = vmatpush1.bf16.msra.mxu0 %v10461_v38  ;;  %v5818_v23 = vadd.f32 %v5789_v40, %v14234_v44  ;;  %v6661_v1 = vrot.slane %v6625_v63, 4  ;;  %v6663_v4 = vrot.slane %v6626_v60, 4  ;;  %v6650_v46 = vsel %vm5485_vm6, %v6644_v55, %v6649_v52  ;;  %7831 = vmatpush1.bf16.msra.mxu1 %v10462_v13  ;;  %v19132_v37 = vld [vmem:[#allocation144_spill] sm:$0xff]  ;;  %v10469_v60 = vld [vmem:[#allocation3 + $0x144] ss:$16 sps:$4 sm:$0xff]  }
 0x2f8   : > { %v6100_v21 = vadd.f32 %v19128_v56, %v5808_v47  ;;  %v6077_v9 = vsel %vm385_vm5, %v19127_v54, %v19130_v28  ;;  %v6660_v44 = vsel %vm5485_vm6, %v6649_v52, %v6659_v45  ;;  %v6101_v59 = vadd.f32 %v6076_v0, %v14241_v51  ;;  %v14344_v48 = vpop.permute.xlu1 %6359  ;;  %7746 = vmatprep.subr.bf16.mxu0 %v10463_v41  ;;  %v10471_v45 = vld [vmem:[#allocation3 + $0x14c] ss:$16 sps:$4 sm:$0xff]   ;;  %v10473_v57 = vld [vmem:[#allocation3 + $0x140] ss:$16 sps:$4 sm:$0xff]   ;;  %v10480_v53 = vld [vmem:[#allocation3 + $0x168] ss:$16 sps:$4 sm:$0xff]  }
 0x2f9   : > { %4962 = vrot.lane.b32.xlu1 %v14185_v20, %s11292_s23  ;;  %v6079_v38 = vsel %vm385_vm5, %v19132_v37, %v14167_v61  ;;  %v6080_v20 = vsel %vm385_vm5, %v14167_v61, %v14161_v58  ;;  %19133 = vst [vmem:[#allocation61_spill] sm:$0xff] %v14344_v48  ;;  %7832 = vmatprep.subr.bf16.mxu1 %v10465_v35  ;;  %v6358_v61 = vpop.permute.xlu0 %6357  ;;  %v19134_v50 = vld [vmem:[#allocation56_spill] sm:$0xff]  ;;  %v10475_v35 = vld [vmem:[#allocation3 + $0x164] ss:$16 sps:$4 sm:$0xff]  }
 0x2fa   : > { %4954 = vrot.lane.b32.xlu0 %v19131_v31, %s11292_s23  ;;  %v6105_v63 = vadd.f32 %v19132_v37, %v5813_v15  ;;  %v6082_v52 = vsel %vm385_vm5, %v14203_v16, %v14199_v2  ;;  %v14353_v51 = vsel %vm5485_vm6, %v6645_v39, %v6651_v62  ;;  %v14358_v30 = vsel %vm5485_vm6, %v6646_v36, %v6653_v43  ;;  %v6249_v54 = vld [vmem:[#allocation2 + $0x58] sm:$0xfc]  ;;  %v10479_v31 = vld [vmem:[#allocation3 + $0x160] ss:$16 sps:$4 sm:$0xff]  }
 0x2fb   : > { %7747 = vmatpush1.bf16.msra.mxu0 %v10467_v26  ;;  %v6102_v40 = vadd.f32 %v6077_v9, %v14243_v11  ;;  %v6402_v17 = vadd.f32 %v14297_v12, %v6100_v21  ;;  %v19135_v13 = vrot.slane %v19134_v50, 4  ;;  %v14366_v15 = vsel %vm5485_vm6, %v6651_v62, %v6661_v1  ;;  %7833 = vmatpush1.bf16.msra.mxu1 %v10468_v27  ;;  %v10474_v11 = vld [vmem:[#allocation3 + $0x148] ss:$16 sps:$4 sm:$0xff]   ;;  %v19136_v62 = vld [vmem:[#allocation59_spill] sm:$0xff] }
 0x2fc   : > { %v14369_v47 = vsel %vm5485_vm6, %v6653_v43, %v6663_v4  ;;  %v6106_v56 = vadd.f32 %v6079_v38, %v14286_v29  ;;  %v6107_v0 = vadd.f32 %v6080_v20, %v5815_v7  ;;  %v6407_v41 = vadd.f32 %v14313_v24, %v6105_v63  ;;  %v6368_v1 = vpop.permute.xlu1 %6367  ;;  %7748 = vmatprep.subr.bf16.mxu0 %v10469_v60  ;;  %v10477_v29 = vld [vmem:[#allocation3 + $0x16c] ss:$16 sps:$4 sm:$0xff]   ;;  %v14396_v9 = vld [vmem:[#allocation2 + $0xb8] sm:$0x3] }
 0x2fd   : > { %5759 = vrot.lane.b32.xlu1 %v19135_v13, %s11291_s19  ;;  %v6110_v26 = vadd.f32 %v14203_v16, %v5818_v23  ;;  %v6111_v21 = vadd.f32 %v6082_v52, %v5819_v42  ;;  %v14379_v43 = vsel %vm1014_vm1, %v19136_v62, %v14239_v3  ;;  %7834 = vmatprep.subr.bf16.mxu1 %v10471_v45  ;;  %v6366_v4 = vpop.permute.xlu0 %6365  ;;  %v14390_v42 = vld [vmem:[#allocation2 + $0x10] sm:$0xff]  ;;  %v19138_v37 = vld [vmem:[#allocation136_spill] sm:$0xff] }
 0x2fe   : > { %4964 = vrot.lane.b32.xlu0 %v14210_v6, %s11292_s23  ;;  %v6083_v7 = vsel %vm385_vm5, %v14199_v2, %v14248_v8  ;;  %v6375_v6 = vsel %vm1014_vm1, %v14297_v12, %v14284_v25  ;;  %v14388_v16 = vmul.f32 %v14239_v3, %v6249_v54  ;;  %v14394_v23 = vmul.f32 %v14390_v42, %v14239_v3  ;;  %v19139_v52 = vld [vmem:[#allocation76_spill] sm:$0xff]  ;;  %v19166_v8 = vld [vmem:[#allocation77_spill] sm:$0xff] }
 0x2ff   : > { %19137 = vst [vmem:[#allocation33_spill] sm:$0xff] %v14396_v9  ;;  %7749 = vmatpush1.bf16.msra.mxu0 %v10473_v57  ;;  %v6684_v2 = vadd.f32 %v6644_v55, %v6402_v17  ;;  %v6379_v12 = vsel %vm1014_vm1, %v14313_v24, %v6358_v61  ;;  %v6412_v27 = vadd.f32 %v6366_v4, %v6110_v26  ;;  %v14413_v57 = vld [vmem:[#allocation2 + $0x50] sm:$0xfc] }
 0x300   : > { %7750 = vmatprep.subr.bf16.mxu0 %v10475_v35  ;;  %v6689_v38 = vadd.f32 %v6650_v46, %v6407_v41  ;;  %v6376_v20 = vsel %vm1014_vm1, %v14284_v25, %v14322_v32  ;;  %v6383_v63 = vsel %vm1014_vm1, %v6366_v4, %v6368_v1  ;;  %7835 = vmatpush1.bf16.msra.mxu1 %v10474_v11  ;;  %v6838_v45 = vpop.permute.xlu1 %6837  ;;  %v10483_v41 = vld [vmem:[#allocation3 + $0x18c] ss:$16 sps:$4 sm:$0xff]   ;;  %v10485_v11 = vld [vmem:[#allocation3 + $0x180] ss:$16 sps:$4 sm:$0xff]  }
 0x301   : > { %5779 = vrot.lane.b32.xlu1 %v19138_v37, %s11291_s19  ;;  %v6112_v55 = vadd.f32 %v6083_v7, %v14315_v5  ;;  %v6380_v24 = vsel %vm1014_vm1, %v6358_v61, %v14344_v48  ;;  %v6694_v60 = vadd.f32 %v6660_v44, %v6412_v27  ;;  %19140 = vst [vmem:[#allocation42_spill] sm:$0xff] %v14413_v57  ;;  %v14419_v54 = vpop.permute.xlu0 %6369  ;;  %v10481_v5 = vld [vmem:[#allocation3 + $0x184] ss:$16 sps:$4 sm:$0xff]  }
 0x302   : > { %5769 = vrot.lane.b32.xlu0 %v19139_v52, %s11291_s19  ;;  %v14417_v46 = vmul.f32 %v14239_v3, %v14396_v9  ;;  %7836 = vmatprep.subr.bf16.mxu1 %v10477_v29  ;;  %v6403_v25 = vadd.f32 %v6375_v6, %v6101_v59  ;;  %v6408_v17 = vadd.f32 %v6379_v12, %v6106_v56  ;;  %v19142_v3 = vld [vmem:[#allocation141_spill] sm:$0xff]  ;;  %v14426_v59 = vld [vmem:[#allocation2 + $0xb0] sm:$0x3]  ;;  %v10489_v52 = vld [vmem:[#allocation3 + $0x1ac] ss:$16 sps:$4 sm:$0xff]  }
 0x303   : > { %v6853_v50 = vadd.f32 %v6838_v45, %v6684_v2  ;;  %v6858_v13 = vadd.f32 %v6838_v45, %v6689_v38  ;;  %19141 = vst [vmem:[#allocation58_spill] sm:$0xff] %v14419_v54  ;;  %7751 = vmatpush1.bf16.msra.mxu0 %v10479_v31  ;;  %v6404_v61 = vadd.f32 %v6376_v20, %v6102_v40  ;;  %v19143_v62 = vrot.slane %v19142_v3, 4  ;;  %v19145_v7 = vld [vmem:[#allocation133_spill] sm:$0xff]  ;;  %v19148_v38 = vld [vmem:[#allocation134_spill] sm:$0xff] }
 0x304   : > { %v6413_v44 = vadd.f32 %v6383_v63, %v6111_v21  ;;  %v6863_v35 = vadd.f32 %v6838_v45, %v6694_v60  ;;  %v6384_v26 = vsel %vm1014_vm1, %v6368_v1, %v14419_v54  ;;  %19144 = vst [vmem:[#allocation151_spill] sm:$0xff] %v14426_v59  ;;  %v6409_v56 = vadd.f32 %v6380_v24, %v6107_v0  ;;  %v14436_v4 = vpop.permute.xlu1 %6841  ;;  %v10486_v0 = vld [vmem:[#allocation3 + $0x188] ss:$16 sps:$4 sm:$0xff]  }
 0x305   : > { %6058 = vrot.lane.b32.xlu1 %v19143_v62, %s11290_s29  ;;  %v6414_v29 = vadd.f32 %v6384_v26, %v6112_v55  ;;  %v19146_v6 = vrot.slane %v19145_v7, %v18839_v49  ;;  %v14434_v40 = vmul.f32 %v14379_v43, %v14413_v57  ;;  %7837 = vmatpush1.bf16.msra.mxu1 %v10480_v53  ;;  %v6868_v21 = vmax.f32 %v6853_v50, 0.0  ;;  %v6840_v37 = vpop.permute.xlu0 %6839  ;;  %v10491_v53 = vld [vmem:[#allocation3 + $0x1a0] ss:$16 sps:$4 sm:$0xff]   ;;  %v19149_v24 = vld [vmem:[#allocation124_spill] sm:$0xff] }
 0x306   : > { %v6873_v1 = vmax.f32 %v6858_v13, 0.0  ;;  %19147 = vst [vmem:[#allocation152_spill] sm:$0xff] %v14436_v4  ;;  %v6324_v31 = vrot.slane %v14388_v16, 4  ;;  %v6878_v2 = vmax.f32 %v6863_v35, 0.0  ;;  %7752 = vmatprep.subr.bf16.mxu0 %v10481_v5  ;;  %7838 = vmatprep.subr.bf16.mxu1 %v10483_v41  ;;  %v6685_v12 = vadd.f32 %v6645_v39, %v6403_v25  ;;  %v10487_v16 = vld [vmem:[#allocation3 + $0x1a4] ss:$16 sps:$4 sm:$0xff]  }
 0x307   : > { %6604 = vrot.lane.b32.xlu0 %v19146_v6, %s11290_s29  ;;  %v6690_v27 = vadd.f32 %v14353_v51, %v6408_v17  ;;  %v14444_v20 = vmul.f32 %v14379_v43, %v19148_v38  ;;  %v14448_v63 = vmul.f32 %v14379_v43, %v14426_v59  ;;  %7753 = vmatpush1.bf16.msra.mxu0 %v10485_v11  ;;  %v19150_v50 = vld [vmem:[#allocation127_spill] sm:$0xff]  ;;  %v10492_v13 = vld [vmem:[#allocation3 + $0x1a8] ss:$16 sps:$4 sm:$0xff]   ;;  %v6323_v11 = vrot.slane %v14434_v40, 4  ;;  %v10495_v62 = vld [vmem:[#allocation3 + $0x1cc] ss:$16 sps:$4 sm:$0xff]  }
 0x308   : > { %v6686_v55 = vadd.f32 %v6646_v36, %v6404_v61  ;;  %v6695_v34 = vadd.f32 %v14366_v15, %v6413_v44  ;;  %v6696_v39 = vadd.f32 %v14369_v47, %v6414_v29  ;;  %v6845_v51 = vsel %vm385_vm5, %v6838_v45, %v6840_v37  ;;  %v14462_v36 = vpop.permute.xlu1 %1427  ;;  %7754 = vmatprep.subr.bf16.mxu0 %v10487_v16  ;;  %v10493_v44 = vld [vmem:[#allocation3 + $0x1c4] ss:$16 sps:$4 sm:$0xff]   ;;  %v10501_v38 = vld [vmem:[#allocation3 + $0x1ec] ss:$16 sps:$4 sm:$0xff]  }
 0x309   : > { %6074 = vrot.lane.b32.xlu1 %v19149_v24, %s11290_s29  ;;  %v6691_v60 = vadd.f32 %v14358_v30, %v6409_v56  ;;  %v6846_v43 = vsel %vm385_vm5, %v6840_v37, %v14436_v4  ;;  %v6854_v25 = vadd.f32 %v6845_v51, %v6685_v12  ;;  %v6859_v17 = vadd.f32 %v6845_v51, %v6690_v27  ;;  %v14465_v41 = vpop.permute.xlu0 %833  ;;  %v10497_v56 = vld [vmem:[#allocation3 + $0x1c0] ss:$16 sps:$4 sm:$0xff]   ;;  %v19164_v54 = vld [vmem:[#allocation60_spill] sm:$0xff] }
 0x30a   : > { %v6864_v22 = vadd.f32 %v6845_v51, %v6695_v34  ;;  %v6333_v15 = vrot.slane %v14394_v23, 4  ;;  %v6883_v47 = vpack.c.bf16 %v6873_v1, %v6868_v21  ;;  %v6888_v45 = vpack.c.bf16 %v6878_v2, %v6878_v2  ;;  %7839 = vmatpush1.bf16.msra.mxu1 %v10486_v0  ;;  %v10498_v21 = vld [vmem:[#allocation3 + $0x1c8] ss:$16 sps:$4 sm:$0xff]   ;;  %v10499_v1 = vld [vmem:[#allocation3 + $0x1e4] ss:$16 sps:$4 sm:$0xff]  }
 0x30b   : > { %6066 = vrot.lane.b32.xlu0 %v19150_v50, %s11290_s29  ;;  %v6869_v5 = vmax.f32 %v6854_v25, 0.0  ;;  %v6874_v30 = vmax.f32 %v6859_v17, 0.0  ;;  %v6331_v61 = vrot.slane %v14444_v20, 4  ;;  %7840 = vmatprep.subr.bf16.mxu1 %v10489_v52  ;;  %v6855_v35 = vadd.f32 %v6846_v43, %v6686_v55  ;;  %v10944_v17 = vld [vmem:[%s18190_s2] sm:$0xf] }
 0x30c   : > { %7755 = vmatpush1.bf16.msra.mxu0 %v10491_v53  ;;  %v6860_v26 = vadd.f32 %v6846_v43, %v6691_v60  ;;  %v6865_v3 = vadd.f32 %v6846_v43, %v6696_v39  ;;  %v6879_v23 = vmax.f32 %v6864_v22, 0.0  ;;  %v6343_v29 = vrot.slane %v14417_v46, 4  ;;  %v14472_v7 = vpop.permute.xlu1 %1061  ;;  %v10503_v53 = vld [vmem:[#allocation3 + $0x1e0] ss:$16 sps:$4 sm:$0xff]  }
 0x30d   : > { %6353 = vrot.lane.b32.xlu1 %v6324_v31, %s11292_s23  ;;  %v7054_v6 = vrot.slane %v6883_v47, 3  ;;  %v7055_v40 = vrot.slane %v6888_v45, 3  ;;  %7756 = vmatprep.subr.bf16.mxu0 %v10493_v44  ;;  %v6884_v2 = vpack.c.bf16 %v6874_v30, %v6869_v5  ;;  %v14474_v12 = vpop.permute.xlu0 %1059  ;;  %v6334_v27 = vsel %vm5485_vm6, %v6324_v31, %v6333_v15 }
 0x30e   : > { %7841 = vmatpush1.bf16.msra.mxu1 %v10492_v13  ;;  %v6889_v0 = vpack.c.bf16 %v6879_v23, %v6879_v23  ;;  %v6341_v37 = vrot.slane %v14448_v63, 4  ;;  %v6870_v46 = vmax.f32 %v6855_v35, 0.0  ;;  %v6875_v20 = vmax.f32 %v6860_v26, 0.0  ;;  %v10504_v63 = vld [vmem:[#allocation3 + $0x1e8] ss:$16 sps:$4 sm:$0xff]  }
 0x30f   : > { %6351 = vrot.lane.b32.xlu0 %v6323_v11, %s11292_s23  ;;  %7842 = vmatprep.subr.bf16.mxu1 %v10495_v62  ;;  %v6880_v16 = vmax.f32 %v6865_v3, 0.0  ;;  %v6332_v52 = vsel %vm5485_vm6, %v6323_v11, %v6331_v61  ;;  %v7056_v31 = vsel %vm4071_vm4, %v7054_v6, %v7055_v40  ;;  %v6344_v51 = vsel %vm5485_vm6, %v6333_v15, %v6343_v29  ;;  %v19151_v29 = vld [vmem:[#allocation19_spill] sm:$0xff]  ;;  %v19152_v6 = vld [vmem:[#allocation18_spill] sm:$0xff] }
 0x310   : > { %7757 = vmatpush1.bf16.msra.mxu0 %v10497_v56  ;;  %v14481_v55 = vpop.permute.xlu1 %1071  ;;  %v7058_v34 = vrot.slane %v6889_v0, 3  ;;  %v7057_v24 = vrot.slane %v6884_v2, 3  ;;  %v6885_v60 = vpack.c.bf16 %v6875_v20, %v6870_v46  ;;  %v6342_v25 = vsel %vm5485_vm6, %v6331_v61, %v6341_v37  ;;  %v10946_v2 = vld [vmem:[#allocation2 + $0x20] sm:$0xc0]  ;;  %v19154_v37 = vld [vmem:[#allocation40_spill] sm:$0xff] }
 0x311   : > { %6363 = vrot.lane.b32.xlu1 %v6334_v27, %s11292_s23  ;;  %7758 = vmatprep.subr.bf16.mxu0 %v10499_v1  ;;  %v14484_v39 = vpop.permute.xlu0 %1069  ;;  %v6890_v43 = vpack.c.bf16 %v6880_v16, %v6880_v16  ;;  %v6836_v50 = vrot.slane %v10944_v17, %v18839_v49  ;;  %v388_v40 = vsel %vm385_vm5, %v19152_v6, %v19151_v29  ;;  %v19153_v27 = vld [vmem:[#allocation31_spill] sm:$0xff]  ;;  %v10947_v20 = vld [vmem:[#allocation2 + $0x18] sm:$0xc0]  ;;  %v10949_v17 = vld [vmem:[#allocation2 + $0x80] sm:$0x3f] }
 0x312   : > { %7843 = vmatpush1.bf16.msra.mxu1 %v10498_v21  ;;  %v7059_v47 = vsel %vm4071_vm4, %v7057_v24, %v7058_v34  ;;  %v7060_v13 = vrot.slane %v6885_v60, 3  ;;  %v14527_v21 = vld [vmem:[#allocation2 + $0x50] sm:$0xff]  ;;  %v398_v0 = vmul.f32 %v10946_v2, %v19151_v29  ;;  %v397_v16 = vmul.f32 %v10947_v20, %v388_v40  ;;  %v14544_v24 = vld [vmem:[#allocation2 + $0x48] sm:$0xff]  ;;  %v10952_v49 = vld [vmem:[#allocation2 + $0x18] sm:$0x80] }
 0x313   : > { %6361 = vrot.lane.b32.xlu0 %v6332_v52, %s11292_s23  ;;  %7844 = vmatprep.subr.bf16.mxu1 %v10501_v38  ;;  %v7061_v45 = vrot.slane %v6890_v43, 3  ;;  %v403_v1 = vmul.f32 %v14527_v21, %v19151_v29  ;;  %v588_v38 = vsel %vm516_vm0, %v19154_v37, %v19153_v27  ;;  %v19155_v52 = vld [vmem:[#allocation30_spill] sm:$0xff]  ;;  %v402_v60 = vmul.f32 %v14544_v24, %v388_v40  ;;  %v19157_v43 = vld [vmem:[#allocation65_spill] sm:$0xff] }
 0x314   : > { %7759 = vmatpush1.bf16.msra.mxu0 %v10503_v53  ;;  %v14494_v22 = vpop.permute.xlu1 %1081  ;;  %v19156_v53 = vld [vmem:[#allocation41_spill] sm:$0xff] }
 0x315   : > { %6373 = vrot.lane.b32.xlu1 %v6344_v51, %s11292_s23  ;;  %v14496_v15 = vpop.permute.xlu0 %1079  ;;  %v7062_v11 = vsel %vm4071_vm4, %v7060_v13, %v7061_v45  ;;  %v621_v34 = vadd.f32 %v19155_v52, %v403_v1  ;;  %v616_v51 = vadd.f32 %v19153_v27, %v398_v0  ;;  %v19158_v45 = vld [vmem:[#allocation24_spill] sm:$0xff]  ;;  %v19159_v13 = vld [vmem:[#allocation25_spill] sm:$0xff] }
 0x316   : > { %7845 = vmatpush1.bf16.msra.mxu1 %v10504_v63  ;;  %v10950_v1 = vld [vmem:[#allocation2 + $0x78] sm:$0x3f]  ;;  %v14554_v0 = vld [vmem:[#allocation2 + $0x20] sm:$0x80] }
 0x317   : > { %6371 = vrot.lane.b32.xlu0 %v6342_v25, %s11292_s23  ;;  %v1431_v25 = vsel %vm385_vm5, %v19157_v43, %v14462_v36  ;;  %v407_v37 = vmul.f32 %v10950_v1, %v388_v40  ;;  %v1441_v27 = vmul.f32 %v14554_v0, %v14462_v36  ;;  %v863_v1 = vadd.f32 %v19158_v45, %v616_v51 }
 0x318   : > { %v14501_v5 = vpop.permute.xlu1 %1741 }
 0x319   : > { %7071 = vrot.lane.b32.xlu1 %v7059_v47, %s11290_s29  ;;  %v14503_v30 = vpop.permute.xlu0 %1287  ;;  %v615_v47 = vadd.f32 %v588_v38, %v397_v16  ;;  %v19163_v38 = vld [vmem:[#allocation43_spill] sm:$0xff]  ;;  %v1480_v51 = vrot.slane %v1441_v27, 1 }
 0x31b   : > { %6843 = vrot.lane.b32.xlu0 %v6836_v50, %s11290_s29  ;;  %v408_v50 = vmul.f32 %v10949_v17, %v19151_v29  ;;  %v19162_v29 = vld [vmem:[#allocation35_spill] sm:$0xff] }
 0x31c   : > { %v14508_v61 = vpop.permute.xlu1 %1761  ;;  %v596_v16 = vsel %vm516_vm0, %v19163_v38, %v19162_v29  ;;  %v843_v38 = vsel %vm385_vm5, %v19164_v54, %v14465_v41 }
 0x31d   : > { %7069 = vrot.lane.b32.xlu1 %v7056_v31, %s11290_s29  ;;  %v14510_v44 = vpop.permute.xlu0 %1751  ;;  %v592_v31 = vsel %vm516_vm0, %v19156_v53, %v19155_v52  ;;  %v19160_v52 = vld [vmem:[#allocation26_spill] sm:$0xff]  ;;  %v19161_v53 = vld [vmem:[#allocation27_spill] sm:$0xff]  ;;  %v626_v4 = vadd.f32 %v19162_v29, %v408_v50  ;;  %v1086_v50 = vsel %vm1014_vm1, %v14474_v12, %v14472_v7  ;;  %v1094_v7 = vsel %vm1014_vm1, %v14496_v15, %v14494_v22 }
 0x31e   : > { %v620_v6 = vadd.f32 %v592_v31, %v402_v60  ;;  %v840_v43 = vsel %vm385_vm5, %v19161_v53, %v19160_v52  ;;  %v14567_v31 = vmul.f32 %v14544_v24, %v1431_v25  ;;  %v868_v60 = vadd.f32 %v19160_v52, %v621_v34 }
 0x31f   : > { %7073 = vrot.lane.b32.xlu0 %v7062_v11, %s11290_s29  ;;  %v837_v11 = vsel %vm385_vm5, %v19159_v13, %v19158_v45  ;;  %v1440_v13 = vmul.f32 %v10952_v49, %v1431_v25  ;;  %v1446_v53 = vmul.f32 %v14527_v21, %v14462_v36  ;;  %v19165_v49 = vld [vmem:[#allocation66_spill] sm:$0xff]  ;;  %v1291_v34 = vsel %vm385_vm5, %v19166_v8, %v14503_v30 }
 0x320   : > { %v14512_v35 = vpop.permute.xlu1 %2040  ;;  %v862_v48 = vadd.f32 %v837_v11, %v615_v47  ;;  %v1085_v32 = vsel %vm1014_vm1, %v19165_v49, %v14474_v12  ;;  %v625_v52 = vadd.f32 %v596_v16, %v407_v37  ;;  %v867_v45 = vadd.f32 %v840_v43, %v620_v6  ;;  %v10953_v11 = vld [vmem:[#allocation2 + $0x28] sm:$0xc0]  ;;  %v10954_v12 = vld [vmem:[#allocation2 + $0x80] sm:$0x7f]  ;;  %v10955_v43 = vld [vmem:[#allocation2 + $0x78] sm:$0x7f] }
 0x321   : > { %v14514_v26 = vpop.permute.xlu0 %2578  ;;  %v1477_v57 = vrot.slane %v1440_v13, 1  ;;  %v1478_v54 = vrot.slane %v14567_v31, 1  ;;  %v873_v47 = vadd.f32 %v14465_v41, %v626_v4  ;;  %v1301_v49 = vmul.f32 %v10953_v11, %v14503_v30  ;;  %v19167_v4 = vld [vmem:[#allocation71_spill] sm:$0xff] }
 0x322   : > { %v1481_v8 = vrot.slane %v1446_v53, 1  ;;  %v872_v37 = vadd.f32 %v843_v38, %v625_v52  ;;  %v1113_v27 = vadd.f32 %v1085_v32, %v862_v48  ;;  %v1300_v16 = vmul.f32 %v10946_v2, %v1291_v34  ;;  %v19168_v32 = vld [vmem:[#allocation72_spill] sm:$0xff]  ;;  %v10956_v2 = vld [vmem:[#allocation2 + $0x88] sm:$0x3f] }
 0x323   : > { %v1114_v9 = vadd.f32 %v1086_v50, %v863_v1  ;;  %v1451_v6 = vmul.f32 %v10954_v12, %v14462_v36  ;;  %v1450_v13 = vmul.f32 %v10955_v43, %v1431_v25  ;;  %v1089_v41 = vsel %vm1014_vm1, %v19167_v4, %v14484_v39 }
 0x324   : > { %v14516_v3 = vpop.permute.xlu1 %2056  ;;  %v1090_v31 = vsel %vm1014_vm1, %v14484_v39, %v14481_v55  ;;  %v1093_v48 = vsel %vm1014_vm1, %v19168_v32, %v14496_v15  ;;  %v1311_v22 = vmul.f32 %v10956_v2, %v14503_v30  ;;  %v1306_v36 = vmul.f32 %v14390_v42, %v14503_v30 }
 0x325   : > { %v14518_v23 = vpop.permute.xlu0 %2048  ;;  %v1310_v25 = vmul.f32 %v10949_v17, %v1291_v34  ;;  %v1305_v53 = vmul.f32 %v14527_v21, %v1291_v34  ;;  %v1316_v38 = vadd.f32 %v1301_v49, %v1114_v9  ;;  %v1124_v50 = vadd.f32 %v1094_v7, %v873_v47 }
 0x326   : > { %v1315_v55 = vadd.f32 %v1300_v16, %v1113_v27  ;;  %v1118_v39 = vadd.f32 %v1089_v41, %v867_v45  ;;  %v1119_v11 = vadd.f32 %v1090_v31, %v868_v60  ;;  %v1123_v43 = vadd.f32 %v1093_v48, %v872_v37  ;;  %v19169_v60 = vld [vmem:[#allocation81_spill] sm:$0xff]  ;;  %v10957_v48 = vld [vmem:[#allocation2 + $0x28] sm:$0x80] }
 0x327   : > { %v1491_v15 = vrot.slane %v1451_v6, 1  ;;  %v1326_v4 = vadd.f32 %v1311_v22, %v1124_v50  ;;  %v1489_v32 = vrot.slane %v1450_v13, 1  ;;  %v1482_v2 = vsel %vm1467_vm2, %v1480_v51, %v1481_v8 }
 0x328   : > { %v14520_v62 = vpop.permute.xlu1 %2325  ;;  %v1479_v59 = vsel %vm1467_vm2, %v1477_v57, %v1478_v54  ;;  %v1325_v30 = vadd.f32 %v1310_v25, %v1123_v43  ;;  %v1320_v17 = vadd.f32 %v1305_v53, %v1118_v39  ;;  %v1321_v34 = vadd.f32 %v1306_v36, %v1119_v11  ;;  %v19170_v57 = vld [vmem:[#allocation93_spill] sm:$0xff]  ;;  %v19171_v36 = vld [vmem:[#allocation94_spill] sm:$0xff] }
 0x329   : > { %v14522_v56 = vpop.permute.xlu0 %2823  ;;  %v1512_v9 = vadd.f32 %v1482_v2, %v1316_v38  ;;  %v1511_v47 = vadd.f32 %v1479_v59, %v1315_v55  ;;  %v1492_v45 = vsel %vm1467_vm2, %v1481_v8, %v1491_v15  ;;  %v1766_v37 = vsel %vm516_vm0, %v19169_v60, %v14501_v5  ;;  %v19173_v39 = vld [vmem:[#allocation82_spill] sm:$0xff] }
 0x32a   : > { %v1522_v27 = vadd.f32 %v1491_v15, %v1326_v4  ;;  %v1490_v51 = vsel %vm1467_vm2, %v1478_v54, %v1489_v32  ;;  %v2582_v16 = vsel %vm385_vm5, %v19170_v57, %v14514_v26  ;;  %v1521_v6 = vadd.f32 %v1489_v32, %v1325_v30  ;;  %v10958_v43 = vld [vmem:[#allocation2 + $0x88] sm:$0x7f] }
 0x32b   : > { %v1516_v13 = vadd.f32 %v1490_v51, %v1320_v17  ;;  %v1517_v41 = vadd.f32 %v1492_v45, %v1321_v34  ;;  %v1794_v59 = vadd.f32 %v14501_v5, %v1512_v9  ;;  %v1793_v8 = vadd.f32 %v1766_v37, %v1511_v47  ;;  %v19172_v5 = vld [vmem:[#allocation87_spill] sm:$0xff]  ;;  %v19174_v37 = vld [vmem:[#allocation100_spill] sm:$0xff] }
 0x32c   : > { %v14535_v46 = vpop.permute.xlu1 %2335  ;;  %v2592_v22 = vmul.f32 %v10957_v48, %v14514_v26  ;;  %v2597_v54 = vmul.f32 %v14390_v42, %v14514_v26  ;;  %v2060_v25 = vsel %vm385_vm5, %v19171_v36, %v14512_v35  ;;  %v2591_v53 = vmul.f32 %v14554_v0, %v2582_v16  ;;  %v19175_v51 = vld [vmem:[#allocation99_spill] sm:$0xff]  ;;  %v14689_v48 = vld [vmem:[#allocation2 + $0x80] sm:$0xff] }
 0x32d   : > { %v14540_v63 = vpop.permute.xlu0 %2327  ;;  %v14643_v38 = vmul.f32 %v14527_v21, %v2582_v16  ;;  %v1774_v50 = vsel %vm516_vm0, %v19172_v5, %v14508_v61  ;;  %v1804_v55 = vadd.f32 %v14508_v61, %v1522_v27  ;;  %v1770_v11 = vsel %vm516_vm0, %v19173_v39, %v14510_v44  ;;  %v10507_v36 = vld [vmem:[#allocation3 + $0x204] ss:$16 sps:$4 sm:$0xff]  }
 0x32e   : > { %v2602_v15 = vmul.f32 %v10958_v43, %v14514_v26  ;;  %v1803_v32 = vadd.f32 %v1774_v50, %v1521_v6  ;;  %v1798_v0 = vadd.f32 %v1770_v11, %v1516_v13  ;;  %v1799_v2 = vadd.f32 %v14510_v44, %v1517_v41  ;;  %v19176_v13 = vld [vmem:[#allocation109_spill] sm:$0xff]  ;;  %v10510_v50 = vld [vmem:[#allocation3 + $0x20c] ss:$16 sps:$4 sm:$0xff]   ;;  %7771 = vmatprep.subr.bf16.mxu0 %v10507_v36 }
 0x32f   : > { %v2086_v30 = vadd.f32 %v14512_v35, %v1794_v59  ;;  %v2085_v34 = vadd.f32 %v2060_v25, %v1793_v8  ;;  %v2601_v9 = vmul.f32 %v10954_v12, %v2582_v16  ;;  %v2630_v61 = vrot.slane %v2592_v22, 1  ;;  %7857 = vmatprep.subr.bf16.mxu1 %v10510_v50 }
 0x330   : > { %v14558_v20 = vpop.permute.xlu1 %2345  ;;  %v2631_v47 = vrot.slane %v2597_v54, 1  ;;  %v2627_v45 = vrot.slane %v2591_v53, 1  ;;  %v2628_v60 = vrot.slane %v14643_v38, 1  ;;  %v2066_v26 = vsel %vm385_vm5, %v19174_v37, %v14516_v3 }
 0x331   : > { %v14569_v40 = vpop.permute.xlu0 %2337  ;;  %v2352_v27 = vsel %vm1014_vm1, %v14520_v62, %v14540_v63  ;;  %v2641_v44 = vrot.slane %v2602_v15, 1  ;;  %v2096_v35 = vadd.f32 %v14516_v3, %v1804_v55  ;;  %v2063_v12 = vsel %vm385_vm5, %v19175_v51, %v14518_v23  ;;  %v19177_v63 = vld [vmem:[#allocation104_spill] sm:$0xff] }
 0x332   : > { %v2356_v57 = vsel %vm1014_vm1, %v14535_v46, %v14569_v40  ;;  %v2091_v6 = vadd.f32 %v14518_v23, %v1799_v2  ;;  %v2351_v41 = vsel %vm1014_vm1, %v19176_v13, %v14520_v62  ;;  %v2827_v3 = vsel %vm385_vm5, %v19177_v63, %v14522_v56  ;;  %v19178_v62 = vld [vmem:[#allocation115_spill] sm:$0xff]  ;;  %v14702_v15 = vld [vmem:[#allocation2 + $0x78] sm:$0xff] }
 0x333   : > { %v2837_v40 = vmul.f32 %v14527_v21, %v14522_v56  ;;  %v2842_v23 = vmul.f32 %v14689_v48, %v14522_v56  ;;  %v2380_v22 = vadd.f32 %v2352_v27, %v2086_v30  ;;  %v2359_v54 = vsel %vm1014_vm1, %v19178_v62, %v14558_v20  ;;  %v19182_v62 = vld [vmem:[#allocation122_spill] sm:$0xff] }
 0x334   : > { %v14588_v29 = vpop.permute.xlu1 %3077  ;;  %v2639_v25 = vrot.slane %v2601_v9, 1  ;;  %v2095_v53 = vadd.f32 %v2066_v26, %v1803_v32  ;;  %v2385_v5 = vadd.f32 %v2356_v57, %v2091_v6  ;;  %v2090_v55 = vadd.f32 %v2063_v12, %v1798_v0 }
 0x335   : > { %v14593_v58 = vpop.permute.xlu0 %2347  ;;  %v2379_v39 = vadd.f32 %v2351_v41, %v2085_v34  ;;  %v2836_v11 = vmul.f32 %v14544_v24, %v2827_v3  ;;  %v2632_v32 = vsel %vm1467_vm2, %v2630_v61, %v2631_v47  ;;  %v2642_v30 = vsel %vm1467_vm2, %v2631_v47, %v2641_v44 }
 0x336   : > { %v2360_v59 = vsel %vm1014_vm1, %v14558_v20, %v14593_v58  ;;  %v19179_v58 = vld [vmem:[#allocation110_spill] sm:$0xff]  ;;  %v2841_v20 = vmul.f32 %v14702_v15, %v2827_v3  ;;  %v2389_v2 = vadd.f32 %v2359_v54, %v2095_v53  ;;  %v2858_v9 = vrot.slane %v2837_v40, 2  ;;  %v19183_v53 = vld [vmem:[#allocation121_spill] sm:$0xff] }
 0x337   : > { %v2355_v38 = vsel %vm1014_vm1, %v19179_v58, %v14535_v46  ;;  %v2390_v43 = vadd.f32 %v2360_v59, %v2096_v35  ;;  %v2867_v0 = vrot.slane %v2842_v23, 2  ;;  %v2662_v37 = vadd.f32 %v2632_v32, %v2380_v22  ;;  %v19180_v59 = vld [vmem:[#allocation132_spill] sm:$0xff] }
 0x338   : > { %v14609_v1 = vpop.permute.xlu1 %3097  ;;  %v2384_v34 = vadd.f32 %v2355_v38, %v2090_v55  ;;  %v2629_v24 = vsel %vm1467_vm2, %v2627_v45, %v2628_v60  ;;  %v2667_v26 = vadd.f32 %v2642_v30, %v2385_v5  ;;  %v2857_v35 = vrot.slane %v2836_v11, 2  ;;  %v19181_v23 = vld [vmem:[#allocation116_spill] sm:$0xff]  ;;  %v19185_v30 = vld [vmem:[#allocation62_spill] sm:$0xff] }
 0x339   : > { %v14614_v52 = vpop.permute.xlu0 %3087  ;;  %v2661_v27 = vadd.f32 %v2629_v24, %v2379_v39  ;;  %v2672_v51 = vadd.f32 %v2641_v44, %v2390_v43  ;;  %v2865_v57 = vrot.slane %v2841_v20, 2  ;;  %v2640_v61 = vsel %vm1467_vm2, %v2628_v60, %v2639_v25  ;;  %v19184_v39 = vld [vmem:[#allocation140_spill] sm:$0xff] }
 0x33a   : > { %v2671_v6 = vadd.f32 %v2639_v25, %v2389_v2  ;;  %v2666_v47 = vadd.f32 %v2640_v61, %v2384_v34  ;;  %v2888_v41 = vadd.f32 %v2858_v9, %v2662_v37  ;;  %v2868_v63 = vsel %vm2853_vm3, %v2858_v9, %v2867_v0  ;;  %v19186_v34 = vld [vmem:[#allocation150_spill] sm:$0xff] }
 0x33b   : > { %v2893_v3 = vadd.f32 %v2868_v63, %v2667_v26  ;;  %v2887_v40 = vadd.f32 %v2857_v35, %v2661_v27  ;;  %v3102_v44 = vsel %vm516_vm0, %v19181_v23, %v14588_v29  ;;  %v2898_v22 = vadd.f32 %v2867_v0, %v2672_v51  ;;  %v19189_v23 = vld [vmem:[#allocation155_spill] sm:$0xff] }
 0x33c   : > { %v14618_v28 = vpop.permute.xlu1 %3340  ;;  %v3110_v60 = vsel %vm516_vm0, %v19182_v62, %v14609_v1  ;;  %v2897_v36 = vadd.f32 %v2865_v57, %v2671_v6  ;;  %v2866_v25 = vsel %vm2853_vm3, %v2857_v35, %v2865_v57  ;;  %v3106_v58 = vsel %vm516_vm0, %v19183_v53, %v14614_v52  ;;  %v19187_v57 = vld [vmem:[#allocation57_spill] sm:$0xff]  ;;  %v19188_v6 = vld [vmem:[#allocation146_spill] sm:$0xff] }
 0x33d   : > { %v14620_v49 = vpop.permute.xlu0 %3821  ;;  %v3130_v50 = vadd.f32 %v14588_v29, %v2888_v41  ;;  %v2892_v55 = vadd.f32 %v2866_v25, %v2666_v47  ;;  %v3360_v11 = vsel %vm385_vm5, %v19184_v39, %v14618_v28  ;;  %v3129_v20 = vadd.f32 %v3102_v44, %v2887_v40  ;;  %v19190_v44 = vld [vmem:[#allocation159_spill] sm:$0xff] }
 0x33e   : > { %v3825_v45 = vsel %vm385_vm5, %v19180_v59, %v14620_v49  ;;  %v3835_v38 = vmul.f32 %v14390_v42, %v14620_v49  ;;  %v3139_v32 = vadd.f32 %v3110_v60, %v2897_v36  ;;  %v3135_v2 = vadd.f32 %v14614_v52, %v2893_v3  ;;  %v10961_v3 = vld [vmem:[#allocation2 + $0xb0] sm:$0x1]  ;;  %v10963_v60 = vld [vmem:[#allocation2 + $0x50] sm:$0xfe] }
 0x33f   : > { %v3834_v43 = vmul.f32 %v14527_v21, %v3825_v45  ;;  %v3140_v49 = vadd.f32 %v14609_v1, %v2898_v22  ;;  %v3134_v0 = vadd.f32 %v3106_v58, %v2892_v55  ;;  %v3386_v29 = vadd.f32 %v14618_v28, %v3130_v50  ;;  %v10962_v22 = vld [vmem:[#allocation2 + $0x48] sm:$0xfe]  ;;  %v10964_v58 = vld [vmem:[#allocation2 + $0xa8] sm:$0x1] }
 0x340   : > { %v14630_v7 = vpop.permute.xlu1 %3356  ;;  %v3385_v21 = vadd.f32 %v3360_v11, %v3129_v20  ;;  %v3839_v26 = vmul.f32 %v14689_v48, %v3825_v45  ;;  %v3855_v27 = vrot.slane %v3835_v38, 2 }
 0x341   : > { %v14633_v31 = vpop.permute.xlu0 %3348  ;;  %v3366_v9 = vsel %vm385_vm5, %v19185_v30, %v14630_v7  ;;  %v3854_v1 = vrot.slane %v3834_v43, 2  ;;  %v3396_v28 = vadd.f32 %v14630_v7, %v3140_v49 }
 0x342   : > { %v3395_v51 = vadd.f32 %v3366_v9, %v3139_v32  ;;  %v3363_v47 = vsel %vm385_vm5, %v19188_v6, %v14633_v31  ;;  %v3391_v41 = vadd.f32 %v14633_v31, %v3135_v2  ;;  %v3862_v55 = vrot.slane %v3839_v26, 2 }
 0x343   : > { %v3390_v53 = vadd.f32 %v3363_v47, %v3134_v0  ;;  %v19191_v47 = vld [vmem:[#allocation73_spill] sm:$0xff] }
 0x344   : > { %v14653_v4 = vpop.permute.xlu1 %3588 }
 0x345   : > { %v14657_v17 = vpop.permute.xlu0 %4031  ;;  %v3614_v37 = vsel %vm1014_vm1, %v19186_v34, %v14653_v4  ;;  %v3863_v34 = vsel %vm2853_vm3, %v3854_v1, %v3862_v55 }
 0x346   : > { %v4035_v61 = vsel %vm385_vm5, %v19187_v57, %v14657_v17  ;;  %v3642_v63 = vadd.f32 %v3614_v37, %v3385_v21  ;;  %v4055_v7 = vmul.f32 %v10961_v3, %v14657_v17  ;;  %v4045_v36 = vmul.f32 %v10963_v60, %v14657_v17  ;;  %v19195_v60 = vld [vmem:[#allocation92_spill] sm:$0xff] }
 0x347   : > { %v4044_v62 = vmul.f32 %v10962_v22, %v4035_v61  ;;  %v4054_v38 = vmul.f32 %v10964_v58, %v4035_v61 }
 0x348   : > { %v14673_v16 = vpop.permute.xlu1 %3598  ;;  %v4095_v2 = vrot.slane %v4055_v7, 3  ;;  %v19193_v7 = vld [vmem:[#allocation28_spill] sm:$0xff] }
 0x349   : > { %v14685_v8 = vpop.permute.xlu0 %3590  ;;  %v3618_v31 = vsel %vm1014_vm1, %v19189_v23, %v14673_v16  ;;  %v4075_v30 = vrot.slane %v4044_v62, 3  ;;  %v4093_v0 = vrot.slane %v4054_v38, 3 }
 0x34a   : > { %v3615_v52 = vsel %vm1014_vm1, %v14653_v4, %v14685_v8  ;;  %v4050_v8 = vmul.f32 %v14689_v48, %v14657_v17  ;;  %v3647_v11 = vadd.f32 %v3618_v31, %v3390_v53  ;;  %v4076_v17 = vrot.slane %v4045_v36, 3 }
 0x34b   : > { %v3643_v59 = vadd.f32 %v3615_v52, %v3386_v29 }
 0x34c   : > { %v14700_v56 = vpop.permute.xlu1 %3608  ;;  %v4085_v32 = vrot.slane %v4050_v8, 3  ;;  %v3889_v21 = vadd.f32 %v3863_v34, %v3647_v11  ;;  %v19192_v8 = vld [vmem:[#allocation83_spill] sm:$0xff]  ;;  %v19197_v34 = vld [vmem:[#allocation162_spill] sm:$0xff] }
 0x34d   : > { %v3601_v46 = vpop.permute.xlu0 %3600  ;;  %v3885_v43 = vadd.f32 %v3855_v27, %v3643_v59 }
 0x34e   : > { %v3619_v4 = vsel %vm1014_vm1, %v14673_v16, %v3601_v46  ;;  %v3622_v46 = vsel %vm1014_vm1, %v19190_v44, %v14700_v56  ;;  %v3884_v16 = vadd.f32 %v3854_v1, %v3642_v63 }
 0x34f   : > { %v3648_v50 = vadd.f32 %v3619_v4, %v3391_v41  ;;  %v3652_v20 = vadd.f32 %v3622_v46, %v3395_v51  ;;  %v4116_v52 = vadd.f32 %v4076_v17, %v3885_v43  ;;  %v4096_v51 = vsel %vm4071_vm4, %v4085_v32, %v4095_v2  ;;  %v10967_v2 = vld [vmem:[#allocation2 + $0x58] sm:$0xfe] }
 0x350   : > { %v14708_v12 = vpop.permute.xlu1 %4345  ;;  %v4115_v57 = vadd.f32 %v4075_v30, %v3884_v16 }
 0x351   : > { %v3611_v13 = vpop.permute.xlu0 %3610  ;;  %v3890_v29 = vadd.f32 %v3855_v27, %v3648_v50  ;;  %v3894_v26 = vadd.f32 %v3862_v55, %v3652_v20  ;;  %v4370_v41 = vsel %vm516_vm0, %v19191_v47, %v14708_v12  ;;  %v4398_v31 = vadd.f32 %v14708_v12, %v4116_v52  ;;  %v10966_v12 = vld [vmem:[#allocation2 + $0x50] sm:$0xfe]  ;;  %v19196_v20 = vld [vmem:[#allocation96_spill] sm:$0xff]  ;;  %v19198_v52 = vld [vmem:[#allocation105_spill] sm:$0xff] }
 0x352   : > { %v3623_v45 = vsel %vm1014_vm1, %v14700_v56, %v3611_v13  ;;  %v4049_v13 = vmul.f32 %v14702_v15, %v4035_v61  ;;  %v4086_v61 = vsel %vm4071_vm4, %v4076_v17, %v4085_v32  ;;  %v4397_v62 = vadd.f32 %v4370_v41, %v4115_v57 }
 0x353   : > { %v3653_v39 = vadd.f32 %v3623_v45, %v3396_v28  ;;  %v4121_v1 = vadd.f32 %v4086_v61, %v3890_v29  ;;  %v19194_v45 = vld [vmem:[#allocation89_spill] sm:$0xff] }
 0x354   : > { %v4083_v49 = vrot.slane %v4049_v13, 3  ;;  %v10965_v13 = vld [vmem:[#allocation2 + $0xb8] sm:$0x1] }
 0x355   : > { %v14721_v54 = vpop.permute.xlu1 %4365  ;;  %v3895_v37 = vadd.f32 %v3855_v27, %v3653_v39 }
 0x356   : > { %v14729_v5 = vpop.permute.xlu0 %4355  ;;  %v4094_v63 = vsel %vm4071_vm4, %v4083_v49, %v4093_v0  ;;  %v4084_v4 = vsel %vm4071_vm4, %v4075_v30, %v4083_v49  ;;  %v4378_v3 = vsel %vm516_vm0, %v19192_v8, %v14721_v54  ;;  %v14817_v49 = vld [vmem:[#allocation2 + $0x80] sm:$0xff] }
 0x357   : > { %v4126_v27 = vadd.f32 %v4096_v51, %v3895_v37  ;;  %v4374_v59 = vsel %vm516_vm0, %v19193_v7, %v14729_v5  ;;  %v4125_v44 = vadd.f32 %v4094_v63, %v3894_v26  ;;  %v4120_v46 = vadd.f32 %v4084_v4, %v3889_v21  ;;  %v19199_v4 = vld [vmem:[#allocation102_spill] sm:$0xff]  ;;  %v10970_v7 = vld [vmem:[#allocation2 + $0xb0] sm:$0x3] }
 0x358   : > { %v4403_v39 = vadd.f32 %v14729_v5, %v4121_v1  ;;  %v10969_v5 = vld [vmem:[#allocation2 + $0xb0] sm:$0x1] }
 0x359   : > { %v14745_v24 = vpop.permute.xlu1 %4644  ;;  %v4407_v50 = vadd.f32 %v4378_v3, %v4125_v44  ;;  %v4402_v55 = vadd.f32 %v4374_v59, %v4120_v46  ;;  %v4408_v11 = vadd.f32 %v14721_v54, %v4126_v27  ;;  %v10971_v44 = vld [vmem:[#allocation2 + $0x50] sm:$0xfc] }
 0x35a   : > { %v4664_v36 = vsel %vm385_vm5, %v19195_v60, %v14745_v24  ;;  %v4690_v43 = vadd.f32 %v14745_v24, %v4398_v31 }
 0x35b   : > { %v14751_v35 = vpop.permute.xlu0 %5195  ;;  %v4689_v17 = vadd.f32 %v4664_v36, %v4397_v62 }
 0x35c   : > { %v5199_v23 = vsel %vm385_vm5, %v19194_v45, %v14751_v35  ;;  %v5214_v53 = vmul.f32 %v14390_v42, %v14751_v35  ;;  %v5219_v58 = vmul.f32 %v10965_v13, %v14751_v35  ;;  %v5209_v30 = vmul.f32 %v10967_v2, %v14751_v35  ;;  %v10973_v13 = vld [vmem:[#allocation2 + $0x48] sm:$0xfc] }
 0x35d   : > { %v14768_v40 = vpop.permute.xlu1 %4660  ;;  %v14809_v16 = vmul.f32 %v10966_v12, %v5199_v23  ;;  %v5213_v0 = vmul.f32 %v14817_v49, %v5199_v23  ;;  %v5218_v29 = vmul.f32 %v10969_v5, %v5199_v23  ;;  %v19200_v23 = vld [vmem:[#allocation129_spill] sm:$0xff] }
 0x35e   : > { %v4670_v32 = vsel %vm385_vm5, %v19196_v20, %v14768_v40  ;;  %v5248_v24 = vrot.slane %v5214_v53, 3  ;;  %v5258_v21 = vrot.slane %v5219_v58, 3  ;;  %v4700_v26 = vadd.f32 %v14768_v40, %v4408_v11 }
 0x35f   : > { %v14777_v25 = vpop.permute.xlu0 %4652  ;;  %v4699_v51 = vadd.f32 %v4670_v32, %v4407_v50  ;;  %v5238_v47 = vrot.slane %v14809_v16, 3  ;;  %v5239_v27 = vrot.slane %v5209_v30, 3  ;;  %v5256_v50 = vrot.slane %v5218_v29, 3 }
 0x360   : > { %v4667_v54 = vsel %vm385_vm5, %v19197_v34, %v14777_v25  ;;  %v4695_v61 = vadd.f32 %v14777_v25, %v4403_v39 }
 0x361   : > { %v4694_v63 = vadd.f32 %v4667_v54, %v4402_v55  ;;  %v5259_v55 = vsel %vm4071_vm4, %v5248_v24, %v5258_v21 }
 0x363   : > { %v14780_v56 = vpop.permute.xlu1 %4942 }
 0x364   : > { %v14782_v9 = vpop.permute.xlu0 %5445  ;;  %v4968_v35 = vsel %vm1014_vm1, %v19198_v52, %v14780_v56 }
 0x365   : > { %v5449_v1 = vsel %vm385_vm5, %v19199_v4, %v14782_v9  ;;  %v4996_v8 = vadd.f32 %v4968_v35, %v4689_v17  ;;  %v5464_v3 = vmul.f32 %v14689_v48, %v14782_v9  ;;  %v5469_v25 = vmul.f32 %v10970_v7, %v14782_v9  ;;  %v10972_v48 = vld [vmem:[#allocation2 + $0xa8] sm:$0x3] }
 0x366   : > { %v5459_v46 = vmul.f32 %v10971_v44, %v14782_v9  ;;  %v5463_v60 = vmul.f32 %v14702_v15, %v5449_v1  ;;  %v5468_v36 = vmul.f32 %v10972_v48, %v5449_v1  ;;  %v5458_v58 = vmul.f32 %v10973_v13, %v5449_v1  ;;  %v19202_v48 = vld [vmem:[#allocation151_spill] sm:$0xff] }
 0x367   : > { %v4953_v28 = vpop.permute.xlu1 %4952  ;;  %v5278_v39 = vadd.f32 %v5238_v47, %v4996_v8  ;;  %v5499_v9 = vrot.slane %v5464_v3, 4  ;;  %v5509_v11 = vrot.slane %v5469_v25, 4 }
 0x368   : > { %v4945_v6 = vpop.permute.xlu0 %4944  ;;  %v5490_v15 = vrot.slane %v5459_v46, 4  ;;  %v5497_v32 = vrot.slane %v5463_v60, 4  ;;  %v5507_v2 = vrot.slane %v5468_v36, 4  ;;  %v5489_v17 = vrot.slane %v5458_v58, 4  ;;  %v19205_v58 = vld [vmem:[#allocation42_spill] sm:$0xff] }
 0x369   : > { %v4969_v41 = vsel %vm1014_vm1, %v14780_v56, %v4945_v6  ;;  %v4972_v56 = vsel %vm1014_vm1, %v19200_v23, %v4953_v28 }
 0x36a   : > { %v4997_v6 = vadd.f32 %v4969_v41, %v4690_v43  ;;  %v5001_v12 = vadd.f32 %v4972_v56, %v4694_v63  ;;  %v5500_v52 = vsel %vm5485_vm6, %v5490_v15, %v5499_v9  ;;  %v5498_v4 = vsel %vm5485_vm6, %v5489_v17, %v5497_v32 }
 0x36b   : > { %v4963_v22 = vpop.permute.xlu1 %4962 }
 0x36c   : > { %v4955_v38 = vpop.permute.xlu0 %4954  ;;  %v4976_v31 = vsel %vm1014_vm1, %v19091_v19, %v4963_v22  ;;  %v5249_v19 = vsel %vm4071_vm4, %v5239_v27, %v5248_v24  ;;  %v5279_v43 = vadd.f32 %v5239_v27, %v4997_v6  ;;  %v5510_v24 = vsel %vm5485_vm6, %v5499_v9, %v5509_v11  ;;  %v19201_v6 = vld [vmem:[#allocation147_spill] sm:$0xff] }
 0x36d   : > { %v4973_v40 = vsel %vm1014_vm1, %v4953_v28, %v4955_v38  ;;  %v5246_v38 = vrot.slane %v5213_v0, 3  ;;  %v5006_v16 = vadd.f32 %v4976_v31, %v4699_v51 }
 0x36e   : > { %v5002_v53 = vadd.f32 %v4973_v40, %v4695_v61  ;;  %v5508_v61 = vsel %vm5485_vm6, %v5497_v32, %v5507_v2 }
 0x36f   : > { %v14823_v37 = vpop.permute.xlu1 %5759  ;;  %v5247_v0 = vsel %vm4071_vm4, %v5238_v47, %v5246_v38  ;;  %v5257_v5 = vsel %vm4071_vm4, %v5246_v38, %v5256_v50 }
 0x370   : > { %v4965_v57 = vpop.permute.xlu0 %4964  ;;  %v5284_v30 = vadd.f32 %v5249_v19, %v5002_v53  ;;  %v5283_v34 = vadd.f32 %v5247_v0, %v5001_v12  ;;  %v5288_v54 = vadd.f32 %v5257_v5, %v5006_v16  ;;  %v5784_v51 = vsel %vm516_vm0, %v13764_v18, %v14823_v37  ;;  %v19203_v53 = vld [vmem:[#allocation33_spill] sm:$0xff]  ;;  %v19207_v16 = vld [vmem:[#allocation63_spill] sm:$0xff] }
 0x371   : > { %v4977_v59 = vsel %vm1014_vm1, %v4963_v22, %v4965_v57  ;;  %v5529_v57 = vadd.f32 %v5489_v17, %v5278_v39 }
 0x372   : > { %v5007_v28 = vadd.f32 %v4977_v59, %v4700_v26  ;;  %v5530_v26 = vadd.f32 %v5490_v15, %v5279_v43  ;;  %v5535_v47 = vadd.f32 %v5500_v52, %v5284_v30  ;;  %v5539_v27 = vadd.f32 %v5508_v61, %v5288_v54  ;;  %v19209_v52 = vld [vmem:[#allocation58_spill] sm:$0xff] }
 0x373   : > { %v5780_v45 = vpop.permute.xlu1 %5779  ;;  %v5534_v40 = vadd.f32 %v5498_v4, %v5283_v34  ;;  %v5811_v7 = vadd.f32 %v5784_v51, %v5529_v57 }
 0x374   : > { %v5770_v62 = vpop.permute.xlu0 %5769  ;;  %v5289_v29 = vadd.f32 %v5259_v55, %v5007_v28  ;;  %v5792_v63 = vsel %vm516_vm0, %v19121_v33, %v5780_v45  ;;  %v5812_v18 = vadd.f32 %v14823_v37, %v5530_v26  ;;  %v19204_v37 = vld [vmem:[#allocation139_spill] sm:$0xff]  ;;  %v19206_v28 = vld [vmem:[#allocation84_spill] sm:$0xff] }
 0x375   : > { %v5788_v1 = vsel %vm516_vm0, %v19112_v14, %v5770_v62  ;;  %v5821_v23 = vadd.f32 %v5792_v63, %v5539_v27  ;;  %v5817_v33 = vadd.f32 %v5770_v62, %v5535_v47  ;;  %v10974_v14 = vld [vmem:[#allocation2 + $0x58] sm:$0xfc] }
 0x376   : > { %v5540_v41 = vadd.f32 %v5510_v24, %v5289_v29  ;;  %v5816_v56 = vadd.f32 %v5788_v1, %v5534_v40 }
 0x377   : > { %v6059_v22 = vpop.permute.xlu1 %6058 }
 0x378   : > { %v6078_v31 = vsel %vm385_vm5, %v19201_v6, %v6059_v22  ;;  %v5822_v44 = vadd.f32 %v5780_v45, %v5540_v41  ;;  %v6104_v36 = vadd.f32 %v6059_v22, %v5812_v18  ;;  %v19208_v22 = vld [vmem:[#allocation61_spill] sm:$0xff] }
 0x379   : > { %v6605_v20 = vpop.permute.xlu0 %6604  ;;  %v6103_v62 = vadd.f32 %v6078_v31, %v5811_v7 }
 0x37a   : > { %v6608_v8 = vsel %vm385_vm5, %v14034_v10, %v6605_v20  ;;  %v6623_v25 = vmul.f32 %v14390_v42, %v6605_v20  ;;  %v6618_v46 = vmul.f32 %v10974_v14, %v6605_v20  ;;  %v6628_v13 = vmul.f32 %v6605_v20, %v19203_v53 }
 0x37b   : > { %v6075_v21 = vpop.permute.xlu1 %6074  ;;  %v6622_v60 = vmul.f32 %v14817_v49, %v6608_v8  ;;  %v6627_v10 = vmul.f32 %v6608_v8, %v19202_v48  ;;  %v6617_v38 = vmul.f32 %v6608_v8, %v19205_v58  ;;  %v10505_v48 = vld [vmem:[#allocation3 + $0x200] ss:$16 sps:$4 sm:$0xff]  }
 0x37c   : > { %v6657_v55 = vrot.slane %v6623_v25, 4  ;;  %v6084_v45 = vsel %vm385_vm5, %v19206_v28, %v6075_v21  ;;  %v6648_v32 = vrot.slane %v6618_v46, 4  ;;  %v6667_v2 = vrot.slane %v6628_v13, 4  ;;  %v19210_v25 = vld [vmem:[#allocation152_spill] sm:$0xff] }
 0x37d   : > { %v6067_v35 = vpop.permute.xlu0 %6066  ;;  %v6655_v43 = vrot.slane %v6622_v60, 4  ;;  %v6665_v15 = vrot.slane %v6627_v10, 4  ;;  %v6647_v30 = vrot.slane %v6617_v38, 4  ;;  %v6113_v29 = vadd.f32 %v6084_v45, %v5821_v23 }
 0x37e   : > { %v6081_v42 = vsel %vm385_vm5, %v19204_v37, %v6067_v35  ;;  %v6109_v49 = vadd.f32 %v6067_v35, %v5817_v33  ;;  %v6114_v34 = vadd.f32 %v6075_v21, %v5822_v44  ;;  %v6658_v51 = vsel %vm5485_vm6, %v6648_v32, %v6657_v55 }
 0x37f   : > { %v6354_v3 = vpop.permute.xlu1 %6353  ;;  %v6108_v20 = vadd.f32 %v6081_v42, %v5816_v56  ;;  %v6666_v61 = vsel %vm5485_vm6, %v6655_v43, %v6665_v15  ;;  %v6656_v4 = vsel %vm5485_vm6, %v6647_v30, %v6655_v43  ;;  %v6668_v21 = vsel %vm5485_vm6, %v6657_v55, %v6667_v2  ;;  %v10508_v42 = vld [vmem:[#allocation3 + $0x208] ss:$16 sps:$4 sm:$0xff]   ;;  %v10516_v55 = vld [vmem:[#allocation3 + $0x22c] ss:$16 sps:$4 sm:$0xff]   ;;  %v10519_v43 = vld [vmem:[#allocation3 + $0x244] ss:$16 sps:$4 sm:$0xff]  }
 0x380   : > { %v19211_v2 = vld [vmem:[#allocation14_spill] sm:$0xff] }
 0x381   : > { %v6352_v59 = vpop.permute.xlu0 %6351 }
 0x382   : > { %v6378_v39 = vsel %vm1014_vm1, %v6352_v59, %v6354_v3  ;;  %v6377_v19 = vsel %vm1014_vm1, %v19207_v16, %v6352_v59 }
 0x383   : > { %v6364_v50 = vpop.permute.xlu1 %6363  ;;  %v6406_v17 = vadd.f32 %v6378_v39, %v6104_v36  ;;  %v6405_v54 = vadd.f32 %v6377_v19, %v6103_v62  ;;  %v10513_v62 = vld [vmem:[#allocation3 + $0x224] ss:$16 sps:$4 sm:$0xff]  }
 0x385   : > { %v6362_v12 = vpop.permute.xlu0 %6361  ;;  %v6688_v63 = vadd.f32 %v6648_v32, %v6406_v17  ;;  %v6687_v40 = vadd.f32 %v6647_v30, %v6405_v54  ;;  %v19212_v17 = vld [vmem:[#allocation16_spill] sm:$0xff]  ;;  %v10525_v54 = vld [vmem:[#allocation3 + $0x264] ss:$16 sps:$4 sm:$0xff]  }
 0x386   : > { %v6381_v9 = vsel %vm1014_vm1, %v19208_v22, %v6362_v12  ;;  %v6382_v11 = vsel %vm1014_vm1, %v6362_v12, %v6364_v50  ;;  %v10511_v22 = vld [vmem:[#allocation3 + $0x220] ss:$16 sps:$4 sm:$0xff]  }
 0x387   : > { %v6411_v0 = vadd.f32 %v6382_v11, %v6109_v49  ;;  %v6374_v5 = vpop.permute.xlu1 %6373  ;;  %v6410_v26 = vadd.f32 %v6381_v9, %v6108_v20  ;;  %v14899_v49 = vld [vmem:[%s18189_s1 + $0x83] ss:$8 sm:$0xf]  ;;  %v10522_v20 = vld [vmem:[#allocation3 + $0x24c] ss:$16 sps:$4 sm:$0xff]  }
 0x388   : > { %v10514_v11 = vld [vmem:[#allocation3 + $0x228] ss:$16 sps:$4 sm:$0xff]   ;;  %v1131_v30 = vrot.slane %v14899_v49, %v19211_v2 }
 0x389   : > { %v6372_v24 = vpop.permute.xlu0 %6371  ;;  %v6693_v1 = vadd.f32 %v6658_v51, %v6411_v0  ;;  %v6692_v8 = vadd.f32 %v6656_v4, %v6410_v26  ;;  %v1135_v0 = vrot.slane %v14899_v49, %v19212_v17  ;;  %v10528_v26 = vld [vmem:[#allocation3 + $0x26c] ss:$16 sps:$4 sm:$0xff]   ;;  %v10526_v51 = vld [vmem:[#allocation3 + $0x268] ss:$16 sps:$4 sm:$0xff]  }
 0x38a   : > { %v6385_v35 = vsel %vm1014_vm1, %v19209_v52, %v6372_v24  ;;  %v6386_v57 = vsel %vm1014_vm1, %v6372_v24, %v6374_v5  ;;  %v9848_v5 = vld [vmem:[%s18189_s1 + $0x86] ss:$8 sm:$0xf]  ;;  %v14924_v4 = vld [vmem:[%s18189_s1 + $0xa0] ss:$8 sm:$0xf] }
 0x38b   : > { %v6415_v47 = vadd.f32 %v6385_v35, %v6113_v29  ;;  %v6416_v41 = vadd.f32 %v6386_v57, %v6114_v34  ;;  %v7072_v27 = vpop.permute.xlu1 %7071  ;;  %v10517_v29 = vld [vmem:[#allocation3 + $0x240] ss:$16 sps:$4 sm:$0xff]   ;;  %v10520_v34 = vld [vmem:[#allocation3 + $0x248] ss:$16 sps:$4 sm:$0xff]   ;;  %v1811_v35 = vrot.slane %v9848_v5, %v19211_v2 }
 0x38c   : > { %v19213_v24 = vld [vmem:[#allocation13_spill] sm:$0xff] }
 0x38d   : > { %v6697_v3 = vadd.f32 %v6666_v61, %v6415_v47  ;;  %v6698_v7 = vadd.f32 %v6668_v21, %v6416_v41  ;;  %v6844_v18 = vpop.permute.xlu0 %6843  ;;  %v1139_v52 = vrot.slane %v14899_v49, %v19213_v24  ;;  %v10523_v57 = vld [vmem:[#allocation3 + $0x260] ss:$16 sps:$4 sm:$0xff]   ;;  %v10531_v61 = vld [vmem:[#allocation3 + $0x284] ss:$16 sps:$4 sm:$0xff]   ;;  %v10534_v47 = vld [vmem:[#allocation3 + $0x28c] ss:$16 sps:$4 sm:$0xff]   ;;  %v1815_v41 = vrot.slane %v9848_v5, %v19212_v17 }
 0x38e   : > { %v6847_v59 = vsel %vm385_vm5, %v19210_v25, %v6844_v18  ;;  %v6857_v23 = vadd.f32 %v6844_v18, %v6688_v63  ;;  %v6862_v56 = vadd.f32 %v6844_v18, %v6693_v1  ;;  %v1819_v63 = vrot.slane %v9848_v5, %v19213_v24  ;;  %v10529_v1 = vld [vmem:[#allocation3 + $0x280] ss:$16 sps:$4 sm:$0xff]   ;;  %v10532_v21 = vld [vmem:[#allocation3 + $0x288] ss:$16 sps:$4 sm:$0xff]  }
 0x38f   : > { %v6856_v33 = vadd.f32 %v6847_v59, %v6687_v40  ;;  %v6861_v6 = vadd.f32 %v6847_v59, %v6692_v8  ;;  %v6867_v31 = vadd.f32 %v6844_v18, %v6698_v7  ;;  %v6866_v44 = vadd.f32 %v6847_v59, %v6697_v3  ;;  %v7070_v60 = vpop.permute.xlu1 %7069  ;;  %v10540_v40 = vld [vmem:[#allocation3 + $0x2ac] ss:$16 sps:$4 sm:$0xff]   ;;  %v19214_v8 = vld [vmem:[#allocation15_spill] sm:$0xff]  ;;  %v10538_v25 = vld [vmem:[#allocation3 + $0x2a8] ss:$16 sps:$4 sm:$0xff]  }
 0x390   : > { %v6872_v14 = vmax.f32 %v6857_v23, 0.0  ;;  %v6877_v46 = vmax.f32 %v6862_v56, 0.0  ;;  %v7080_v36 = vsel %vm385_vm5, %v7070_v60, %v7072_v27  ;;  %v1823_v3 = vrot.slane %v9848_v5, %v19214_v8  ;;  %v10535_v18 = vld [vmem:[#allocation3 + $0x2a0] ss:$16 sps:$4 sm:$0xff]   ;;  %v10543_v59 = vld [vmem:[#allocation3 + $0x2c4] ss:$16 sps:$4 sm:$0xff]  }
 0x391   : > { %v14891_v10 = vpop.permute.xlu0 %7073  ;;  %v6871_v53 = vmax.f32 %v6856_v33, 0.0  ;;  %v6876_v13 = vmax.f32 %v6861_v6, 0.0  ;;  %v6881_v37 = vmax.f32 %v6866_v44, 0.0  ;;  %v6882_v38 = vmax.f32 %v6867_v31, 0.0  ;;  %v10546_v23 = vld [vmem:[#allocation3 + $0x2cc] ss:$16 sps:$4 sm:$0xff]  }
 0x392   : > { %v7081_v58 = vsel %vm385_vm5, %v7072_v27, %v14891_v10  ;;  %v6887_v50 = vpack.c.bf16 %v6877_v46, %v6872_v14  ;;  %v10537_v27 = vld [vmem:[#allocation3 + $0x2a4] ss:$16 sps:$4 sm:$0xff]   ;;  %v2397_v7 = vrot.slane %v14924_v4, %v19211_v2  ;;  %v2401_v56 = vrot.slane %v14924_v4, %v19212_v17  ;;  %v9858_v6 = vld [vmem:[%s18189_s1 + $0xa3] ss:$8 sm:$0xf] }
 0x393   : > { %7760 = vmatprep.mubr.bf16.mxu0 %v7081_v58  ;;  %7846 = vmatprep.mubr.bf16.mxu1 %v7081_v58  ;;  %v6886_v28 = vpack.c.bf16 %v6876_v13, %v6871_v53  ;;  %v6891_v45 = vpack.c.bf16 %v6881_v37, %v6881_v37  ;;  %v6892_v39 = vpack.c.bf16 %v6882_v38, %v6882_v38  ;;  %v10541_v31 = vld [vmem:[#allocation3 + $0x2c0] ss:$16 sps:$4 sm:$0xff]   ;;  %v10544_v44 = vld [vmem:[#allocation3 + $0x2c8] ss:$16 sps:$4 sm:$0xff]   ;;  %v10549_v14 = vld [vmem:[#allocation3 + $0x2e4] ss:$16 sps:$4 sm:$0xff]  }
 0x394   : > { %7761 = vmatmul.mubr.bf16.vlgmr.msra.gmra.mrb[0].mxu0 %v7080_v36  ;;  %7847 = vmatmul.mubr.bf16.vlgmr.msra.gmra.mrb[0].mxu1 %v7080_v36  ;;  %v7066_v12 = vrot.slane %v6887_v50, 3  ;;  %v2405_v33 = vrot.slane %v14924_v4, %v19213_v24  ;;  %v10552_v46 = vld [vmem:[#allocation3 + $0x2ec] ss:$16 sps:$4 sm:$0xff]   ;;  %v3147_v60 = vrot.slane %v9858_v6, %v19211_v2  ;;  %v10547_v36 = vld [vmem:[#allocation3 + $0x2e0] ss:$16 sps:$4 sm:$0xff]   ;;  %v3159_v58 = vrot.slane %v9858_v6, %v19214_v8 }
 0x395   : > { %v7063_v16 = vrot.slane %v6886_v28, 3  ;;  %v7064_v19 = vrot.slane %v6891_v45, 3  ;;  %7772 = vmatpush1.bf16.msra.mxu0 %v10505_v48  ;;  %7858 = vmatpush1.bf16.msra.mxu1 %v10508_v42  ;;  %v7067_v9 = vrot.slane %v6892_v39, 3  ;;  %v3151_v48 = vrot.slane %v9858_v6, %v19212_v17  ;;  %v10550_v53 = vld [vmem:[#allocation3 + $0x2e8] ss:$16 sps:$4 sm:$0xff]  }
 0x396   : > { %7773 = vmatprep.subr.bf16.mxu0 %v10513_v62  ;;  %7859 = vmatprep.subr.bf16.mxu1 %v10516_v55  ;;  %v10555_v13 = vld [vmem:[#allocation3 + $0x304] ss:$16 sps:$4 sm:$0xff]   ;;  %v10558_v37 = vld [vmem:[#allocation3 + $0x30c] ss:$16 sps:$4 sm:$0xff]   ;;  %v3155_v42 = vrot.slane %v9858_v6, %v19213_v24  ;;  %v10553_v50 = vld [vmem:[#allocation3 + $0x300] ss:$16 sps:$4 sm:$0xff]  }
 0x397   : > { %v7065_v15 = vsel %vm4071_vm4, %v7063_v16, %v7064_v19  ;;  %v7068_v32 = vsel %vm4071_vm4, %v7066_v12, %v7067_v9  ;;  %v14951_v38 = vld [vmem:[%s18189_s1 + $0xa5] ss:$8 sm:$0xf]  ;;  %v10556_v62 = vld [vmem:[#allocation3 + $0x308] ss:$16 sps:$4 sm:$0xff]  }
 0x398   : > { %7075 = vrot.lane.b32.xlu0 %v7065_v15, %s11290_s29  ;;  %7077 = vrot.lane.b32.xlu1 %v7068_v32, %s11290_s29  ;;  %v10561_v55 = vld [vmem:[#allocation3 + $0x324] ss:$16 sps:$4 sm:$0xff]   ;;  %v10564_v28 = vld [vmem:[#allocation3 + $0x32c] ss:$16 sps:$4 sm:$0xff]   ;;  %v3660_v45 = vrot.slane %v14951_v38, %v19211_v2  ;;  %v3664_v39 = vrot.slane %v14951_v38, %v19212_v17  ;;  %v10559_v16 = vld [vmem:[#allocation3 + $0x320] ss:$16 sps:$4 sm:$0xff]  }
 0x399   : > { %7774 = vmatpush1.bf16.msra.mxu0 %v10511_v22  ;;  %7860 = vmatpush1.bf16.msra.mxu1 %v10514_v11  ;;  %v9868_v12 = vld [vmem:[%s18189_s1 + $0xc0] ss:$8 sm:$0xf]  ;;  %v10567_v22 = vld [vmem:[#allocation3 + $0x344] ss:$16 sps:$4 sm:$0xff]   ;;  %v3668_v11 = vrot.slane %v14951_v38, %v19213_v24 }
 0x39a   : > { %7775 = vmatprep.subr.bf16.mxu0 %v10519_v43  ;;  %7861 = vmatprep.subr.bf16.mxu1 %v10522_v20  ;;  %v10562_v19 = vld [vmem:[#allocation3 + $0x328] ss:$16 sps:$4 sm:$0xff]   ;;  %v10570_v9 = vld [vmem:[#allocation3 + $0x34c] ss:$16 sps:$4 sm:$0xff]   ;;  %v4415_v43 = vrot.slane %v9868_v12, %v19211_v2  ;;  %v10565_v15 = vld [vmem:[#allocation3 + $0x340] ss:$16 sps:$4 sm:$0xff]   ;;  %v4423_v5 = vrot.slane %v9868_v12, %v19213_v24 }
 0x39b   : > { %v10568_v20 = vld [vmem:[#allocation3 + $0x348] ss:$16 sps:$4 sm:$0xff]   ;;  %v10573_v32 = vld [vmem:[#allocation3 + $0x364] ss:$16 sps:$4 sm:$0xff]  }
 0x39c   : > { %1144 = vrot.lane.b32.xlu0 %v1131_v30, %s11292_s23  ;;  %1146 = vrot.lane.b32.xlu1 %v1135_v0, %s11292_s23  ;;  %v10576_v30 = vld [vmem:[#allocation3 + $0x36c] ss:$16 sps:$4 sm:$0xff]   ;;  %v4419_v0 = vrot.slane %v9868_v12, %v19212_v17 }
 0x39d   : > { %7776 = vmatpush1.bf16.msra.mxu0 %v10517_v29  ;;  %7862 = vmatpush1.bf16.msra.mxu1 %v10520_v34  ;;  %v9872_v29 = vld [vmem:[%s18189_s1 + $0xc2] ss:$8 sm:$0xf] }
 0x39e   : > { %7777 = vmatprep.subr.bf16.mxu0 %v10525_v54  ;;  %7863 = vmatprep.subr.bf16.mxu1 %v10528_v26  ;;  %v10571_v34 = vld [vmem:[#allocation3 + $0x360] ss:$16 sps:$4 sm:$0xff]   ;;  %v10574_v54 = vld [vmem:[#allocation3 + $0x368] ss:$16 sps:$4 sm:$0xff]   ;;  %v10579_v26 = vld [vmem:[#allocation3 + $0x384] ss:$16 sps:$4 sm:$0xff]  }
 0x3a0   : > { %1148 = vrot.lane.b32.xlu0 %v1139_v52, %s11292_s23  ;;  %1824 = vrot.lane.b32.xlu1 %v1811_v35, %s11291_s19  ;;  %v10582_v52 = vld [vmem:[#allocation3 + $0x38c] ss:$16 sps:$4 sm:$0xff]   ;;  %v4427_v35 = vrot.slane %v9868_v12, %v19214_v8 }
 0x3a1   : > { %7778 = vmatpush1.bf16.msra.mxu0 %v10523_v57  ;;  %7864 = vmatpush1.bf16.msra.mxu1 %v10526_v51  ;;  %v5014_v57 = vrot.slane %v9872_v29, %v19211_v2  ;;  %v10577_v51 = vld [vmem:[#allocation3 + $0x380] ss:$16 sps:$4 sm:$0xff]  }
 0x3a2   : > { %7779 = vmatprep.subr.bf16.mxu0 %v10531_v61  ;;  %7865 = vmatprep.subr.bf16.mxu1 %v10534_v47  ;;  %v10580_v61 = vld [vmem:[#allocation3 + $0x388] ss:$16 sps:$4 sm:$0xff]   ;;  %v10585_v47 = vld [vmem:[#allocation3 + $0x3a4] ss:$16 sps:$4 sm:$0xff]  }
 0x3a4   : > { %1826 = vrot.lane.b32.xlu0 %v1815_v41, %s11291_s19  ;;  %1828 = vrot.lane.b32.xlu1 %v1819_v63, %s11291_s19  ;;  %v10588_v41 = vld [vmem:[#allocation3 + $0x3ac] ss:$16 sps:$4 sm:$0xff]   ;;  %v5018_v63 = vrot.slane %v9872_v29, %v19212_v17 }
 0x3a5   : > { %7780 = vmatpush1.bf16.msra.mxu0 %v10529_v1  ;;  %7866 = vmatpush1.bf16.msra.mxu1 %v10532_v21  ;;  %v5022_v1 = vrot.slane %v9872_v29, %v19213_v24  ;;  %v9878_v21 = vld [vmem:[%s18189_s1 + $0xc5] ss:$8 sm:$0xf] }
 0x3a6   : > { %7781 = vmatprep.subr.bf16.mxu0 %v10537_v27  ;;  %7867 = vmatprep.subr.bf16.mxu1 %v10540_v40  ;;  %v10583_v27 = vld [vmem:[#allocation3 + $0x3a0] ss:$16 sps:$4 sm:$0xff]   ;;  %v10586_v40 = vld [vmem:[#allocation3 + $0x3a8] ss:$16 sps:$4 sm:$0xff]   ;;  %v5837_v6 = vrot.slane %v9878_v21, %v19213_v24 }
 0x3a8   : > { %1830 = vrot.lane.b32.xlu0 %v1823_v3, %s11291_s19  ;;  %2410 = vrot.lane.b32.xlu1 %v2397_v7, %s11292_s23  ;;  %v10591_v3 = vld [vmem:[#allocation3 + $0x3c4] ss:$16 sps:$4 sm:$0xff]   ;;  %v10594_v7 = vld [vmem:[#allocation3 + $0x3cc] ss:$16 sps:$4 sm:$0xff]  }
 0x3a9   : > { %7782 = vmatpush1.bf16.msra.mxu0 %v10535_v18  ;;  %7868 = vmatpush1.bf16.msra.mxu1 %v10538_v25  ;;  %v5829_v18 = vrot.slane %v9878_v21, %v19211_v2  ;;  %v5833_v25 = vrot.slane %v9878_v21, %v19212_v17 }
 0x3aa   : > { %7783 = vmatprep.subr.bf16.mxu0 %v10543_v59  ;;  %7869 = vmatprep.subr.bf16.mxu1 %v10546_v23  ;;  %v10589_v59 = vld [vmem:[#allocation3 + $0x3c0] ss:$16 sps:$4 sm:$0xff]   ;;  %v10592_v23 = vld [vmem:[#allocation3 + $0x3c8] ss:$16 sps:$4 sm:$0xff]  }
 0x3ac   : > { %2412 = vrot.lane.b32.xlu0 %v2401_v56, %s11292_s23  ;;  %2414 = vrot.lane.b32.xlu1 %v2405_v33, %s11292_s23  ;;  %v10597_v56 = vld [vmem:[#allocation3 + $0x3e4] ss:$16 sps:$4 sm:$0xff]   ;;  %v10600_v33 = vld [vmem:[#allocation3 + $0x3ec] ss:$16 sps:$4 sm:$0xff]  }
 0x3ad   : > { %7784 = vmatpush1.bf16.msra.mxu0 %v10541_v31  ;;  %7870 = vmatpush1.bf16.msra.mxu1 %v10544_v44  ;;  %v5841_v31 = vrot.slane %v9878_v21, %v19214_v8  ;;  %v9882_v44 = vld [vmem:[%s18189_s1 + $0xc7] ss:$8 sm:$0xf] }
 0x3ae   : > { %7785 = vmatprep.subr.bf16.mxu0 %v10549_v14  ;;  %7871 = vmatprep.subr.bf16.mxu1 %v10552_v46  ;;  %v10595_v14 = vld [vmem:[#allocation3 + $0x3e0] ss:$16 sps:$4 sm:$0xff]  }
 0x3af   : > { %v9840_v46 = vld [vmem:[%s18189_s1 + $0x82] ss:$8 sm:$0xf] }
 0x3b0   : > { %3160 = vrot.lane.b32.xlu0 %v3147_v60, %s11291_s19  ;;  %3162 = vrot.lane.b32.xlu1 %v3151_v48, %s11291_s19  ;;  %v10598_v60 = vld [vmem:[#allocation3 + $0x3e8] ss:$16 sps:$4 sm:$0xff]   ;;  %v6423_v48 = vrot.slane %v9882_v44, %v19211_v2 }
 0x3b1   : > { %7786 = vmatpush1.bf16.msra.mxu0 %v10547_v36  ;;  %7872 = vmatpush1.bf16.msra.mxu1 %v10550_v53  ;;  %v6427_v36 = vrot.slane %v9882_v44, %v19212_v17  ;;  %v880_v53 = vrot.slane %v9840_v46, %v19211_v2 }
 0x3b2   : > { %7787 = vmatprep.subr.bf16.mxu0 %v10555_v13  ;;  %7873 = vmatprep.subr.bf16.mxu1 %v10558_v37  ;;  %v6431_v13 = vrot.slane %v9882_v44, %v19213_v24  ;;  %v884_v37 = vrot.slane %v9840_v46, %v19212_v17 }
 0x3b4   : > { %3164 = vrot.lane.b32.xlu0 %v3155_v42, %s11291_s19  ;;  %3166 = vrot.lane.b32.xlu1 %v3159_v58, %s11291_s19  ;;  %v10975_v42 = vld [vmem:[#allocation2 + $0x8] sm:$0xc0] }
 0x3b5   : > { %7788 = vmatpush1.bf16.msra.mxu0 %v10553_v50  ;;  %7874 = vmatpush1.bf16.msra.mxu1 %v10556_v62  ;;  %v897_v58 = vmul.f32 %v10975_v42, %v880_v53  ;;  %v888_v50 = vrot.slane %v9840_v46, %v19213_v24  ;;  %v10976_v62 = vld [vmem:[#allocation2 + $0x10] sm:$0xc0] }
 0x3b6   : > { %7789 = vmatprep.subr.bf16.mxu0 %v10561_v55  ;;  %7875 = vmatprep.subr.bf16.mxu1 %v10564_v28  ;;  %v898_v55 = vmul.f32 %v10976_v62, %v884_v37  ;;  %v10977_v28 = vld [vmem:[#allocation2 + $0x18] sm:$0xc0] }
 0x3b8   : > { %3673 = vrot.lane.b32.xlu0 %v3660_v45, %s11292_s23  ;;  %3675 = vrot.lane.b32.xlu1 %v3664_v39, %s11292_s23  ;;  %v899_v45 = vmul.f32 %v10977_v28, %v888_v50  ;;  %v15012_v39 = vld [vmem:[#allocation2 + $0x38] sm:$0xff] }
 0x3b9   : > { %7790 = vmatpush1.bf16.msra.mxu0 %v10559_v16  ;;  %7876 = vmatpush1.bf16.msra.mxu1 %v10562_v19  ;;  %v901_v12 = vmul.f32 %v15012_v39, %v880_v53  ;;  %v15016_v16 = vld [vmem:[#allocation2 + $0x40] sm:$0xff] }
 0x3ba   : > { %7791 = vmatprep.subr.bf16.mxu0 %v10567_v22  ;;  %7877 = vmatprep.subr.bf16.mxu1 %v10570_v9  ;;  %v902_v19 = vmul.f32 %v15016_v16, %v884_v37  ;;  %v15020_v22 = vld [vmem:[#allocation2 + $0x48] sm:$0xff] }
 0x3bb   : > { %v903_v9 = vmul.f32 %v15020_v22, %v888_v50 }
 0x3bc   : > { %3677 = vrot.lane.b32.xlu0 %v3668_v11, %s11292_s23  ;;  %4428 = vrot.lane.b32.xlu1 %v4415_v43, %s11291_s19  ;;  %v10981_v11 = vld [vmem:[#allocation2 + $0x68] sm:$0x3f] }
 0x3bd   : > { %7792 = vmatpush1.bf16.msra.mxu0 %v10565_v15  ;;  %7878 = vmatpush1.bf16.msra.mxu1 %v10568_v20  ;;  %v905_v43 = vmul.f32 %v10981_v11, %v880_v53  ;;  %v10982_v15 = vld [vmem:[#allocation2 + $0x70] sm:$0x3f] }
 0x3be   : > { %7793 = vmatprep.subr.bf16.mxu0 %v10573_v32  ;;  %7879 = vmatprep.subr.bf16.mxu1 %v10576_v30  ;;  %v906_v20 = vmul.f32 %v10982_v15, %v884_v37  ;;  %v10983_v32 = vld [vmem:[#allocation2 + $0x78] sm:$0x3f] }
 0x3bf   : > { %v907_v30 = vmul.f32 %v10983_v32, %v888_v50 }
 0x3c0   : > { %4430 = vrot.lane.b32.xlu0 %v4419_v0, %s11291_s19  ;;  %4432 = vrot.lane.b32.xlu1 %v4423_v5, %s11291_s19  ;;  %v9846_v0 = vld [vmem:[%s18189_s1 + $0x85] ss:$8 sm:$0xf] }
 0x3c1   : > { %7794 = vmatpush1.bf16.msra.mxu0 %v10571_v34  ;;  %7880 = vmatpush1.bf16.msra.mxu1 %v10574_v54  ;;  %v1529_v5 = vrot.slane %v9846_v0, %v19211_v2  ;;  %v1533_v29 = vrot.slane %v9846_v0, %v19212_v17  ;;  %v1537_v34 = vrot.slane %v9846_v0, %v19213_v24 }
 0x3c2   : > { %7795 = vmatprep.subr.bf16.mxu0 %v10579_v26  ;;  %7881 = vmatprep.subr.bf16.mxu1 %v10582_v52 }
 0x3c4   : > { %4434 = vrot.lane.b32.xlu0 %v4427_v35, %s11291_s19  ;;  %5027 = vrot.lane.b32.xlu1 %v5014_v57, %s11292_s23 }
 0x3c5   : > { %7796 = vmatpush1.bf16.msra.mxu0 %v10577_v51  ;;  %7882 = vmatpush1.bf16.msra.mxu1 %v10580_v61 }
 0x3c6   : > { %7797 = vmatprep.subr.bf16.mxu0 %v10585_v47  ;;  %7883 = vmatprep.subr.bf16.mxu1 %v10588_v41 }
 0x3c8   : > { %5029 = vrot.lane.b32.xlu0 %v5018_v63, %s11292_s23  ;;  %5031 = vrot.lane.b32.xlu1 %v5022_v1, %s11292_s23 }
 0x3c9   : > { %7798 = vmatpush1.bf16.msra.mxu0 %v10583_v27  ;;  %7884 = vmatpush1.bf16.msra.mxu1 %v10586_v40 }
 0x3ca   : > { %7799 = vmatprep.subr.bf16.mxu0 %v10591_v3  ;;  %7885 = vmatprep.subr.bf16.mxu1 %v10594_v7 }
 0x3cc   : > { %5842 = vrot.lane.b32.xlu0 %v5829_v18, %s11291_s19  ;;  %5844 = vrot.lane.b32.xlu1 %v5833_v25, %s11291_s19 }
 0x3cd   : > { %7800 = vmatpush1.bf16.msra.mxu0 %v10589_v59  ;;  %7886 = vmatpush1.bf16.msra.mxu1 %v10592_v23 }
 0x3ce   : > { %7801 = vmatprep.subr.bf16.mxu0 %v10597_v56  ;;  %7887 = vmatprep.subr.bf16.mxu1 %v10600_v33  ;;  %v9844_v56 = vld [vmem:[%s18189_s1 + $0x84] ss:$8 sm:$0xf] }
 0x3d0   : > { %5846 = vrot.lane.b32.xlu0 %v5837_v6, %s11291_s19  ;;  %5848 = vrot.lane.b32.xlu1 %v5841_v31, %s11291_s19 }
 0x3d1   : > { %7802 = vmatpush1.bf16.msra.mxu0 %v10595_v14  ;;  %7888 = vmatpush1.bf16.msra.mxu1 %v10598_v60  ;;  %v1333_v14 = vrot.slane %v9844_v56, %v19211_v2  ;;  %v15072_v60 = vld [vmem:[#allocation2 + $0x8] sm:$0x80] }
 0x3d4   : > { %6436 = vrot.lane.b32.xlu0 %v6423_v48, %s11292_s23  ;;  %6438 = vrot.lane.b32.xlu1 %v6427_v36, %s11292_s23 }
 0x3d8   : > { %6440 = vrot.lane.b32.xlu0 %v6431_v13, %s11292_s23  ;;  %921 = vrot.lane.b32.xlu1 %v897_v58, %s11290_s29  ;;  %v15083_v58 = vld [vmem:[#allocation2 + $0x10] sm:$0x80] }
 0x3dc   : > { %923 = vrot.lane.b32.xlu0 %v898_v55, %s11290_s29  ;;  %925 = vrot.lane.b32.xlu1 %v899_v45, %s11290_s29  ;;  %v1341_v55 = vrot.slane %v9844_v56, %v19213_v24 }
 0x3e0   : > { %929 = vrot.lane.b32.xlu0 %v901_v12, %s11290_s29  ;;  %931 = vrot.lane.b32.xlu1 %v902_v19, %s11290_s29  ;;  %v15089_v12 = vld [vmem:[#allocation2 + $0x18] sm:$0x80] }
 0x3e4   : > { %933 = vrot.lane.b32.xlu0 %v903_v9, %s11290_s29  ;;  %937 = vrot.lane.b32.xlu1 %v905_v43, %s11290_s29  ;;  %v1143_v43 = vrot.slane %v14899_v49, %v19214_v8 }
 0x3e8   : > { %939 = vrot.lane.b32.xlu0 %v906_v20, %s11290_s29  ;;  %941 = vrot.lane.b32.xlu1 %v907_v30, %s11290_s29 }
 0x3ec   : > { %1542 = vrot.lane.b32.xlu0 %v1529_v5, %s11290_s29  ;;  %1544 = vrot.lane.b32.xlu1 %v1533_v29, %s11290_s29  ;;  %v15102_v29 = vld [vmem:[#allocation2 + $0x68] sm:$0x7f] }
 0x3f0   : > { %1546 = vrot.lane.b32.xlu0 %v1537_v34, %s11290_s29 }
 0x40a   : > { %v7076_v54 = vpop.permute.xlu0 %7075  ;;  %v7078_v26 = vpop.permute.xlu1 %7077 }
 0x40b   : > { %v7082_v52 = vsel %vm385_vm5, %v14891_v10, %v7076_v54  ;;  %v7083_v35 = vsel %vm385_vm5, %v7076_v54, %v7078_v26  ;;  %v15105_v54 = vld [vmem:[#allocation2 + $0x70] sm:$0x7f] }
 0x40c   : > { %7803 = vmatprep.mubr.bf16.mxu0 %v7083_v35  ;;  %7889 = vmatprep.mubr.bf16.mxu1 %v7083_v35 }
 0x40d   : > { %7804 = vmatmul.mubr.bf16.vlgmr.msra.gmra.mrb[0].mxu0 %v7082_v52  ;;  %7890 = vmatmul.mubr.bf16.vlgmr.msra.gmra.mrb[0].mxu1 %v7082_v52 }
 0x40e   : > { %v1145_v57 = vpop.permute.xlu0 %1144  ;;  %v1147_v51 = vpop.permute.xlu1 %1146 }
 0x40f   : > { %v1160_v61 = vmul.f32 %v10975_v42, %v1145_v57  ;;  %v1152_v47 = vsel %vm1014_vm1, %v1145_v57, %v1147_v51  ;;  %v1165_v27 = vmul.f32 %v15012_v39, %v1145_v57  ;;  %v1170_v23 = vmul.f32 %v10981_v11, %v1145_v57 }
 0x410   : > { %v1161_v41 = vmul.f32 %v10976_v62, %v1152_v47  ;;  %v1166_v7 = vmul.f32 %v15016_v16, %v1152_v47  ;;  %v1171_v33 = vmul.f32 %v10982_v15, %v1152_v47  ;;  %v1337_v42 = vrot.slane %v9844_v56, %v19212_v17  ;;  %v10991_v56 = vld [vmem:[#allocation2] sm:$0x80] }
 0x411   : > { %1190 = vrot.lane.b32.xlu1 %v1160_v61, %s11292_s23  ;;  %v15116_v61 = vld [vmem:[#allocation2 + $0x78] sm:$0x7f] }
 0x412   : > { %v15042_v63 = vpop.permute.xlu0 %1148  ;;  %1192 = vrot.lane.b32.xlu0 %v1161_v41, %s11292_s23  ;;  %v15047_v10 = vpop.permute.xlu1 %1824 }
 0x413   : > { %19215 = vst [vmem:[#allocation154_spill] sm:$0xff] %v15042_v63  ;;  %v1153_v1 = vsel %vm1014_vm1, %v1147_v51, %v15042_v63 }
 0x414   : > { %v1162_v21 = vmul.f32 %v10977_v28, %v1153_v1  ;;  %v1167_v18 = vmul.f32 %v15020_v22, %v1153_v1  ;;  %v1172_v46 = vmul.f32 %v10983_v32, %v1153_v1 }
 0x416   : > { %v1827_v40 = vpop.permute.xlu0 %1826  ;;  %1194 = vrot.lane.b32.xlu1 %v1162_v21, %s11292_s23  ;;  %1200 = vrot.lane.b32.xlu0 %v1165_v27, %s11292_s23  ;;  %v1829_v3 = vpop.permute.xlu1 %1828 }
 0x417   : > { %v1832_v6 = vsel %vm516_vm0, %v15047_v10, %v1827_v40  ;;  %v1833_v53 = vsel %vm516_vm0, %v1827_v40, %v1829_v3 }
 0x418   : > { %v1841_v48 = vmul.f32 %v15072_v60, %v1832_v6  ;;  %v1846_v36 = vmul.f32 %v15012_v39, %v1832_v6  ;;  %v1842_v50 = vmul.f32 %v15083_v58, %v1833_v53  ;;  %v1847_v62 = vmul.f32 %v15016_v16, %v1833_v53 }
 0x419   : > { %v1851_v34 = vmul.f32 %v15102_v29, %v1832_v6  ;;  %v1852_v26 = vmul.f32 %v15105_v54, %v1833_v53  ;;  %v10992_v6 = vld [vmem:[#allocation2 + $0x60] sm:$0x7f] }
 0x41a   : > { %v15054_v25 = vpop.permute.xlu0 %1830  ;;  %1202 = vrot.lane.b32.xlu1 %v1166_v7, %s11292_s23  ;;  %1204 = vrot.lane.b32.xlu0 %v1167_v18, %s11292_s23  ;;  %v15058_v59 = vpop.permute.xlu1 %2410  ;;  %v1873_v28 = vrot.slane %v1841_v48, 1  ;;  %v1874_v45 = vrot.slane %v1846_v36, 1  ;;  %v1876_v15 = vrot.slane %v1842_v50, 1  ;;  %v1877_v20 = vrot.slane %v1847_v62, 1  ;;  %v15130_v18 = vld [vmem:[#allocation2 + $0x10] sm:$0xff] }
 0x41b   : > { %v1834_v13 = vsel %vm516_vm0, %v1829_v3, %v15054_v25  ;;  %v1887_v57 = vrot.slane %v1851_v34, 1  ;;  %v1889_v41 = vrot.slane %v1852_v26, 1  ;;  %v9850_v48 = vld [vmem:[%s18189_s1 + $0x87] ss:$8 sm:$0xf] }
 0x41c   : > { %v1843_v19 = vmul.f32 %v15089_v12, %v1834_v13  ;;  %v1848_v9 = vmul.f32 %v15020_v22, %v1834_v13  ;;  %v1875_v30 = vsel %vm1467_vm2, %v1873_v28, %v1874_v45  ;;  %v1878_v52 = vsel %vm1467_vm2, %v1876_v15, %v1877_v20 }
 0x41d   : > { %v1853_v47 = vmul.f32 %v15116_v61, %v1834_v13  ;;  %v1888_v21 = vsel %vm1467_vm2, %v1874_v45, %v1887_v57  ;;  %v1890_v40 = vsel %vm1467_vm2, %v1877_v20, %v1889_v41  ;;  %v2103_v50 = vrot.slane %v9850_v48, %v19211_v2 }
 0x41e   : > { %v15065_v31 = vpop.permute.xlu0 %2412  ;;  %1210 = vrot.lane.b32.xlu1 %v1170_v23, %s11292_s23  ;;  %1212 = vrot.lane.b32.xlu0 %v1171_v33, %s11292_s23  ;;  %v15069_v44 = vpop.permute.xlu1 %2414  ;;  %v1879_v0 = vrot.slane %v1843_v19, 1  ;;  %v1880_v5 = vrot.slane %v1848_v9, 1  ;;  %v1845_v23 = vmul.f32 %v15130_v18, %v15047_v10  ;;  %v1840_v33 = vmul.f32 %v10991_v56, %v15047_v10 }
 0x41f   : > { %19216 = vst [vmem:[#allocation160_spill] sm:$0xff] %v15069_v44  ;;  %v1891_v27 = vrot.slane %v1853_v47, 1  ;;  %v2107_v62 = vrot.slane %v9850_v48, %v19212_v17  ;;  %v2124_v15 = vmul.f32 %v15012_v39, %v2103_v50  ;;  %v2111_v20 = vrot.slane %v9850_v48, %v19213_v24 }
 0x420   : > { %v1881_v35 = vsel %vm1467_vm2, %v1879_v0, %v1880_v5  ;;  %v1871_v53 = vrot.slane %v1845_v23, 1  ;;  %v1870_v13 = vrot.slane %v1840_v33, 1 }
 0x421   : > { %v1892_v7 = vsel %vm1467_vm2, %v1880_v5, %v1891_v27  ;;  %v2125_v0 = vmul.f32 %v15016_v16, %v2107_v62  ;;  %v2126_v47 = vmul.f32 %v15020_v22, %v2111_v20  ;;  %v2129_v33 = vmul.f32 %v15105_v54, %v2107_v62 }
 0x422   : > { %v15079_v37 = vpop.permute.xlu0 %3160  ;;  %1214 = vrot.lane.b32.xlu1 %v1172_v46, %s11292_s23  ;;  %1346 = vrot.lane.b32.xlu0 %v1333_v14, %s11290_s29  ;;  %v15093_v11 = vpop.permute.xlu1 %3162  ;;  %v1850_v14 = vmul.f32 %v10992_v6, %v15047_v10  ;;  %v9854_v10 = vld [vmem:[%s18189_s1 + $0xa1] ss:$8 sm:$0xf]  ;;  %v1872_v28 = vsel %vm1467_vm2, %v1870_v13, %v1871_v53  ;;  %v2130_v48 = vmul.f32 %v15116_v61, %v2111_v20 }
 0x423   : > { %v2679_v9 = vrot.slane %v9854_v10, %v19211_v2  ;;  %v2687_v5 = vrot.slane %v9854_v10, %v19213_v24  ;;  %v2683_v34 = vrot.slane %v9854_v10, %v19212_v17  ;;  %v2151_v56 = vrot.slane %v2126_v47, 1  ;;  %v10601_v10 = vld [vmem:[#allocation6 + $0x40] sm:$0xff]   ;;  %v10609_v47 = vld [vmem:[#allocation6 + $0x50] sm:$0xff]  }
 0x424   : > { %10219 = vmatprep.subr.bf16.mxu0 %v10601_v10  ;;  %v2418_v10 = vsel %vm1014_vm1, %v15058_v59, %v15065_v31 }
 0x426   : > { %1348 = vrot.lane.b32.xlu1 %v1337_v42, %s11290_s29  ;;  %v15098_v32 = vpop.permute.xlu0 %3164  ;;  %1350 = vrot.lane.b32.xlu0 %v1341_v55, %s11290_s29  ;;  %v15109_v49 = vpop.permute.xlu1 %3166  ;;  %v1885_v42 = vrot.slane %v1850_v14, 1 }
 0x428   : > { %v1886_v45 = vsel %vm1467_vm2, %v1871_v53, %v1885_v42 }
 0x42a   : > { %1150 = vrot.lane.b32.xlu1 %v1143_v43, %s11292_s23  ;;  %1897 = vrot.lane.b32.xlu0 %v1875_v30, %s11291_s19  ;;  %v15114_v51 = vpop.permute.xlu0 %3673  ;;  %v15121_v1 = vpop.permute.xlu1 %3675  ;;  %v2120_v43 = vmul.f32 %v15072_v60, %v2103_v50  ;;  %v2121_v30 = vmul.f32 %v15083_v58, %v2107_v62 }
 0x42e   : > { %1899 = vrot.lane.b32.xlu1 %v1878_v52, %s11291_s19  ;;  %1901 = vrot.lane.b32.xlu0 %v1881_v35, %s11291_s19  ;;  %v15126_v3 = vpop.permute.xlu0 %3677  ;;  %v15137_v46 = vpop.permute.xlu1 %4428  ;;  %v2144_v52 = vrot.slane %v2120_v43, 1  ;;  %v2145_v35 = vrot.slane %v2124_v15, 1  ;;  %v10604_v43 = vld [vmem:[#allocation6 + $0x80] sm:$0xff]  }
 0x42f   : > { %19217 = vst [vmem:[#allocation69_spill] sm:$0xff] %v15126_v3 }
 0x432   : > { %1907 = vrot.lane.b32.xlu1 %v1888_v21, %s11291_s19  ;;  %1909 = vrot.lane.b32.xlu0 %v1890_v40, %s11291_s19  ;;  %v15143_v36 = vpop.permute.xlu0 %4430  ;;  %v15152_v55 = vpop.permute.xlu1 %4432  ;;  %v2148_v21 = vrot.slane %v2125_v0, 1  ;;  %v10606_v0 = vld [vmem:[#allocation6 + $0xc8] sm:$0xff]  }
 0x436   : > { %1911 = vrot.lane.b32.xlu1 %v1892_v7, %s11291_s19  ;;  %1917 = vrot.lane.b32.xlu0 %v1887_v57, %s11291_s19  ;;  %v15157_v19 = vpop.permute.xlu0 %4434  ;;  %v15169_v26 = vpop.permute.xlu1 %5027  ;;  %v2122_v57 = vmul.f32 %v15089_v12, %v2111_v20  ;;  %v2146_v7 = vsel %vm1467_vm2, %v2144_v52, %v2145_v35  ;;  %v10608_v52 = vld [vmem:[#allocation6 + $0x88] sm:$0xff]  }
 0x438   : > { %v2150_v23 = vrot.slane %v2122_v57, 1 }
 0x43a   : > { %1919 = vrot.lane.b32.xlu1 %v1889_v41, %s11291_s19  ;;  %1921 = vrot.lane.b32.xlu0 %v1891_v27, %s11291_s19  ;;  %v2147_v41 = vrot.slane %v2121_v30, 1  ;;  %v2128_v27 = vmul.f32 %v15102_v29, %v2103_v50  ;;  %v15175_v40 = vpop.permute.xlu0 %5029  ;;  %v15183_v53 = vpop.permute.xlu1 %5031  ;;  %v2158_v50 = vrot.slane %v2129_v33, 1  ;;  %v10605_v30 = vld [vmem:[#allocation6 + $0x48] sm:$0xff]   ;;  %v10613_v33 = vld [vmem:[#allocation6 + $0x58] sm:$0xff]  }
 0x43b   : > { %19218 = vst [vmem:[#allocation54_spill] sm:$0xff] %v15183_v53 }
 0x43c   : > { %v2149_v6 = vsel %vm1467_vm2, %v2147_v41, %v2148_v21  ;;  %v2156_v14 = vrot.slane %v2128_v27, 1  ;;  %v2159_v20 = vsel %vm1467_vm2, %v2148_v21, %v2158_v50  ;;  %v10610_v41 = vld [vmem:[#allocation6 + $0xd0] sm:$0xff]  }
 0x43d   : > { %v10611_v21 = vld [vmem:[#allocation6 + $0x10] sm:$0xff]  }
 0x43e   : > { %1895 = vrot.lane.b32.xlu1 %v1872_v28, %s11291_s19  ;;  %1905 = vrot.lane.b32.xlu0 %v1886_v45, %s11291_s19  ;;  %v15186_v13 = vpop.permute.xlu0 %5842  ;;  %v10602_v28 = vld [vmem:[#allocation6 + $0xc0] sm:$0xff]   ;;  %v2157_v62 = vsel %vm1467_vm2, %v2145_v35, %v2156_v14  ;;  %v15192_v15 = vpop.permute.xlu1 %5844 }
 0x43f   : > { %v10603_v45 = vld [vmem:[#allocation6] sm:$0xff]   ;;  %10241 = vmatprep.subr.bf16.mxu1 %v10602_v28  ;;  %v2419_v28 = vsel %vm1014_vm1, %v15065_v31, %v15069_v44 }
 0x440   : > { %10220 = vmatpush3.bf16.msra.mxu0 %v10603_v45  ;;  %10242 = vmatpush3.bf16.msra.mxu1 %v10604_v43  ;;  %v9856_v27 = vld [vmem:[%s18189_s1 + $0xa2] ss:$8 sm:$0xf] }
 0x441   : > { %10221 = vmatprep.subr.bf16.mxu0 %v10605_v30  ;;  %10243 = vmatprep.subr.bf16.mxu1 %v10606_v0  ;;  %v10617_v30 = vld [vmem:[#allocation6 + $0x60] sm:$0xff]  }
 0x442   : > { %1915 = vrot.lane.b32.xlu1 %v1885_v42, %s11291_s19  ;;  %2692 = vrot.lane.b32.xlu0 %v2679_v9, %s11290_s29  ;;  %v2152_v42 = vsel %vm1467_vm2, %v2150_v23, %v2151_v56  ;;  %v2160_v9 = vrot.slane %v2130_v48, 1  ;;  %v15197_v35 = vpop.permute.xlu0 %5846  ;;  %v15201_v57 = vpop.permute.xlu1 %5848  ;;  %v2905_v48 = vrot.slane %v9856_v27, %v19211_v2  ;;  %v10618_v0 = vld [vmem:[#allocation6 + $0xe0] sm:$0xff]  }
 0x443   : > { %v10619_v31 = vld [vmem:[#allocation6 + $0x20] sm:$0xff]  }
 0x444   : > { %10244 = vmatpush3.bf16.msra.mxu1 %v10608_v52 }
 0x445   : > { %10245 = vmatprep.subr.bf16.mxu1 %v10610_v41  ;;  %v10620_v41 = vld [vmem:[#allocation6 + $0xa0] sm:$0xff]  }
 0x446   : > { %2694 = vrot.lane.b32.xlu1 %v2683_v34, %s11290_s29  ;;  %2696 = vrot.lane.b32.xlu0 %v2687_v5, %s11290_s29  ;;  %v10607_v5 = vld [vmem:[#allocation6 + $0x8] sm:$0xff]   ;;  %v2161_v34 = vsel %vm1467_vm2, %v2151_v56, %v2160_v9  ;;  %v15207_v23 = vpop.permute.xlu0 %6436  ;;  %v2409_v56 = vrot.slane %v14924_v4, %v19214_v8  ;;  %v2431_v4 = vmul.f32 %v15012_v39, %v15058_v59  ;;  %v15224_v45 = vpop.permute.xlu1 %6438 }
 0x447   : > { %10222 = vmatpush3.bf16.msra.mxu0 %v10607_v5  ;;  %v2428_v5 = vmul.f32 %v15089_v12, %v2419_v28  ;;  %v2437_v12 = vmul.f32 %v15105_v54, %v2418_v10 }
 0x448   : > { %10223 = vmatprep.subr.bf16.mxu0 %v10609_v47  ;;  %v2457_v47 = vrot.slane %v2431_v4, 1  ;;  %v10624_v4 = vld [vmem:[#allocation6 + $0xa8] sm:$0xff]  }
 0x44a   : > { %2164 = vrot.lane.b32.xlu1 %v2146_v7, %s11290_s29  ;;  %2166 = vrot.lane.b32.xlu0 %v2149_v6, %s11290_s29  ;;  %v10612_v7 = vld [vmem:[#allocation6 + $0x90] sm:$0xff]   ;;  %v10614_v6 = vld [vmem:[#allocation6 + $0xd8] sm:$0xff]   ;;  %v15230_v43 = vpop.permute.xlu0 %6440 }
 0x44b   : > { %10224 = vmatpush3.bf16.msra.mxu0 %v10611_v21  ;;  %10246 = vmatpush3.bf16.msra.mxu1 %v10612_v7  ;;  %19219 = vst [vmem:[#allocation67_spill] sm:$0xff] %v15230_v43  ;;  %v2436_v7 = vmul.f32 %v15102_v29, %v15058_v59 }
 0x44c   : > { %10225 = vmatprep.subr.bf16.mxu0 %v10613_v33  ;;  %10247 = vmatprep.subr.bf16.mxu1 %v10614_v6 }
 0x44d   : > { %v2471_v54 = vrot.slane %v2436_v7, 1  ;;  %v10632_v7 = vld [vmem:[#allocation6 + $0xb8] sm:$0xff]  }
 0x44e   : > { %2168 = vrot.lane.b32.xlu1 %v2152_v42, %s11290_s29  ;;  %2172 = vrot.lane.b32.xlu0 %v2157_v62, %s11290_s29  ;;  %v10616_v42 = vld [vmem:[#allocation6 + $0x98] sm:$0xff]   ;;  %v2909_v62 = vrot.slane %v9856_v27, %v19212_v17 }
 0x44f   : > { %10248 = vmatpush3.bf16.msra.mxu1 %v10616_v42  ;;  %v15244_v42 = vpop.permute.xlu0 %923 }
 0x450   : > { %10249 = vmatprep.subr.bf16.mxu1 %v10618_v0  ;;  %v10626_v0 = vld [vmem:[#allocation6 + $0xf0] sm:$0xff]  }
 0x452   : > { %2174 = vrot.lane.b32.xlu1 %v2159_v20, %s11290_s29  ;;  %2176 = vrot.lane.b32.xlu0 %v2161_v34, %s11290_s29  ;;  %v2913_v20 = vrot.slane %v9856_v27, %v19213_v24  ;;  %v2433_v34 = vmul.f32 %v15020_v22, %v2419_v28  ;;  %v15237_v27 = vpop.permute.xlu1 %921 }
 0x453   : > { %10250 = vmatpush3.bf16.msra.mxu1 %v10620_v41  ;;  %v3168_v41 = vsel %vm516_vm0, %v15079_v37, %v15093_v11 }
 0x454   : > { %v2463_v33 = vrot.slane %v2433_v34, 1  ;;  %v10629_v34 = vld [vmem:[#allocation6 + $0x78] sm:$0xff]  }
 0x456   : > { %2180 = vrot.lane.b32.xlu1 %v2156_v14, %s11290_s29  ;;  %2182 = vrot.lane.b32.xlu0 %v2158_v50, %s11290_s29  ;;  %v10615_v14 = vld [vmem:[#allocation6 + $0x18] sm:$0xff]   ;;  %v2426_v50 = vmul.f32 %v15072_v60, %v15058_v59  ;;  %v2432_v60 = vmul.f32 %v15016_v16, %v2418_v10  ;;  %v2438_v59 = vmul.f32 %v15116_v61, %v2419_v28  ;;  %v10625_v28 = vld [vmem:[#allocation6 + $0x70] sm:$0xff]  }
 0x457   : > { %10226 = vmatpush3.bf16.msra.mxu0 %v10615_v14  ;;  %v10622_v14 = vld [vmem:[#allocation6 + $0xe8] sm:$0xff]  }
 0x458   : > { %v2456_v52 = vrot.slane %v2426_v50, 1  ;;  %10227 = vmatprep.subr.bf16.mxu0 %v10617_v30  ;;  %v2460_v21 = vrot.slane %v2432_v60, 1  ;;  %10251 = vmatprep.subr.bf16.mxu1 %v10622_v14  ;;  %v10623_v50 = vld [vmem:[#allocation6 + $0x28] sm:$0xff]   ;;  %v2475_v60 = vrot.slane %v2438_v59, 1  ;;  %v2472_v30 = vsel %vm1467_vm2, %v2457_v47, %v2471_v54 }
 0x459   : > { %10252 = vmatpush3.bf16.msra.mxu1 %v10624_v4  ;;  %v15278_v14 = vld [vmem:[#allocation2 + $0x68] sm:$0xff] }
 0x45a   : > { %2184 = vrot.lane.b32.xlu1 %v2160_v9, %s11290_s29  ;;  %2416 = vrot.lane.b32.xlu0 %v2409_v56, %s11292_s23  ;;  %v2427_v9 = vmul.f32 %v15083_v58, %v2418_v10  ;;  %v2462_v56 = vrot.slane %v2428_v5, 1  ;;  %v2458_v6 = vsel %vm1467_vm2, %v2456_v52, %v2457_v47  ;;  %v2473_v10 = vrot.slane %v2437_v12, 1  ;;  %v10628_v5 = vld [vmem:[#allocation6 + $0xb0] sm:$0xff]   ;;  %v10630_v52 = vld [vmem:[#allocation6 + $0xf8] sm:$0xff]  }
 0x45b   : > { %10228 = vmatpush3.bf16.msra.mxu0 %v10619_v31  ;;  %v10627_v31 = vld [vmem:[#allocation6 + $0x30] sm:$0xff]   ;;  %10253 = vmatprep.subr.bf16.mxu1 %v10626_v0  ;;  %v2476_v47 = vsel %vm1467_vm2, %v2463_v33, %v2475_v60  ;;  %v3169_v12 = vsel %vm516_vm0, %v15093_v11, %v15098_v32  ;;  %v3182_v11 = vmul.f32 %v15278_v14, %v3168_v41 }
 0x45c   : > { %v2459_v58 = vrot.slane %v2427_v9, 1  ;;  %v15251_v9 = vpop.permute.xlu1 %925  ;;  %v2474_v61 = vsel %vm1467_vm2, %v2460_v21, %v2473_v10 }
 0x45d   : > { %19220 = vst [vmem:[#allocation143_spill] sm:$0xff] %v15251_v9  ;;  %10254 = vmatpush3.bf16.msra.mxu1 %v10628_v5 }
 0x45e   : > { %2918 = vrot.lane.b32.xlu1 %v2905_v48, %s11290_s29  ;;  %2920 = vrot.lane.b32.xlu0 %v2909_v62, %s11290_s29  ;;  %v10621_v48 = vld [vmem:[#allocation6 + $0x68] sm:$0xff]   ;;  %v2461_v29 = vsel %vm1467_vm2, %v2459_v58, %v2460_v21  ;;  %v2464_v62 = vsel %vm1467_vm2, %v2462_v56, %v2463_v33  ;;  %v10631_v21 = vld [vmem:[#allocation6 + $0x38] sm:$0xff]   ;;  %v3178_v33 = vmul.f32 %v15016_v16, %v3169_v12 }
 0x45f   : > { %10229 = vmatprep.subr.bf16.mxu0 %v10621_v48  ;;  %10255 = vmatprep.subr.bf16.mxu1 %v10630_v52  ;;  %v3170_v48 = vsel %vm516_vm0, %v15098_v32, %v15109_v49 }
 0x460   : > { %10230 = vmatpush3.bf16.msra.mxu0 %v10623_v50  ;;  %v15263_v58 = vpop.permute.xlu1 %931  ;;  %v3179_v59 = vmul.f32 %v15020_v22, %v3170_v48  ;;  %v3198_v32 = vrot.slane %v3178_v33, 2 }
 0x461   : > { %10231 = vmatprep.subr.bf16.mxu0 %v10625_v28  ;;  %10256 = vmatpush3.bf16.msra.mxu1 %v10632_v7  ;;  %v3176_v7 = vmul.f32 %v15130_v18, %v15079_v37  ;;  %v9864_v37 = vld [vmem:[%s18189_s1 + $0xa6] ss:$8 sm:$0xf] }
 0x462   : > { %2922 = vrot.lane.b32.xlu1 %v2913_v20, %s11290_s29  ;;  %2481 = vrot.lane.b32.xlu0 %v2458_v6, %s11292_s23  ;;  %v15254_v20 = vpop.permute.xlu0 %929  ;;  %v3177_v6 = vmul.f32 %v15012_v39, %v3168_v41 }
 0x463   : > { %v3196_v33 = vrot.slane %v3176_v7, 2 }
 0x464   : > { %10232 = vmatpush3.bf16.msra.mxu0 %v10627_v31  ;;  %v15282_v50 = vpop.permute.xlu1 %937  ;;  %v3197_v4 = vrot.slane %v3177_v6, 2  ;;  %v9860_v6 = vld [vmem:[%s18189_s1 + $0xa4] ss:$8 sm:$0xf] }
 0x465   : > { %10233 = vmatprep.subr.bf16.mxu0 %v10629_v34 }
 0x466   : > { %2483 = vrot.lane.b32.xlu1 %v2461_v29, %s11292_s23  ;;  %2485 = vrot.lane.b32.xlu0 %v2464_v62, %s11292_s23  ;;  %v15270_v56 = vpop.permute.xlu0 %933  ;;  %v15286_v29 = vld [vmem:[#allocation2 + $0x70] sm:$0xff] }
 0x467   : > { %19221 = vst [vmem:[#allocation70_spill] sm:$0xff] %v15270_v56 }
 0x468   : > { %10234 = vmatpush3.bf16.msra.mxu0 %v10631_v21  ;;  %v15296_v0 = vpop.permute.xlu1 %941 }
 0x469   : > { %19222 = vst [vmem:[#allocation74_spill] sm:$0xff] %v15296_v0 }
 0x46a   : > { %2491 = vrot.lane.b32.xlu1 %v2472_v30, %s11292_s23  ;;  %2493 = vrot.lane.b32.xlu0 %v2474_v61, %s11292_s23  ;;  %v15289_v62 = vpop.permute.xlu0 %939  ;;  %v3203_v30 = vrot.slane %v3182_v11, 2  ;;  %v15291_v61 = vld [vmem:[#allocation2 + $0x78] sm:$0xff]  ;;  %v3403_v11 = vrot.slane %v9860_v6, %v19211_v2 }
 0x46b   : > { %v3184_v28 = vmul.f32 %v15291_v61, %v3170_v48 }
 0x46c   : > { %v3204_v34 = vsel %vm2853_vm3, %v3197_v4, %v3203_v30  ;;  %v15304_v41 = vpop.permute.xlu1 %1544 }
 0x46d   : > { %v3207_v5 = vrot.slane %v3184_v28, 2  ;;  %19224 = vst [vmem:[#allocation130_spill] sm:$0xff] %v15304_v41  ;;  %v3420_v28 = vmul.f32 %v15012_v39, %v3403_v11 }
 0x46e   : > { %2495 = vrot.lane.b32.xlu1 %v2476_v47, %s11292_s23  ;;  %2501 = vrot.lane.b32.xlu0 %v2471_v54, %s11292_s23  ;;  %v3183_v54 = vmul.f32 %v15286_v29, %v3169_v12  ;;  %v15298_v31 = vpop.permute.xlu0 %1542 }
 0x46f   : > { %19223 = vst [vmem:[#allocation78_spill] sm:$0xff] %v15298_v31  ;;  %v19321_v31 = vld [vmem:[#allocation48_spill] sm:$0xff] }
 0x472   : > { %2503 = vrot.lane.b32.xlu1 %v2473_v10, %s11292_s23  ;;  %2505 = vrot.lane.b32.xlu0 %v2475_v60, %s11292_s23  ;;  %v3199_v10 = vrot.slane %v3179_v59, 2  ;;  %v3205_v60 = vrot.slane %v3183_v54, 2  ;;  %v15309_v21 = vpop.permute.xlu0 %1546  ;;  %v3902_v54 = vrot.slane %v9864_v37, %v19211_v2 }
 0x473   : > { %19225 = vst [vmem:[#allocation79_spill] sm:$0xff] %v15309_v21 }
 0x474   : > { %v3206_v52 = vsel %vm2853_vm3, %v3198_v32, %v3205_v60  ;;  %v3208_v47 = vsel %vm2853_vm3, %v3199_v10, %v3207_v5 }
 0x476   : > { %3213 = vrot.lane.b32.xlu1 %v3197_v4, %s11291_s19  ;;  %3215 = vrot.lane.b32.xlu0 %v3198_v32, %s11291_s19  ;;  %v3407_v32 = vrot.slane %v9860_v6, %v19212_v17 }
 0x47a   : > { %3217 = vrot.lane.b32.xlu1 %v3199_v10, %s11291_s19  ;;  %3223 = vrot.lane.b32.xlu0 %v3204_v34, %s11291_s19  ;;  %v3411_v10 = vrot.slane %v9860_v6, %v19213_v24  ;;  %v3910_v34 = vrot.slane %v9864_v37, %v19213_v24  ;;  %v3425_v6 = vmul.f32 %v15286_v29, %v3407_v32 }
 0x47c   : > { %v3422_v7 = vmul.f32 %v15020_v22, %v3411_v10 }
 0x47e   : > { %3225 = vrot.lane.b32.xlu1 %v3206_v52, %s11291_s19  ;;  %3227 = vrot.lane.b32.xlu0 %v3208_v47, %s11291_s19  ;;  %v3421_v52 = vmul.f32 %v15016_v16, %v3407_v32  ;;  %v3436_v47 = vrot.slane %v3420_v28, 2 }
 0x482   : > { %3233 = vrot.lane.b32.xlu1 %v3203_v30, %s11291_s19  ;;  %3235 = vrot.lane.b32.xlu0 %v3205_v60, %s11291_s19  ;;  %v3906_v30 = vrot.slane %v9864_v37, %v19212_v17  ;;  %v3438_v37 = vrot.slane %v3422_v7, 2 }
 0x483   : > { %v15315_v12 = vpop.permute.xlu1 %1190 }
 0x484   : > { %19226 = vst [vmem:[#allocation90_spill] sm:$0xff] %v15315_v12  ;;  %v15320_v48 = vpop.permute.xlu0 %1192 }
 0x485   : > { %19227 = vst [vmem:[#allocation145_spill] sm:$0xff] %v15320_v48 }
 0x486   : > { %3237 = vrot.lane.b32.xlu1 %v3207_v5, %s11291_s19  ;;  %3211 = vrot.lane.b32.xlu0 %v3196_v33, %s11291_s19 }
 0x488   : > { %v15328_v4 = vpop.permute.xlu1 %1194  ;;  %v15330_v59 = vpop.permute.xlu0 %1200 }
 0x489   : > { %19228 = vst [vmem:[#allocation85_spill] sm:$0xff] %v15328_v4  ;;  %19229 = vst [vmem:[#allocation86_spill] sm:$0xff] %v15330_v59 }
 0x48a   : > { %3221 = vrot.lane.b32.xlu1 %v3196_v33, %s11291_s19  ;;  %3231 = vrot.lane.b32.xlu0 %v3196_v33, %s11291_s19  ;;  %v3424_v33 = vmul.f32 %v15278_v14, %v3403_v11 }
 0x48c   : > { %v15339_v60 = vpop.permute.xlu1 %1202  ;;  %v15341_v5 = vpop.permute.xlu0 %1204 }
 0x48d   : > { %19230 = vst [vmem:[#allocation149_spill] sm:$0xff] %v15339_v60  ;;  %19231 = vst [vmem:[#allocation91_spill] sm:$0xff] %v15341_v5  ;;  %v3440_v5 = vrot.slane %v3424_v33, 2  ;;  %v3442_v60 = vrot.slane %v3425_v6, 2 }
 0x48e   : > { %3915 = vrot.lane.b32.xlu1 %v3902_v54, %s11290_s29  ;;  %3917 = vrot.lane.b32.xlu0 %v3906_v30, %s11290_s29  ;;  %v3437_v54 = vrot.slane %v3421_v52, 2  ;;  %v3426_v30 = vmul.f32 %v15291_v61, %v3411_v10 }
 0x48f   : > { %v3441_v11 = vsel %vm2853_vm3, %v3436_v47, %v3440_v5 }
 0x490   : > { %v15349_v44 = vpop.permute.xlu1 %1210  ;;  %v15352_v63 = vpop.permute.xlu0 %1212  ;;  %v3444_v32 = vrot.slane %v3426_v30, 2  ;;  %v3443_v52 = vsel %vm2853_vm3, %v3437_v54, %v3442_v60 }
 0x491   : > { %19232 = vst [vmem:[#allocation158_spill] sm:$0xff] %v15349_v44  ;;  %19233 = vst [vmem:[#allocation157_spill] sm:$0xff] %v15352_v63 }
 0x492   : > { %3919 = vrot.lane.b32.xlu1 %v3910_v34, %s11290_s29  ;;  %3448 = vrot.lane.b32.xlu0 %v3436_v47, %s11290_s29  ;;  %v3445_v10 = vsel %vm2853_vm3, %v3438_v37, %v3444_v32 }
 0x494   : > { %v15357_v28 = vpop.permute.xlu1 %1214  ;;  %v15359_v59 = vpop.permute.xlu0 %1346 }
 0x495   : > { %19234 = vst [vmem:[#allocation80_spill] sm:$0xff] %v15357_v28  ;;  %19235 = vst [vmem:[#allocation64_spill] sm:$0xff] %v15359_v59 }
 0x496   : > { %3450 = vrot.lane.b32.xlu1 %v3437_v54, %s11290_s29  ;;  %3452 = vrot.lane.b32.xlu0 %v3438_v37, %s11290_s29  ;;  %v9866_v54 = vld [vmem:[%s18189_s1 + $0xa7] ss:$8 sm:$0xf]  ;;  %v3672_v37 = vrot.slane %v14951_v38, %v19214_v8 }
 0x497   : > { %v4141_v38 = vrot.slane %v9866_v54, %v19213_v24 }
 0x498   : > { %v15364_v34 = vpop.permute.xlu1 %1348  ;;  %v15367_v7 = vpop.permute.xlu0 %1350 }
 0x499   : > { %19236 = vst [vmem:[#allocation88_spill] sm:$0xff] %v15364_v34  ;;  %19237 = vst [vmem:[#allocation55_spill] sm:$0xff] %v15367_v7 }
 0x49a   : > { %3456 = vrot.lane.b32.xlu1 %v3441_v11, %s11290_s29  ;;  %3458 = vrot.lane.b32.xlu0 %v3443_v52, %s11290_s29  ;;  %v4133_v11 = vrot.slane %v9866_v54, %v19211_v2 }
 0x49c   : > { %v15372_v33 = vpop.permute.xlu1 %1150  ;;  %v15374_v6 = vpop.permute.xlu0 %1897 }
 0x49d   : > { %19238 = vst [vmem:[#allocation97_spill] sm:$0xff] %v15372_v33  ;;  %19239 = vst [vmem:[#allocation161_spill] sm:$0xff] %v15374_v6 }
 0x49e   : > { %3460 = vrot.lane.b32.xlu1 %v3445_v10, %s11290_s29  ;;  %3464 = vrot.lane.b32.xlu0 %v3440_v5, %s11290_s29  ;;  %v3681_v10 = vsel %vm1014_vm1, %v15114_v51, %v15121_v1 }
 0x4a0   : > { %v15378_v47 = vpop.permute.xlu1 %1899  ;;  %v15383_v30 = vpop.permute.xlu0 %1901 }
 0x4a1   : > { %19240 = vst [vmem:[#allocation128_spill] sm:$0xff] %v15378_v47  ;;  %19241 = vst [vmem:[#allocation101_spill] sm:$0xff] %v15383_v30  ;;  %v4137_v30 = vrot.slane %v9866_v54, %v19212_v17 }
 0x4a2   : > { %3466 = vrot.lane.b32.xlu1 %v3442_v60, %s11290_s29  ;;  %3468 = vrot.lane.b32.xlu0 %v3444_v32, %s11290_s29  ;;  %v3689_v60 = vmul.f32 %v15012_v39, %v15114_v51 }
 0x4a4   : > { %v15390_v52 = vpop.permute.xlu1 %1907  ;;  %v15392_v5 = vpop.permute.xlu0 %1909  ;;  %v3709_v54 = vrot.slane %v3689_v60, 2 }
 0x4a5   : > { %19242 = vst [vmem:[#allocation29_spill] sm:$0xff] %v15390_v52  ;;  %19243 = vst [vmem:[#allocation95_spill] sm:$0xff] %v15392_v5  ;;  %v3690_v52 = vmul.f32 %v15016_v16, %v3681_v10  ;;  %v3682_v5 = vsel %vm1014_vm1, %v15121_v1, %v15126_v3  ;;  %v3695_v16 = vmul.f32 %v15286_v29, %v3681_v10 }
 0x4a6   : > { %3679 = vrot.lane.b32.xlu1 %v3672_v37, %s11292_s23  ;;  %4146 = vrot.lane.b32.xlu0 %v4133_v11, %s11290_s29  ;;  %v3694_v37 = vmul.f32 %v15278_v14, %v15114_v51  ;;  %v3691_v39 = vmul.f32 %v15020_v22, %v3682_v5  ;;  %v3696_v3 = vmul.f32 %v15291_v61, %v3682_v5 }
 0x4a8   : > { %v15403_v32 = vpop.permute.xlu1 %1911  ;;  %v15409_v6 = vpop.permute.xlu0 %1917  ;;  %v3714_v1 = vrot.slane %v3694_v37, 2  ;;  %v3711_v51 = vrot.slane %v3691_v39, 2  ;;  %v3718_v22 = vrot.slane %v3696_v3, 2  ;;  %v4436_v37 = vsel %vm516_vm0, %v15137_v46, %v15143_v36 }
 0x4a9   : > { %19244 = vst [vmem:[#allocation68_spill] sm:$0xff] %v15403_v32  ;;  %19245 = vst [vmem:[#allocation98_spill] sm:$0xff] %v15409_v6  ;;  %v3710_v32 = vrot.slane %v3690_v52, 2 }
 0x4aa   : > { %4148 = vrot.lane.b32.xlu1 %v4137_v30, %s11290_s29  ;;  %4150 = vrot.lane.b32.xlu0 %v4141_v38, %s11290_s29  ;;  %v3716_v38 = vrot.slane %v3695_v16, 2  ;;  %v3715_v6 = vsel %vm2853_vm3, %v3709_v54, %v3714_v1  ;;  %v3719_v39 = vsel %vm2853_vm3, %v3711_v51, %v3718_v22 }
 0x4ac   : > { %v15416_v11 = vpop.permute.xlu1 %1919  ;;  %v15419_v47 = vpop.permute.xlu0 %1921  ;;  %v3717_v10 = vsel %vm2853_vm3, %v3710_v32, %v3716_v38 }
 0x4ad   : > { %19246 = vst [vmem:[#allocation103_spill] sm:$0xff] %v15416_v11  ;;  %19247 = vst [vmem:[#allocation17_spill] sm:$0xff] %v15419_v47  ;;  %v15465_v47 = vld [vmem:[#allocation2 + $0x48] sm:$0xfe] }
 0x4ae   : > { %3724 = vrot.lane.b32.xlu1 %v3709_v54, %s11292_s23  ;;  %3726 = vrot.lane.b32.xlu0 %v3710_v32, %s11292_s23  ;;  %v15444_v54 = vld [vmem:[#allocation2 + $0x38] sm:$0xfe]  ;;  %v4437_v32 = vsel %vm516_vm0, %v15143_v36, %v15152_v55 }
 0x4b0   : > { %v15424_v30 = vpop.permute.xlu1 %1895  ;;  %v15426_v60 = vpop.permute.xlu0 %1905 }
 0x4b1   : > { %19248 = vst [vmem:[#allocation156_spill] sm:$0xff] %v15424_v30  ;;  %19249 = vst [vmem:[#allocation106_spill] sm:$0xff] %v15426_v60  ;;  %v4450_v60 = vmul.f32 %v15278_v14, %v4436_v37 }
 0x4b2   : > { %3728 = vrot.lane.b32.xlu1 %v3711_v51, %s11292_s23  ;;  %3734 = vrot.lane.b32.xlu0 %v3715_v6, %s11292_s23  ;;  %v4445_v6 = vmul.f32 %v15444_v54, %v4436_v37  ;;  %v4438_v51 = vsel %vm516_vm0, %v15152_v55, %v15157_v19  ;;  %v4451_v55 = vmul.f32 %v15286_v29, %v4437_v32 }
 0x4b3   : > { %v4447_v11 = vmul.f32 %v15465_v47, %v4438_v51 }
 0x4b4   : > { %v15431_v52 = vpop.permute.xlu1 %1915  ;;  %v15433_v5 = vpop.permute.xlu0 %2692  ;;  %v4475_v30 = vrot.slane %v4445_v6, 3  ;;  %v4452_v6 = vmul.f32 %v15291_v61, %v4438_v51  ;;  %v4483_v33 = vrot.slane %v4451_v55, 3 }
 0x4b5   : > { %19250 = vst [vmem:[#allocation107_spill] sm:$0xff] %v15431_v52  ;;  %19251 = vst [vmem:[#allocation111_spill] sm:$0xff] %v15433_v5  ;;  %v4477_v5 = vrot.slane %v4447_v11, 3 }
 0x4b6   : > { %3736 = vrot.lane.b32.xlu1 %v3717_v10, %s11292_s23  ;;  %3738 = vrot.lane.b32.xlu0 %v3719_v39, %s11292_s23  ;;  %v15457_v10 = vld [vmem:[#allocation2 + $0x40] sm:$0xfe] }
 0x4b7   : > { %v4446_v39 = vmul.f32 %v15457_v10, %v4437_v32 }
 0x4b8   : > { %v15442_v3 = vpop.permute.xlu1 %2694  ;;  %v15450_v16 = vpop.permute.xlu0 %2696 }
 0x4b9   : > { %19252 = vst [vmem:[#allocation131_spill] sm:$0xff] %v15442_v3  ;;  %19253 = vst [vmem:[#allocation135_spill] sm:$0xff] %v15450_v16  ;;  %v4481_v16 = vrot.slane %v4450_v60, 3 }
 0x4ba   : > { %3744 = vrot.lane.b32.xlu1 %v3714_v1, %s11292_s23  ;;  %3746 = vrot.lane.b32.xlu0 %v3716_v38, %s11292_s23  ;;  %v4476_v1 = vrot.slane %v4446_v39, 3  ;;  %v15483_v39 = vld [vmem:[#allocation2 + $0xa0] sm:$0x1] }
 0x4bb   : > { %v4456_v60 = vmul.f32 %v15483_v39, %v4437_v32  ;;  %v4482_v11 = vsel %vm4071_vm4, %v4475_v30, %v4481_v16 }
 0x4bc   : > { %v15460_v52 = vpop.permute.xlu1 %2164  ;;  %v15463_v36 = vpop.permute.xlu0 %2166  ;;  %v4484_v44 = vsel %vm4071_vm4, %v4476_v1, %v4483_v33 }
 0x4bd   : > { %19254 = vst [vmem:[#allocation153_spill] sm:$0xff] %v15460_v52  ;;  %19255 = vst [vmem:[#allocation108_spill] sm:$0xff] %v15463_v36  ;;  %v15476_v36 = vld [vmem:[#allocation2 + $0x98] sm:$0x1]  ;;  %v4493_v63 = vrot.slane %v4456_v60, 3 }
 0x4be   : > { %3748 = vrot.lane.b32.xlu1 %v3718_v22, %s11292_s23  ;;  %4501 = vrot.lane.b32.xlu0 %v4475_v30, %s11291_s19  ;;  %v4455_v3 = vmul.f32 %v15476_v36, %v4436_v37  ;;  %v15491_v37 = vld [vmem:[#allocation2 + $0xa8] sm:$0x1] }
 0x4bf   : > { %v4457_v55 = vmul.f32 %v15491_v37, %v4438_v51  ;;  %v4449_v51 = vmul.f32 %v15130_v18, %v15137_v46  ;;  %v9870_v18 = vld [vmem:[%s18189_s1 + $0xc1] ss:$8 sm:$0xf] }
 0x4c0   : > { %v15471_v38 = vpop.permute.xlu1 %2168  ;;  %v15473_v52 = vpop.permute.xlu0 %2172  ;;  %v4491_v28 = vrot.slane %v4455_v3, 3 }
 0x4c1   : > { %19256 = vst [vmem:[#allocation112_spill] sm:$0xff] %v15471_v38  ;;  %19257 = vst [vmem:[#allocation118_spill] sm:$0xff] %v15473_v52  ;;  %v4485_v52 = vrot.slane %v4452_v6, 3  ;;  %v4495_v3 = vrot.slane %v4457_v55, 3  ;;  %v4479_v55 = vrot.slane %v4449_v51, 3 }
 0x4c2   : > { %4503 = vrot.lane.b32.xlu1 %v4476_v1, %s11291_s19  ;;  %4505 = vrot.lane.b32.xlu0 %v4477_v5, %s11291_s19  ;;  %v4492_v30 = vsel %vm4071_vm4, %v4481_v16, %v4491_v28  ;;  %v11002_v1 = vld [vmem:[#allocation2 + $0x30] sm:$0xfe] }
 0x4c3   : > { %v4444_v6 = vmul.f32 %v11002_v1, %v15137_v46  ;;  %v4496_v16 = vsel %vm4071_vm4, %v4485_v52, %v4495_v3  ;;  %v4707_v3 = vrot.slane %v9870_v18, %v19211_v2 }
 0x4c4   : > { %v15481_v22 = vpop.permute.xlu1 %2174  ;;  %v15486_v38 = vpop.permute.xlu0 %2176 }
 0x4c5   : > { %19258 = vst [vmem:[#allocation114_spill] sm:$0xff] %v15481_v22  ;;  %19259 = vst [vmem:[#allocation123_spill] sm:$0xff] %v15486_v38  ;;  %v4486_v38 = vsel %vm4071_vm4, %v4477_v5, %v4485_v52  ;;  %v11003_v5 = vld [vmem:[#allocation2 + $0x90] sm:$0x1] }
 0x4c6   : > { %4511 = vrot.lane.b32.xlu1 %v4482_v11, %s11291_s19  ;;  %4513 = vrot.lane.b32.xlu0 %v4484_v44, %s11291_s19  ;;  %v4494_v11 = vsel %vm4071_vm4, %v4483_v33, %v4493_v63  ;;  %v4454_v28 = vmul.f32 %v11003_v5, %v15137_v46  ;;  %v9874_v63 = vld [vmem:[%s18189_s1 + $0xc3] ss:$8 sm:$0xf] }
 0x4c7   : > { %v5296_v1 = vrot.slane %v9874_v63, %v19211_v2 }
 0x4c8   : > { %v15495_v22 = vpop.permute.xlu1 %2180  ;;  %v15497_v32 = vpop.permute.xlu0 %2182  ;;  %v4489_v46 = vrot.slane %v4454_v28, 3  ;;  %v5300_v28 = vrot.slane %v9874_v63, %v19212_v17 }
 0x4c9   : > { %19260 = vst [vmem:[#allocation117_spill] sm:$0xff] %v15495_v22  ;;  %19261 = vst [vmem:[#allocation113_spill] sm:$0xff] %v15497_v32 }
 0x4ca   : > { %4515 = vrot.lane.b32.xlu1 %v4486_v38, %s11291_s19  ;;  %4521 = vrot.lane.b32.xlu0 %v4492_v30, %s11291_s19  ;;  %v4474_v38 = vrot.slane %v4444_v6, 3  ;;  %v4711_v6 = vrot.slane %v9870_v18, %v19212_v17  ;;  %v4490_v5 = vsel %vm4071_vm4, %v4479_v55, %v4489_v46 }
 0x4cc   : > { %v15506_v44 = vpop.permute.xlu1 %2184  ;;  %v15508_v60 = vpop.permute.xlu0 %2416  ;;  %v4480_v52 = vsel %vm4071_vm4, %v4474_v38, %v4479_v55 }
 0x4cd   : > { %19262 = vst [vmem:[#allocation119_spill] sm:$0xff] %v15506_v44  ;;  %19263 = vst [vmem:[#allocation126_spill] sm:$0xff] %v15508_v60 }
 0x4ce   : > { %4523 = vrot.lane.b32.xlu1 %v4494_v11, %s11291_s19  ;;  %4525 = vrot.lane.b32.xlu0 %v4496_v16, %s11291_s19  ;;  %v4724_v16 = vmul.f32 %v15444_v54, %v4707_v3 }
 0x4d0   : > { %v15518_v30 = vpop.permute.xlu1 %2918  ;;  %v15523_v33 = vpop.permute.xlu0 %2920  ;;  %v4748_v55 = vrot.slane %v4724_v16, 3 }
 0x4d1   : > { %19264 = vst [vmem:[#allocation75_spill] sm:$0xff] %v15518_v30  ;;  %19265 = vst [vmem:[#allocation120_spill] sm:$0xff] %v15523_v33  ;;  %v4725_v30 = vmul.f32 %v15457_v10, %v4711_v6  ;;  %v7021_v10 = vld [vmem:[%s18192_s4] sm:$0xf] }
 0x4d2   : > { %4499 = vrot.lane.b32.xlu1 %v4474_v38, %s11291_s19  ;;  %4509 = vrot.lane.b32.xlu0 %v4480_v52, %s11291_s19  ;;  %v4715_v38 = vrot.slane %v9870_v18, %v19213_v24  ;;  %v5304_v52 = vrot.slane %v9874_v63, %v19213_v24  ;;  %v4729_v18 = vmul.f32 %v15286_v29, %v4711_v6 }
 0x4d3   : > { %v4749_v54 = vrot.slane %v4725_v30, 3  ;;  %v4732_v30 = vmul.f32 %v15476_v36, %v4707_v3  ;;  %v7026_v16 = vrot.slane %v7021_v10, %v19211_v2 }
 0x4d4   : > { %v15531_v51 = vpop.permute.xlu1 %2922  ;;  %v15533_v11 = vpop.permute.xlu0 %2481  ;;  %v4726_v46 = vmul.f32 %v15465_v47, %v4715_v38 }
 0x4d5   : > { %19266 = vst [vmem:[#allocation125_spill] sm:$0xff] %v15531_v51  ;;  %19267 = vst [vmem:[#allocation137_spill] sm:$0xff] %v15533_v11  ;;  %v4728_v11 = vmul.f32 %v15278_v14, %v4707_v3  ;;  %v4760_v32 = vrot.slane %v4732_v30, 3 }
 0x4d6   : > { %4519 = vrot.lane.b32.xlu1 %v4490_v5, %s11291_s19  ;;  %5309 = vrot.lane.b32.xlu0 %v5296_v1, %s11290_s29  ;;  %v15558_v5 = vmul.f32 %v15291_v61, %v4715_v38  ;;  %v4750_v47 = vrot.slane %v4726_v46, 3 }
 0x4d7   : > { %v4752_v63 = vrot.slane %v4728_v11, 3 }
 0x4d8   : > { %v15543_v33 = vpop.permute.xlu1 %2483  ;;  %v15546_v51 = vpop.permute.xlu0 %2485 }
 0x4d9   : > { %19268 = vst [vmem:[#allocation138_spill] sm:$0xff] %v15543_v33  ;;  %19269 = vst [vmem:[#allocation142_spill] sm:$0xff] %v15546_v51  ;;  %v7030_v33 = vrot.slane %v7021_v10, %v19212_v17 }
 0x4da   : > { %5311 = vrot.lane.b32.xlu1 %v5300_v28, %s11290_s29  ;;  %5313 = vrot.lane.b32.xlu0 %v5304_v52, %s11290_s29  ;;  %v4733_v28 = vmul.f32 %v15483_v39, %v4711_v6  ;;  %v7034_v52 = vrot.slane %v7021_v10, %v19213_v24  ;;  %v4753_v39 = vsel %vm4071_vm4, %v4748_v55, %v4752_v63  ;;  %v4756_v6 = vrot.slane %v15558_v5, 3 }
 0x4dc   : > { %v15552_v1 = vpop.permute.xlu1 %2491  ;;  %v15560_v51 = vpop.permute.xlu0 %2493  ;;  %v4762_v36 = vrot.slane %v4733_v28, 3 }
 0x4dd   : > { %19270 = vst [vmem:[#allocation148_spill] sm:$0xff] %v15552_v1  ;;  %19271 = vst [vmem:[#allocation53_spill] sm:$0xff] %v15560_v51  ;;  %v4754_v1 = vrot.slane %v4729_v18, 3  ;;  %v7038_v51 = vrot.slane %v7021_v10, %v19214_v8  ;;  %v4734_v18 = vmul.f32 %v15491_v37, %v4715_v38 }
 0x4de   : > { %4768 = vrot.lane.b32.xlu1 %v4748_v55, %s11290_s29  ;;  %4770 = vrot.lane.b32.xlu0 %v4749_v54, %s11290_s29 }
 0x4df   : > { %v4755_v55 = vsel %vm4071_vm4, %v4749_v54, %v4754_v1  ;;  %v4763_v37 = vsel %vm4071_vm4, %v4754_v1, %v4762_v36 }
 0x4e0   : > { %v15568_v11 = vpop.permute.xlu1 %2495  ;;  %v7805_v46 = vpop.f32.mrb[0].mxu0 }
 0x4e1   : > { %19272 = vst [vmem:[#allocation144_spill] sm:$0xff] %v15568_v11  ;;  %v7891_v44 = vpop.f32.mrb[0].mxu1  ;;  %v15574_v3 = vpop.permute.xlu0 %2501  ;;  %v10307_v11 = vadd.f32 %v7805_v46, %v7026_v16 }
 0x4e2   : > { %19273 = vst [vmem:[#allocation56_spill] sm:$0xff] %v15574_v3  ;;  %v7807_v22 = vpop.f32.mrb[1].mxu0  ;;  %4772 = vrot.lane.b32.xlu1 %v4750_v47, %s11290_s29  ;;  %v10311_v60 = vadd.f32 %v7891_v44, %v7034_v52  ;;  %v7893_v7 = vpop.f32.mrb[1].mxu1  ;;  %4776 = vrot.lane.b32.xlu0 %v4753_v39, %s11290_s29  ;;  %v4757_v3 = vsel %vm4071_vm4, %v4750_v47, %v4756_v6 }
 0x4e3   : > { %v7809_v59 = vpop.f32.mrb[2].mxu0  ;;  %v10308_v10 = vadd.f32 %v7807_v22, %v7030_v33  ;;  %v10312_v5 = vadd.f32 %v7893_v7, %v7038_v51  ;;  %v7895_v34 = vpop.f32.mrb[2].mxu1  ;;  %v4761_v22 = vsel %vm4071_vm4, %v4752_v63, %v4760_v32  ;;  %v4764_v7 = vrot.slane %v4734_v18, 3 }
 0x4e4   : > { %v7811_v28 = vpop.f32.mrb[3].mxu0  ;;  %v10309_v4 = vadd.f32 %v7809_v59, %v7026_v16  ;;  %v10313_v12 = vadd.f32 %v7895_v34, %v7034_v52  ;;  %v7897_v48 = vpop.f32.mrb[3].mxu1  ;;  %v7900_v54 = vmax.f32 %v10307_v11, 0.0  ;;  %v7902_v39 = vmax.f32 %v10311_v60, 0.0 }
 0x4e5   : > { %v15581_v30 = vpop.permute.xlu1 %2503  ;;  %v10310_v44 = vadd.f32 %v7811_v28, %v7030_v33  ;;  %v10314_v38 = vadd.f32 %v7897_v48, %v7038_v51  ;;  %v15584_v46 = vpop.permute.xlu0 %2505  ;;  %v7901_v59 = vmax.f32 %v10308_v10, 0.0  ;;  %v7903_v34 = vmax.f32 %v10312_v5, 0.0  ;;  %v11005_v10 = vld [vmem:[#allocation2 + $0x38] sm:$0xfe] }
 0x4e6   : > { %19274 = vst [vmem:[#allocation59_spill] sm:$0xff] %v15581_v30  ;;  %19275 = vst [vmem:[#allocation136_spill] sm:$0xff] %v15584_v46  ;;  %4778 = vrot.lane.b32.xlu1 %v4755_v55, %s11290_s29  ;;  %v7904_v21 = vmax.f32 %v10309_v4, 0.0  ;;  %v7906_v47 = vmax.f32 %v10313_v12, 0.0  ;;  %4780 = vrot.lane.b32.xlu0 %v4757_v3, %s11290_s29  ;;  %v4765_v32 = vsel %vm4071_vm4, %v4756_v6, %v4764_v7  ;;  %v11007_v7 = vld [vmem:[#allocation2 + $0x48] sm:$0xfe] }
 0x4e7   : > { %v7905_v16 = vmax.f32 %v10310_v44, 0.0  ;;  %v7907_v52 = vmax.f32 %v10314_v38, 0.0  ;;  %v11004_v12 = vld [vmem:[%s18189_s1 + $0xc2] ss:$8 sm:$0xf]  ;;  %v5035_v3 = vsel %vm1014_vm1, %v15169_v26, %v15175_v40  ;;  %v5043_v5 = vmul.f32 %v11005_v10, %v15169_v26 }
 0x4e8   : > { %v7908_v1 = vpack.c.bf16 %v7904_v21, %v7900_v54  ;;  %v7910_v33 = vpack.c.bf16 %v7906_v47, %v7902_v39  ;;  %v5026_v4 = vrot.slane %v11004_v12, %v19214_v8  ;;  %v9876_v21 = vld [vmem:[%s18189_s1 + $0xc4] ss:$8 sm:$0xf]  ;;  %v5036_v28 = vsel %vm1014_vm1, %v15175_v40, %v15183_v53  ;;  %v11013_v53 = vld [vmem:[#allocation2 + $0xa0] sm:$0x1] }
 0x4e9   : > { %v15589_v48 = vpop.permute.xlu1 %3213  ;;  %v7909_v51 = vpack.c.bf16 %v7905_v16, %v7901_v59  ;;  %v7911_v36 = vpack.c.bf16 %v7907_v52, %v7903_v34  ;;  %v15591_v55 = vpop.permute.xlu0 %3215  ;;  %v5547_v11 = vrot.slane %v9876_v21, %v19211_v2  ;;  %v5551_v6 = vrot.slane %v9876_v21, %v19212_v17  ;;  %v11006_v38 = vld [vmem:[#allocation2 + $0x40] sm:$0xfe]  ;;  %v15629_v59 = vld [vmem:[#allocation2 + $0x68] sm:$0xff]  ;;  %v15635_v34 = vld [vmem:[#allocation2 + $0x70] sm:$0xff] }
 0x4ea   : > { %19276 = vst [vmem:[#allocation76_spill] sm:$0xff] %v15589_v48  ;;  %19277 = vst [vmem:[#allocation141_spill] sm:$0xff] %v15591_v55  ;;  %4784 = vrot.lane.b32.xlu1 %v4761_v22, %s11290_s29  ;;  %4786 = vrot.lane.b32.xlu0 %v4763_v37, %s11290_s29  ;;  %v5555_v44 = vrot.slane %v9876_v21, %v19213_v24  ;;  %v5044_v22 = vmul.f32 %v11006_v38, %v5035_v3  ;;  %v5073_v47 = vrot.slane %v5043_v5, 3  ;;  %v19286_v10 = vld [vmem:[#allocation20_spill] sm:$0xff]  ;;  %v19287_v5 = vld [vmem:[#allocation21_spill] sm:$0xff] }
 0x4eb   : > { %8207 = vmatprep.mubr.bf16.mxu0 %v7909_v51  ;;  %8248 = vmatprep.mubr.bf16.mxu1 %v7911_v36  ;;  %v15625_v54 = vmul.f32 %v11007_v7, %v5036_v28  ;;  %v15633_v40 = vmul.f32 %v15629_v59, %v15169_v26  ;;  %v15638_v16 = vmul.f32 %v15635_v34, %v5035_v3  ;;  %v19288_v38 = vld [vmem:[#allocation23_spill] sm:$0xff]  ;;  %v11012_v7 = vld [vmem:[#allocation2] sm:$0xc0]  ;;  %v15717_v48 = vld [vmem:[#allocation2 + $0x48] sm:$0xff] }
 0x4ec   : > { %8208 = vmatmul.mubr.bf16.vlgmr.msra.gmra.mrb[4].mxu0 %v7908_v1  ;;  %8249 = vmatmul.mubr.bf16.vlgmr.msra.gmra.mrb[4].mxu1 %v7910_v33  ;;  %v5074_v1 = vrot.slane %v5044_v22, 3  ;;  %v15644_v33 = vld [vmem:[#allocation2 + $0x78] sm:$0xff]  ;;  %v452_v22 = vsel %vm385_vm5, %v19286_v10, %v19288_v38  ;;  %19300 = vst [vmem:[#allocation60_spill] sm:$0xff] %v15717_v48  ;;  %v15725_v46 = vsel %vm516_vm0, %v15186_v13, %v15192_v15 }
 0x4ed   : > { %v15603_v60 = vpop.permute.xlu1 %3217  ;;  %v15605_v63 = vpop.permute.xlu0 %3223  ;;  %v15647_v51 = vmul.f32 %v15644_v33, %v5036_v28  ;;  %v5075_v36 = vrot.slane %v15625_v54, 3  ;;  %v15666_v54 = vmul.f32 %v11012_v7, %v19287_v5  ;;  %v11015_v7 = vld [vmem:[#allocation2 + $0xa8] sm:$0x1]  ;;  %v15797_v0 = vmul.f32 %v15278_v14, %v15725_v46 }
 0x4ee   : > { %19278 = vst [vmem:[#allocation133_spill] sm:$0xff] %v15603_v60  ;;  %19279 = vst [vmem:[#allocation134_spill] sm:$0xff] %v15605_v63  ;;  %4788 = vrot.lane.b32.xlu1 %v4765_v32, %s11290_s29  ;;  %5033 = vrot.lane.b32.xlu0 %v5026_v4, %s11292_s23  ;;  %v5078_v4 = vrot.slane %v15633_v40, 3  ;;  %v19289_v40 = vld [vmem:[#allocation22_spill] sm:$0xff]  ;;  %v15708_v60 = vld [vmem:[#allocation2 + $0x40] sm:$0xff] }
 0x4ef   : > { %v453_v32 = vsel %vm385_vm5, %v19288_v38, %v19289_v40  ;;  %v19292_v38 = vrot.slane %v15638_v16, 3  ;;  %19298 = vst [vmem:[#allocation35_spill] sm:$0xff] %v15708_v60  ;;  %v19303_v8 = vrot.slane %v15647_v51, 3 }
 0x4f1   : > { %v15614_v18 = vpop.permute.xlu1 %3225  ;;  %v15620_v37 = vpop.permute.xlu0 %3227 }
 0x4f2   : > { %19280 = vst [vmem:[#allocation124_spill] sm:$0xff] %v15614_v18  ;;  %19281 = vst [vmem:[#allocation127_spill] sm:$0xff] %v15620_v37  ;;  %5560 = vrot.lane.b32.xlu1 %v5547_v11, %s11290_s29  ;;  %5562 = vrot.lane.b32.xlu0 %v5551_v6, %s11290_s29  ;;  %v11011_v11 = vld [vmem:[#allocation2 + $0x98] sm:$0x1]  ;;  %v11018_v18 = vld [vmem:[#allocation2 + $0x60] sm:$0x3f] }
 0x4f3   : > { %v5053_v6 = vmul.f32 %v11011_v11, %v15169_v26  ;;  %v5054_v26 = vmul.f32 %v11013_v53, %v5035_v3  ;;  %v5081_v53 = vsel %vm4071_vm4, %v5074_v1, %v19292_v38  ;;  %v15687_v11 = vld [vmem:[#allocation2 + $0x8] sm:$0xc0] }
 0x4f4   : > { %19293 = vst [vmem:[#allocation65_spill] sm:$0xff] %v15687_v11 }
 0x4f5   : > { %v15627_v39 = vpop.permute.xlu1 %3233  ;;  %v15640_v52 = vpop.permute.xlu0 %3235  ;;  %v5088_v3 = vrot.slane %v5053_v6, 3  ;;  %v15705_v6 = vld [vmem:[#allocation2 + $0x18] sm:$0xc0]  ;;  %v5090_v55 = vrot.slane %v5054_v26, 3  ;;  %v5851_v26 = vsel %vm516_vm0, %v15192_v15, %v15197_v35 }
 0x4f6   : > { %19282 = vst [vmem:[#allocation19_spill] sm:$0xff] %v15627_v39  ;;  %19283 = vst [vmem:[#allocation18_spill] sm:$0xff] %v15640_v52  ;;  %5564 = vrot.lane.b32.xlu1 %v5555_v44, %s11290_s29  ;;  %5098 = vrot.lane.b32.xlu0 %v5073_v47, %s11292_s23  ;;  %v451_v44 = vsel %vm385_vm5, %v19287_v5, %v19286_v10  ;;  %v15675_v39 = vld [vmem:[#allocation2 + $0x10] sm:$0xff]  ;;  %v5055_v52 = vmul.f32 %v11015_v7, %v5036_v28  ;;  %v15696_v7 = vld [vmem:[#allocation2 + $0x68] sm:$0x3f] }
 0x4f7   : > { %v15679_v10 = vmul.f32 %v15675_v39, %v19287_v5  ;;  %v15694_v28 = vmul.f32 %v11018_v18, %v19287_v5  ;;  %19295 = vst [vmem:[#allocation25_spill] sm:$0xff] %v15696_v7  ;;  %19297 = vst [vmem:[#allocation27_spill] sm:$0xff] %v15705_v6  ;;  %v462_v38 = vmul.f32 %v15705_v6, %v453_v32  ;;  %v15713_v5 = vld [vmem:[#allocation2 + $0x20] sm:$0xc0]  ;;  %v19310_v15 = vld [vmem:[#allocation44_spill] sm:$0xff] }
 0x4f8   : > { %v15711_v18 = vmul.f32 %v15708_v60, %v452_v22  ;;  %19299 = vst [vmem:[#allocation43_spill] sm:$0xff] %v15713_v5  ;;  %v5083_v6 = vsel %vm4071_vm4, %v5075_v36, %v19303_v8 }
 0x4f9   : > { %v15650_v12 = vpop.permute.xlu1 %3237  ;;  %v15654_v21 = vpop.permute.xlu0 %3211 }
 0x4fa   : > { %19284 = vst [vmem:[#allocation31_spill] sm:$0xff] %v15650_v12  ;;  %19285 = vst [vmem:[#allocation40_spill] sm:$0xff] %v15654_v21  ;;  %5100 = vrot.lane.b32.xlu1 %v5074_v1, %s11292_s23  ;;  %5102 = vrot.lane.b32.xlu0 %v5075_v36, %s11292_s23  ;;  %v5079_v12 = vsel %vm4071_vm4, %v5073_v47, %v5078_v4  ;;  %v460_v47 = vmul.f32 %v15687_v11, %v451_v44  ;;  %v15702_v1 = vld [vmem:[#allocation2 + $0x10] sm:$0xc0]  ;;  %v19308_v36 = vld [vmem:[#allocation34_spill] sm:$0xff] }
 0x4fb   : > { %19296 = vst [vmem:[#allocation26_spill] sm:$0xff] %v15702_v1 }
 0x4fd   : > { %v15672_v21 = vpop.permute.xlu1 %3221  ;;  %v15681_v37 = vpop.permute.xlu0 %3231 }
 0x4fe   : > { %19290 = vst [vmem:[#allocation30_spill] sm:$0xff] %v15672_v21  ;;  %19291 = vst [vmem:[#allocation41_spill] sm:$0xff] %v15681_v37  ;;  %5108 = vrot.lane.b32.xlu1 %v5079_v12, %s11292_s23  ;;  %v15690_v21 = vld [vmem:[#allocation2 + $0x38] sm:$0xff]  ;;  %v15699_v37 = vmul.f32 %v15696_v7, %v451_v44  ;;  %5110 = vrot.lane.b32.xlu0 %v5081_v53, %s11292_s23  ;;  %v461_v12 = vmul.f32 %v15702_v1, %v452_v22  ;;  %v15732_v7 = vld [vmem:[#allocation2 + $0x70] sm:$0x3f]  ;;  %v5092_v1 = vrot.slane %v5055_v52, 3 }
 0x4ff   : > { %19294 = vst [vmem:[#allocation24_spill] sm:$0xff] %v15690_v21  ;;  %v465_v63 = vmul.f32 %v15690_v21, %v451_v44  ;;  %v463_v44 = vmul.f32 %v15713_v5, %v19289_v40  ;;  %v15720_v53 = vmul.f32 %v15717_v48, %v453_v32  ;;  %19304 = vst [vmem:[#allocation71_spill] sm:$0xff] %v15732_v7  ;;  %v19319_v21 = vld [vmem:[#allocation39_spill] sm:$0xff] }
 0x500   : > { %v15735_v5 = vmul.f32 %v15732_v7, %v452_v22  ;;  %v5089_v48 = vsel %vm4071_vm4, %v5078_v4, %v5088_v3  ;;  %v15752_v22 = vld [vmem:[#allocation2 + $0x50] sm:$0xff]  ;;  %v19311_v7 = vld [vmem:[#allocation32_spill] sm:$0xff]  ;;  %v19312_v4 = vld [vmem:[#allocation45_spill] sm:$0xff] }
 0x501   : > { %19301 = vst [vmem:[#allocation66_spill] sm:$0xff] %v15720_v53  ;;  %v15727_v30 = vpop.permute.xlu1 %3915  ;;  %v15740_v53 = vpop.permute.xlu0 %3917  ;;  %v15750_v11 = vadd.f32 %v19308_v36, %v463_v44  ;;  %v468_v52 = vmul.f32 %v15752_v22, %v19289_v40  ;;  %v723_v3 = vsel %vm516_vm0, %v19310_v15, %v19312_v4 }
 0x502   : > { %19302 = vst [vmem:[#allocation77_spill] sm:$0xff] %v15727_v30  ;;  %19305 = vst [vmem:[#allocation72_spill] sm:$0xff] %v15740_v53  ;;  %5112 = vrot.lane.b32.xlu1 %v5083_v6, %s11292_s23  ;;  %v15744_v30 = vld [vmem:[#allocation2 + $0x78] sm:$0x3f]  ;;  %v722_v53 = vsel %vm516_vm0, %v19311_v7, %v19310_v15  ;;  %5118 = vrot.lane.b32.xlu0 %v5089_v48, %s11292_s23  ;;  %v19314_v7 = vld [vmem:[#allocation47_spill] sm:$0xff] }
 0x503   : > { %19306 = vst [vmem:[#allocation81_spill] sm:$0xff] %v15744_v30  ;;  %v15747_v8 = vmul.f32 %v15744_v30, %v453_v32  ;;  %19309 = vst [vmem:[#allocation94_spill] sm:$0xff] %v15750_v11  ;;  %v19313_v32 = vld [vmem:[#allocation46_spill] sm:$0xff]  ;;  %v15769_v11 = vld [vmem:[#allocation2 + $0x38] sm:$0xfc]  ;;  %v15790_v41 = vadd.f32 %v19319_v21, %v468_v52 }
 0x504   : > { %v724_v6 = vsel %vm516_vm0, %v19312_v4, %v19313_v32  ;;  %v725_v44 = vsel %vm516_vm0, %v19313_v32, %v19308_v36  ;;  %v5859_v40 = vmul.f32 %v15769_v11, %v15725_v46  ;;  %v15776_v30 = vld [vmem:[#allocation2 + $0x40] sm:$0xfc]  ;;  %v5852_v4 = vsel %vm516_vm0, %v15197_v35, %v15201_v57 }
 0x505   : > { %19307 = vst [vmem:[#allocation93_spill] sm:$0xff] %v15747_v8  ;;  %v19315_v8 = vld [vmem:[#allocation37_spill] sm:$0xff]  ;;  %19316 = vst [vmem:[#allocation87_spill] sm:$0xff] %v15776_v30  ;;  %v15779_v15 = vmul.f32 %v15776_v30, %v5851_v26  ;;  %v15784_v60 = vpop.permute.xlu1 %3919  ;;  %v19318_v36 = vrot.slane %v15638_v16, 3  ;;  %v15799_v30 = vpop.permute.xlu0 %3448  ;;  %v19323_v35 = vrot.slane %v15647_v51, 3  ;;  %v15808_v16 = vadd.f32 %v723_v3, %v460_v47 }
 0x506   : > { %v726_v48 = vsel %vm516_vm0, %v19315_v8, %v19314_v7  ;;  %19317 = vst [vmem:[#allocation82_spill] sm:$0xff] %v15784_v60  ;;  %19320 = vst [vmem:[#allocation100_spill] sm:$0xff] %v15790_v41  ;;  %v727_v8 = vsel %vm516_vm0, %v19314_v7, %v19321_v31  ;;  %v15810_v52 = vadd.f32 %v724_v6, %v461_v12  ;;  %v19325_v47 = vld [vmem:[#allocation49_spill] sm:$0xff] }
 0x507   : > { %v5091_v32 = vsel %vm4071_vm4, %v19318_v36, %v5090_v55  ;;  %19322 = vst [vmem:[#allocation99_spill] sm:$0xff] %v15799_v30  ;;  %v5093_v60 = vsel %vm4071_vm4, %v19323_v35, %v5092_v1  ;;  %v15806_v55 = vadd.f32 %v722_v53, %v15666_v54  ;;  %v15812_v7 = vadd.f32 %v725_v44, %v462_v38  ;;  %v15819_v1 = vld [vmem:[#allocation2 + $0x48] sm:$0xfc]  ;;  %v15827_v38 = vld [vmem:[#allocation2 + $0xa0] sm:$0x3]  ;;  %v19331_v44 = vld [vmem:[#allocation51_spill] sm:$0xff] }
 0x508   : > { %5120 = vrot.lane.b32.xlu1 %v5091_v32, %s11292_s23  ;;  %5122 = vrot.lane.b32.xlu0 %v5093_v60, %s11292_s23  ;;  %v15816_v14 = vadd.f32 %v726_v48, %v15679_v10  ;;  %v5889_v36 = vrot.slane %v5859_v40, 4  ;;  %v5865_v51 = vmul.f32 %v15286_v29, %v5851_v26  ;;  %v5861_v32 = vmul.f32 %v15819_v1, %v5852_v4  ;;  %v19328_v40 = vld [vmem:[#allocation50_spill] sm:$0xff]  ;;  %v15858_v35 = vld [vmem:[#allocation2 + $0x80] sm:$0xff] }
 0x509   : > { %19324 = vst [vmem:[#allocation109_spill] sm:$0xff] %v15812_v7  ;;  %v15822_v54 = vadd.f32 %v727_v8, %v465_v63  ;;  %v728_v12 = vsel %vm516_vm0, %v19321_v31, %v19325_v47  ;;  %v5870_v60 = vmul.f32 %v15827_v38, %v5851_v26  ;;  %v5890_v10 = vrot.slane %v15779_v15, 4  ;;  %v15831_v53 = vpop.permute.xlu1 %3450  ;;  %v19329_v63 = vld [vmem:[#allocation36_spill] sm:$0xff]  ;;  %v15842_v31 = vpop.permute.xlu0 %3452  ;;  %19334 = vst [vmem:[#allocation116_spill] sm:$0xff] %v15858_v35 }
 0x50a   : > { %19326 = vst [vmem:[#allocation104_spill] sm:$0xff] %v15831_v53  ;;  %v15836_v29 = vsel %vm516_vm0, %v19325_v47, %v19319_v21  ;;  %v730_v3 = vsel %vm516_vm0, %v19329_v63, %v19328_v40  ;;  %19330 = vst [vmem:[#allocation110_spill] sm:$0xff] %v15842_v31  ;;  %v15846_v26 = vmul.f32 %v15291_v61, %v5852_v4  ;;  %v19332_v15 = vld [vmem:[#allocation52_spill] sm:$0xff]  ;;  %v5897_v63 = vrot.slane %v5865_v51, 4 }
 0x50b   : > { %19327 = vst [vmem:[#allocation115_spill] sm:$0xff] %v15836_v29  ;;  %v731_v48 = vsel %vm516_vm0, %v19328_v40, %v19331_v44  ;;  %v732_v21 = vsel %vm516_vm0, %v19331_v44, %v19332_v15  ;;  %v15856_v8 = vmul.f32 %v15752_v22, %v15109_v49  ;;  %v15862_v47 = vmul.f32 %v15858_v35, %v15109_v49  ;;  %v15865_v61 = vld [vmem:[#allocation2 + $0x98] sm:$0x3]  ;;  %v19336_v49 = vld [vmem:[#allocation38_spill] sm:$0xff] }
 0x50c   : > { %5915 = vrot.lane.b32.xlu1 %v5889_v36, %s11291_s19  ;;  %5917 = vrot.lane.b32.xlu0 %v5890_v10, %s11291_s19  ;;  %v5869_v40 = vmul.f32 %v15865_v61, %v15725_v46  ;;  %v6444_v44 = vsel %vm1014_vm1, %v15207_v23, %v15224_v45  ;;  %v5891_v6 = vrot.slane %v5861_v32, 4  ;;  %v15873_v41 = vadd.f32 %v728_v12, %v15711_v18 }
 0x50d   : > { %19333 = vst [vmem:[#allocation132_spill] sm:$0xff] %v15856_v8  ;;  %19335 = vst [vmem:[#allocation122_spill] sm:$0xff] %v15862_v47  ;;  %v15876_v7 = vadd.f32 %v730_v3, %v15694_v28  ;;  %v15881_v29 = vsel %vm516_vm0, %v19332_v15, %v19336_v49  ;;  %v5907_v31 = vrot.slane %v5870_v60, 4  ;;  %v15883_v30 = vpop.permute.xlu1 %3456  ;;  %v15886_v46 = vadd.f32 %v731_v48, %v15699_v37  ;;  %v15891_v32 = vpop.permute.xlu0 %3458  ;;  %v11034_v3 = vld [vmem:[#allocation2 + $0x40] sm:$0xfc] }
 0x50e   : > { %19337 = vst [vmem:[#allocation121_spill] sm:$0xff] %v15881_v29  ;;  %19338 = vst [vmem:[#allocation140_spill] sm:$0xff] %v15883_v30  ;;  %v15889_v51 = vadd.f32 %v732_v21, %v15735_v5  ;;  %v19340_v18 = vrot.slane %v15797_v0, 4  ;;  %v5899_v12 = vrot.slane %v15846_v26, 4  ;;  %v15898_v60 = vmul.f32 %v11034_v3, %v6444_v44  ;;  %v15907_v5 = vld [vmem:[#allocation2 + $0xa8] sm:$0x3] }
 0x50f   : > { %19339 = vst [vmem:[#allocation62_spill] sm:$0xff] %v15891_v32  ;;  %v15901_v15 = vmul.f32 %v15635_v34, %v6444_v44  ;;  %v6445_v37 = vsel %vm1014_vm1, %v15224_v45, %v15230_v43  ;;  %v5905_v21 = vrot.slane %v5869_v40, 4  ;;  %v5908_v34 = vsel %vm5485_vm6, %v5897_v63, %v5907_v31  ;;  %v11036_v49 = vld [vmem:[#allocation2 + $0x30] sm:$0xfc]  ;;  %v11037_v29 = vld [vmem:[#allocation2 + $0x90] sm:$0x3] }
 0x510   : > { %v5896_v28 = vsel %vm5485_vm6, %v5889_v36, %v19340_v18  ;;  %5919 = vrot.lane.b32.xlu1 %v5891_v6, %s11291_s19  ;;  %v5871_v36 = vmul.f32 %v15907_v5, %v5852_v4  ;;  %v5898_v18 = vsel %vm5485_vm6, %v5890_v10, %v5897_v63  ;;  %v5858_v45 = vmul.f32 %v11036_v49, %v15186_v13  ;;  %v11038_v43 = vld [vmem:[#allocation2 + $0xa0] sm:$0x3]  ;;  %v11039_v30 = vld [vmem:[#allocation2 + $0x48] sm:$0xfc] }
 0x511   : > { %5925 = vrot.lane.b32.xlu0 %v5896_v28, %s11291_s19  ;;  %v15913_v3 = vpop.permute.xlu1 %3460  ;;  %v5863_v28 = vmul.f32 %v15675_v39, %v15186_v13  ;;  %v5868_v4 = vmul.f32 %v11037_v29, %v15186_v13  ;;  %v6463_v48 = vmul.f32 %v11038_v43, %v6444_v44  ;;  %v15920_v26 = vmul.f32 %v11039_v30, %v6445_v37  ;;  %v15923_v40 = vpop.permute.xlu0 %3464  ;;  %v11041_v30 = vld [vmem:[#allocation2 + $0x38] sm:$0xfc] }
 0x512   : > { %19341 = vst [vmem:[#allocation150_spill] sm:$0xff] %v15913_v3  ;;  %v6459_v10 = vmul.f32 %v15644_v33, %v6445_v37  ;;  %19342 = vst [vmem:[#allocation57_spill] sm:$0xff] %v15923_v40  ;;  %v5900_v31 = vsel %vm5485_vm6, %v5891_v6, %v5899_v12  ;;  %v6489_v49 = vrot.slane %v15901_v15, 4  ;;  %v11040_v3 = vld [vmem:[#allocation2 + $0xa8] sm:$0x3]  ;;  %v5909_v13 = vrot.slane %v5871_v36, 4 }
 0x513   : > { %v6464_v32 = vmul.f32 %v11040_v3, %v6445_v37  ;;  %v945_v43 = vsel %vm385_vm5, %v15237_v27, %v15244_v42  ;;  %v15934_v33 = vmul.f32 %v11041_v30, %v15207_v23  ;;  %v6457_v29 = vmul.f32 %v15629_v59, %v15207_v23  ;;  %v11042_v6 = vld [vmem:[#allocation2 + $0x98] sm:$0x3] }
 0x514   : > { %5927 = vrot.lane.b32.xlu1 %v5898_v18, %s11291_s19  ;;  %v6462_v44 = vmul.f32 %v11042_v6, %v15207_v23  ;;  %v19344_v37 = vrot.slane %v15797_v0, 4  ;;  %v5888_v18 = vrot.slane %v5858_v45, 4  ;;  %v5893_v3 = vrot.slane %v5863_v28, 4  ;;  %v15993_v6 = vld [vmem:[#allocation2 + $0x80] sm:$0x7f] }
 0x515   : > { %5929 = vrot.lane.b32.xlu0 %v5900_v31, %s11291_s19  ;;  %v15939_v15 = vpop.permute.xlu1 %3466  ;;  %v5903_v31 = vrot.slane %v5868_v4, 4  ;;  %v6499_v63 = vrot.slane %v6463_v48, 4  ;;  %v18523_v40 = vrot.slane %v15920_v26, 4  ;;  %v6491_v30 = vrot.slane %v6459_v10, 4  ;;  %v15948_v53 = vpop.permute.xlu0 %3468  ;;  %19349 = vst [vmem:[#allocation83_spill] sm:$0xff] %v15993_v6 }
 0x516   : > { %19343 = vst [vmem:[#allocation146_spill] sm:$0xff] %v15939_v15  ;;  %v5906_v36 = vsel %vm5485_vm6, %v19344_v37, %v5905_v21  ;;  %v946_v59 = vsel %vm385_vm5, %v15244_v42, %v15251_v9  ;;  %19345 = vst [vmem:[#allocation155_spill] sm:$0xff] %v15948_v53  ;;  %v6501_v23 = vrot.slane %v6464_v32, 4  ;;  %v15953_v0 = vadd.f32 %v15237_v27, %v15806_v55  ;;  %v9880_v42 = vld [vmem:[%s18189_s1 + $0xc6] ss:$8 sm:$0xf] }
 0x517   : > { %v15956_v21 = vadd.f32 %v945_v43, %v15808_v16  ;;  %v5910_v48 = vsel %vm5485_vm6, %v5899_v12, %v5909_v13  ;;  %v18524_v45 = vrot.slane %v15934_v33, 4  ;;  %v19346_v28 = vrot.slane %v15898_v60, 4 }
 0x518   : > { %5935 = vrot.lane.b32.xlu1 %v5906_v36, %s11291_s19  ;;  %v6487_v27 = vrot.slane %v6457_v29, 4  ;;  %v6497_v55 = vrot.slane %v6462_v44, 4  ;;  %v15970_v16 = vadd.f32 %v946_v59, %v15810_v52  ;;  %v948_v12 = vsel %vm385_vm5, %v15254_v20, %v15263_v58 }
 0x519   : > { %5937 = vrot.lane.b32.xlu0 %v5908_v34, %s11291_s19  ;;  %v15967_v32 = vsel %vm5485_vm6, %v19346_v28, %v6489_v49  ;;  %v15975_v34 = vpop.permute.xlu1 %3679  ;;  %v5904_v4 = vsel %vm5485_vm6, %v5893_v3, %v5903_v31  ;;  %v5894_v10 = vsel %vm5485_vm6, %v5888_v18, %v5893_v3  ;;  %v15981_v13 = vadd.f32 %v15254_v20, %v15816_v14  ;;  %v15983_v43 = vpop.permute.xlu0 %4146  ;;  %v16003_v20 = vld [vmem:[%s18189_s1 + $0xe0] ss:$8 sm:$0xf]  ;;  %v16014_v3 = vld [vmem:[#allocation2 + $0x20] sm:$0x80] }
 0x51a   : > { %19347 = vst [vmem:[#allocation159_spill] sm:$0xff] %v15975_v34  ;;  %19348 = vst [vmem:[#allocation73_spill] sm:$0xff] %v15983_v43  ;;  %v15989_v52 = vsel %vm5485_vm6, %v18523_v40, %v6491_v30  ;;  %v1849_v29 = vmul.f32 %v15752_v22, %v15054_v25  ;;  %v15997_v44 = vmul.f32 %v15993_v6, %v15054_v25  ;;  %v19408_v6 = vld [vmem:[#allocation25_spill] sm:$0xff] }
 0x51b   : > { %v16006_v14 = vrot.slane %v9880_v42, %v19211_v2  ;;  %v16009_v37 = vsel %vm5485_vm6, %v6491_v30, %v6501_v23  ;;  %v16012_v36 = vsel %vm5485_vm6, %v6489_v49, %v6499_v63  ;;  %19353 = vst [vmem:[#allocation96_spill] sm:$0xff] %v16014_v3  ;;  %v1844_v31 = vmul.f32 %v16014_v3, %v15054_v25  ;;  %v16041_v23 = vld [vmem:[#allocation2 + $0x50] sm:$0xfe] }
 0x51c   : > { %5939 = vrot.lane.b32.xlu1 %v5910_v48, %s11291_s19  ;;  %19350 = vst [vmem:[#allocation28_spill] sm:$0xff] %v15997_v44  ;;  %19351 = vst [vmem:[#allocation89_spill] sm:$0xff] %v16009_v37  ;;  %v16024_v59 = vsel %vm5485_vm6, %v18524_v45, %v6487_v27  ;;  %v16027_v48 = vsel %vm5485_vm6, %v6487_v27, %v6497_v55  ;;  %v19354_v30 = vrot.slane %v15862_v47, 2  ;;  %v19355_v63 = vrot.slane %v15856_v8, 2  ;;  %v16049_v55 = vld [vmem:[#allocation2 + $0xb0] sm:$0x1] }
 0x51d   : > { %5913 = vrot.lane.b32.xlu0 %v5888_v18, %s11291_s19  ;;  %19352 = vst [vmem:[#allocation92_spill] sm:$0xff] %v16012_v36  ;;  %v16019_v18 = vadd.f32 %v948_v12, %v15822_v54  ;;  %v949_v25 = vsel %vm385_vm5, %v15263_v58, %v15270_v56  ;;  %v16039_v54 = vpop.permute.xlu1 %4148  ;;  %19358 = vst [vmem:[#allocation102_spill] sm:$0xff] %v16041_v23  ;;  %v16045_v28 = vmul.f32 %v16041_v23, %v15157_v19  ;;  %v11047_v45 = vld [vmem:[#allocation2 + $0x50] sm:$0xfc]  ;;  %v19411_v37 = vld [vmem:[#allocation60_spill] sm:$0xff] }
 0x51e   : > { %v16034_v49 = vsel %vm2853_vm3, %v19355_v63, %v19354_v30  ;;  %19357 = vst [vmem:[#allocation105_spill] sm:$0xff] %v16039_v54  ;;  %v4453_v27 = vmul.f32 %v15858_v35, %v15157_v19  ;;  %19360 = vst [vmem:[#allocation147_spill] sm:$0xff] %v16049_v55  ;;  %v4458_v12 = vmul.f32 %v16049_v55, %v15157_v19  ;;  %v16053_v30 = vpop.permute.xlu0 %4150  ;;  %v1883_v40 = vrot.slane %v1849_v29, 1  ;;  %v11048_v55 = vld [vmem:[#allocation2 + $0xb0] sm:$0x3] }
 0x51f   : > { %19356 = vst [vmem:[#allocation162_spill] sm:$0xff] %v16034_v49  ;;  %19359 = vst [vmem:[#allocation129_spill] sm:$0xff] %v16045_v28  ;;  %v6705_v58 = vrot.slane %v16003_v20, %v19211_v2  ;;  %v16059_v63 = vrot.slane %v9880_v42, %v19212_v17  ;;  %v6709_v56 = vrot.slane %v16003_v20, %v19212_v17  ;;  %v1882_v9 = vrot.slane %v1844_v31, 1  ;;  %v19365_v23 = vld [vmem:[#allocation87_spill] sm:$0xff] }
 0x520   : > { %19361 = vst [vmem:[#allocation151_spill] sm:$0xff] %v16053_v30  ;;  %5923 = vrot.lane.b32.xlu1 %v5894_v10, %s11291_s19  ;;  %v16067_v19 = vmul.f32 %v15769_v11, %v16006_v14  ;;  %v16070_v10 = vrot.slane %v9880_v42, %v19213_v24  ;;  %v16073_v47 = vadd.f32 %v949_v25, %v15873_v41  ;;  %v4487_v8 = vrot.slane %v4453_v27, 3 }
 0x521   : > { %5933 = vrot.lane.b32.xlu0 %v5904_v4, %s11291_s19  ;;  %v16077_v29 = vadd.f32 %v15282_v50, %v15876_v7  ;;  %v16080_v4 = vmul.f32 %v11047_v45, %v15201_v57  ;;  %v5867_v49 = vmul.f32 %v15858_v35, %v15201_v57  ;;  %v16084_v11 = vpop.permute.xlu1 %3724  ;;  %v4497_v31 = vrot.slane %v4458_v12, 3 }
 0x522   : > { %19363 = vst [vmem:[#allocation139_spill] sm:$0xff] %v16084_v11  ;;  %v5872_v41 = vmul.f32 %v11048_v55, %v15201_v57  ;;  %v951_v7 = vsel %vm385_vm5, %v15282_v50, %v15289_v62  ;;  %v16091_v25 = vpop.permute.xlu0 %3726  ;;  %v6713_v45 = vrot.slane %v16003_v20, %v19213_v24  ;;  %v6139_v11 = vmul.f32 %v19365_v23, %v16059_v63  ;;  %v19368_v57 = vld [vmem:[#allocation74_spill] sm:$0xff]  ;;  %v19410_v24 = vld [vmem:[#allocation71_spill] sm:$0xff] }
 0x523   : > { %19362 = vst [vmem:[#allocation33_spill] sm:$0xff] %v16080_v4  ;;  %19364 = vst [vmem:[#allocation42_spill] sm:$0xff] %v16091_v25  ;;  %v19366_v27 = vrot.slane %v15997_v44, 1  ;;  %v952_v55 = vsel %vm385_vm5, %v15289_v62, %v19368_v57  ;;  %v6162_v50 = vrot.slane %v16067_v19, 4  ;;  %v16112_v20 = vld [vmem:[#allocation2 + $0x68] sm:$0xff]  ;;  %v5901_v19 = vrot.slane %v5867_v49, 4 }
 0x524   : > { %6718 = vrot.lane.b32.xlu1 %v6705_v58, %s11290_s29  ;;  %v16110_v58 = vmul.f32 %v15819_v1, %v16070_v10  ;;  %19369 = vst [vmem:[#allocation63_spill] sm:$0xff] %v16112_v20  ;;  %v16116_v23 = vmul.f32 %v16112_v20, %v16006_v14  ;;  %v16129_v1 = vadd.f32 %v951_v7, %v15886_v46  ;;  %v19373_v25 = vrot.slane %v16045_v28, 3  ;;  %v19376_v62 = vld [vmem:[#allocation78_spill] sm:$0xff] }
 0x525   : > { %v16101_v12 = vsel %vm1467_vm2, %v1883_v40, %v19366_v27  ;;  %6720 = vrot.lane.b32.xlu0 %v6709_v56, %s11290_s29  ;;  %v16118_v27 = vld [vmem:[#allocation2 + $0x70] sm:$0xff]  ;;  %v16125_v56 = vsel %vm1467_vm2, %v1882_v9, %v1883_v40  ;;  %v16131_v57 = vpop.permute.xlu1 %3728  ;;  %v16139_v53 = vsel %vm4071_vm4, %v4487_v8, %v4497_v31  ;;  %v5911_v54 = vrot.slane %v5872_v41, 4  ;;  %v11051_v40 = vld [vmem:[#allocation2] sm:$0x80]  ;;  %v19377_v46 = vld [vmem:[#allocation130_spill] sm:$0xff] }
 0x526   : > { %19367 = vst [vmem:[#allocation84_spill] sm:$0xff] %v16101_v12  ;;  %19370 = vst [vmem:[#allocation61_spill] sm:$0xff] %v16118_v27  ;;  %v16122_v42 = vmul.f32 %v16118_v27, %v16059_v63  ;;  %v16136_v30 = vsel %vm4071_vm4, %v19373_v25, %v4487_v8  ;;  %v16142_v9 = vadd.f32 %v952_v55, %v15889_v51  ;;  %v6163_v25 = vrot.slane %v6139_v11, 4  ;;  %v16159_v41 = vld [vmem:[#allocation2 + $0x78] sm:$0xff] }
 0x527   : > { %19371 = vst [vmem:[#allocation58_spill] sm:$0xff] %v16125_v56  ;;  %19372 = vst [vmem:[#allocation152_spill] sm:$0xff] %v16131_v57  ;;  %v16145_v49 = vmul.f32 %v11051_v40, %v19376_v62  ;;  %v1550_v7 = vsel %vm385_vm5, %v19376_v62, %v19377_v46  ;;  %v16150_v57 = vpop.permute.xlu0 %3734  ;;  %v6164_v51 = vrot.slane %v16110_v58, 4  ;;  %v6166_v31 = vrot.slane %v16116_v23, 4  ;;  %v11053_v23 = vld [vmem:[#allocation2 + $0x60] sm:$0x7f] }
 0x528   : > { %19374 = vst [vmem:[#allocation20_spill] sm:$0xff] %v16136_v30  ;;  %19375 = vst [vmem:[#allocation21_spill] sm:$0xff] %v16139_v53  ;;  %6722 = vrot.lane.b32.xlu1 %v6713_v45, %s11290_s29  ;;  %v19379_v30 = vld [vmem:[#allocation79_spill] sm:$0xff]  ;;  %v16163_v55 = vmul.f32 %v16159_v41, %v16070_v10  ;;  %v16167_v45 = vmul.f32 %v15675_v39, %v19376_v62  ;;  %v6146_v40 = vmul.f32 %v15865_v61, %v16006_v14  ;;  %v16180_v53 = vld [vmem:[#allocation2 + $0x8] sm:$0x80] }
 0x529   : > { %19378 = vst [vmem:[#allocation23_spill] sm:$0xff] %v16150_v57  ;;  %v1551_v8 = vsel %vm385_vm5, %v19377_v46, %v19379_v30  ;;  %6182 = vrot.lane.b32.xlu0 %v6162_v50, %s11290_s29  ;;  %19380 = vst [vmem:[#allocation34_spill] sm:$0xff] %v16159_v41  ;;  %v19381_v46 = vrot.slane %v16080_v4, 4  ;;  %v16178_v30 = vmul.f32 %v11053_v23, %v19376_v62  ;;  %v19383_v57 = vld [vmem:[#allocation24_spill] sm:$0xff]  ;;  %v16188_v11 = vpop.permute.xlu1 %3736  ;;  %v16199_v23 = vld [vmem:[#allocation2 + $0x10] sm:$0x80] }
 0x52a   : > { %v16183_v28 = vmul.f32 %v16180_v53, %v1550_v7  ;;  %v16186_v15 = vmul.f32 %v19383_v57, %v1550_v7  ;;  %19384 = vst [vmem:[#allocation32_spill] sm:$0xff] %v16188_v11  ;;  %v16191_v61 = vsel %vm5485_vm6, %v5901_v19, %v5911_v54  ;;  %v19386_v4 = vld [vmem:[#allocation35_spill] sm:$0xff]  ;;  %v6170_v14 = vrot.slane %v16163_v55, 4  ;;  %v19389_v55 = vld [vmem:[#allocation145_spill] sm:$0xff]  ;;  %v19390_v41 = vld [vmem:[#allocation90_spill] sm:$0xff] }
 0x52b   : > { %v16175_v58 = vsel %vm5485_vm6, %v19381_v46, %v5901_v19  ;;  %19385 = vst [vmem:[#allocation45_spill] sm:$0xff] %v16191_v61  ;;  %v16194_v46 = vld [vmem:[#allocation2 + $0x68] sm:$0x7f]  ;;  %v16205_v44 = vmul.f32 %v19386_v4, %v1551_v8  ;;  %v16207_v34 = vpop.permute.xlu0 %3738  ;;  %v16210_v54 = vld [vmem:[#allocation2 + $0x70] sm:$0x7f]  ;;  %v6147_v61 = vmul.f32 %v15827_v38, %v16059_v63  ;;  %v6174_v35 = vrot.slane %v6146_v40, 4 }
 0x52c   : > { %19382 = vst [vmem:[#allocation44_spill] sm:$0xff] %v16175_v58  ;;  %v16197_v62 = vmul.f32 %v16194_v46, %v1550_v7  ;;  %v16202_v58 = vmul.f32 %v16199_v23, %v1551_v8  ;;  %19387 = vst [vmem:[#allocation46_spill] sm:$0xff] %v16207_v34  ;;  %6184 = vrot.lane.b32.xlu1 %v6163_v25, %s11290_s29  ;;  %v16213_v19 = vmul.f32 %v16210_v54, %v1551_v8  ;;  %v19392_v40 = vld [vmem:[#allocation85_spill] sm:$0xff]  ;;  %v19394_v12 = vld [vmem:[#allocation88_spill] sm:$0xff] }
 0x52d   : > { %6186 = vrot.lane.b32.xlu0 %v6164_v51, %s11290_s29  ;;  %v6167_v7 = vsel %vm5485_vm6, %v6162_v50, %v6166_v31  ;;  %v19388_v34 = vrot.slane %v16122_v42, 4  ;;  %v6148_v8 = vmul.f32 %v15907_v5, %v16070_v10  ;;  %v1220_v38 = vsel %vm1014_vm1, %v19390_v41, %v19389_v55  ;;  %v16232_v63 = vpop.permute.xlu1 %3744 }
 0x52e   : > { %19391 = vst [vmem:[#allocation47_spill] sm:$0xff] %v16232_v63  ;;  %v1221_v5 = vsel %vm1014_vm1, %v19389_v55, %v19392_v40  ;;  %v1247_v50 = vadd.f32 %v19390_v41, %v15953_v0  ;;  %v6171_v11 = vsel %vm5485_vm6, %v6164_v51, %v6170_v14  ;;  %v19395_v63 = vld [vmem:[#allocation64_spill] sm:$0xff]  ;;  %v6175_v40 = vsel %vm5485_vm6, %v6166_v31, %v6174_v35  ;;  %v19397_v0 = vld [vmem:[#allocation149_spill] sm:$0xff]  ;;  %v19398_v51 = vld [vmem:[#allocation55_spill] sm:$0xff] }
 0x52f   : > { %v6169_v43 = vsel %vm5485_vm6, %v6163_v25, %v19388_v34  ;;  %v1594_v34 = vrot.slane %v16202_v58, 1  ;;  %v16240_v10 = vpop.permute.xlu0 %3746  ;;  %v6176_v58 = vrot.slane %v6147_v61, 4  ;;  %v1248_v25 = vadd.f32 %v1220_v38, %v15956_v21  ;;  %v19400_v61 = vld [vmem:[#allocation91_spill] sm:$0xff]  ;;  %v19401_v31 = vld [vmem:[#allocation157_spill] sm:$0xff] }
 0x530   : > { %19393 = vst [vmem:[#allocation37_spill] sm:$0xff] %v16240_v10  ;;  %6190 = vrot.lane.b32.xlu1 %v6167_v7, %s11290_s29  ;;  %v1354_v55 = vsel %vm385_vm5, %v19395_v63, %v19394_v12  ;;  %v6178_v10 = vrot.slane %v6148_v8, 4  ;;  %v19396_v7 = vld [vmem:[#allocation86_spill] sm:$0xff]  ;;  %v1249_v27 = vadd.f32 %v1221_v5, %v15970_v16  ;;  %v1355_v21 = vsel %vm385_vm5, %v19394_v12, %v19398_v51  ;;  %v19403_v16 = vld [vmem:[#allocation65_spill] sm:$0xff]  ;;  %v19404_v5 = vld [vmem:[#allocation80_spill] sm:$0xff] }
 0x531   : > { %6192 = vrot.lane.b32.xlu0 %v6169_v43, %s11290_s29  ;;  %v1252_v56 = vadd.f32 %v19396_v7, %v15981_v13  ;;  %v1224_v43 = vsel %vm1014_vm1, %v19396_v7, %v19397_v0  ;;  %v16262_v41 = vpop.permute.xlu1 %3748  ;;  %v1225_v35 = vsel %vm1014_vm1, %v19397_v0, %v19400_v61  ;;  %v19402_v8 = vld [vmem:[#allocation158_spill] sm:$0xff]  ;;  %v1362_v38 = vmul.f32 %v19403_v16, %v19395_v63 }
 0x532   : > { %19399 = vst [vmem:[#allocation39_spill] sm:$0xff] %v16262_v41  ;;  %v1228_v13 = vsel %vm1014_vm1, %v19402_v8, %v19401_v31  ;;  %v1229_v7 = vsel %vm1014_vm1, %v19401_v31, %v19404_v5  ;;  %v1367_v12 = vmul.f32 %v19383_v57, %v19395_v63  ;;  %v19406_v51 = vld [vmem:[#allocation26_spill] sm:$0xff]  ;;  %v1368_v61 = vmul.f32 %v19386_v4, %v1354_v55  ;;  %v19409_v5 = vld [vmem:[#allocation27_spill] sm:$0xff] }
 0x533   : > { %v16275_v20 = vpop.permute.xlu0 %4501  ;;  %v1363_v0 = vmul.f32 %v19406_v51, %v1354_v55  ;;  %v19407_v41 = vrot.slane %v16122_v42, 4  ;;  %v1372_v31 = vmul.f32 %v19408_v6, %v19395_v63  ;;  %v6179_v3 = vsel %vm5485_vm6, %v6170_v14, %v6178_v10 }
 0x534   : > { %19405 = vst [vmem:[#allocation48_spill] sm:$0xff] %v16275_v20  ;;  %6194 = vrot.lane.b32.xlu1 %v6171_v11, %s11290_s29  ;;  %v1364_v20 = vmul.f32 %v19409_v5, %v1355_v21  ;;  %v1373_v11 = vmul.f32 %v19410_v24, %v1354_v55  ;;  %v1253_v17 = vadd.f32 %v1224_v43, %v16019_v18  ;;  %v19415_v18 = vld [vmem:[#allocation15_spill] sm:$0xff] }
 0x535   : > { %6198 = vrot.lane.b32.xlu0 %v6175_v40, %s11290_s29  ;;  %v6177_v16 = vsel %vm5485_vm6, %v19407_v41, %v6176_v58  ;;  %v1254_v51 = vadd.f32 %v1225_v35, %v16073_v47  ;;  %v1369_v2 = vmul.f32 %v19411_v37, %v1355_v21  ;;  %v19412_v40 = vld [vmem:[#allocation81_spill] sm:$0xff]  ;;  %v16295_v42 = vpop.permute.xlu1 %4503  ;;  %v1257_v58 = vadd.f32 %v19402_v8, %v16077_v29 }
 0x536   : > { %v1374_v36 = vmul.f32 %v19412_v40, %v1355_v21  ;;  %19413 = vst [vmem:[#allocation49_spill] sm:$0xff] %v16295_v42  ;;  %v1258_v6 = vadd.f32 %v1228_v13, %v16129_v1  ;;  %v1259_v63 = vadd.f32 %v1229_v7, %v16142_v9  ;;  %v11058_v47 = vld [vmem:[%s18189_s1 + $0xc7] ss:$8 sm:$0xf]  ;;  %v1378_v10 = vadd.f32 %v1363_v0, %v1248_v25 }
 0x537   : > { %v16301_v24 = vpop.permute.xlu0 %4505  ;;  %v6435_v14 = vrot.slane %v11058_v47, %v19415_v18  ;;  %v1383_v55 = vadd.f32 %v1368_v61, %v1253_v17  ;;  %v1382_v43 = vadd.f32 %v1367_v12, %v1252_v56  ;;  %v1377_v21 = vadd.f32 %v1362_v38, %v1247_v50  ;;  %v19423_v50 = vld [vmem:[#allocation97_spill] sm:$0xff]  ;;  %v19424_v61 = vld [vmem:[#allocation154_spill] sm:$0xff] }
 0x538   : > { %19414 = vst [vmem:[#allocation50_spill] sm:$0xff] %v16301_v24  ;;  %6200 = vrot.lane.b32.xlu1 %v6177_v16, %s11290_s29  ;;  %v1379_v29 = vadd.f32 %v1364_v20, %v1249_v27  ;;  %v1388_v1 = vadd.f32 %v1373_v11, %v1258_v6  ;;  %v19416_v9 = vrot.slane %v16178_v30, 1  ;;  %v19417_v41 = vrot.slane %v16167_v45, 1  ;;  %v19432_v6 = vld [vmem:[#allocation128_spill] sm:$0xff] }
 0x539   : > { %6202 = vrot.lane.b32.xlu0 %v6179_v3, %s11290_s29  ;;  %v1387_v8 = vadd.f32 %v1372_v31, %v1257_v58  ;;  %v1384_v13 = vadd.f32 %v1369_v2, %v1254_v51  ;;  %v1389_v5 = vadd.f32 %v1374_v36, %v1259_v63  ;;  %v19418_v7 = vrot.slane %v16186_v15, 1  ;;  %v16324_v27 = vpop.permute.xlu1 %4511  ;;  %v19433_v63 = vld [vmem:[#allocation161_spill] sm:$0xff] }
 0x53a   : > { %v1604_v35 = vsel %vm1467_vm2, %v19417_v41, %v19416_v9  ;;  %v19419_v25 = vrot.slane %v16183_v28, 1  ;;  %v19420_v56 = vmov %v19417_v41  ;;  %v19421_v3 = vrot.slane %v16145_v49, 1  ;;  %19422 = vst [vmem:[#allocation36_spill] sm:$0xff] %v16324_v27  ;;  %v19497_v27 = vld [vmem:[#allocation56_spill] sm:$0xff] }
 0x53b   : > { %v1154_v38 = vsel %vm1014_vm1, %v19424_v61, %v19423_v50  ;;  %v19425_v2 = vrot.slane %v16205_v44, 1  ;;  %v19426_v28 = vrot.slane %v16197_v62, 1  ;;  %v19427_v12 = vmov %v19418_v7  ;;  %v16342_v31 = vpop.permute.xlu0 %4513  ;;  %v19445_v61 = vld [vmem:[#allocation29_spill] sm:$0xff] }
 0x53c   : > { %v1593_v17 = vsel %vm1467_vm2, %v19419_v25, %v19418_v7  ;;  %v1590_v20 = vsel %vm1467_vm2, %v19421_v3, %v19420_v56  ;;  %v19428_v49 = vrot.slane %v16213_v19, 1  ;;  %19430 = vst [vmem:[#allocation51_spill] sm:$0xff] %v16342_v31  ;;  %6442 = vrot.lane.b32.xlu1 %v6435_v14, %s11292_s23  ;;  %v16345_v40 = vadd.f32 %v1604_v35, %v1382_v43  ;;  %v19439_v7 = vld [vmem:[#allocation101_spill] sm:$0xff] }
 0x53d   : > { %v1596_v36 = vsel %vm1467_vm2, %v1594_v34, %v19425_v2  ;;  %v1606_v45 = vsel %vm1467_vm2, %v19427_v12, %v19426_v28  ;;  %v19429_v0 = vmov %v19425_v2  ;;  %v1629_v11 = vadd.f32 %v1593_v17, %v1378_v10  ;;  %v16383_v17 = vld [vmem:[#allocation2 + $0x80] sm:$0x3f] }
 0x53e   : > { %v1608_v16 = vsel %vm1467_vm2, %v19429_v0, %v19428_v49  ;;  %v1634_v51 = vadd.f32 %v1606_v45, %v1383_v55  ;;  %v1628_v34 = vadd.f32 %v1590_v20, %v1377_v21  ;;  %v19431_v15 = vrot.slane %v15934_v33, 4  ;;  %v16361_v21 = vpop.permute.xlu1 %4515  ;;  %v19438_v33 = vld [vmem:[#allocation43_spill] sm:$0xff] }
 0x53f   : > { %v1630_v58 = vadd.f32 %v1596_v36, %v1379_v29  ;;  %v1926_v44 = vsel %vm516_vm0, %v19433_v63, %v19432_v6  ;;  %v19434_v47 = vmov %v19426_v28  ;;  %v19435_v41 = vrot.slane %v16178_v30, 1  ;;  %19437 = vst [vmem:[#allocation52_spill] sm:$0xff] %v16361_v21  ;;  %v19441_v30 = vld [vmem:[#allocation111_spill] sm:$0xff]  ;;  %v11061_v28 = vld [vmem:[#allocation2 + $0x88] sm:$0x3f] }
 0x540   : > { %6507 = vrot.lane.b32.xlu0 %v19431_v15, %s11292_s23  ;;  %v1639_v9 = vadd.f32 %v19434_v47, %v1388_v1  ;;  %v1635_v10 = vadd.f32 %v1608_v16, %v1384_v13  ;;  %v19436_v55 = vmov %v19428_v49  ;;  %v16364_v35 = vmul.f32 %v19438_v33, %v1154_v38  ;;  %v19440_v1 = vld [vmem:[#allocation131_spill] sm:$0xff]  ;;  %v16375_v13 = vpop.permute.xlu0 %4521 }
 0x541   : > { %v16357_v14 = vadd.f32 %v19435_v41, %v1387_v8  ;;  %v1640_v43 = vadd.f32 %v19436_v55, %v1389_v5  ;;  %v16367_v29 = vmul.f32 %v15752_v22, %v1154_v38  ;;  %v1927_v62 = vsel %vm516_vm0, %v19432_v6, %v19439_v7  ;;  %19442 = vst [vmem:[#allocation87_spill] sm:$0xff] %v16375_v13  ;;  %v11059_v5 = vld [vmem:[#allocation2 + $0x28] sm:$0xc0]  ;;  %v19444_v20 = vld [vmem:[#allocation95_spill] sm:$0xff]  ;;  %v19452_v55 = vld [vmem:[#allocation17_spill] sm:$0xff] }
 0x542   : > { %v2700_v8 = vsel %vm385_vm5, %v19441_v30, %v19440_v1  ;;  %v19443_v19 = vrot.slane %v15898_v60, 4  ;;  %v16381_v25 = vmul.f32 %v11059_v5, %v19423_v50  ;;  %v16386_v56 = vmul.f32 %v16383_v17, %v1154_v38  ;;  %v19450_v47 = vld [vmem:[#allocation103_spill] sm:$0xff]  ;;  %v19451_v41 = vld [vmem:[#allocation98_spill] sm:$0xff]  ;;  %v19458_v7 = vld [vmem:[#allocation108_spill] sm:$0xff] }
 0x543   : > { %v1953_v3 = vadd.f32 %v1926_v44, %v1629_v11  ;;  %v1930_v2 = vsel %vm516_vm0, %v19445_v61, %v19444_v20  ;;  %v19446_v36 = vrot.slane %v15920_v26, 4  ;;  %v16396_v60 = vmul.f32 %v15675_v39, %v19423_v50  ;;  %v19447_v26 = vld [vmem:[#allocation135_spill] sm:$0xff]  ;;  %v19449_v44 = vld [vmem:[#allocation68_spill] sm:$0xff] }
 0x544   : > { %6509 = vrot.lane.b32.xlu1 %v19443_v19, %s11292_s23  ;;  %v16399_v12 = vmul.f32 %v11061_v28, %v19423_v50  ;;  %v2708_v38 = vmul.f32 %v16180_v53, %v19441_v30  ;;  %v2713_v45 = vmul.f32 %v19383_v57, %v19441_v30  ;;  %v16407_v49 = vmul.f32 %v16194_v46, %v19441_v30  ;;  %v16419_v53 = vpop.permute.xlu1 %4523  ;;  %v11063_v19 = vld [vmem:[#allocation2 + $0x78] sm:$0x7f] }
 0x545   : > { %6511 = vrot.lane.b32.xlu0 %v19446_v36, %s11292_s23  ;;  %v2701_v0 = vsel %vm385_vm5, %v19440_v1, %v19447_v26  ;;  %v16412_v16 = vadd.f32 %v1927_v62, %v1630_v58  ;;  %v2709_v11 = vmul.f32 %v16199_v23, %v2700_v8  ;;  %v2714_v50 = vmul.f32 %v19386_v4, %v2700_v8  ;;  %v16432_v62 = vpop.permute.xlu0 %4525  ;;  %v11062_v1 = vld [vmem:[#allocation2 + $0x18] sm:$0x80] }
 0x546   : > { %v16417_v15 = vmul.f32 %v16210_v54, %v2700_v8  ;;  %19448 = vst [vmem:[#allocation78_spill] sm:$0xff] %v16419_v53  ;;  %v16421_v6 = vadd.f32 %v1930_v2, %v1634_v51  ;;  %v1931_v46 = vsel %vm516_vm0, %v19444_v20, %v19449_v44  ;;  %v1934_v58 = vsel %vm516_vm0, %v19451_v41, %v19450_v47  ;;  %v19454_v54 = vld [vmem:[#allocation156_spill] sm:$0xff]  ;;  %v19455_v20 = vld [vmem:[#allocation106_spill] sm:$0xff]  ;;  %v19459_v44 = vld [vmem:[#allocation153_spill] sm:$0xff] }
 0x547   : > { %v1935_v23 = vsel %vm516_vm0, %v19450_v47, %v19452_v55  ;;  %19453 = vst [vmem:[#allocation130_spill] sm:$0xff] %v16432_v62  ;;  %v1925_v51 = vsel %vm516_vm0, %v19454_v54, %v19433_v63  ;;  %v2710_v30 = vmul.f32 %v11062_v1, %v2701_v0  ;;  %v2715_v8 = vmul.f32 %v19411_v37, %v2701_v0  ;;  %v19456_v63 = vld [vmem:[#allocation107_spill] sm:$0xff]  ;;  %v11066_v53 = vld [vmem:[#allocation2 + $0x88] sm:$0x7f] }
 0x548   : > { %6517 = vrot.lane.b32.xlu1 %v16024_v59, %s11292_s23  ;;  %v16440_v5 = vmul.f32 %v11063_v19, %v2701_v0  ;;  %v1929_v2 = vsel %vm516_vm0, %v19455_v20, %v19445_v61  ;;  %v2738_v36 = vrot.slane %v2708_v38, 1  ;;  %v2739_v59 = vrot.slane %v2713_v45, 1  ;;  %v16452_v19 = vpop.permute.xlu1 %4499 }
 0x549   : > { %6519 = vrot.lane.b32.xlu0 %v15967_v32, %s11292_s23  ;;  %v18564_v28 = vrot.slane %v16407_v49, 1  ;;  %v1933_v47 = vsel %vm516_vm0, %v19456_v63, %v19451_v41  ;;  %v2741_v54 = vrot.slane %v2709_v11, 1  ;;  %v2742_v1 = vrot.slane %v2714_v50, 1  ;;  %19457 = vst [vmem:[#allocation24_spill] sm:$0xff] %v16452_v19  ;;  %v16457_v38 = vpop.permute.xlu0 %4509  ;;  %v19477_v19 = vld [vmem:[#allocation96_spill] sm:$0xff] }
 0x54a   : > { %v18563_v0 = vrot.slane %v16417_v15, 1  ;;  %v1959_v26 = vadd.f32 %v1931_v46, %v1635_v10  ;;  %v1963_v32 = vadd.f32 %v1934_v58, %v1639_v9  ;;  %v1964_v55 = vadd.f32 %v1935_v23, %v1640_v43  ;;  %19460 = vst [vmem:[#allocation35_spill] sm:$0xff] %v16457_v38  ;;  %v10046_v9 = vld [vmem:[%s18190_s2 + $0x4] sm:$0xf]  ;;  %v19462_v23 = vld [vmem:[#allocation126_spill] sm:$0xff]  ;;  %v19475_v38 = vld [vmem:[#allocation119_spill] sm:$0xff] }
 0x54b   : > { %v2188_v61 = vsel %vm385_vm5, %v19459_v44, %v19458_v7  ;;  %v1952_v45 = vadd.f32 %v1925_v51, %v1628_v34  ;;  %v2744_v41 = vrot.slane %v2710_v30, 1  ;;  %v2745_v11 = vrot.slane %v2715_v8, 1  ;;  %v19463_v51 = vld [vmem:[#allocation160_spill] sm:$0xff] }
 0x54c   : > { %6521 = vrot.lane.b32.xlu1 %v15989_v52, %s11292_s23  ;;  %v18565_v50 = vrot.slane %v16440_v5, 1  ;;  %v1957_v10 = vadd.f32 %v1929_v2, %v16345_v40  ;;  %v1962_v43 = vadd.f32 %v1933_v47, %v16357_v14  ;;  %v16470_v46 = vsel %vm1467_vm2, %v2738_v36, %v2739_v59  ;;  %v16488_v14 = vpop.permute.xlu1 %4519  ;;  %v11064_v2 = vld [vmem:[#allocation2 + $0x28] sm:$0x80] }
 0x54d   : > { %6527 = vrot.lane.b32.xlu0 %v16027_v48, %s11292_s23  ;;  %v16475_v52 = vsel %vm1467_vm2, %v2739_v59, %v18564_v28  ;;  %v2212_v34 = vadd.f32 %v19459_v44, %v1952_v45  ;;  %v16478_v58 = vadd.f32 %v2188_v61, %v1953_v3  ;;  %v16481_v48 = vsel %vm1467_vm2, %v2741_v54, %v2742_v1  ;;  %v16493_v8 = vpop.permute.xlu0 %5309  ;;  %v19465_v44 = vld [vmem:[#allocation92_spill] sm:$0xff]  ;;  %v19466_v3 = vld [vmem:[#allocation14_spill] sm:$0xff]  ;;  %v19467_v54 = vld [vmem:[#allocation89_spill] sm:$0xff] }
 0x54e   : > { %v16486_v40 = vsel %vm1467_vm2, %v2742_v1, %v18563_v0  ;;  %19461 = vst [vmem:[#allocation145_spill] sm:$0xff] %v16488_v14  ;;  %v2420_v30 = vsel %vm1014_vm1, %v19463_v51, %v19462_v23  ;;  %19464 = vst [vmem:[#allocation90_spill] sm:$0xff] %v16493_v8  ;;  %v8265_v20 = vrot.slane %v10046_v9, %v19466_v3  ;;  %v19468_v1 = vld [vmem:[#allocation16_spill] sm:$0xff]  ;;  %v19471_v28 = vld [vmem:[#allocation114_spill] sm:$0xff] }
 0x54f   : > { %v2430_v36 = vmul.f32 %v11064_v2, %v19462_v23  ;;  %v16501_v59 = vmul.f32 %v15675_v39, %v19462_v23  ;;  %v16504_v63 = vsel %vm1467_vm2, %v2744_v41, %v2745_v11  ;;  %v16509_v47 = vsel %vm1467_vm2, %v2745_v11, %v18565_v50  ;;  %v11065_v45 = vld [vmem:[%s18189_s1 + $0x82] ss:$8 sm:$0xf] }
 0x550   : > { %6529 = vrot.lane.b32.xlu1 %v19465_v44, %s11292_s23  ;;  %v8269_v61 = vrot.slane %v10046_v9, %v19468_v1  ;;  %v892_v51 = vrot.slane %v11065_v45, %v19415_v18  ;;  %v19469_v44 = vld [vmem:[#allocation118_spill] sm:$0xff]  ;;  %v19470_v41 = vld [vmem:[#allocation112_spill] sm:$0xff]  ;;  %v19472_v50 = vld [vmem:[#allocation123_spill] sm:$0xff]  ;;  %v16534_v45 = vpop.permute.xlu1 %5311 }
 0x551   : > { %6531 = vrot.lane.b32.xlu0 %v19467_v54, %s11292_s23  ;;  %v2217_v2 = vadd.f32 %v19469_v44, %v1957_v10  ;;  %v2189_v0 = vsel %vm385_vm5, %v19458_v7, %v19470_v41  ;;  %v2191_v11 = vsel %vm385_vm5, %v19469_v44, %v19471_v28  ;;  %v2192_v54 = vsel %vm385_vm5, %v19471_v28, %v19472_v50  ;;  %v19473_v1 = vld [vmem:[#allocation113_spill] sm:$0xff]  ;;  %v16542_v44 = vpop.permute.xlu0 %5313 }
 0x552   : > { %v19474_v3 = vld [vmem:[#allocation117_spill] sm:$0xff]  ;;  %v2195_v10 = vsel %vm385_vm5, %v19473_v1, %v19475_v38  ;;  %19476 = vst [vmem:[#allocation88_spill] sm:$0xff] %v16534_v45  ;;  %v16537_v7 = vmul.f32 %v19477_v19, %v2420_v30  ;;  %v16540_v41 = vmul.f32 %v15752_v22, %v2420_v30  ;;  %19478 = vst [vmem:[#allocation64_spill] sm:$0xff] %v16542_v44  ;;  %v2468_v62 = vrot.slane %v2430_v36, 1  ;;  %v19480_v36 = vld [vmem:[#allocation120_spill] sm:$0xff] }
 0x553   : > { %v2194_v14 = vsel %vm385_vm5, %v19474_v3, %v19473_v1  ;;  %v19479_v28 = vld [vmem:[#allocation13_spill] sm:$0xff]  ;;  %v16548_v1 = vmul.f32 %v11066_v53, %v19462_v23  ;;  %v2214_v38 = vadd.f32 %v2189_v0, %v16412_v16  ;;  %v2218_v21 = vadd.f32 %v2191_v11, %v16421_v6  ;;  %v19483_v6 = vld [vmem:[#allocation83_spill] sm:$0xff] }
 0x554   : > { %8278 = vrot.lane.b32.xlu1 %v8265_v20, %s11290_s29  ;;  %v8273_v50 = vrot.slane %v10046_v9, %v19479_v28  ;;  %v2219_v8 = vadd.f32 %v2192_v54, %v1959_v26  ;;  %v900_v44 = vmul.f32 %v19438_v33, %v892_v51  ;;  %v2222_v20 = vadd.f32 %v19474_v3, %v1962_v43  ;;  %v19481_v28 = vld [vmem:[#allocation75_spill] sm:$0xff]  ;;  %v16560_v23 = vpop.permute.xlu1 %4768  ;;  %v19484_v33 = vld [vmem:[#allocation125_spill] sm:$0xff]  ;;  %v19490_v54 = vld [vmem:[#allocation142_spill] sm:$0xff] }
 0x555   : > { %8280 = vrot.lane.b32.xlu0 %v8269_v61, %s11290_s29  ;;  %v2223_v45 = vadd.f32 %v2194_v14, %v1963_v32  ;;  %v2224_v9 = vadd.f32 %v2195_v10, %v1964_v55  ;;  %v2926_v13 = vsel %vm385_vm5, %v19481_v28, %v19480_v36  ;;  %v2934_v53 = vmul.f32 %v15675_v39, %v19481_v28  ;;  %v16570_v32 = vpop.permute.xlu0 %4770  ;;  %v19488_v61 = vld [vmem:[#allocation138_spill] sm:$0xff] }
 0x556   : > { %19482 = vst [vmem:[#allocation86_spill] sm:$0xff] %v16560_v23  ;;  %v2465_v16 = vrot.slane %v16537_v7, 1  ;;  %v2466_v26 = vrot.slane %v16540_v41, 1  ;;  %v16565_v0 = vmul.f32 %v19483_v6, %v2420_v30  ;;  %v2927_v55 = vsel %vm385_vm5, %v19480_v36, %v19484_v33  ;;  %19485 = vst [vmem:[#allocation149_spill] sm:$0xff] %v16570_v32  ;;  %v19489_v41 = vld [vmem:[#allocation137_spill] sm:$0xff]  ;;  %v19491_v7 = vld [vmem:[#allocation63_spill] sm:$0xff] }
 0x557   : > { %v904_v43 = vmul.f32 %v15752_v22, %v892_v51  ;;  %v19486_v39 = vrot.slane %v16501_v59, 1  ;;  %v2935_v30 = vmul.f32 %v19383_v57, %v2926_v13  ;;  %v2511_v11 = vsel %vm1014_vm1, %v19489_v41, %v19488_v61  ;;  %v19492_v36 = vld [vmem:[#allocation53_spill] sm:$0xff]  ;;  %v19494_v33 = vld [vmem:[#allocation144_spill] sm:$0xff] }
 0x558   : > { %8282 = vrot.lane.b32.xlu1 %v8273_v50, %s11290_s29  ;;  %v2512_v10 = vsel %vm1014_vm1, %v19488_v61, %v19490_v54  ;;  %v908_v50 = vmul.f32 %v16383_v17, %v892_v51  ;;  %v16590_v28 = vmul.f32 %v19491_v7, %v2926_v13  ;;  %v2516_v23 = vsel %vm1014_vm1, %v19492_v36, %v19494_v33  ;;  %v19495_v61 = vld [vmem:[#allocation61_spill] sm:$0xff]  ;;  %v19498_v13 = vld [vmem:[#allocation136_spill] sm:$0xff]  ;;  %v16607_v51 = vpop.permute.xlu1 %4772 }
 0x559   : > { %v16577_v14 = vsel %vm1467_vm2, %v2468_v62, %v19486_v39  ;;  %927 = vrot.lane.b32.xlu0 %v900_v44, %s11290_s29  ;;  %v2538_v62 = vadd.f32 %v19489_v41, %v2212_v34  ;;  %v19493_v39 = vld [vmem:[#allocation148_spill] sm:$0xff]  ;;  %v2936_v32 = vmul.f32 %v19386_v4, %v2927_v55  ;;  %v2941_v54 = vmul.f32 %v19495_v61, %v2927_v55  ;;  %v19496_v44 = vld [vmem:[#allocation59_spill] sm:$0xff] }
 0x55a   : > { %19487 = vst [vmem:[#allocation157_spill] sm:$0xff] %v16577_v14  ;;  %v2515_v3 = vsel %vm1014_vm1, %v19493_v39, %v19492_v36  ;;  %v2519_v17 = vsel %vm1014_vm1, %v19497_v27, %v19496_v44  ;;  %v2520_v34 = vsel %vm1014_vm1, %v19496_v44, %v19498_v13  ;;  %19499 = vst [vmem:[#allocation158_spill] sm:$0xff] %v16607_v51  ;;  %v16611_v36 = vpop.permute.xlu0 %4776  ;;  %v11067_v55 = vld [vmem:[%s18189_s1 + $0x85] ss:$8 sm:$0xf]  ;;  %v2954_v42 = vrot.slane %v2934_v53, 2 }
 0x55b   : > { %v2539_v41 = vadd.f32 %v2511_v11, %v16478_v58  ;;  %v2540_v31 = vadd.f32 %v2512_v10, %v2214_v38  ;;  %v2543_v24 = vadd.f32 %v19493_v39, %v2217_v2  ;;  %19500 = vst [vmem:[#allocation65_spill] sm:$0xff] %v16611_v36  ;;  %v1541_v33 = vrot.slane %v11067_v55, %v19415_v18 }
 0x55c   : > { %935 = vrot.lane.b32.xlu1 %v904_v43, %s11290_s29  ;;  %v2544_v14 = vadd.f32 %v2515_v3, %v2218_v21  ;;  %v2548_v44 = vadd.f32 %v19497_v27, %v2222_v20  ;;  %v2545_v13 = vadd.f32 %v2516_v23, %v2219_v8  ;;  %v2955_v38 = vrot.slane %v2935_v30, 2  ;;  %v16622_v36 = vpop.permute.xlu1 %4778 }
 0x55d   : > { %943 = vrot.lane.b32.xlu0 %v908_v50, %s11290_s29  ;;  %v2961_v58 = vrot.slane %v16590_v28, 2  ;;  %v2549_v2 = vadd.f32 %v2519_v17, %v2223_v45  ;;  %v2550_v11 = vadd.f32 %v2520_v34, %v2224_v9  ;;  %v2778_v43 = vadd.f32 %v16470_v46, %v2538_v62  ;;  %19501 = vst [vmem:[#allocation26_spill] sm:$0xff] %v16622_v36  ;;  %v11068_v50 = vld [vmem:[%s18189_s1 + $0x87] ss:$8 sm:$0xf] }
 0x55e   : > { %v2956_v10 = vrot.slane %v2936_v32, 2  ;;  %v2963_v39 = vrot.slane %v2941_v54, 2  ;;  %v18580_v55 = vrot.slane %v16565_v0, 1  ;;  %v2779_v21 = vadd.f32 %v16481_v48, %v2539_v41  ;;  %v16628_v20 = vpop.permute.xlu0 %4780  ;;  %v19512_v41 = vld [vmem:[#allocation133_spill] sm:$0xff] }
 0x55f   : > { %v2780_v27 = vadd.f32 %v16504_v63, %v2540_v31  ;;  %v2783_v8 = vadd.f32 %v16475_v52, %v2543_v24  ;;  %19502 = vst [vmem:[#allocation25_spill] sm:$0xff] %v16628_v20  ;;  %v16632_v45 = vsel %vm1467_vm2, %v2465_v16, %v2466_v26  ;;  %v2784_v46 = vadd.f32 %v16486_v40, %v2544_v14 }
 0x560   : > { %1548 = vrot.lane.b32.xlu1 %v1541_v33, %s11290_s29  ;;  %v19503_v9 = vrot.slane %v16407_v49, 1  ;;  %v2785_v23 = vadd.f32 %v16509_v47, %v2545_v13  ;;  %v19504_v31 = vrot.slane %v16417_v15, 1  ;;  %v19505_v52 = vrot.slane %v16440_v5, 1  ;;  %v19508_v33 = vld [vmem:[#allocation141_spill] sm:$0xff]  ;;  %v19509_v47 = vld [vmem:[#allocation76_spill] sm:$0xff]  ;;  %v16658_v14 = vpop.permute.xlu1 %4784 }
 0x561   : > { %1196 = vrot.lane.b32.xlu0 %v16364_v35, %s11292_s23  ;;  %v2962_v63 = vsel %vm2853_vm3, %v2955_v38, %v2961_v58  ;;  %v19506_v16 = vrot.slane %v16548_v1, 1  ;;  %v19507_v40 = vrot.slane %v16501_v59, 1  ;;  %v3242_v32 = vsel %vm516_vm0, %v19509_v47, %v19508_v33  ;;  %19510 = vst [vmem:[#allocation27_spill] sm:$0xff] %v16658_v14  ;;  %v19556_v14 = vld [vmem:[#allocation151_spill] sm:$0xff] }
 0x562   : > { %v2788_v53 = vadd.f32 %v19503_v9, %v2548_v44  ;;  %v2789_v24 = vadd.f32 %v19504_v31, %v2549_v2  ;;  %v2790_v48 = vadd.f32 %v19505_v52, %v2550_v11  ;;  %v2964_v35 = vsel %vm2853_vm3, %v2956_v10, %v2963_v39  ;;  %v16667_v54 = vpop.permute.xlu0 %4786  ;;  %v19513_v11 = vld [vmem:[#allocation124_spill] sm:$0xff]  ;;  %v19519_v9 = vld [vmem:[#allocation77_spill] sm:$0xff] }
 0x563   : > { %v16650_v49 = vsel %vm1467_vm2, %v19507_v40, %v19506_v16  ;;  %v16656_v15 = vadd.f32 %v2954_v42, %v2778_v43  ;;  %v16663_v5 = vsel %vm1467_vm2, %v2466_v26, %v18580_v55  ;;  %v2985_v3 = vadd.f32 %v2955_v38, %v2779_v21  ;;  %19511 = vst [vmem:[#allocation71_spill] sm:$0xff] %v16667_v54  ;;  %v11069_v26 = vld [vmem:[%s18189_s1 + $0x84] ss:$8 sm:$0xf] }
 0x564   : > { %v2986_v59 = vadd.f32 %v2956_v10, %v2780_v27  ;;  %v16665_v30 = vadd.f32 %v2954_v42, %v2783_v8  ;;  %1198 = vrot.lane.b32.xlu1 %v16381_v25, %s11292_s23  ;;  %v2115_v28 = vrot.slane %v11068_v50, %v19415_v18  ;;  %v2990_v62 = vadd.f32 %v2962_v63, %v2784_v46  ;;  %v19515_v10 = vld [vmem:[#allocation127_spill] sm:$0xff]  ;;  %v19516_v21 = vld [vmem:[#allocation18_spill] sm:$0xff]  ;;  %v19518_v46 = vld [vmem:[#allocation72_spill] sm:$0xff] }
 0x565   : > { %v2991_v17 = vadd.f32 %v2964_v35, %v2785_v23  ;;  %v16675_v13 = vadd.f32 %v2954_v42, %v2788_v53  ;;  %1206 = vrot.lane.b32.xlu0 %v16367_v29, %s11292_s23  ;;  %v1345_v34 = vrot.slane %v11069_v26, %v19415_v18  ;;  %v16683_v25 = vadd.f32 %v3242_v32, %v2985_v3  ;;  %v19514_v42 = vld [vmem:[#allocation134_spill] sm:$0xff]  ;;  %v19517_v27 = vld [vmem:[#allocation19_spill] sm:$0xff]  ;;  %v16700_v23 = vpop.permute.xlu1 %4788 }
 0x566   : > { %v3243_v44 = vsel %vm516_vm0, %v19508_v33, %v19512_v41  ;;  %v2995_v38 = vadd.f32 %v2961_v58, %v2789_v24  ;;  %v2996_v2 = vadd.f32 %v2963_v39, %v2790_v48  ;;  %v3246_v43 = vsel %vm516_vm0, %v19514_v42, %v19513_v11  ;;  %19520 = vst [vmem:[#allocation60_spill] sm:$0xff] %v16700_v23  ;;  %v19521_v58 = vld [vmem:[#allocation82_spill] sm:$0xff]  ;;  %v16705_v31 = vpop.permute.xlu0 %5033 }
 0x567   : > { %v3247_v29 = vsel %vm516_vm0, %v19513_v11, %v19515_v10  ;;  %v3250_v8 = vsel %vm516_vm0, %v19517_v27, %v19516_v21  ;;  %v3923_v53 = vsel %vm385_vm5, %v19519_v9, %v19518_v46  ;;  %v3924_v39 = vsel %vm385_vm5, %v19518_v46, %v19521_v58  ;;  %v19548_v58 = vld [vmem:[#allocation57_spill] sm:$0xff] }
 0x568   : > { %1208 = vrot.lane.b32.xlu1 %v16396_v60, %s11292_s23  ;;  %v2127_v24 = vmul.f32 %v15752_v22, %v2115_v28  ;;  %v16711_v52 = vmul.f32 %v19483_v6, %v2115_v28  ;;  %v2123_v48 = vmul.f32 %v19477_v19, %v2115_v28  ;;  %v3270_v63 = vadd.f32 %v3243_v44, %v2986_v59  ;;  %v16727_v22 = vld [vmem:[%s18189_s1 + $0xa1] ss:$8 sm:$0xf] }
 0x569   : > { %v16716_v16 = vmul.f32 %v19383_v57, %v19519_v9  ;;  %v16720_v40 = vmul.f32 %v19491_v7, %v19519_v9  ;;  %1216 = vrot.lane.b32.xlu0 %v16386_v56, %s11292_s23  ;;  %v3274_v19 = vadd.f32 %v3246_v43, %v2990_v62  ;;  %v16731_v6 = vadd.f32 %v3247_v29, %v2991_v17  ;;  %v19522_v56 = vld [vmem:[#allocation31_spill] sm:$0xff]  ;;  %v19523_v59 = vld [vmem:[#allocation34_spill] sm:$0xff]  ;;  %v16750_v28 = vpop.permute.xlu1 %5560 }
 0x56a   : > { %v16734_v57 = vmul.f32 %v19386_v4, %v3923_v53  ;;  %v16737_v33 = vmul.f32 %v19495_v61, %v3923_v53  ;;  %v16739_v32 = vadd.f32 %v3250_v8, %v2995_v38  ;;  %v3251_v35 = vsel %vm516_vm0, %v19516_v21, %v19522_v56  ;;  %19524 = vst [vmem:[#allocation81_spill] sm:$0xff] %v16750_v28  ;;  %v19525_v4 = vld [vmem:[#allocation40_spill] sm:$0xff]  ;;  %v16755_v17 = vpop.permute.xlu0 %5562  ;;  %v19528_v21 = vld [vmem:[#allocation41_spill] sm:$0xff] }
 0x56b   : > { %v16745_v3 = vmul.f32 %v19411_v37, %v3924_v39  ;;  %v16748_v50 = vmul.f32 %v19523_v59, %v3924_v39  ;;  %v3241_v62 = vsel %vm516_vm0, %v19525_v4, %v19509_v47  ;;  %19526 = vst [vmem:[#allocation15_spill] sm:$0xff] %v16755_v17  ;;  %v2154_v26 = vrot.slane %v2127_v24, 1  ;;  %v19527_v37 = vld [vmem:[#allocation30_spill] sm:$0xff]  ;;  %v19531_v4 = vld [vmem:[#allocation99_spill] sm:$0xff]  ;;  %v19537_v24 = vld [vmem:[#allocation140_spill] sm:$0xff] }
 0x56c   : > { %1218 = vrot.lane.b32.xlu1 %v16399_v12, %s11292_s23  ;;  %v18581_v44 = vrot.slane %v16711_v52, 1  ;;  %v2153_v38 = vrot.slane %v2123_v48, 1  ;;  %v3245_v11 = vsel %vm516_vm0, %v19527_v37, %v19514_v42  ;;  %v18586_v43 = vrot.slane %v16716_v16, 2  ;;  %v16769_v47 = vld [vmem:[%s18189_s1 + $0xa2] ss:$8 sm:$0xf] }
 0x56d   : > { %v18582_v29 = vrot.slane %v16720_v40, 2  ;;  %1352 = vrot.lane.b32.xlu0 %v1345_v34, %s11290_s29  ;;  %v3249_v8 = vsel %vm516_vm0, %v19528_v21, %v19517_v27  ;;  %v18584_v42 = vrot.slane %v16734_v57, 2  ;;  %v18583_v46 = vrot.slane %v16737_v33, 2  ;;  %v11072_v34 = vld [vmem:[%s18189_s1 + $0xa4] ss:$8 sm:$0xf]  ;;  %v16787_v59 = vpop.permute.xlu1 %5564 }
 0x56e   : > { %v3415_v9 = vrot.slane %v11072_v34, %v19415_v18  ;;  %v3268_v53 = vadd.f32 %v3241_v62, %v16656_v15  ;;  %v16783_v39 = vadd.f32 %v3251_v35, %v2996_v2  ;;  %v18585_v48 = vrot.slane %v16748_v50, 2  ;;  %19529 = vst [vmem:[#allocation97_spill] sm:$0xff] %v16787_v59  ;;  %v19530_v27 = vld [vmem:[#allocation104_spill] sm:$0xff]  ;;  %v19532_v21 = vld [vmem:[#allocation110_spill] sm:$0xff]  ;;  %v16795_v12 = vpop.permute.xlu0 %5098 }
 0x56f   : > { %v3472_v37 = vsel %vm385_vm5, %v19531_v4, %v19530_v27  ;;  %v3473_v55 = vsel %vm385_vm5, %v19530_v27, %v19532_v21  ;;  %19533 = vst [vmem:[#allocation154_spill] sm:$0xff] %v16795_v12  ;;  %v19534_v15 = vld [vmem:[#allocation58_spill] sm:$0xff]  ;;  %v2163_v2 = vsel %vm1467_vm2, %v2154_v26, %v18581_v44  ;;  %v2155_v35 = vsel %vm1467_vm2, %v2153_v38, %v2154_v26 }
 0x570   : > { %1903 = vrot.lane.b32.xlu1 %v19534_v15, %s11291_s19  ;;  %v3278_v62 = vadd.f32 %v3249_v8, %v16675_v13  ;;  %v3273_v34 = vadd.f32 %v3245_v11, %v16665_v30  ;;  %v16806_v60 = vadd.f32 %v19531_v4, %v3268_v53  ;;  %v16813_v27 = vsel %vm2853_vm3, %v18586_v43, %v18582_v29  ;;  %v19535_v15 = vld [vmem:[#allocation84_spill] sm:$0xff]  ;;  %v19536_v44 = vld [vmem:[#allocation62_spill] sm:$0xff]  ;;  %v11073_v13 = vld [vmem:[#allocation2 + $0x50] sm:$0xff] }
 0x571   : > { %1913 = vrot.lane.b32.xlu0 %v19535_v15, %s11291_s19  ;;  %v3475_v26 = vsel %vm385_vm5, %v19537_v24, %v19536_v44  ;;  %v16825_v30 = vsel %vm2853_vm3, %v18584_v42, %v18583_v46  ;;  %v16827_v38 = vmul.f32 %v11073_v13, %v3415_v9  ;;  %v19538_v11 = vld [vmem:[#allocation116_spill] sm:$0xff]  ;;  %v16833_v53 = vadd.f32 %v3472_v37, %v16683_v25  ;;  %v16844_v46 = vpop.permute.xlu1 %5100  ;;  %v16856_v37 = vld [vmem:[#allocation2 + $0x10] sm:$0xff] }
 0x572   : > { %v16830_v8 = vmul.f32 %v19538_v11, %v3415_v9  ;;  %v16835_v4 = vadd.f32 %v3473_v55, %v3270_v63  ;;  %v19539_v15 = vrot.slane %v16745_v3, 2  ;;  %19540 = vst [vmem:[#allocation128_spill] sm:$0xff] %v16844_v46  ;;  %v16849_v42 = vld [vmem:[%s18189_s1 + $0xa6] ss:$8 sm:$0xf]  ;;  %19542 = vst [vmem:[#allocation161_spill] sm:$0xff] %v16856_v37  ;;  %v16867_v56 = vpop.permute.xlu0 %5102  ;;  %v16875_v10 = vadd.f32 %v3475_v26, %v3274_v19 }
 0x573   : > { %v11075_v9 = vld [vmem:[#allocation2 + $0x30] sm:$0xfe]  ;;  %v19541_v55 = vld [vmem:[#allocation73_spill] sm:$0xff]  ;;  %19545 = vst [vmem:[#allocation43_spill] sm:$0xff] %v16867_v56  ;;  %v19546_v25 = vld [vmem:[#allocation28_spill] sm:$0xff]  ;;  %v16878_v12 = vadd.f32 %v19548_v58, %v3278_v62 }
 0x574   : > { %v16842_v29 = vsel %vm2853_vm3, %v19539_v15, %v18585_v48  ;;  %v16854_v63 = vmul.f32 %v11075_v9, %v19541_v55  ;;  %v16860_v11 = vmul.f32 %v16856_v37, %v19541_v55  ;;  %v19543_v15 = vld [vmem:[#allocation159_spill] sm:$0xff]  ;;  %v19544_v48 = vld [vmem:[#allocation69_spill] sm:$0xff]  ;;  %v19547_v41 = vrot.slane %v19546_v25, 1  ;;  %v19549_v46 = vld [vmem:[#allocation150_spill] sm:$0xff] }
 0x575   : > { %v3683_v43 = vsel %vm1014_vm1, %v19544_v48, %v19543_v15  ;;  %v3693_v21 = vmul.f32 %v16856_v37, %v19543_v15  ;;  %v16873_v9 = vadd.f32 %v19537_v24, %v3273_v34  ;;  %v3476_v48 = vsel %vm385_vm5, %v19536_v44, %v19549_v46  ;;  %v19551_v56 = vld [vmem:[#allocation146_spill] sm:$0xff]  ;;  %v19552_v24 = vld [vmem:[#allocation105_spill] sm:$0xff]  ;;  %v19553_v26 = vld [vmem:[#allocation155_spill] sm:$0xff]  ;;  %v16906_v59 = vpop.permute.xlu1 %5108 }
 0x576   : > { %1923 = vrot.lane.b32.xlu1 %v19547_v41, %s11291_s19  ;;  %v19550_v15 = vrot.slane %v16727_v22, %v19415_v18  ;;  %v3478_v41 = vsel %vm385_vm5, %v19548_v58, %v19551_v56  ;;  %v4154_v19 = vsel %vm385_vm5, %v19541_v55, %v19552_v24  ;;  %v3479_v44 = vsel %vm385_vm5, %v19551_v56, %v19553_v26  ;;  %v11077_v25 = vld [vmem:[#allocation2 + $0x90] sm:$0x1]  ;;  %v16901_v46 = vld [vmem:[#allocation2 + $0x80] sm:$0xff] }
 0x577   : > { %v4172_v22 = vmul.f32 %v11077_v25, %v19541_v55  ;;  %v16904_v58 = vmul.f32 %v16901_v46, %v3683_v43  ;;  %19554 = vst [vmem:[#allocation131_spill] sm:$0xff] %v16906_v59  ;;  %v4197_v34 = vrot.slane %v16860_v11, 3  ;;  %v16910_v23 = vrot.slane %v3693_v21, 2  ;;  %v16915_v55 = vpop.permute.xlu0 %5110  ;;  %v16926_v21 = vld [vmem:[%s18189_s1 + $0xa7] ss:$8 sm:$0xf] }
 0x578   : > { %2698 = vrot.lane.b32.xlu0 %v19550_v15, %s11290_s29  ;;  %v16899_v15 = vmul.f32 %v11073_v13, %v3683_v43  ;;  %v4155_v56 = vsel %vm385_vm5, %v19552_v24, %v19556_v14  ;;  %19557 = vst [vmem:[#allocation95_spill] sm:$0xff] %v16915_v55  ;;  %v3503_v13 = vadd.f32 %v3476_v48, %v16731_v6  ;;  %v11079_v43 = vld [vmem:[#allocation2 + $0x38] sm:$0xfe]  ;;  %v11081_v6 = vld [vmem:[#allocation2 + $0x98] sm:$0x1]  ;;  %v19564_v14 = vld [vmem:[#allocation42_spill] sm:$0xff] }
 0x579   : > { %19555 = vst [vmem:[#allocation111_spill] sm:$0xff] %v16910_v23  ;;  %v16919_v25 = vmul.f32 %v11079_v43, %v4154_v19  ;;  %v4168_v26 = vmul.f32 %v19491_v7, %v4154_v19  ;;  %v3507_v24 = vadd.f32 %v3478_v41, %v16739_v32  ;;  %v4173_v48 = vmul.f32 %v11081_v6, %v4154_v19  ;;  %v11082_v55 = vld [vmem:[#allocation2 + $0x40] sm:$0xfe]  ;;  %v16943_v32 = vpop.permute.xlu1 %5112  ;;  %v11083_v41 = vld [vmem:[#allocation2 + $0xa0] sm:$0x1]  ;;  %v19565_v59 = vld [vmem:[#allocation139_spill] sm:$0xff] }
 0x57a   : > { %2170 = vrot.lane.b32.xlu1 %v2155_v35, %s11290_s29  ;;  %v3508_v35 = vadd.f32 %v3479_v44, %v16783_v39  ;;  %v19558_v43 = vrot.slane %v16830_v8, 2  ;;  %v19559_v7 = vrot.slane %v16827_v38, 2  ;;  %v4207_v62 = vrot.slane %v4172_v22, 3  ;;  %19560 = vst [vmem:[#allocation29_spill] sm:$0xff] %v16943_v32  ;;  %v19566_v32 = vld [vmem:[#allocation152_spill] sm:$0xff] }
 0x57b   : > { %v16941_v11 = vmul.f32 %v11082_v55, %v4155_v56  ;;  %v4169_v39 = vmul.f32 %v19495_v61, %v4155_v56  ;;  %v4174_v19 = vmul.f32 %v11083_v41, %v4155_v56  ;;  %v19561_v44 = vrot.slane %v16854_v63, 3  ;;  %v11084_v23 = vld [vmem:[%s18189_s1 + $0xc1] ss:$8 sm:$0xf] }
 0x57c   : > { %2178 = vrot.lane.b32.xlu0 %v2163_v2, %s11290_s29  ;;  %v16937_v2 = vsel %vm2853_vm3, %v19559_v7, %v19558_v43  ;;  %v16951_v43 = vpop.permute.xlu0 %5118  ;;  %v19563_v22 = vrot.slane %v16711_v52, 1  ;;  %v4193_v55 = vrot.slane %v16919_v25, 3  ;;  %v4199_v7 = vrot.slane %v4168_v26, 3  ;;  %v19569_v52 = vld [vmem:[#allocation23_spill] sm:$0xff]  ;;  %v19570_v25 = vld [vmem:[#allocation46_spill] sm:$0xff] }
 0x57d   : > { %v16949_v6 = vsel %vm4071_vm4, %v19561_v44, %v4197_v34  ;;  %19562 = vst [vmem:[#allocation103_spill] sm:$0xff] %v16951_v43  ;;  %v3754_v61 = vsel %vm1014_vm1, %v19565_v59, %v19564_v14  ;;  %v3755_v56 = vsel %vm1014_vm1, %v19564_v14, %v19566_v32  ;;  %v19567_v41 = vrot.slane %v16769_v47, %v19415_v18  ;;  %v19568_v43 = vld [vmem:[#allocation32_spill] sm:$0xff]  ;;  %v16984_v28 = vpop.permute.xlu1 %5120 }
 0x57e   : > { %2186 = vrot.lane.b32.xlu1 %v19563_v22, %s11290_s29  ;;  %v4209_v44 = vrot.slane %v4173_v48, 3  ;;  %v3758_v22 = vsel %vm1014_vm1, %v19569_v52, %v19568_v43  ;;  %v3759_v26 = vsel %vm1014_vm1, %v19568_v43, %v19570_v25  ;;  %v4719_v14 = vrot.slane %v11084_v23, %v19415_v18  ;;  %v19571_v48 = vld [vmem:[#allocation37_spill] sm:$0xff] }
 0x57f   : > { %v4194_v32 = vrot.slane %v16941_v11, 3  ;;  %v3781_v47 = vadd.f32 %v19565_v59, %v16806_v60  ;;  %v4208_v20 = vsel %vm4071_vm4, %v4197_v34, %v4207_v62  ;;  %v4201_v43 = vrot.slane %v4169_v39, 3  ;;  %v19573_v62 = vld [vmem:[#allocation39_spill] sm:$0xff]  ;;  %v19574_v39 = vld [vmem:[#allocation157_spill] sm:$0xff] }
 0x580   : > { %2924 = vrot.lane.b32.xlu0 %v19567_v41, %s11290_s29  ;;  %v19572_v41 = vld [vmem:[#allocation47_spill] sm:$0xff]  ;;  %v4211_v25 = vrot.slane %v4174_v19, 3  ;;  %v3782_v17 = vadd.f32 %v3754_v61, %v16833_v53  ;;  %v3783_v36 = vadd.f32 %v3755_v56, %v16835_v4  ;;  %v16988_v23 = vpop.permute.xlu0 %5122  ;;  %v3786_v60 = vadd.f32 %v19569_v52, %v16873_v9  ;;  %v19575_v19 = vld [vmem:[#allocation102_spill] sm:$0xff] }
 0x581   : > { %v3762_v54 = vsel %vm1014_vm1, %v19572_v41, %v19571_v48  ;;  %v3787_v59 = vadd.f32 %v3758_v22, %v16875_v10  ;;  %v3788_v11 = vadd.f32 %v3759_v26, %v3503_v13  ;;  %v3763_v34 = vsel %vm1014_vm1, %v19571_v48, %v19573_v62  ;;  %v17010_v52 = vpop.permute.xlu1 %5915  ;;  %v19577_v22 = vld [vmem:[#allocation147_spill] sm:$0xff] }
 0x582   : > { %2487 = vrot.lane.b32.xlu1 %v16632_v45, %s11292_s23  ;;  %v3791_v53 = vadd.f32 %v19572_v41, %v16878_v12  ;;  %v3792_v4 = vadd.f32 %v3762_v54, %v3507_v24  ;;  %v17003_v61 = vmul.f32 %v19575_v19, %v4719_v14  ;;  %v4731_v45 = vmul.f32 %v16901_v46, %v4719_v14 }
 0x583   : > { %v19576_v9 = vrot.slane %v16716_v16, 2  ;;  %v4200_v13 = vsel %vm4071_vm4, %v4193_v55, %v4199_v7  ;;  %v4210_v56 = vsel %vm4071_vm4, %v4199_v7, %v4209_v44  ;;  %v4735_v26 = vmul.f32 %v19577_v22, %v4719_v14 }
 0x584   : > { %2489 = vrot.lane.b32.xlu0 %v19574_v39, %s11292_s23  ;;  %v19578_v48 = vrot.slane %v16734_v57, 2  ;;  %v19579_v54 = vrot.slane %v16745_v3, 2  ;;  %v3793_v41 = vadd.f32 %v3763_v34, %v3508_v35  ;;  %v17017_v39 = vpop.permute.xlu0 %5917  ;;  %v19580_v16 = vrot.slane %v16904_v58, 2 }
 0x585   : > { %v3981_v10 = vadd.f32 %v19576_v9, %v3781_v47  ;;  %v19581_v7 = vrot.slane %v16899_v15, 2  ;;  %v3986_v14 = vadd.f32 %v16813_v27, %v3786_v60  ;;  %v3987_v57 = vadd.f32 %v16825_v30, %v3787_v59 }
 0x586   : > { %v3982_v12 = vadd.f32 %v19578_v48, %v3782_v17  ;;  %v3983_v24 = vadd.f32 %v19579_v54, %v3783_v36  ;;  %2497 = vrot.lane.b32.xlu1 %v16663_v5, %s11292_s23  ;;  %v3988_v3 = vadd.f32 %v16842_v29, %v3788_v11  ;;  %v4202_v36 = vsel %vm4071_vm4, %v4194_v32, %v4201_v43  ;;  %v17044_v29 = vpop.permute.xlu1 %5919 }
 0x587   : > { %v17026_v44 = vsel %vm2853_vm3, %v19581_v7, %v19580_v16  ;;  %v19582_v5 = vrot.slane %v16720_v40, 2  ;;  %v19583_v35 = vrot.slane %v16737_v33, 2  ;;  %v18603_v34 = vrot.slane %v17003_v61, 3 }
 0x588   : > { %2499 = vrot.lane.b32.xlu0 %v16650_v49, %s11292_s23  ;;  %v4758_v19 = vrot.slane %v4731_v45, 3  ;;  %v4212_v27 = vsel %vm4071_vm4, %v4201_v43, %v4211_v25  ;;  %v19584_v30 = vrot.slane %v16854_v63, 3  ;;  %v17049_v49 = vld [vmem:[%s18189_s1 + $0xc3] ss:$8 sm:$0xf]  ;;  %v4766_v33 = vrot.slane %v4735_v26, 3  ;;  %v17058_v45 = vpop.permute.xlu0 %5925 }
 0x589   : > { %v3991_v17 = vadd.f32 %v19582_v5, %v3791_v53  ;;  %v3992_v47 = vadd.f32 %v19583_v35, %v3792_v4  ;;  %v19585_v59 = vrot.slane %v16748_v50, 2  ;;  %v4233_v53 = vadd.f32 %v4193_v55, %v3982_v12  ;;  %v19586_v43 = vld [vmem:[#allocation49_spill] sm:$0xff]  ;;  %v19587_v63 = vld [vmem:[#allocation48_spill] sm:$0xff] }
 0x58a   : > { %v17042_v60 = vadd.f32 %v19584_v30, %v3981_v10  ;;  %v4234_v25 = vadd.f32 %v4194_v32, %v3983_v24  ;;  %v4530_v4 = vsel %vm516_vm0, %v19587_v63, %v19586_v43  ;;  %v19588_v9 = vrot.slane %v16565_v0, 1  ;;  %v19589_v10 = vld [vmem:[#allocation50_spill] sm:$0xff]  ;;  %v19594_v24 = vld [vmem:[#allocation36_spill] sm:$0xff]  ;;  %v17094_v7 = vpop.permute.xlu1 %5927 }
 0x58b   : > { %v3993_v11 = vadd.f32 %v19585_v59, %v3793_v41  ;;  %v4531_v22 = vsel %vm516_vm0, %v19586_v43, %v19589_v10  ;;  %v4238_v26 = vadd.f32 %v4200_v13, %v3987_v57  ;;  %v4239_v48 = vadd.f32 %v4202_v36, %v3988_v3  ;;  %v17082_v13 = vld [vmem:[%s18189_s1 + $0xc4] ss:$8 sm:$0xf] }
 0x58c   : > { %2507 = vrot.lane.b32.xlu1 %v19588_v9, %s11292_s23  ;;  %v17067_v50 = vadd.f32 %v16949_v6, %v3986_v14  ;;  %v19590_v32 = vrot.slane %v16548_v1, 1  ;;  %v4243_v55 = vadd.f32 %v4210_v56, %v3992_v47  ;;  %v17072_v12 = vadd.f32 %v4208_v20, %v3991_v17  ;;  %19592 = vst [vmem:[#allocation156_spill] sm:$0xff] %v17082_v13  ;;  %v19593_v1 = vld [vmem:[#allocation51_spill] sm:$0xff]  ;;  %v19595_v56 = vld [vmem:[#allocation88_spill] sm:$0xff]  ;;  %v19596_v41 = vld [vmem:[#allocation90_spill] sm:$0xff]  ;;  %v17107_v47 = vpop.permute.xlu0 %5929 }
 0x58d   : > { %v17077_v0 = vsel %vm4071_vm4, %v18603_v34, %v4758_v19  ;;  %v17086_v54 = vadd.f32 %v4530_v4, %v4233_v53  ;;  %v4534_v20 = vsel %vm516_vm0, %v19594_v24, %v19593_v1  ;;  %v5317_v16 = vsel %vm385_vm5, %v19596_v41, %v19595_v56  ;;  %v19598_v3 = vld [vmem:[#allocation52_spill] sm:$0xff]  ;;  %v19602_v53 = vld [vmem:[#allocation78_spill] sm:$0xff] }
 0x58e   : > { %2509 = vrot.lane.b32.xlu0 %v19590_v32, %s11292_s23  ;;  %19591 = vst [vmem:[#allocation98_spill] sm:$0xff] %v17077_v0  ;;  %v17097_v14 = vsel %vm4071_vm4, %v4758_v19, %v4766_v33  ;;  %v17099_v57 = vadd.f32 %v4531_v22, %v4234_v25  ;;  %v4535_v36 = vsel %vm516_vm0, %v19593_v1, %v19598_v3  ;;  %v19599_v17 = vld [vmem:[#allocation64_spill] sm:$0xff]  ;;  %v19603_v19 = vld [vmem:[#allocation87_spill] sm:$0xff]  ;;  %v19604_v25 = vld [vmem:[#allocation130_spill] sm:$0xff] }
 0x58f   : > { %19597 = vst [vmem:[#allocation106_spill] sm:$0xff] %v17097_v14  ;;  %v4244_v5 = vadd.f32 %v4212_v27, %v3993_v11  ;;  %v5318_v35 = vsel %vm385_vm5, %v19595_v56, %v19599_v17  ;;  %v19600_v30 = vld [vmem:[#allocation132_spill] sm:$0xff]  ;;  %v4538_v33 = vsel %vm516_vm0, %v19603_v19, %v19602_v53  ;;  %v4539_v43 = vsel %vm516_vm0, %v19602_v53, %v19604_v25  ;;  %v17118_v4 = vld [vmem:[#allocation2 + $0x68] sm:$0xff]  ;;  %v11090_v53 = vld [vmem:[#allocation2 + $0x40] sm:$0xfe] }
 0x590   : > { %v19601_v59 = vrot.slane %v19600_v30, 2  ;;  %19605 = vst [vmem:[#allocation107_spill] sm:$0xff] %v17118_v4  ;;  %v5330_v27 = vmul.f32 %v17118_v4, %v19596_v41  ;;  %v11088_v11 = vld [vmem:[#allocation2 + $0x38] sm:$0xfe]  ;;  %v19606_v22 = vld [vmem:[#allocation162_spill] sm:$0xff]  ;;  %v17127_v32 = vadd.f32 %v4534_v20, %v4238_v26  ;;  %v17133_v6 = vmul.f32 %v11090_v53, %v5317_v16 }
 0x591   : > { %v17123_v9 = vmul.f32 %v11088_v11, %v19596_v41  ;;  %v19607_v1 = vld [vmem:[#allocation24_spill] sm:$0xff]  ;;  %v11091_v34 = vld [vmem:[#allocation2 + $0x48] sm:$0xfe]  ;;  %v17137_v11 = vld [vmem:[#allocation2 + $0x70] sm:$0xff]  ;;  %v17151_v53 = vadd.f32 %v4539_v43, %v4244_v5 }
 0x592   : > { %3219 = vrot.lane.b32.xlu1 %v19601_v59, %s11291_s19  ;;  %3229 = vrot.lane.b32.xlu0 %v19606_v22, %s11291_s19  ;;  %v4529_v56 = vsel %vm516_vm0, %v19607_v1, %v19587_v63  ;;  %v11089_v30 = vld [vmem:[#allocation2 + $0x98] sm:$0x1]  ;;  %v17135_v40 = vmul.f32 %v11091_v34, %v5318_v35  ;;  %19608 = vst [vmem:[#allocation108_spill] sm:$0xff] %v17137_v11  ;;  %v11094_v20 = vld [vmem:[#allocation2 + $0xa0] sm:$0x1]  ;;  %v17145_v1 = vpop.permute.xlu1 %5935  ;;  %v17153_v34 = vpop.permute.xlu0 %5937  ;;  %v19612_v10 = vld [vmem:[#allocation122_spill] sm:$0xff] }
 0x593   : > { %v5335_v59 = vmul.f32 %v11089_v30, %v19596_v41  ;;  %v5331_v25 = vmul.f32 %v17137_v11, %v5317_v16  ;;  %v17140_v22 = vld [vmem:[#allocation2 + $0x78] sm:$0xff]  ;;  %v5336_v63 = vmul.f32 %v11094_v20, %v5317_v16  ;;  %19610 = vst [vmem:[#allocation126_spill] sm:$0xff] %v17145_v1  ;;  %v17147_v41 = vadd.f32 %v4535_v36, %v4239_v48  ;;  %v19614_v20 = vld [vmem:[#allocation35_spill] sm:$0xff]  ;;  %v19618_v5 = vld [vmem:[#allocation149_spill] sm:$0xff] }
 0x594   : > { %19609 = vst [vmem:[#allocation153_spill] sm:$0xff] %v17140_v22  ;;  %v17143_v26 = vmul.f32 %v17140_v22, %v5318_v35  ;;  %v17149_v30 = vadd.f32 %v4538_v33, %v4243_v55  ;;  %19611 = vst [vmem:[#allocation160_spill] sm:$0xff] %v17153_v34  ;;  %v19613_v3 = vrot.slane %v19612_v10, 2  ;;  %v11095_v17 = vld [vmem:[%s18189_s1 + $0xc6] ss:$8 sm:$0xf]  ;;  %v4533_v48 = vsel %vm516_vm0, %v19614_v20, %v19594_v24 }
 0x595   : > { %v6133_v16 = vrot.slane %v11095_v17, %v19415_v18  ;;  %v4556_v55 = vadd.f32 %v4529_v56, %v17042_v60  ;;  %v5360_v36 = vrot.slane %v5330_v27, 3  ;;  %v19615_v10 = vrot.slane %v16849_v42, %v19415_v18  ;;  %v19616_v33 = vld [vmem:[#allocation145_spill] sm:$0xff]  ;;  %v11096_v17 = vld [vmem:[#allocation2 + $0xa8] sm:$0x1]  ;;  %v19640_v22 = vld [vmem:[#allocation27_spill] sm:$0xff] }
 0x596   : > { %3239 = vrot.lane.b32.xlu1 %v19613_v3, %s11291_s19  ;;  %v5370_v3 = vrot.slane %v5335_v59, 3  ;;  %v4537_v43 = vsel %vm516_vm0, %v19616_v33, %v19603_v19  ;;  %v5337_v62 = vmul.f32 %v11096_v17, %v5318_v35  ;;  %v5362_v60 = vrot.slane %v5331_v25, 3  ;;  %v17177_v20 = vpop.permute.xlu1 %5939  ;;  %v19619_v42 = vld [vmem:[#allocation86_spill] sm:$0xff]  ;;  %v11097_v35 = vld [vmem:[#allocation2 + $0x50] sm:$0xfc] }
 0x597   : > { %3921 = vrot.lane.b32.xlu0 %v19615_v10, %s11290_s29  ;;  %v5364_v27 = vrot.slane %v17143_v26, 3  ;;  %v5372_v56 = vrot.slane %v5336_v63, 3  ;;  %19617 = vst [vmem:[#allocation92_spill] sm:$0xff] %v17177_v20  ;;  %v4792_v59 = vsel %vm385_vm5, %v19619_v42, %v19618_v5  ;;  %v17182_v10 = vpop.permute.xlu0 %5913  ;;  %v19621_v19 = vrot.slane %v16827_v38, 2  ;;  %v11098_v17 = vld [vmem:[#allocation2 + $0xb0] sm:$0x3] }
 0x598   : > { %19620 = vst [vmem:[#allocation89_spill] sm:$0xff] %v17182_v10  ;;  %v17187_v33 = vmul.f32 %v11097_v35, %v6133_v16  ;;  %v6145_v25 = vmul.f32 %v16901_v46, %v6133_v16  ;;  %v6149_v26 = vmul.f32 %v11098_v17, %v6133_v16  ;;  %v4561_v63 = vadd.f32 %v4533_v48, %v17067_v50  ;;  %v17204_v38 = vld [vmem:[%s18189_s1 + $0xe0] ss:$8 sm:$0xf] }
 0x599   : > { %v17192_v24 = vadd.f32 %v4537_v43, %v17072_v12  ;;  %v19623_v13 = vrot.slane %v17123_v9, 3  ;;  %19624 = vst [vmem:[#allocation114_spill] sm:$0xff] %v17204_v38  ;;  %v5374_v50 = vrot.slane %v5337_v62, 3  ;;  %v17209_v12 = vadd.f32 %v19619_v42, %v4556_v55  ;;  %v19625_v16 = vld [vmem:[#allocation54_spill] sm:$0xff] }
 0x59a   : > { %3454 = vrot.lane.b32.xlu1 %v19621_v19, %s11290_s29  ;;  %19622 = vst [vmem:[#allocation118_spill] sm:$0xff] %v17187_v33  ;;  %v17217_v48 = vsel %vm4071_vm4, %v5360_v36, %v5370_v3  ;;  %v4793_v43 = vsel %vm385_vm5, %v19618_v5, %v16607_v51  ;;  %v19626_v62 = vrot.slane %v17133_v6, 3  ;;  %v17231_v42 = vsel %vm4071_vm4, %v5362_v60, %v5372_v56  ;;  %v17233_v19 = vpop.permute.xlu1 %5923  ;;  %v11100_v56 = vld [vmem:[#allocation2 + $0x58] sm:$0xfe]  ;;  %v19636_v51 = vld [vmem:[#allocation81_spill] sm:$0xff] }
 0x59b   : > { %v17197_v10 = vsel %vm4071_vm4, %v19623_v13, %v5360_v36  ;;  %3462 = vrot.lane.b32.xlu0 %v16937_v2, %s11290_s29  ;;  %v17214_v13 = vsel %vm1014_vm1, %v19625_v16, %v16705_v31  ;;  %v17220_v2 = vadd.f32 %v4792_v59, %v17086_v54  ;;  %19627 = vst [vmem:[#allocation113_spill] sm:$0xff] %v17233_v19  ;;  %v19628_v36 = vrot.slane %v17135_v40, 3  ;;  %v17240_v54 = vpop.permute.xlu0 %5933  ;;  %v19635_v59 = vld [vmem:[#allocation15_spill] sm:$0xff]  ;;  %v10636_v34 = vld [vmem:[#allocation3 + $0x408] ss:$16 sps:$4 sm:$0xff]  }
 0x59c   : > { %v17228_v55 = vsel %vm4071_vm4, %v19626_v62, %v5362_v60  ;;  %19629 = vst [vmem:[#allocation117_spill] sm:$0xff] %v17240_v54  ;;  %v19630_v5 = vrot.slane %v16830_v8, 2  ;;  %v6172_v35 = vrot.slane %v6145_v25, 4  ;;  %v6180_v17 = vrot.slane %v6149_v26, 4  ;;  %v11101_v62 = vld [vmem:[#allocation2 + $0x50] sm:$0xfe] }
 0x59d   : > { %v17238_v3 = vsel %vm4071_vm4, %v19628_v36, %v5364_v27  ;;  %v19631_v60 = vrot.slane %v16926_v21, %v19415_v18  ;;  %v17251_v16 = vmul.f32 %v11100_v56, %v16705_v31  ;;  %v17254_v36 = vmul.f32 %v11101_v62, %v17214_v13  ;;  %v19633_v21 = vld [vmem:[#allocation65_spill] sm:$0xff]  ;;  %v19634_v56 = vld [vmem:[#allocation26_spill] sm:$0xff] }
 0x59e   : > { %3470 = vrot.lane.b32.xlu1 %v19630_v5, %s11290_s29  ;;  %v17258_v8 = vmul.f32 %v16856_v37, %v16705_v31  ;;  %v17260_v5 = vld [vmem:[#allocation2 + $0x80] sm:$0xff]  ;;  %v17267_v26 = vadd.f32 %v19633_v21, %v4561_v63  ;;  %v4795_v62 = vsel %vm385_vm5, %v19633_v21, %v19634_v56  ;;  %v17276_v46 = vsel %vm4071_vm4, %v5364_v27, %v5374_v50  ;;  %v11103_v63 = vld [vmem:[#allocation2 + $0x90] sm:$0x3] }
 0x59f   : > { %4152 = vrot.lane.b32.xlu0 %v19631_v60, %s11290_s29  ;;  %19632 = vst [vmem:[#allocation96_spill] sm:$0xff] %v17260_v5  ;;  %v17264_v25 = vmul.f32 %v17260_v5, %v17214_v13  ;;  %v17270_v60 = vadd.f32 %v4793_v43, %v17099_v57  ;;  %v5568_v38 = vsel %vm385_vm5, %v19636_v51, %v19635_v59  ;;  %v17286_v57 = vpop.permute.xlu1 %6718  ;;  %v11104_v43 = vld [vmem:[#allocation2 + $0xb8] sm:$0x1]  ;;  %v19638_v21 = vld [vmem:[#allocation25_spill] sm:$0xff]  ;;  %v19639_v50 = vld [vmem:[#allocation71_spill] sm:$0xff]  ;;  %v17295_v14 = vpop.permute.xlu0 %6720 }
 0x5a0   : > { %v17283_v5 = vmul.f32 %v16856_v37, %v19636_v51  ;;  %v5586_v19 = vmul.f32 %v11103_v63, %v19636_v51  ;;  %19637 = vst [vmem:[#allocation120_spill] sm:$0xff] %v17286_v57  ;;  %v5057_v54 = vmul.f32 %v11104_v43, %v16705_v31  ;;  %v4796_v27 = vsel %vm385_vm5, %v19634_v56, %v19638_v21  ;;  %v19646_v56 = vld [vmem:[#allocation111_spill] sm:$0xff]  ;;  %v10638_v21 = vld [vmem:[#allocation3 + $0x40c] ss:$16 sps:$4 sm:$0xff]  }
 0x5a1   : > { %v4798_v20 = vsel %vm385_vm5, %v19640_v22, %v19639_v50  ;;  %19641 = vst [vmem:[#allocation75_spill] sm:$0xff] %v17295_v14  ;;  %v19642_v37 = vrot.slane %v16899_v15, 2  ;;  %v19643_v63 = vrot.slane %v17187_v33, 4  ;;  %v17306_v31 = vsel %vm5485_vm6, %v6172_v35, %v6180_v17  ;;  %v11105_v17 = vld [vmem:[#allocation2 + $0x68] sm:$0xff]  ;;  %v10633_v43 = vld [vmem:[#allocation3 + $0x400] ss:$16 sps:$4 sm:$0xff]   ;;  %9255 = vmatprep.subr.bf16.mxu1 %v10638_v21 }
 0x5a2   : > { %19645 = vst [vmem:[#allocation138_spill] sm:$0xff] %v17306_v31  ;;  %v5086_v4 = vrot.slane %v17258_v8, 3  ;;  %v17315_v33 = vadd.f32 %v4795_v62, %v17127_v32  ;;  %v17320_v31 = vmul.f32 %v11105_v17, %v5568_v38  ;;  %v18618_v8 = vrot.slane %v17283_v5, 4  ;;  %v11107_v15 = vld [vmem:[#allocation2 + $0x30] sm:$0xfc]  ;;  %9256 = vmatpush1.bf16.msra.mxu1 %v10636_v34 }
 0x5a3   : > { %3730 = vrot.lane.b32.xlu1 %v19642_v37, %s11292_s23  ;;  %v17303_v11 = vsel %vm5485_vm6, %v19643_v63, %v6172_v35  ;;  %3732 = vrot.lane.b32.xlu0 %v19646_v56, %s11292_s23  ;;  %v10635_v37 = vld [vmem:[#allocation3 + $0x404] ss:$16 sps:$4 sm:$0xff]   ;;  %v19647_v63 = vld [vmem:[#allocation60_spill] sm:$0xff]  ;;  %v5621_v0 = vrot.slane %v5586_v19, 4  ;;  %v17324_v57 = vmul.f32 %v11107_v15, %v19636_v51  ;;  %v17326_v32 = vpop.permute.xlu1 %6722  ;;  %v5096_v62 = vrot.slane %v5057_v54, 3  ;;  %v17334_v14 = vpop.permute.xlu0 %6182 }
 0x5a4   : > { %19644 = vst [vmem:[#allocation83_spill] sm:$0xff] %v17303_v11  ;;  %v4799_v35 = vsel %vm385_vm5, %v19639_v50, %v19647_v63  ;;  %v11106_v11 = vld [vmem:[#allocation2 + $0x98] sm:$0x3]  ;;  %9169 = vmatprep.subr.bf16.mxu0 %v10635_v37  ;;  %v10641_v50 = vld [vmem:[#allocation3 + $0x424] ss:$16 sps:$4 sm:$0xff]   ;;  %v4823_v17 = vadd.f32 %v4796_v27, %v17147_v41  ;;  %v17332_v63 = vadd.f32 %v4798_v20, %v17149_v30  ;;  %19648 = vst [vmem:[#allocation137_spill] sm:$0xff] %v17334_v14 }
 0x5a5   : > { %v5587_v1 = vmul.f32 %v11106_v11, %v5568_v38  ;;  %v4826_v11 = vadd.f32 %v19640_v22, %v17192_v24  ;;  %v10644_v51 = vld [vmem:[#allocation3 + $0x42c] ss:$16 sps:$4 sm:$0xff]   ;;  %v17339_v19 = vadd.f32 %v4799_v35, %v17151_v53  ;;  %v19649_v54 = vld [vmem:[#allocation97_spill] sm:$0xff]  ;;  %v11109_v22 = vld [vmem:[#allocation2 + $0xb0] sm:$0x1]  ;;  %v19650_v53 = vrot.slane %v17251_v16, 3  ;;  %9170 = vmatpush1.bf16.msra.mxu0 %v10633_v43 }
 0x5a6   : > { %v5569_v41 = vsel %vm385_vm5, %v19635_v59, %v19649_v54  ;;  %v11108_v27 = vld [vmem:[#allocation2 + $0x38] sm:$0xfc]  ;;  %v17349_v30 = vmul.f32 %v11109_v22, %v17214_v13  ;;  %v19652_v59 = vrot.slane %v17264_v25, 3  ;;  %v10639_v37 = vld [vmem:[#allocation3 + $0x420] ss:$16 sps:$4 sm:$0xff]   ;;  %9171 = vmatprep.subr.bf16.mxu0 %v10641_v50  ;;  %9257 = vmatprep.subr.bf16.mxu1 %v10644_v51 }
 0x5a7   : > { %3740 = vrot.lane.b32.xlu1 %v17026_v44, %s11292_s23  ;;  %v17344_v15 = vmul.f32 %v11108_v27, %v5568_v38  ;;  %3742 = vrot.lane.b32.xlu0 %v19646_v56, %s11292_s23  ;;  %v5623_v24 = vrot.slane %v5587_v1, 4  ;;  %v17355_v20 = vsel %vm4071_vm4, %v19650_v53, %v5086_v4  ;;  %v19653_v38 = vrot.slane %v17254_v36, 3  ;;  %v10642_v13 = vld [vmem:[#allocation3 + $0x428] ss:$16 sps:$4 sm:$0xff]   ;;  %v17373_v44 = vpop.permute.xlu1 %6184  ;;  %v11110_v43 = vld [vmem:[#allocation2 + $0x40] sm:$0xfc] }
 0x5a8   : > { %19651 = vst [vmem:[#allocation63_spill] sm:$0xff] %v17355_v20  ;;  %v19655_v35 = vld [vmem:[#allocation128_spill] sm:$0xff]  ;;  %v19656_v27 = vld [vmem:[#allocation154_spill] sm:$0xff]  ;;  %v17371_v53 = vsel %vm5485_vm6, %v18618_v8, %v5621_v0  ;;  %v19658_v54 = vld [vmem:[#allocation43_spill] sm:$0xff]  ;;  %9258 = vmatpush1.bf16.msra.mxu1 %v10642_v13 }
 0x5a9   : > { %v17362_v21 = vsel %vm4071_vm4, %v19653_v38, %v19652_v59  ;;  %v5128_v1 = vsel %vm1014_vm1, %v19656_v27, %v19655_v35  ;;  %v17376_v59 = vsel %vm4071_vm4, %v5086_v4, %v5096_v62  ;;  %v5155_v34 = vadd.f32 %v19656_v27, %v17209_v12  ;;  %v19659_v20 = vld [vmem:[#allocation95_spill] sm:$0xff]  ;;  %v11112_v12 = vld [vmem:[#allocation2 + $0xa0] sm:$0x3]  ;;  %9172 = vmatpush1.bf16.msra.mxu0 %v10639_v37 }
 0x5aa   : > { %19654 = vst [vmem:[#allocation53_spill] sm:$0xff] %v17362_v21  ;;  %19657 = vst [vmem:[#allocation148_spill] sm:$0xff] %v17376_v59  ;;  %v17380_v38 = vmul.f32 %v11110_v43, %v5569_v41  ;;  %v5129_v22 = vsel %vm1014_vm1, %v19655_v35, %v19658_v54  ;;  %v19660_v0 = vld [vmem:[#allocation131_spill] sm:$0xff]  ;;  %v17388_v21 = vpop.permute.xlu0 %6186  ;;  %v19662_v4 = vrot.slane %v16904_v58, 2  ;;  %v5588_v51 = vmul.f32 %v11112_v12, %v5569_v41  ;;  %v19663_v27 = vld [vmem:[#allocation29_spill] sm:$0xff] }
 0x5ab   : > { %v5132_v8 = vsel %vm1014_vm1, %v19660_v0, %v19659_v20  ;;  %19661 = vst [vmem:[#allocation61_spill] sm:$0xff] %v17388_v21  ;;  %v11111_v62 = vld [vmem:[#allocation2 + $0x70] sm:$0xff]  ;;  %v5133_v43 = vsel %vm1014_vm1, %v19659_v20, %v19663_v27  ;;  %v5607_v35 = vrot.slane %v17344_v15, 4  ;;  %3752 = vrot.lane.b32.xlu0 %v19646_v56, %s11292_s23  ;;  %v5156_v59 = vadd.f32 %v5128_v1, %v17220_v2  ;;  %v10650_v15 = vld [vmem:[#allocation3 + $0x44c] ss:$16 sps:$4 sm:$0xff]   ;;  %v17415_v27 = vpop.permute.xlu1 %6190 }
 0x5ac   : > { %3750 = vrot.lane.b32.xlu1 %v19662_v4, %s11292_s23  ;;  %v5583_v50 = vmul.f32 %v11111_v62, %v5569_v41  ;;  %v10647_v54 = vld [vmem:[#allocation3 + $0x444] ss:$16 sps:$4 sm:$0xff]   ;;  %v19665_v4 = vrot.slane %v17320_v31, 4  ;;  %v10645_v20 = vld [vmem:[#allocation3 + $0x440] ss:$16 sps:$4 sm:$0xff]   ;;  %v5157_v12 = vadd.f32 %v5129_v22, %v17270_v60  ;;  %v5160_v56 = vadd.f32 %v19660_v0, %v17267_v26  ;;  %9259 = vmatprep.subr.bf16.mxu1 %v10650_v15 }
 0x5ad   : > { %v19664_v21 = vld [vmem:[#allocation103_spill] sm:$0xff]  ;;  %v10648_v62 = vld [vmem:[#allocation3 + $0x448] ss:$16 sps:$4 sm:$0xff]   ;;  %v5161_v2 = vadd.f32 %v5132_v8, %v17315_v33  ;;  %v5137_v1 = vsel %vm1014_vm1, %v16984_v28, %v16988_v23  ;;  %9173 = vmatprep.subr.bf16.mxu0 %v10647_v54  ;;  %v19666_v37 = vrot.slane %v17123_v9, 3  ;;  %v5162_v14 = vadd.f32 %v5133_v43, %v4823_v17  ;;  %v19667_v26 = vld [vmem:[#allocation129_spill] sm:$0xff] }
 0x5ae   : > { %v5136_v58 = vsel %vm1014_vm1, %v19664_v21, %v16984_v28  ;;  %v17406_v41 = vsel %vm5485_vm6, %v19665_v4, %v5623_v24  ;;  %v10653_v24 = vld [vmem:[#allocation3 + $0x464] ss:$16 sps:$4 sm:$0xff]   ;;  %v5165_v4 = vadd.f32 %v19664_v21, %v4826_v11  ;;  %v17420_v60 = vpop.permute.xlu0 %6192  ;;  %v19668_v22 = vrot.slane %v19667_v26, 3  ;;  %v10656_v28 = vld [vmem:[#allocation3 + $0x46c] ss:$16 sps:$4 sm:$0xff]   ;;  %9174 = vmatpush1.bf16.msra.mxu0 %v10645_v20  ;;  %9260 = vmatpush1.bf16.msra.mxu1 %v10648_v62 }
 0x5af   : > { %v5395_v13 = vadd.f32 %v19666_v37, %v5155_v34  ;;  %v5094_v33 = vrot.slane %v17349_v30, 3  ;;  %v5608_v8 = vrot.slane %v17380_v38, 4  ;;  %v5615_v54 = vrot.slane %v5583_v50, 4  ;;  %v19669_v34 = vld [vmem:[#allocation20_spill] sm:$0xff]  ;;  %v10651_v38 = vld [vmem:[#allocation3 + $0x460] ss:$16 sps:$4 sm:$0xff]   ;;  %9175 = vmatprep.subr.bf16.mxu0 %v10653_v24  ;;  %9261 = vmatprep.subr.bf16.mxu1 %v10656_v28 }
 0x5b0   : > { %4507 = vrot.lane.b32.xlu1 %v19668_v22, %s11291_s19  ;;  %v5625_v0 = vrot.slane %v5588_v51, 4  ;;  %v5166_v9 = vadd.f32 %v5136_v58, %v17332_v63  ;;  %4517 = vrot.lane.b32.xlu0 %v19669_v34, %s11291_s19  ;;  %v19670_v17 = vrot.slane %v17133_v6, 3  ;;  %v5167_v21 = vadd.f32 %v5137_v1, %v17339_v19  ;;  %v10654_v50 = vld [vmem:[#allocation3 + $0x468] ss:$16 sps:$4 sm:$0xff]   ;;  %v19680_v34 = vld [vmem:[#allocation75_spill] sm:$0xff] }
 0x5b1   : > { %v19671_v43 = vrot.slane %v17283_v5, 4  ;;  %v19672_v30 = vrot.slane %v17324_v57, 4  ;;  %v19673_v63 = vrot.slane %v17135_v40, 3  ;;  %v5400_v58 = vadd.f32 %v17197_v10, %v5160_v56  ;;  %v19675_v40 = vld [vmem:[#allocation21_spill] sm:$0xff]  ;;  %v10660_v37 = vld [vmem:[#allocation3 + $0x488] ss:$16 sps:$4 sm:$0xff]  }
 0x5b2   : > { %v5396_v11 = vadd.f32 %v19670_v17, %v5156_v59  ;;  %v5401_v6 = vadd.f32 %v17228_v55, %v5161_v2  ;;  %v17442_v59 = vpop.permute.xlu1 %6194  ;;  %v5405_v5 = vadd.f32 %v17217_v48, %v5165_v4  ;;  %v5402_v19 = vadd.f32 %v17238_v3, %v5162_v14  ;;  %v17449_v1 = vpop.permute.xlu0 %6198  ;;  %v10659_v2 = vld [vmem:[#allocation3 + $0x484] ss:$16 sps:$4 sm:$0xff]   ;;  %9176 = vmatpush1.bf16.msra.mxu0 %v10651_v38  ;;  %v10657_v57 = vld [vmem:[#allocation3 + $0x480] ss:$16 sps:$4 sm:$0xff]   ;;  %v19681_v17 = vld [vmem:[#allocation120_spill] sm:$0xff] }
 0x5b3   : > { %v5612_v15 = vsel %vm5485_vm6, %v19672_v30, %v19671_v43  ;;  %v5397_v51 = vadd.f32 %v19673_v63, %v5157_v12  ;;  %v19674_v20 = vrot.slane %v17320_v31, 4  ;;  %v19676_v10 = vrot.slane %v17264_v25, 3  ;;  %9262 = vmatpush1.bf16.msra.mxu1 %v10654_v50  ;;  %9177 = vmatprep.subr.bf16.mxu0 %v10659_v2  ;;  %v19683_v38 = vld [vmem:[#allocation160_spill] sm:$0xff]  ;;  %v19684_v50 = vld [vmem:[#allocation126_spill] sm:$0xff] }
 0x5b4   : > { %4527 = vrot.lane.b32.xlu1 %v19675_v40, %s11291_s19  ;;  %v5406_v12 = vadd.f32 %v17231_v42, %v5166_v9  ;;  %v5616_v48 = vsel %vm5485_vm6, %v5608_v8, %v5615_v54  ;;  %v19677_v14 = vmov %v19672_v30  ;;  %v5626_v31 = vsel %vm5485_vm6, %v5615_v54, %v5625_v0  ;;  %v11114_v40 = vld [vmem:[#allocation2 + $0x38] sm:$0xfc]  ;;  %v19687_v2 = vld [vmem:[#allocation106_spill] sm:$0xff] }
 0x5b5   : > { %v5614_v62 = vsel %vm5485_vm6, %v5607_v35, %v19674_v20  ;;  %v17456_v55 = vsel %vm4071_vm4, %v19676_v10, %v5094_v33  ;;  %v17462_v3 = vadd.f32 %v19677_v14, %v5395_v13  ;;  %v19678_v56 = vrot.slane %v17049_v49, %v19415_v18  ;;  %v10662_v13 = vld [vmem:[#allocation3 + $0x48c] ss:$16 sps:$4 sm:$0xff]   ;;  %v10666_v20 = vld [vmem:[#allocation3 + $0x4a8] ss:$16 sps:$4 sm:$0xff]   ;;  %v11115_v14 = vld [vmem:[#allocation2 + $0xa0] sm:$0x3] }
 0x5b6   : > { %v5407_v25 = vadd.f32 %v17276_v46, %v5167_v21  ;;  %v5647_v24 = vadd.f32 %v5607_v35, %v5396_v11  ;;  %v5944_v42 = vsel %vm516_vm0, %v17010_v52, %v17017_v39  ;;  %v5648_v4 = vadd.f32 %v5608_v8, %v5397_v51  ;;  %v17478_v33 = vpop.permute.xlu1 %6200  ;;  %v17486_v54 = vpop.permute.xlu0 %6202  ;;  %9263 = vmatprep.subr.bf16.mxu1 %v10662_v13  ;;  %v19682_v11 = vld [vmem:[#allocation98_spill] sm:$0xff]  ;;  %v10665_v21 = vld [vmem:[#allocation3 + $0x4a4] ss:$16 sps:$4 sm:$0xff]  }
 0x5b7   : > { %5315 = vrot.lane.b32.xlu0 %v19678_v56, %s11290_s29  ;;  %v5945_v26 = vsel %vm516_vm0, %v17017_v39, %v17044_v29  ;;  %v5652_v49 = vadd.f32 %v5614_v62, %v5401_v6  ;;  %v17476_v22 = vadd.f32 %v5612_v15, %v5400_v58  ;;  %v5653_v46 = vadd.f32 %v5616_v48, %v5402_v19  ;;  %v10668_v15 = vld [vmem:[#allocation3 + $0x4ac] ss:$16 sps:$4 sm:$0xff]   ;;  %v19685_v51 = vld [vmem:[#allocation107_spill] sm:$0xff]  ;;  %v11113_v6 = vld [vmem:[#allocation2 + $0x98] sm:$0x3] }
 0x5b8   : > { %v5948_v35 = vsel %vm516_vm0, %v17058_v45, %v17094_v7  ;;  %v17484_v28 = vadd.f32 %v17371_v53, %v5405_v5  ;;  %v19679_v8 = vrot.slane %v17003_v61, 3  ;;  %v17491_v39 = vadd.f32 %v5944_v42, %v5647_v24  ;;  %9178 = vmatpush1.bf16.msra.mxu0 %v10657_v57  ;;  %9264 = vmatpush1.bf16.msra.mxu1 %v10660_v37  ;;  %v11116_v42 = vld [vmem:[#allocation2 + $0x48] sm:$0xfc]  ;;  %v19689_v37 = vld [vmem:[#allocation153_spill] sm:$0xff] }
 0x5b9   : > { %v5949_v0 = vsel %vm516_vm0, %v17094_v7, %v17107_v47  ;;  %v5657_v9 = vadd.f32 %v17406_v41, %v5406_v12  ;;  %v6726_v53 = vsel %vm385_vm5, %v19681_v17, %v19680_v34  ;;  %v17502_v43 = vadd.f32 %v5945_v26, %v5648_v4  ;;  %v10663_v7 = vld [vmem:[#allocation3 + $0x4a0] ss:$16 sps:$4 sm:$0xff]   ;;  %9179 = vmatprep.subr.bf16.mxu0 %v10665_v21  ;;  %v19686_v12 = vld [vmem:[#allocation108_spill] sm:$0xff] }
 0x5ba   : > { %4774 = vrot.lane.b32.xlu1 %v19679_v8, %s11290_s29  ;;  %v5658_v61 = vadd.f32 %v5626_v31, %v5407_v25  ;;  %v6727_v30 = vsel %vm385_vm5, %v19680_v34, %v17326_v32  ;;  %v17507_v41 = vadd.f32 %v5948_v35, %v5652_v49  ;;  %v5952_v63 = vsel %vm516_vm0, %v19684_v50, %v19683_v38  ;;  %v17517_v19 = vpop.permute.xlu1 %6442  ;;  %v17527_v56 = vpop.permute.xlu0 %6507  ;;  %v19688_v25 = vld [vmem:[#allocation92_spill] sm:$0xff]  ;;  %v11117_v49 = vld [vmem:[#allocation2 + $0x40] sm:$0xfc] }
 0x5bb   : > { %4782 = vrot.lane.b32.xlu0 %v19682_v11, %s11290_s29  ;;  %v17514_v58 = vmul.f32 %v19685_v51, %v19681_v17  ;;  %v6744_v5 = vmul.f32 %v11113_v6, %v19681_v17  ;;  %v17519_v62 = vadd.f32 %v5949_v0, %v5653_v46  ;;  %v17522_v10 = vmul.f32 %v11114_v40, %v19681_v17  ;;  %v19690_v4 = vld [vmem:[#allocation156_spill] sm:$0xff]  ;;  %v10671_v35 = vld [vmem:[#allocation3 + $0x4c4] ss:$16 sps:$4 sm:$0xff]   ;;  %v11118_v17 = vld [vmem:[#allocation2 + $0xa8] sm:$0x3] }
 0x5bc   : > { %v17525_v48 = vmul.f32 %v19686_v12, %v6726_v53  ;;  %v6745_v31 = vmul.f32 %v11115_v14, %v6726_v53  ;;  %v5953_v24 = vsel %vm516_vm0, %v19683_v38, %v19688_v25  ;;  %v17534_v57 = vmul.f32 %v11116_v42, %v6727_v30  ;;  %v19692_v0 = vld [vmem:[#allocation89_spill] sm:$0xff]  ;;  %9265 = vmatprep.subr.bf16.mxu1 %v10668_v15  ;;  %v10674_v38 = vld [vmem:[#allocation3 + $0x4cc] ss:$16 sps:$4 sm:$0xff]  }
 0x5bd   : > { %v17537_v13 = vmul.f32 %v19689_v37, %v6727_v30  ;;  %v19691_v26 = vrot.slane %v19690_v4, %v19415_v18  ;;  %v17543_v46 = vmul.f32 %v11117_v49, %v6726_v53  ;;  %v17545_v8 = vadd.f32 %v5952_v63, %v5657_v9  ;;  %9180 = vmatpush1.bf16.msra.mxu0 %v10663_v7  ;;  %v10669_v21 = vld [vmem:[#allocation3 + $0x4c0] ss:$16 sps:$4 sm:$0xff]   ;;  %v10680_v4 = vld [vmem:[#allocation3 + $0x4ec] ss:$16 sps:$4 sm:$0xff]  }
 0x5be   : > { %4790 = vrot.lane.b32.xlu1 %v19687_v2, %s11290_s29  ;;  %v5943_v34 = vsel %vm516_vm0, %v19692_v0, %v17010_v52  ;;  %v6746_v11 = vmul.f32 %v11118_v17, %v6727_v30  ;;  %v19693_v51 = vld [vmem:[#allocation117_spill] sm:$0xff]  ;;  %v6769_v9 = vrot.slane %v17514_v58, 4  ;;  %v6779_v63 = vrot.slane %v6744_v5, 4  ;;  %v17557_v12 = vpop.permute.xlu1 %6509  ;;  %9266 = vmatpush1.bf16.msra.mxu1 %v10666_v20  ;;  %v10672_v52 = vld [vmem:[#allocation3 + $0x4c8] ss:$16 sps:$4 sm:$0xff]   ;;  %v17561_v2 = vpop.permute.xlu0 %6511 }
 0x5bf   : > { %5566 = vrot.lane.b32.xlu0 %v19691_v26, %s11290_s29  ;;  %v5951_v6 = vsel %vm516_vm0, %v19693_v51, %v19684_v50  ;;  %v19694_v53 = vld [vmem:[#allocation113_spill] sm:$0xff]  ;;  %9181 = vmatprep.subr.bf16.mxu0 %v10671_v35  ;;  %v5982_v30 = vadd.f32 %v5953_v24, %v5658_v61  ;;  %v6771_v7 = vrot.slane %v17525_v48, 4  ;;  %v6781_v15 = vrot.slane %v6745_v31, 4 }
 0x5c0   : > { %v5947_v40 = vsel %vm516_vm0, %v19694_v53, %v17058_v45  ;;  %v6764_v14 = vrot.slane %v17522_v10, 4  ;;  %v19695_v50 = vrot.slane %v17254_v36, 3  ;;  %9267 = vmatprep.subr.bf16.mxu1 %v10674_v38  ;;  %v5970_v45 = vadd.f32 %v5943_v34, %v17462_v3  ;;  %v10677_v48 = vld [vmem:[#allocation3 + $0x4e4] ss:$16 sps:$4 sm:$0xff]   ;;  %v10675_v37 = vld [vmem:[#allocation3 + $0x4e0] ss:$16 sps:$4 sm:$0xff]  }
 0x5c1   : > { %v6766_v58 = vrot.slane %v17534_v57, 4  ;;  %v6773_v5 = vrot.slane %v17537_v13, 4  ;;  %v6765_v61 = vrot.slane %v17543_v46, 4  ;;  %v19696_v20 = vrot.slane %v17251_v16, 3  ;;  %v19697_v42 = vld [vmem:[#allocation137_spill] sm:$0xff]  ;;  %9182 = vmatpush1.bf16.msra.mxu0 %v10669_v21  ;;  %v19700_v53 = vld [vmem:[#allocation63_spill] sm:$0xff] }
 0x5c2   : > { %5104 = vrot.lane.b32.xlu1 %v19695_v50, %s11292_s23  ;;  %v5980_v31 = vadd.f32 %v5951_v6, %v17484_v28  ;;  %v5975_v24 = vadd.f32 %v5947_v40, %v17476_v22  ;;  %v6783_v36 = vrot.slane %v6746_v11, 4  ;;  %v6206_v3 = vsel %vm385_vm5, %v19697_v42, %v17373_v44  ;;  %v19698_v26 = vld [vmem:[#allocation61_spill] sm:$0xff]  ;;  %v6518_v49 = vpop.permute.xlu1 %6517  ;;  %9268 = vmatpush1.bf16.msra.mxu1 %v10672_v52  ;;  %v10678_v22 = vld [vmem:[#allocation3 + $0x4e8] ss:$16 sps:$4 sm:$0xff]   ;;  %v17588_v34 = vpop.permute.xlu0 %6519  ;;  %v10686_v21 = vld [vmem:[#allocation3 + $0x50c] ss:$16 sps:$4 sm:$0xff]  }
 0x5c3   : > { %5106 = vrot.lane.b32.xlu0 %v19696_v20, %s11292_s23  ;;  %v6230_v13 = vadd.f32 %v19697_v42, %v5970_v45  ;;  %v6207_v16 = vsel %vm385_vm5, %v17373_v44, %v19698_v26  ;;  %v17583_v35 = vsel %vm5485_vm6, %v6769_v9, %v6779_v63  ;;  %9183 = vmatprep.subr.bf16.mxu0 %v10677_v48  ;;  %v10683_v28 = vld [vmem:[#allocation3 + $0x504] ss:$16 sps:$4 sm:$0xff]   ;;  %v10681_v52 = vld [vmem:[#allocation3 + $0x500] ss:$16 sps:$4 sm:$0xff]   ;;  %v10684_v20 = vld [vmem:[#allocation3 + $0x508] ss:$16 sps:$4 sm:$0xff]  }
 0x5c4   : > { %v6209_v0 = vsel %vm385_vm5, %v17415_v27, %v17420_v60  ;;  %v17593_v17 = vsel %vm5485_vm6, %v6764_v14, %v6769_v9  ;;  %v19699_v44 = vld [vmem:[#allocation53_spill] sm:$0xff]  ;;  %v17598_v11 = vsel %vm5485_vm6, %v6771_v7, %v6781_v15  ;;  %9269 = vmatprep.subr.bf16.mxu1 %v10680_v4  ;;  %v6231_v38 = vadd.f32 %v6206_v3, %v17491_v39  ;;  %v11120_v4 = vld [vmem:[#allocation2 + $0xb8] sm:$0x3] }
 0x5c5   : > { %v6210_v51 = vsel %vm385_vm5, %v17420_v60, %v17442_v59  ;;  %v17607_v6 = vsel %vm5485_vm6, %v6765_v61, %v6771_v7  ;;  %v17614_v40 = vsel %vm5485_vm6, %v6766_v58, %v6773_v5  ;;  %v17617_v9 = vadd.f32 %v6207_v16, %v17502_v43  ;;  %9184 = vmatpush1.bf16.msra.mxu0 %v10675_v37  ;;  %v19701_v43 = vld [vmem:[#allocation67_spill] sm:$0xff]  ;;  %v19703_v37 = vld [vmem:[#allocation96_spill] sm:$0xff] }
 0x5c6   : > { %5114 = vrot.lane.b32.xlu1 %v19699_v44, %s11292_s23  ;;  %v6212_v60 = vsel %vm385_vm5, %v17449_v1, %v17478_v33  ;;  %v6213_v39 = vsel %vm385_vm5, %v17478_v33, %v17486_v54  ;;  %v17626_v63 = vsel %vm5485_vm6, %v6773_v5, %v6783_v36  ;;  %v6235_v7 = vadd.f32 %v17415_v27, %v5975_v24  ;;  %v17633_v45 = vpop.permute.xlu1 %6521  ;;  %v6528_v48 = vpop.permute.xlu0 %6527  ;;  %v11119_v36 = vld [vmem:[#allocation2 + $0x58] sm:$0xfc] }
 0x5c7   : > { %5116 = vrot.lane.b32.xlu0 %v19700_v53, %s11292_s23  ;;  %v6236_v15 = vadd.f32 %v6209_v0, %v17507_v41  ;;  %v6446_v50 = vsel %vm1014_vm1, %v19701_v43, %v17517_v19  ;;  %9270 = vmatpush1.bf16.msra.mxu1 %v10678_v22  ;;  %v6240_v33 = vadd.f32 %v17449_v1, %v5980_v31  ;;  %v10689_v31 = vld [vmem:[#allocation3 + $0x524] ss:$16 sps:$4 sm:$0xff]   ;;  %v10687_v22 = vld [vmem:[#allocation3 + $0x520] ss:$16 sps:$4 sm:$0xff]  }
 0x5c8   : > { %9185 = vmatprep.subr.bf16.mxu0 %v10683_v28  ;;  %v17637_v5 = vadd.f32 %v6210_v51, %v17519_v62  ;;  %v6537_v27 = vsel %vm1014_vm1, %v17527_v56, %v17557_v12  ;;  %9271 = vmatprep.subr.bf16.mxu1 %v10686_v21  ;;  %v6241_v41 = vadd.f32 %v6212_v60, %v17545_v8  ;;  %v19702_v62 = vld [vmem:[#allocation148_spill] sm:$0xff]  ;;  %v19704_v8 = vld [vmem:[#allocation161_spill] sm:$0xff]  ;;  %v11121_v51 = vld [vmem:[#allocation2 + $0x50] sm:$0xfc] }
 0x5c9   : > { %v17645_v24 = vadd.f32 %v6213_v39, %v5982_v30  ;;  %v17648_v42 = vmul.f32 %v11119_v36, %v17517_v19  ;;  %v6541_v1 = vsel %vm1014_vm1, %v6518_v49, %v17588_v34  ;;  %v6564_v3 = vadd.f32 %v17527_v56, %v6230_v13  ;;  %9186 = vmatpush1.bf16.msra.mxu0 %v10681_v52  ;;  %v10692_v28 = vld [vmem:[#allocation3 + $0x52c] ss:$16 sps:$4 sm:$0xff]   ;;  %v10690_v56 = vld [vmem:[#allocation3 + $0x528] ss:$16 sps:$4 sm:$0xff]   ;;  %v10695_v13 = vld [vmem:[#allocation3 + $0x544] ss:$16 sps:$4 sm:$0xff]  }
 0x5ca   : > { %5124 = vrot.lane.b32.xlu1 %v17456_v55, %s11292_s23  ;;  %v17656_v55 = vmul.f32 %v19703_v37, %v6446_v50  ;;  %v17660_v30 = vmul.f32 %v19704_v8, %v17517_v19  ;;  %v17663_v16 = vmul.f32 %v11120_v4, %v17517_v19  ;;  %v6565_v0 = vadd.f32 %v6537_v27, %v6231_v38  ;;  %v6530_v21 = vpop.permute.xlu1 %6529  ;;  %v17670_v39 = vpop.permute.xlu0 %6531  ;;  %v17676_v43 = vld [vmem:[#allocation2 + $0xb0] sm:$0x3] }
 0x5cb   : > { %5126 = vrot.lane.b32.xlu0 %v19702_v62, %s11292_s23  ;;  %v6569_v44 = vadd.f32 %v6518_v49, %v6235_v7  ;;  %v17665_v53 = vmul.f32 %v11121_v51, %v6446_v50  ;;  %9272 = vmatpush1.bf16.msra.mxu1 %v10684_v20  ;;  %v6538_v60 = vsel %vm1014_vm1, %v17557_v12, %v17561_v2  ;;  %v19705_v49 = vld [vmem:[#allocation33_spill] sm:$0xff]  ;;  %v10698_v7 = vld [vmem:[#allocation3 + $0x54c] ss:$16 sps:$4 sm:$0xff]   ;;  %v6486_v27 = vrot.slane %v17648_v42, 4 }
 0x5cc   : > { %9187 = vmatprep.subr.bf16.mxu0 %v10689_v31  ;;  %v6570_v19 = vadd.f32 %v6541_v1, %v6236_v15  ;;  %v6545_v52 = vsel %vm1014_vm1, %v6528_v48, %v6530_v21  ;;  %v19706_v38 = vrot.slane %v19705_v49, 4  ;;  %9273 = vmatprep.subr.bf16.mxu1 %v10692_v28  ;;  %v17679_v20 = vmul.f32 %v17676_v43, %v6446_v50  ;;  %v19707_v15 = vld [vmem:[#allocation44_spill] sm:$0xff]  ;;  %v17687_v1 = vld [vmem:[%s18194_s6] ss:$0 sm:$0xff] }
 0x5cd   : > { %v6574_v36 = vadd.f32 %v6528_v48, %v6240_v33  ;;  %v6575_v12 = vadd.f32 %v6545_v52, %v6241_v41  ;;  %v6804_v62 = vadd.f32 %v6764_v14, %v6564_v3  ;;  %v6495_v31 = vrot.slane %v17660_v30, 4  ;;  %v10235_v48 = vpop.f32.mrb[4].mxu0  ;;  %v10257_v41 = vpop.f32.mrb[4].mxu1  ;;  %9188 = vmatpush1.bf16.msra.mxu0 %v10687_v22  ;;  %v10693_v37 = vld [vmem:[#allocation3 + $0x540] ss:$16 sps:$4 sm:$0xff]  }
 0x5ce   : > { %5921 = vrot.lane.b32.xlu1 %v19706_v38, %s11291_s19  ;;  %v6542_v50 = vsel %vm1014_vm1, %v17588_v34, %v17633_v45  ;;  %v6546_v33 = vsel %vm1014_vm1, %v6530_v21, %v17670_v39  ;;  %v6505_v8 = vrot.slane %v17663_v16, 4  ;;  %v6566_v4 = vadd.f32 %v6538_v60, %v17617_v9  ;;  %v10236_v3 = vpop.f32.mrb[5].mxu0  ;;  %v10258_v28 = vpop.f32.mrb[5].mxu1  ;;  %9189 = vmatprep.subr.bf16.mxu0 %v10695_v13  ;;  %v10696_v34 = vld [vmem:[#allocation3 + $0x548] ss:$16 sps:$4 sm:$0xff]   ;;  %v19708_v9 = vld [vmem:[#allocation45_spill] sm:$0xff] }
 0x5cf   : > { %5931 = vrot.lane.b32.xlu0 %v19707_v15, %s11291_s19  ;;  %v6805_v10 = vadd.f32 %v6765_v61, %v6565_v0  ;;  %v6809_v14 = vadd.f32 %v17593_v17, %v6569_v44  ;;  %9274 = vmatpush1.bf16.msra.mxu1 %v10690_v56  ;;  %v6810_v21 = vadd.f32 %v17607_v6, %v6570_v19  ;;  %v10238_v52 = vpop.f32.mrb[6].mxu0  ;;  %v10260_v49 = vpop.f32.mrb[6].mxu1  ;;  %v6485_v46 = vrot.slane %v17665_v53, 4  ;;  %v19709_v13 = vld [vmem:[#allocation114_spill] sm:$0xff]  ;;  %v10701_v19 = vld [vmem:[#allocation3 + $0x564] ss:$16 sps:$4 sm:$0xff]  }
 0x5d0   : > { %v10237_v51 = vadd.f32 %v10236_v3, %v10235_v48  ;;  %v10259_v22 = vadd.f32 %v10258_v28, %v10257_v41  ;;  %9275 = vmatprep.subr.bf16.mxu1 %v10698_v7  ;;  %v6814_v61 = vadd.f32 %v17583_v35, %v6574_v36  ;;  %v6571_v17 = vadd.f32 %v6542_v50, %v17637_v5  ;;  %v8281_v44 = vpop.permute.xlu0 %8280  ;;  %v8279_v56 = vpop.permute.xlu1 %8278  ;;  %v10704_v50 = vld [vmem:[#allocation3 + $0x56c] ss:$16 sps:$4 sm:$0xff]   ;;  %v10702_v41 = vld [vmem:[#allocation3 + $0x568] ss:$16 sps:$4 sm:$0xff]  }
 0x5d1   : > { %v6576_v0 = vadd.f32 %v6546_v33, %v17645_v24  ;;  %v6815_v6 = vadd.f32 %v17598_v11, %v6575_v12  ;;  %v19710_v60 = vrot.slane %v19709_v13, %v19415_v18  ;;  %v8286_v7 = vsel %vm385_vm5, %v8279_v56, %v8281_v44  ;;  %v10239_v36 = vpop.f32.mrb[7].mxu0  ;;  %v10261_v5 = vpop.f32.mrb[7].mxu1  ;;  %9190 = vmatpush1.bf16.msra.mxu0 %v10693_v37  ;;  %v10699_v24 = vld [vmem:[#allocation3 + $0x560] ss:$16 sps:$4 sm:$0xff]  }
 0x5d2   : > { %5941 = vrot.lane.b32.xlu1 %v19708_v9, %s11291_s19  ;;  %v8210_v38 = vadd.f32 %v10237_v51, %v17687_v1  ;;  %v8294_v15 = vadd.f32 %v8279_v56, %v6804_v62  ;;  %v8299_v35 = vadd.f32 %v8279_v56, %v6809_v14  ;;  %v17721_v11 = vadd.f32 %v8286_v7, %v6805_v10  ;;  %v19711_v14 = vld [vmem:[#allocation118_spill] sm:$0xff]  ;;  %s17742_s19 = scalar_lea.vmem [#allocation8], %s17706_s16 }
 0x5d3   : > { %6724 = vrot.lane.b32.xlu0 %v19710_v60, %s11290_s29  ;;  %v17723_v12 = vadd.f32 %v8286_v7, %v6810_v21  ;;  %v8304_v33 = vadd.f32 %v8279_v56, %v6814_v61  ;;  %v6493_v48 = vrot.slane %v17656_v55, 4  ;;  %9276 = vmatpush1.bf16.msra.mxu1 %v10696_v34  ;;  %v10240_v62 = vadd.f32 %v10239_v36, %v10238_v52  ;;  %s9717_s8 = sshll.u32 %s17742_s19, 4  ;;  %s18136_s8 = int_to_ptr.vmem [resolvable:$true] %s9717_s8 }
 0x5d4   : > { %v8251_v3 = vadd.f32 %v10259_v22, %v8210_v38  ;;  %v8309_v28 = vmax.f32 %v8294_v15, 0.0  ;;  %v8314_v51 = vmax.f32 %v8299_v35, 0.0  ;;  %v19712_v9 = vrot.slane %v19711_v14, 4  ;;  %9191 = vmatprep.subr.bf16.mxu0 %v10701_v19  ;;  %v17734_v34 = vpop.permute.xlu0 %927  ;;  %v17736_v56 = vpop.permute.xlu1 %8282  ;;  %v19713_v22 = vld [vmem:[#allocation83_spill] sm:$0xff]  ;;  %9277 = vmatprep.subr.bf16.mxu1 %v10704_v50  ;;  %s11211_s16 = scalar_lea.vmem %s18136_s8, 512  ;;  %p11218_p4 = scmp.lt.s32.totalorder %s18136_s8, %s11216_s18 }
 0x5d5   : > { %v6806_v37 = vadd.f32 %v6766_v58, %v6566_v4  ;;  %v6811_v10 = vadd.f32 %v17614_v40, %v6571_v17  ;;  %v17732_v21 = vadd.f32 %v8286_v7, %v6815_v6  ;;  %v8319_v61 = vmax.f32 %v8304_v33, 0.0  ;;  %9192 = vmatpush1.bf16.msra.mxu0 %v10699_v24  ;;  %v10705_v4 = vld [vmem:[#allocation3 + $0x580] ss:$16 sps:$4 sm:$0xff]   ;;  %v10707_v17 = vld [vmem:[#allocation3 + $0x584] ss:$16 sps:$4 sm:$0xff]   ;;  %v19716_v33 = vld [vmem:[#allocation66_spill] sm:$0xff]  ;;  %p11212_p10 = scmp.ne.s32.totalorder %s18136_s8, %s11211_s16  ;;  %p11219_p7 = scmp.lt.s32.totalorder %s11217_s20, %s11211_s16 }
 0x5d6   : > { %6188 = vrot.lane.b32.xlu1 %v19712_v9, %s11290_s29  ;;  %v6816_v52 = vadd.f32 %v17626_v63, %v6576_v0  ;;  %8257 = vst [vmem:[%s17742_s19] sm:$0xff] %v8251_v3  ;;  %v8324_v57 = vpack.c.bf16 %v8314_v51, %v8309_v28  ;;  %v8213_v58 = vadd.f32 %v10240_v62, %v17687_v1  ;;  %v10710_v6 = vld [vmem:[#allocation3 + $0x58c] ss:$16 sps:$4 sm:$0xff]   ;;  %v8310_v13 = vmax.f32 %v17721_v11, 0.0  ;;  %v10708_v0 = vld [vmem:[#allocation3 + $0x588] ss:$16 sps:$4 sm:$0xff]   ;;  %v19718_v9 = vld [vmem:[#allocation93_spill] sm:$0xff] }
 0x5d7   : > { %6196 = vrot.lane.b32.xlu0 %v19713_v22, %s11290_s29  ;;  %v10262_v40 = vadd.f32 %v10261_v5, %v10260_v49  ;;  %v8315_v60 = vmax.f32 %v17723_v12, 0.0  ;;  %v8329_v19 = vpack.c.bf16 %v8319_v61, %v8319_v61  ;;  %v8287_v63 = vsel %vm385_vm5, %v8281_v44, %v17736_v56  ;;  %9278 = vmatpush1.bf16.msra.mxu1 %v10702_v41  ;;  %v19714_v49 = vld [vmem:[#allocation138_spill] sm:$0xff]  ;;  %v19715_v5 = vld [vmem:[#allocation143_spill] sm:$0xff]  ;;  %v17781_v22 = vld [vmem:[%s18190_s2 + $0x4] sm:$0xf]  ;;  %p11213_p2 = pnand %p11212_p10, %p19767_p1  ;;  %p11220_p8 = por %p11219_p7, %p11218_p4 }
 0x5d8   : > { %v8296_v7 = vadd.f32 %v8287_v63, %v6806_v37  ;;  %v8301_v15 = vadd.f32 %v8287_v63, %v6811_v10  ;;  %v8306_v1 = vadd.f32 %v8287_v63, %v6816_v52  ;;  %v8320_v35 = vmax.f32 %v17732_v21, 0.0  ;;  %v17756_v50 = vpop.permute.xlu0 %943  ;;  %v17758_v44 = vpop.permute.xlu1 %935  ;;  %9193 = vmatprep.subr.bf16.mxu0 %v10707_v17  ;;  %v10713_v12 = vld [vmem:[#allocation3 + $0x5a4] ss:$16 sps:$4 sm:$0xff]   ;;  %9279 = vmatprep.subr.bf16.mxu1 %v10710_v6  ;;  %v10711_v14 = vld [vmem:[#allocation3 + $0x5a0] ss:$16 sps:$4 sm:$0xff]  }
 0x5d9   : > { %v8254_v38 = vadd.f32 %v10262_v40, %v8213_v58  ;;  %v8497_v36 = vrot.slane %v8329_v19, 3  ;;  %v947_v24 = vsel %vm385_vm5, %v19715_v5, %v17734_v34  ;;  %v8496_v11 = vrot.slane %v8324_v57, 3  ;;  %v19717_v41 = vld [vmem:[#allocation115_spill] sm:$0xff]  ;;  %9194 = vmatpush1.bf16.msra.mxu0 %v10705_v4  ;;  %v19719_v37 = vld [vmem:[#allocation121_spill] sm:$0xff]  ;;  %v10714_v57 = vld [vmem:[#allocation3 + $0x5a8] ss:$16 sps:$4 sm:$0xff]   ;;  %p11214_p3 = pneg %p11213_p2 }
 0x5da   : > { %6204 = vrot.lane.b32.xlu1 %v19714_v49, %s11290_s29  ;;  %v757_v3 = vadd.f32 %v19717_v41, %v19716_v33  ;;  %v8311_v28 = vmax.f32 %v8296_v7, 0.0  ;;  %v8316_v51 = vmax.f32 %v8301_v15, 0.0  ;;  %v8321_v62 = vmax.f32 %v8306_v1, 0.0  ;;  %v10716_v58 = vld [vmem:[#allocation3 + $0x5ac] ss:$16 sps:$4 sm:$0xff]   ;;  %v19720_v40 = vld [vmem:[#allocation109_spill] sm:$0xff]  ;;  %9195 = vmatprep.subr.bf16.mxu0 %v10713_v12 }
 0x5db   : > { %6513 = vrot.lane.b32.xlu0 %v6485_v46, %s11292_s23  ;;  %8258 = vst [vmem:[%s17742_s19 + $0x8] sm:$0xff] %v8254_v38  ;;  %v762_v10 = vadd.f32 %v19719_v37, %v19718_v9  ;;  %v6496_v21 = vsel %vm5485_vm6, %v6486_v27, %v6495_v31  ;;  %v6506_v61 = vsel %vm5485_vm6, %v6495_v31, %v6505_v8  ;;  %v6503_v16 = vrot.slane %v17679_v20, 4  ;;  %v19721_v8 = vld [vmem:[#allocation70_spill] sm:$0xff]  ;;  %v11124_v38 = vld [vmem:[#allocation2 + $0x18] sm:$0x80]  ;;  %v17837_v41 = vld [vmem:[#allocation2 + $0x50] sm:$0xff]  ;;  %p11221_p11 = pnand %p11220_p8, %p11214_p3 }
 0x5dc   : > { %v8277_v52 = vrot.slane %v17781_v22, %v19415_v18  ;;  %9280 = vmatpush1.bf16.msra.mxu1 %v10708_v0  ;;  %v972_v4 = vadd.f32 %v947_v24, %v19720_v40  ;;  %v6494_v30 = vsel %vm5485_vm6, %v6485_v46, %v6493_v48  ;;  %v17795_v31 = vpack.c.bf16 %v8315_v60, %v8310_v13  ;;  %v1197_v6 = vpop.permute.xlu0 %1196  ;;  %v1549_v19 = vpop.permute.xlu1 %1548  ;;  %v19722_v46 = vld [vmem:[#allocation85_spill] sm:$0xff]  ;;  %v19723_v60 = vld [vmem:[#allocation79_spill] sm:$0xff]  ;;  %v17823_v49 = vld [vmem:[#allocation2 + $0x48] sm:$0xff] }
 0x5dd   : > { %v950_v17 = vsel %vm385_vm5, %v19721_v8, %v17758_v44  ;;  %v17801_v42 = vpack.c.bf16 %v8320_v35, %v8320_v35  ;;  %9281 = vmatprep.subr.bf16.mxu1 %v10716_v58  ;;  %v17806_v53 = vpack.c.bf16 %v8316_v51, %v8311_v28  ;;  %v17808_v20 = vpack.c.bf16 %v8321_v62, %v8321_v62  ;;  %v17818_v15 = vld [vmem:[#allocation2 + $0x20] sm:$0x80]  ;;  %v19725_v24 = vld [vmem:[#allocation74_spill] sm:$0xff]  ;;  %v17840_v51 = vld [vmem:[#allocation2 + $0x80] sm:$0x7f] }
 0x5de   : > { %6515 = vrot.lane.b32.xlu1 %v6486_v27, %s11292_s23  ;;  %v17804_v27 = vsel %vm4071_vm4, %v8496_v11, %v8497_v36  ;;  %v1222_v13 = vsel %vm1014_vm1, %v19722_v46, %v1197_v6  ;;  %v1552_v63 = vsel %vm385_vm5, %v19723_v60, %v1549_v19  ;;  %9196 = vmatpush1.bf16.msra.mxu0 %v10711_v14  ;;  %v19724_v36 = vld [vmem:[#allocation94_spill] sm:$0xff]  ;;  %v19728_v46 = vld [vmem:[#allocation100_spill] sm:$0xff] }
 0x5df   : > { %6523 = vrot.lane.b32.xlu0 %v6494_v30, %s11292_s23  ;;  %v17814_v0 = vadd.f32 %v1222_v13, %v972_v4  ;;  %v17816_v7 = vmul.f32 %v11124_v38, %v1552_v63  ;;  %v17821_v1 = vmul.f32 %v17818_v15, %v1549_v19  ;;  %v17826_v35 = vmul.f32 %v17823_v49, %v1552_v63  ;;  %v11130_v60 = vld [vmem:[#allocation2 + $0x78] sm:$0x7f] }
 0x5e0   : > { %9282 = vmatpush1.bf16.msra.mxu1 %v10714_v57  ;;  %v973_v5 = vadd.f32 %v17734_v34, %v19724_v36  ;;  %v953_v11 = vsel %vm385_vm5, %v19725_v24, %v17756_v50  ;;  %v977_v12 = vadd.f32 %v950_v17, %v757_v3  ;;  %v6504_v33 = vsel %vm5485_vm6, %v6493_v48, %v6503_v16  ;;  %v1207_v34 = vpop.permute.xlu0 %1206  ;;  %v1199_v14 = vpop.permute.xlu1 %1198  ;;  %v11129_v16 = vld [vmem:[#allocation2 + $0x80] sm:$0x3f] }
 0x5e1   : > { %v1567_v28 = vmul.f32 %v17837_v41, %v1549_v19  ;;  %v17843_v62 = vmul.f32 %v17840_v51, %v1549_v19  ;;  %v8499_v3 = vrot.slane %v17795_v31, 3  ;;  %v8500_v9 = vrot.slane %v17801_v42, 3  ;;  %v19727_v31 = vld [vmem:[#allocation22_spill] sm:$0xff]  ;;  %v10717_v42 = vld [vmem:[#allocation3 + $0x5c0] ss:$16 sps:$4 sm:$0xff]  }
 0x5e2   : > { %6525 = vrot.lane.b32.xlu1 %v6496_v21, %s11292_s23  ;;  %v8502_v55 = vrot.slane %v17806_v53, 3  ;;  %v8503_v48 = vrot.slane %v17808_v20, 3  ;;  %v1597_v37 = vrot.slane %v17816_v7, 1  ;;  %v19726_v21 = vld [vmem:[#allocation91_spill] sm:$0xff]  ;;  %v1598_v58 = vrot.slane %v17826_v35, 1 }
 0x5e3   : > { %6533 = vrot.lane.b32.xlu0 %v6504_v33, %s11292_s23  ;;  %v1226_v57 = vsel %vm1014_vm1, %v19726_v21, %v1207_v34  ;;  %v1600_v40 = vrot.slane %v17821_v1, 1  ;;  %v1223_v30 = vsel %vm1014_vm1, %v1197_v6, %v1199_v14  ;;  %v473_v8 = vmul.f32 %v11129_v16, %v19727_v31  ;;  %v10719_v53 = vld [vmem:[#allocation3 + $0x5c4] ss:$16 sps:$4 sm:$0xff]   ;;  %v10720_v20 = vld [vmem:[#allocation3 + $0x5c8] ss:$16 sps:$4 sm:$0xff]  }
 0x5e4   : > { %v17855_v4 = vadd.f32 %v1226_v57, %v977_v12  ;;  %v982_v17 = vadd.f32 %v953_v11, %v762_v10  ;;  %v1251_v19 = vadd.f32 %v1223_v30, %v973_v5  ;;  %v978_v13 = vadd.f32 %v17758_v44, %v19728_v46  ;;  %v1217_v6 = vpop.permute.xlu0 %1216  ;;  %v1209_v36 = vpop.permute.xlu1 %1208  ;;  %v10722_v10 = vld [vmem:[#allocation3 + $0x5cc] ss:$16 sps:$4 sm:$0xff]   ;;  %9197 = vmatprep.subr.bf16.mxu0 %v10719_v53  ;;  %v10723_v21 = vld [vmem:[#allocation3 + $0x5e0] ss:$16 sps:$4 sm:$0xff]   ;;  %v10726_v57 = vld [vmem:[#allocation3 + $0x5e8] ss:$16 sps:$4 sm:$0xff]  }
 0x5e5   : > { %v17862_v38 = vmul.f32 %v11130_v60, %v1552_v63  ;;  %v1601_v7 = vrot.slane %v1567_v28, 1  ;;  %v1611_v1 = vrot.slane %v17843_v62, 1  ;;  %v19729_v5 = vld [vmem:[#allocation38_spill] sm:$0xff]  ;;  %v19730_v11 = vld [vmem:[#allocation80_spill] sm:$0xff]  ;;  %v1227_v63 = vsel %vm1014_vm1, %v1207_v34, %v1209_v36  ;;  %9283 = vmatprep.subr.bf16.mxu1 %v10722_v10  ;;  %9198 = vmatpush1.bf16.msra.mxu0 %v10717_v42  ;;  %v17888_v53 = vld [vmem:[#allocation2 + $0x10] sm:$0xff] }
 0x5e6   : > { %6535 = vrot.lane.b32.xlu1 %v6506_v61, %s11292_s23  ;;  %v10725_v61 = vld [vmem:[#allocation3 + $0x5e4] ss:$16 sps:$4 sm:$0xff]   ;;  %v763_v24 = vadd.f32 %v19729_v5, %v473_v8  ;;  %v1230_v44 = vsel %vm1014_vm1, %v19730_v11, %v1217_v6  ;;  %v10728_v12 = vld [vmem:[#allocation3 + $0x5ec] ss:$16 sps:$4 sm:$0xff]   ;;  %v1256_v28 = vadd.f32 %v1227_v63, %v978_v13  ;;  %v8501_v14 = vsel %vm4071_vm4, %v8499_v3, %v8500_v9 }
 0x5e7   : > { %8284 = vrot.lane.b32.xlu0 %v8277_v52, %s11290_s29  ;;  %v1260_v33 = vadd.f32 %v1230_v44, %v982_v17  ;;  %v8504_v52 = vsel %vm4071_vm4, %v8502_v55, %v8503_v48  ;;  %9284 = vmatpush1.bf16.msra.mxu1 %v10720_v20  ;;  %v1609_v30 = vrot.slane %v17862_v38, 1  ;;  %v1612_v3 = vsel %vm1467_vm2, %v1601_v7, %v1611_v1  ;;  %v10731_v55 = vld [vmem:[#allocation3 + $0x604] ss:$16 sps:$4 sm:$0xff]   ;;  %v11131_v17 = vld [vmem:[#allocation2 + $0x28] sm:$0xc0]  ;;  %v19737_v62 = vld [vmem:[#allocation112_spill] sm:$0xff] }
 0x5e8   : > { %v983_v22 = vadd.f32 %v17756_v50, %v763_v24  ;;  %v1353_v34 = vpop.permute.xlu0 %1352  ;;  %v1219_v31 = vpop.permute.xlu1 %1218  ;;  %v1599_v50 = vsel %vm1467_vm2, %v1597_v37, %v1598_v58  ;;  %v1602_v9 = vsel %vm1467_vm2, %v1600_v40, %v1601_v7  ;;  %9199 = vmatprep.subr.bf16.mxu0 %v10725_v61  ;;  %v19731_v48 = vld [vmem:[#allocation55_spill] sm:$0xff]  ;;  %v11133_v46 = vld [vmem:[#allocation2 + $0x88] sm:$0x3f]  ;;  %9285 = vmatprep.subr.bf16.mxu1 %v10728_v12  ;;  %v11134_v38 = vld [vmem:[#allocation2 + $0x20] sm:$0xc0] }
 0x5e9   : > { %v1356_v8 = vsel %vm385_vm5, %v19731_v48, %v1353_v34  ;;  %v1366_v42 = vmul.f32 %v11131_v17, %v1353_v34  ;;  %v1371_v20 = vmul.f32 %v17888_v53, %v1353_v34  ;;  %v1376_v13 = vmul.f32 %v11133_v46, %v1353_v34  ;;  %v10734_v60 = vld [vmem:[#allocation3 + $0x60c] ss:$16 sps:$4 sm:$0xff]   ;;  %9200 = vmatpush1.bf16.msra.mxu0 %v10723_v21 }
 0x5ea   : > { %8513 = vrot.lane.b32.xlu1 %v8501_v14, %s11290_s29  ;;  %v1365_v36 = vmul.f32 %v11134_v38, %v1356_v8  ;;  %v1370_v37 = vmul.f32 %v17837_v41, %v1356_v8  ;;  %v1375_v40 = vmul.f32 %v11129_v16, %v1356_v8  ;;  %v1231_v7 = vsel %vm1014_vm1, %v1217_v6, %v1219_v31  ;;  %v19732_v21 = vld [vmem:[#allocation68_spill] sm:$0xff]  ;;  %v19735_v8 = vld [vmem:[#allocation135_spill] sm:$0xff] }
 0x5eb   : > { %8515 = vrot.lane.b32.xlu0 %v8504_v52, %s11290_s29  ;;  %v1261_v10 = vadd.f32 %v1231_v7, %v983_v22  ;;  %v1386_v61 = vadd.f32 %v1371_v20, %v1256_v28  ;;  %v1381_v5 = vadd.f32 %v1366_v42, %v1251_v19  ;;  %9286 = vmatpush1.bf16.msra.mxu1 %v10726_v57  ;;  %v19733_v57 = vld [vmem:[#allocation101_spill] sm:$0xff]  ;;  %v19736_v20 = vld [vmem:[#allocation123_spill] sm:$0xff] }
 0x5ec   : > { %v1914_v24 = vpop.permute.xlu0 %1913  ;;  %v1385_v11 = vadd.f32 %v1370_v37, %v17855_v4  ;;  %v1380_v44 = vadd.f32 %v1365_v36, %v17814_v0  ;;  %v1904_v63 = vpop.permute.xlu1 %1903  ;;  %v1390_v12 = vadd.f32 %v1375_v40, %v1260_v33  ;;  %9212 = vmatprep.subr.bf16.mxu0 %v10731_v55  ;;  %9298 = vmatprep.subr.bf16.mxu1 %v10734_v60  ;;  %v11135_v40 = vld [vmem:[#allocation2 + $0x28] sm:$0x80] }
 0x5ed   : > { %v1391_v16 = vadd.f32 %v1376_v13, %v1261_v10  ;;  %v1610_v6 = vsel %vm1467_vm2, %v1598_v58, %v1609_v30  ;;  %v1637_v28 = vadd.f32 %v1612_v3, %v1386_v61  ;;  %v1632_v19 = vadd.f32 %v1602_v9, %v1381_v5  ;;  %v19734_v3 = vld [vmem:[#allocation17_spill] sm:$0xff] }
 0x5ee   : > { %8511 = vrot.lane.b32.xlu1 %v17804_v27, %s11290_s29  ;;  %v1636_v14 = vadd.f32 %v1610_v6, %v1385_v11  ;;  %v1932_v27 = vsel %vm516_vm0, %v19732_v21, %v1914_v24  ;;  %v1631_v22 = vadd.f32 %v1599_v50, %v1380_v44  ;;  %v1641_v52 = vadd.f32 %v1609_v30, %v1390_v12  ;;  %v11136_v44 = vld [vmem:[#allocation2 + $0x88] sm:$0x7f] }
 0x5ef   : > { %v1961_v4 = vadd.f32 %v1914_v24, %v1637_v28  ;;  %v1928_v0 = vsel %vm516_vm0, %v19733_v57, %v1904_v63  ;;  %v1956_v33 = vadd.f32 %v1904_v63, %v1632_v19  ;;  %v1642_v34 = vadd.f32 %v1611_v1, %v1391_v16 }
 0x5f0   : > { %v1960_v31 = vadd.f32 %v1932_v27, %v1636_v14  ;;  %v1955_v35 = vadd.f32 %v1928_v0, %v1631_v22  ;;  %v2699_v55 = vpop.permute.xlu0 %2698  ;;  %v1924_v58 = vpop.permute.xlu1 %1923  ;;  %v17919_v27 = vld [vmem:[#allocation2 + $0x80] sm:$0xff] }
 0x5f1   : > { %v1936_v9 = vsel %vm516_vm0, %v19734_v3, %v1924_v58  ;;  %v2702_v50 = vsel %vm385_vm5, %v19735_v8, %v2699_v55  ;;  %v1966_v30 = vadd.f32 %v1924_v58, %v1642_v34  ;;  %v2712_v7 = vmul.f32 %v11135_v40, %v2699_v55 }
 0x5f2   : > { %v1965_v48 = vadd.f32 %v1936_v9, %v1641_v52  ;;  %v2711_v37 = vmul.f32 %v17818_v15, %v2702_v50  ;;  %v2716_v10 = vmul.f32 %v17837_v41, %v2702_v50  ;;  %v2717_v61 = vmul.f32 %v17888_v53, %v2699_v55  ;;  %v19738_v52 = vld [vmem:[#allocation142_spill] sm:$0xff] }
 0x5f3   : > { %v2721_v11 = vmul.f32 %v17840_v51, %v2702_v50  ;;  %v2722_v63 = vmul.f32 %v11136_v44, %v2699_v55  ;;  %v2750_v19 = vrot.slane %v2712_v7, 1  ;;  %v19741_v44 = vld [vmem:[#allocation136_spill] sm:$0xff] }
 0x5f4   : > { %v2179_v17 = vpop.permute.xlu0 %2178  ;;  %v2171_v42 = vpop.permute.xlu1 %2170  ;;  %v2747_v6 = vrot.slane %v2711_v37, 1  ;;  %v2748_v28 = vrot.slane %v2716_v10, 1  ;;  %v2751_v14 = vrot.slane %v2717_v61, 1 }
 0x5f5   : > { %v2193_v46 = vsel %vm385_vm5, %v19736_v20, %v2179_v17  ;;  %v2221_v13 = vadd.f32 %v2179_v17, %v1961_v4  ;;  %v2190_v1 = vsel %vm385_vm5, %v19737_v62, %v2171_v42  ;;  %v2216_v60 = vadd.f32 %v2171_v42, %v1956_v33  ;;  %v19740_v42 = vld [vmem:[#allocation144_spill] sm:$0xff] }
 0x5f6   : > { %v2220_v38 = vadd.f32 %v2193_v46, %v1960_v31  ;;  %v2215_v36 = vadd.f32 %v2190_v1, %v1955_v35  ;;  %v2759_v34 = vrot.slane %v2721_v11, 1  ;;  %v2761_v31 = vrot.slane %v2722_v63, 1 }
 0x5f7   : > { %v2749_v35 = vsel %vm1467_vm2, %v2747_v6, %v2748_v28  ;;  %v2752_v55 = vsel %vm1467_vm2, %v2750_v19, %v2751_v14 }
 0x5f8   : > { %v2925_v5 = vpop.permute.xlu0 %2924  ;;  %v2187_v24 = vpop.permute.xlu1 %2186  ;;  %v2762_v37 = vsel %vm1467_vm2, %v2751_v14, %v2761_v31 }
 0x5f9   : > { %v2938_v12 = vmul.f32 %v17837_v41, %v2925_v5  ;;  %v2226_v16 = vadd.f32 %v2187_v24, %v1966_v30  ;;  %v2943_v22 = vmul.f32 %v17919_v27, %v2925_v5  ;;  %v19739_v30 = vld [vmem:[#allocation119_spill] sm:$0xff] }
 0x5fa   : > { %v2196_v17 = vsel %vm385_vm5, %v19739_v30, %v2187_v24 }
 0x5fb   : > { %v2958_v57 = vrot.slane %v2938_v12, 2  ;;  %v2967_v50 = vrot.slane %v2943_v22, 2  ;;  %v2225_v40 = vadd.f32 %v2196_v17, %v1965_v48 }
 0x5fc   : > { %v2490_v15 = vpop.permute.xlu0 %2489  ;;  %v2488_v21 = vpop.permute.xlu1 %2487 }
 0x5fd   : > { %v2513_v4 = vsel %vm1014_vm1, %v19738_v52, %v2488_v21  ;;  %v2514_v51 = vsel %vm1014_vm1, %v2488_v21, %v2490_v15  ;;  %v2968_v12 = vsel %vm2853_vm3, %v2958_v57, %v2967_v50 }
 0x5fe   : > { %v2541_v0 = vadd.f32 %v2513_v4, %v2215_v36  ;;  %v2542_v33 = vadd.f32 %v2514_v51, %v2216_v60  ;;  %v2760_v36 = vsel %vm1467_vm2, %v2748_v28, %v2759_v34 }
 0x600   : > { %v2781_v58 = vadd.f32 %v2749_v35, %v2541_v0  ;;  %v2782_v3 = vadd.f32 %v2752_v55, %v2542_v33  ;;  %v2500_v9 = vpop.permute.xlu0 %2499  ;;  %v2498_v8 = vpop.permute.xlu1 %2497  ;;  %v19742_v55 = vld [vmem:[#allocation125_spill] sm:$0xff] }
 0x601   : > { %v2517_v20 = vsel %vm1014_vm1, %v19740_v42, %v2498_v8  ;;  %v2518_v46 = vsel %vm1014_vm1, %v2498_v8, %v2500_v9  ;;  %v19743_v42 = vld [vmem:[#allocation82_spill] sm:$0xff] }
 0x602   : > { %v2546_v62 = vadd.f32 %v2517_v20, %v2220_v38  ;;  %v2547_v1 = vadd.f32 %v2518_v46, %v2221_v13  ;;  %v2988_v60 = vadd.f32 %v2958_v57, %v2782_v3  ;;  %v2928_v3 = vsel %vm385_vm5, %v19742_v55, %v2925_v5 }
 0x604   : > { %v2786_v7 = vadd.f32 %v2760_v36, %v2546_v62  ;;  %v2787_v10 = vadd.f32 %v2762_v37, %v2547_v1  ;;  %v2510_v61 = vpop.permute.xlu0 %2509  ;;  %v2508_v11 = vpop.permute.xlu1 %2507  ;;  %v19744_v1 = vld [vmem:[#allocation127_spill] sm:$0xff]  ;;  %v19745_v36 = vld [vmem:[#allocation133_spill] sm:$0xff] }
 0x605   : > { %v2521_v24 = vsel %vm1014_vm1, %v19741_v44, %v2508_v11  ;;  %v2522_v63 = vsel %vm1014_vm1, %v2508_v11, %v2510_v61 }
 0x606   : > { %v2551_v6 = vadd.f32 %v2521_v24, %v2225_v40  ;;  %v2552_v38 = vadd.f32 %v2522_v63, %v2226_v16  ;;  %v2993_v13 = vadd.f32 %v2968_v12, %v2787_v10  ;;  %v2937_v16 = vmul.f32 %v17823_v49, %v2928_v3  ;;  %v19746_v24 = vld [vmem:[#allocation31_spill] sm:$0xff] }
 0x608   : > { %v2791_v19 = vadd.f32 %v2759_v34, %v2551_v6  ;;  %v2792_v15 = vadd.f32 %v2761_v31, %v2552_v38  ;;  %v3230_v28 = vpop.permute.xlu0 %3229  ;;  %v3220_v21 = vpop.permute.xlu1 %3219  ;;  %v17941_v34 = vld [vmem:[#allocation2 + $0x78] sm:$0xff]  ;;  %v2957_v30 = vrot.slane %v2937_v16, 2 }
 0x609   : > { %v2942_v31 = vmul.f32 %v17941_v34, %v2928_v3  ;;  %v3248_v49 = vsel %vm516_vm0, %v19744_v1, %v3230_v28  ;;  %v3244_v37 = vsel %vm516_vm0, %v19745_v36, %v3220_v21  ;;  %v3277_v12 = vadd.f32 %v3230_v28, %v2993_v13  ;;  %v19750_v1 = vld [vmem:[#allocation152_spill] sm:$0xff] }
 0x60a   : > { %v2998_v14 = vadd.f32 %v2967_v50, %v2792_v15  ;;  %v2987_v44 = vadd.f32 %v2957_v30, %v2781_v58  ;;  %v3272_v6 = vadd.f32 %v3220_v21, %v2988_v60 }
 0x60b   : > { %v2965_v17 = vrot.slane %v2942_v31, 2  ;;  %v19747_v31 = vld [vmem:[#allocation110_spill] sm:$0xff] }
 0x60c   : > { %v3922_v48 = vpop.permute.xlu0 %3921  ;;  %v3240_v22 = vpop.permute.xlu1 %3239 }
 0x60d   : > { %v3925_v20 = vsel %vm385_vm5, %v19743_v42, %v3922_v48  ;;  %v2966_v5 = vsel %vm2853_vm3, %v2957_v30, %v2965_v17  ;;  %v3935_v10 = vmul.f32 %v17888_v53, %v3922_v48  ;;  %v3252_v63 = vsel %vm516_vm0, %v19746_v24, %v3240_v22  ;;  %v19752_v24 = vld [vmem:[#allocation46_spill] sm:$0xff] }
 0x60e   : > { %v17956_v40 = vmul.f32 %v17837_v41, %v3925_v20  ;;  %v17960_v61 = vmul.f32 %v17919_v27, %v3925_v20  ;;  %v2992_v11 = vadd.f32 %v2966_v5, %v2786_v7  ;;  %v2997_v38 = vadd.f32 %v2965_v17, %v2791_v19  ;;  %v19748_v20 = vld [vmem:[#allocation150_spill] sm:$0xff]  ;;  %v19749_v17 = vld [vmem:[#allocation151_spill] sm:$0xff] }
 0x60f   : > { %v3271_v41 = vadd.f32 %v3244_v37, %v2987_v44  ;;  %v3282_v16 = vadd.f32 %v3240_v22, %v2998_v14  ;;  %v3955_v7 = vrot.slane %v3935_v10, 2  ;;  %v11139_v22 = vld [vmem:[#allocation2 + $0x50] sm:$0xfe]  ;;  %v11140_v10 = vld [vmem:[#allocation2 + $0xb0] sm:$0x1] }
 0x610   : > { %v3463_v52 = vpop.permute.xlu0 %3462  ;;  %v3455_v4 = vpop.permute.xlu1 %3454  ;;  %v3276_v3 = vadd.f32 %v3248_v49, %v2992_v11  ;;  %v3954_v42 = vrot.slane %v17956_v40, 2  ;;  %v3962_v58 = vrot.slane %v17960_v61, 2  ;;  %v3281_v30 = vadd.f32 %v3252_v63, %v2997_v38  ;;  %v11141_v38 = vld [vmem:[#allocation2 + $0x48] sm:$0xfe] }
 0x611   : > { %v3474_v48 = vsel %vm385_vm5, %v19747_v31, %v3455_v4  ;;  %v3477_v60 = vsel %vm385_vm5, %v19748_v20, %v3463_v52  ;;  %v3505_v13 = vadd.f32 %v3463_v52, %v3277_v12  ;;  %v3500_v19 = vadd.f32 %v3455_v4, %v3272_v6  ;;  %v19751_v4 = vld [vmem:[#allocation155_spill] sm:$0xff] }
 0x612   : > { %v3499_v21 = vadd.f32 %v3474_v48, %v3271_v41  ;;  %v3504_v6 = vadd.f32 %v3477_v60, %v3276_v3 }
 0x614   : > { %v4153_v51 = vpop.permute.xlu0 %4152  ;;  %v3471_v0 = vpop.permute.xlu1 %3470 }
 0x615   : > { %v4156_v14 = vsel %vm385_vm5, %v19749_v17, %v4153_v51  ;;  %v4166_v5 = vmul.f32 %v11139_v22, %v4153_v51  ;;  %v4171_v40 = vmul.f32 %v17919_v27, %v4153_v51  ;;  %v4176_v52 = vmul.f32 %v11140_v10, %v4153_v51  ;;  %v19753_v51 = vld [vmem:[#allocation39_spill] sm:$0xff] }
 0x616   : > { %v3510_v11 = vadd.f32 %v3471_v0, %v3282_v16  ;;  %v4165_v41 = vmul.f32 %v11141_v38, %v4156_v14  ;;  %v4170_v31 = vmul.f32 %v17941_v34, %v4156_v14  ;;  %v11142_v16 = vld [vmem:[#allocation2 + $0xa8] sm:$0x1] }
 0x617   : > { %v4196_v20 = vrot.slane %v4166_v5, 3  ;;  %v4175_v3 = vmul.f32 %v11142_v16, %v4156_v14  ;;  %v4215_v60 = vrot.slane %v4176_v52, 3  ;;  %v18021_v16 = vld [vmem:[#allocation2 + $0x80] sm:$0xff] }
 0x618   : > { %v3733_v33 = vpop.permute.xlu0 %3732  ;;  %v3731_v35 = vpop.permute.xlu1 %3730  ;;  %v4203_v10 = vrot.slane %v4170_v31, 3 }
 0x619   : > { %v3756_v49 = vsel %vm1014_vm1, %v19750_v1, %v3731_v35  ;;  %v3757_v44 = vsel %vm1014_vm1, %v3731_v35, %v3733_v33  ;;  %v4205_v33 = vrot.slane %v4171_v40, 3 }
 0x61a   : > { %v3784_v48 = vadd.f32 %v3756_v49, %v3499_v21  ;;  %v3963_v49 = vsel %vm2853_vm3, %v3954_v42, %v3962_v58 }
 0x61b   : > { %v4206_v40 = vsel %vm4071_vm4, %v4196_v20, %v4205_v33 }
 0x61c   : > { %v3743_v57 = vpop.permute.xlu0 %3742  ;;  %v3741_v9 = vpop.permute.xlu1 %3740  ;;  %v3984_v21 = vadd.f32 %v3954_v42, %v3784_v48  ;;  %v19755_v42 = vld [vmem:[#allocation52_spill] sm:$0xff] }
 0x61d   : > { %v3761_v28 = vsel %vm1014_vm1, %v3741_v9, %v3743_v57  ;;  %v3480_v57 = vsel %vm385_vm5, %v19751_v4, %v3471_v0  ;;  %v3760_v63 = vsel %vm1014_vm1, %v19752_v24, %v3741_v9 }
 0x61e   : > { %v3790_v12 = vadd.f32 %v3761_v28, %v3505_v13  ;;  %v3509_v35 = vadd.f32 %v3480_v57, %v3281_v30  ;;  %v3789_v9 = vadd.f32 %v3760_v63, %v3504_v6  ;;  %v4195_v28 = vrot.slane %v4165_v41, 3  ;;  %v19754_v63 = vld [vmem:[#allocation64_spill] sm:$0xff] }
 0x61f   : > { %v4213_v30 = vrot.slane %v4175_v3, 3  ;;  %v4216_v57 = vsel %vm4071_vm4, %v4205_v33, %v4215_v60  ;;  %v11143_v41 = vld [vmem:[#allocation2 + $0x58] sm:$0xfe] }
 0x620   : > { %v3753_v8 = vpop.permute.xlu0 %3752  ;;  %v3751_v50 = vpop.permute.xlu1 %3750  ;;  %v3990_v13 = vadd.f32 %v3955_v7, %v3790_v12  ;;  %v3989_v24 = vadd.f32 %v3963_v49, %v3789_v9  ;;  %v4204_v52 = vsel %vm4071_vm4, %v4195_v28, %v4203_v10 }
 0x621   : > { %v3765_v61 = vsel %vm1014_vm1, %v3751_v50, %v3753_v8  ;;  %v3764_v17 = vsel %vm1014_vm1, %v19753_v51, %v3751_v50  ;;  %v3785_v8 = vadd.f32 %v3757_v44, %v3500_v19  ;;  %v4235_v44 = vadd.f32 %v4195_v28, %v3984_v21 }
 0x622   : > { %v3795_v22 = vadd.f32 %v3765_v61, %v3510_v11  ;;  %v3794_v5 = vadd.f32 %v3764_v17, %v3509_v35  ;;  %v4241_v19 = vadd.f32 %v4206_v40, %v3990_v13  ;;  %v4240_v17 = vadd.f32 %v4204_v52, %v3989_v24  ;;  %v11144_v35 = vld [vmem:[#allocation2 + $0xb8] sm:$0x1]  ;;  %v19757_v13 = vld [vmem:[#allocation130_spill] sm:$0xff]  ;;  %v19758_v24 = vld [vmem:[#allocation25_spill] sm:$0xff] }
 0x623   : > { %v3985_v11 = vadd.f32 %v3955_v7, %v3785_v8  ;;  %v4214_v60 = vsel %vm4071_vm4, %v4203_v10, %v4213_v30 }
 0x624   : > { %v17946_v46 = vpop.permute.xlu0 %4517  ;;  %v17948_v62 = vpop.permute.xlu1 %4507  ;;  %v3995_v50 = vadd.f32 %v3955_v7, %v3795_v22  ;;  %v3994_v14 = vadd.f32 %v3962_v58, %v3794_v5  ;;  %v19756_v7 = vld [vmem:[#allocation50_spill] sm:$0xff] }
 0x625   : > { %v4536_v6 = vsel %vm516_vm0, %v19755_v42, %v17946_v46  ;;  %v4532_v38 = vsel %vm516_vm0, %v19756_v7, %v17948_v62  ;;  %v4236_v22 = vadd.f32 %v4196_v20, %v3985_v11  ;;  %v4565_v9 = vadd.f32 %v17946_v46, %v4241_v19  ;;  %v19759_v42 = vld [vmem:[#allocation158_spill] sm:$0xff] }
 0x626   : > { %v4246_v58 = vadd.f32 %v4216_v57, %v3995_v50  ;;  %v4564_v28 = vadd.f32 %v4536_v6, %v4240_v17  ;;  %v4559_v21 = vadd.f32 %v4532_v38, %v4235_v44  ;;  %v4245_v49 = vadd.f32 %v4214_v60, %v3994_v14 }
 0x627   : > { %v4560_v5 = vadd.f32 %v17948_v62, %v4236_v22  ;;  %v11147_v62 = vld [vmem:[#allocation2 + $0x50] sm:$0xfe] }
 0x628   : > { %v17966_v55 = vpop.permute.xlu1 %4527 }
 0x629   : > { %v17964_v15 = vpop.permute.xlu0 %5315  ;;  %v4540_v20 = vsel %vm516_vm0, %v19757_v13, %v17966_v55  ;;  %v4570_v11 = vadd.f32 %v17966_v55, %v4246_v58  ;;  %v11148_v58 = vld [vmem:[#allocation2 + $0x50] sm:$0xfc] }
 0x62a   : > { %v5319_v12 = vsel %vm385_vm5, %v19754_v63, %v17964_v15  ;;  %v18011_v31 = vmul.f32 %v11143_v41, %v17964_v15  ;;  %v18015_v33 = vmul.f32 %v17888_v53, %v17964_v15  ;;  %v18018_v8 = vmul.f32 %v11144_v35, %v17964_v15  ;;  %v11146_v15 = vld [vmem:[#allocation2 + $0xb0] sm:$0x1]  ;;  %v19760_v41 = vld [vmem:[#allocation97_spill] sm:$0xff] }
 0x62b   : > { %v18024_v3 = vmul.f32 %v18021_v16, %v5319_v12  ;;  %v18031_v50 = vmul.f32 %v11146_v15, %v5319_v12  ;;  %v4569_v52 = vadd.f32 %v4540_v20, %v4245_v49  ;;  %v5328_v14 = vmul.f32 %v11147_v62, %v5319_v12  ;;  %v19762_v35 = vld [vmem:[#allocation29_spill] sm:$0xff]  ;;  %v11150_v49 = vld [vmem:[#allocation2 + $0xb0] sm:$0x3] }
 0x62c   : > { %v17981_v37 = vpop.permute.xlu1 %4774  ;;  %v5359_v46 = vrot.slane %v18011_v31, 3  ;;  %v5368_v19 = vrot.slane %v18015_v33, 3  ;;  %v5378_v57 = vrot.slane %v18018_v8, 3 }
 0x62d   : > { %v17979_v36 = vpop.permute.xlu0 %4782  ;;  %v5366_v44 = vrot.slane %v18024_v3, 3  ;;  %v4794_v55 = vsel %vm385_vm5, %v19759_v42, %v17981_v37  ;;  %v4820_v38 = vadd.f32 %v17981_v37, %v4560_v5  ;;  %v19763_v3 = vld [vmem:[#allocation60_spill] sm:$0xff]  ;;  %v5358_v13 = vrot.slane %v5328_v14, 3 }
 0x62e   : > { %v4797_v10 = vsel %vm385_vm5, %v19758_v24, %v17979_v36  ;;  %v4825_v63 = vadd.f32 %v17979_v36, %v4565_v9  ;;  %v19761_v36 = vld [vmem:[#allocation43_spill] sm:$0xff]  ;;  %v4819_v9 = vadd.f32 %v4794_v55, %v4559_v21 }
 0x62f   : > { %v4824_v7 = vadd.f32 %v4797_v10, %v4564_v28  ;;  %v11149_v28 = vld [vmem:[#allocation2 + $0x48] sm:$0xfc]  ;;  %v11151_v10 = vld [vmem:[#allocation2 + $0xa8] sm:$0x3] }
 0x630   : > { %v17995_v0 = vpop.permute.xlu1 %4790 }
 0x631   : > { %v17993_v1 = vpop.permute.xlu0 %5566  ;;  %v4800_v60 = vsel %vm385_vm5, %v19763_v3, %v17995_v0  ;;  %v5379_v3 = vsel %vm4071_vm4, %v5368_v19, %v5378_v57 }
 0x632   : > { %v5570_v31 = vsel %vm385_vm5, %v19760_v41, %v17993_v1  ;;  %v5580_v12 = vmul.f32 %v11148_v58, %v17993_v1  ;;  %v5585_v17 = vmul.f32 %v17919_v27, %v17993_v1  ;;  %v5590_v15 = vmul.f32 %v11150_v49, %v17993_v1 }
 0x633   : > { %v5579_v5 = vmul.f32 %v11149_v28, %v5570_v31  ;;  %v5584_v27 = vmul.f32 %v17941_v34, %v5570_v31  ;;  %v5589_v62 = vmul.f32 %v11151_v10, %v5570_v31  ;;  %v5376_v34 = vrot.slane %v18031_v50, 3 }
 0x634   : > { %v5105_v61 = vpop.permute.xlu1 %5104  ;;  %v5610_v42 = vrot.slane %v5580_v12, 4  ;;  %v5619_v14 = vrot.slane %v5585_v17, 4  ;;  %v5367_v1 = vsel %vm4071_vm4, %v5358_v13, %v5366_v44 }
 0x635   : > { %v5107_v4 = vpop.permute.xlu0 %5106  ;;  %v5130_v22 = vsel %vm1014_vm1, %v19761_v36, %v5105_v61  ;;  %v4830_v36 = vadd.f32 %v17995_v0, %v4570_v11  ;;  %v5627_v17 = vrot.slane %v5589_v62, 4 }
 0x636   : > { %v5131_v33 = vsel %vm1014_vm1, %v5105_v61, %v5107_v4  ;;  %v5369_v4 = vsel %vm4071_vm4, %v5359_v46, %v5368_v19  ;;  %v5158_v61 = vadd.f32 %v5130_v22, %v4819_v9  ;;  %v5377_v9 = vsel %vm4071_vm4, %v5366_v44, %v5376_v34  ;;  %v11152_v44 = vld [vmem:[#allocation2 + $0x58] sm:$0xfc] }
 0x638   : > { %v5115_v51 = vpop.permute.xlu1 %5114  ;;  %v5398_v22 = vadd.f32 %v5358_v13, %v5158_v61 }
 0x639   : > { %v5117_v48 = vpop.permute.xlu0 %5116 }
 0x63a   : > { %v5135_v6 = vsel %vm1014_vm1, %v5115_v51, %v5117_v48  ;;  %v5134_v48 = vsel %vm1014_vm1, %v19762_v35, %v5115_v51  ;;  %v5159_v51 = vadd.f32 %v5131_v33, %v4820_v38  ;;  %v5609_v38 = vrot.slane %v5579_v5, 4 }
 0x63b   : > { %v5164_v20 = vadd.f32 %v5135_v6, %v4825_v63  ;;  %v5163_v24 = vadd.f32 %v5134_v48, %v4824_v7  ;;  %v4829_v63 = vadd.f32 %v4800_v60, %v4569_v52  ;;  %v5617_v7 = vrot.slane %v5584_v27, 4 }
 0x63c   : > { %v5125_v30 = vpop.permute.xlu1 %5124  ;;  %v5399_v31 = vadd.f32 %v5359_v46, %v5159_v51  ;;  %v5629_v52 = vrot.slane %v5590_v15, 4  ;;  %v5620_v35 = vsel %vm5485_vm6, %v5610_v42, %v5619_v14  ;;  %v5649_v13 = vadd.f32 %v5609_v38, %v5398_v22 }
 0x63d   : > { %v5127_v40 = vpop.permute.xlu0 %5126  ;;  %v5138_v21 = vsel %vm1014_vm1, %v16988_v23, %v5125_v30  ;;  %v5404_v41 = vadd.f32 %v5369_v4, %v5164_v20  ;;  %v5403_v12 = vadd.f32 %v5367_v1, %v5163_v24  ;;  %v5618_v60 = vsel %vm5485_vm6, %v5609_v38, %v5617_v7 }
 0x63e   : > { %v5139_v58 = vsel %vm1014_vm1, %v5125_v30, %v5127_v40  ;;  %v5168_v23 = vadd.f32 %v5138_v21, %v4829_v63  ;;  %v5650_v20 = vadd.f32 %v5610_v42, %v5399_v31  ;;  %v5628_v19 = vsel %vm5485_vm6, %v5617_v7, %v5627_v17 }
 0x63f   : > { %v5169_v33 = vadd.f32 %v5139_v58, %v4830_v36  ;;  %v5655_v40 = vadd.f32 %v5620_v35, %v5404_v41  ;;  %v5654_v11 = vadd.f32 %v5618_v60, %v5403_v12  ;;  %v5630_v57 = vsel %vm5485_vm6, %v5619_v14, %v5629_v52 }
 0x640   : > { %v5922_v37 = vpop.permute.xlu1 %5921  ;;  %v5408_v30 = vadd.f32 %v5377_v9, %v5168_v23 }
 0x641   : > { %v5932_v8 = vpop.permute.xlu0 %5931  ;;  %v5946_v46 = vsel %vm516_vm0, %v17044_v29, %v5922_v37  ;;  %v5409_v5 = vadd.f32 %v5379_v3, %v5169_v33  ;;  %v5974_v51 = vadd.f32 %v5922_v37, %v5650_v20  ;;  %v11154_v37 = vld [vmem:[#allocation2 + $0xb8] sm:$0x3] }
 0x642   : > { %v5950_v0 = vsel %vm516_vm0, %v17107_v47, %v5932_v8  ;;  %v5979_v47 = vadd.f32 %v5932_v8, %v5655_v40  ;;  %v5973_v61 = vadd.f32 %v5946_v46, %v5649_v13  ;;  %v11153_v8 = vld [vmem:[#allocation2 + $0x50] sm:$0xfc] }
 0x643   : > { %v5978_v4 = vadd.f32 %v5950_v0, %v5654_v11  ;;  %v5660_v34 = vadd.f32 %v5630_v57, %v5409_v5 }
 0x644   : > { %v18066_v6 = vpop.permute.xlu1 %5941 }
 0x645   : > { %v6725_v55 = vpop.permute.xlu0 %6724  ;;  %v5954_v10 = vsel %vm516_vm0, %v19688_v25, %v18066_v6  ;;  %v5984_v9 = vadd.f32 %v18066_v6, %v5660_v34 }
 0x646   : > { %v6728_v28 = vsel %vm385_vm5, %v17326_v32, %v6725_v55  ;;  %v6738_v27 = vmul.f32 %v11152_v44, %v6725_v55  ;;  %v6743_v24 = vmul.f32 %v17888_v53, %v6725_v55  ;;  %v5659_v32 = vadd.f32 %v5628_v19, %v5408_v30 }
 0x647   : > { %v6742_v29 = vmul.f32 %v18021_v16, %v6728_v28  ;;  %v6747_v21 = vmul.f32 %v17676_v43, %v6728_v28  ;;  %v6737_v14 = vmul.f32 %v11153_v8, %v6728_v28  ;;  %v6748_v63 = vmul.f32 %v11154_v37, %v6725_v55 }
 0x648   : > { %v6189_v50 = vpop.permute.xlu1 %6188  ;;  %v6768_v16 = vrot.slane %v6738_v27, 4  ;;  %v6777_v58 = vrot.slane %v6743_v24, 4  ;;  %v5983_v38 = vadd.f32 %v5954_v10, %v5659_v32 }
 0x649   : > { %v6197_v48 = vpop.permute.xlu0 %6196  ;;  %v6208_v42 = vsel %vm385_vm5, %v19698_v26, %v6189_v50  ;;  %v6234_v53 = vadd.f32 %v6189_v50, %v5974_v51  ;;  %v6775_v36 = vrot.slane %v6742_v29, 4  ;;  %v6785_v23 = vrot.slane %v6747_v21, 4 }
 0x64a   : > { %v6211_v62 = vsel %vm385_vm5, %v17442_v59, %v6197_v48  ;;  %v6233_v55 = vadd.f32 %v6208_v42, %v5973_v61  ;;  %v6767_v22 = vrot.slane %v6737_v14, 4  ;;  %v6239_v12 = vadd.f32 %v6197_v48, %v5979_v47 }
 0x64b   : > { %v6238_v7 = vadd.f32 %v6211_v62, %v5978_v4  ;;  %v6787_v50 = vrot.slane %v6748_v63, 4  ;;  %v6786_v48 = vsel %vm5485_vm6, %v6775_v36, %v6785_v23  ;;  %v6778_v0 = vsel %vm5485_vm6, %v6768_v16, %v6777_v58  ;;  %v10729_v63 = vld [vmem:[#allocation3 + $0x600] ss:$16 sps:$4 sm:$0xff]   ;;  %v10743_v23 = vld [vmem:[#allocation3 + $0x644] ss:$16 sps:$4 sm:$0xff]  }
 0x64c   : > { %v6205_v15 = vpop.permute.xlu1 %6204  ;;  %v6776_v30 = vsel %vm5485_vm6, %v6767_v22, %v6775_v36 }
 0x64d   : > { %v6514_v49 = vpop.permute.xlu0 %6513  ;;  %v6214_v25 = vsel %vm385_vm5, %v17486_v54, %v6205_v15  ;;  %v6244_v5 = vadd.f32 %v6205_v15, %v5984_v9  ;;  %v6788_v61 = vsel %vm5485_vm6, %v6777_v58, %v6787_v50  ;;  %v10753_v50 = vld [vmem:[#allocation3 + $0x680] ss:$16 sps:$4 sm:$0xff]   ;;  %v10756_v9 = vld [vmem:[#allocation3 + $0x688] ss:$16 sps:$4 sm:$0xff]  }
 0x64e   : > { %v6539_v41 = vsel %vm1014_vm1, %v17561_v2, %v6514_v49  ;;  %v6243_v52 = vadd.f32 %v6214_v25, %v5983_v38  ;;  %v10735_v38 = vld [vmem:[#allocation3 + $0x620] ss:$16 sps:$4 sm:$0xff]  }
 0x64f   : > { %v6567_v17 = vadd.f32 %v6539_v41, %v6233_v55 }
 0x650   : > { %v6516_v43 = vpop.permute.xlu1 %6515 }
 0x651   : > { %v6524_v1 = vpop.permute.xlu0 %6523  ;;  %v6540_v26 = vsel %vm1014_vm1, %v6514_v49, %v6516_v43  ;;  %v6807_v46 = vadd.f32 %v6767_v22, %v6567_v17  ;;  %v10737_v43 = vld [vmem:[#allocation3 + $0x624] ss:$16 sps:$4 sm:$0xff]   ;;  %v10746_v22 = vld [vmem:[#allocation3 + $0x64c] ss:$16 sps:$4 sm:$0xff]   ;;  %v10744_v17 = vld [vmem:[#allocation3 + $0x648] ss:$16 sps:$4 sm:$0xff]  }
 0x652   : > { %v6543_v59 = vsel %vm1014_vm1, %v17633_v45, %v6524_v1  ;;  %v6568_v31 = vadd.f32 %v6540_v26, %v6234_v53 }
 0x653   : > { %v6572_v2 = vadd.f32 %v6543_v59, %v6238_v7  ;;  %v10740_v59 = vld [vmem:[#allocation3 + $0x62c] ss:$16 sps:$4 sm:$0xff]   ;;  %v10738_v7 = vld [vmem:[#allocation3 + $0x628] ss:$16 sps:$4 sm:$0xff]  }
 0x654   : > { %v6526_v35 = vpop.permute.xlu1 %6525  ;;  %v6808_v60 = vadd.f32 %v6768_v16, %v6568_v31 }
 0x655   : > { %v6534_v33 = vpop.permute.xlu0 %6533  ;;  %v6544_v45 = vsel %vm1014_vm1, %v6524_v1, %v6526_v35  ;;  %v6812_v11 = vadd.f32 %v6776_v30, %v6572_v2  ;;  %v10732_v1 = vld [vmem:[#allocation3 + $0x608] ss:$16 sps:$4 sm:$0xff]   ;;  %v10752_v2 = vld [vmem:[#allocation3 + $0x66c] ss:$16 sps:$4 sm:$0xff]   ;;  %v10759_v30 = vld [vmem:[#allocation3 + $0x6a0] ss:$16 sps:$4 sm:$0xff]  }
 0x656   : > { %v6547_v54 = vsel %vm1014_vm1, %v17670_v39, %v6534_v33  ;;  %v6573_v40 = vadd.f32 %v6544_v45, %v6239_v12  ;;  %v10741_v12 = vld [vmem:[#allocation3 + $0x640] ss:$16 sps:$4 sm:$0xff]   ;;  %v10750_v35 = vld [vmem:[#allocation3 + $0x668] ss:$16 sps:$4 sm:$0xff]   ;;  %v10758_v45 = vld [vmem:[#allocation3 + $0x68c] ss:$16 sps:$4 sm:$0xff]  }
 0x657   : > { %v6577_v3 = vadd.f32 %v6547_v54, %v6243_v52  ;;  %v10749_v52 = vld [vmem:[#allocation3 + $0x664] ss:$16 sps:$4 sm:$0xff]  }
 0x658   : > { %v6813_v20 = vadd.f32 %v6778_v0, %v6573_v40  ;;  %v6536_v39 = vpop.permute.xlu1 %6535  ;;  %v10755_v54 = vld [vmem:[#allocation3 + $0x684] ss:$16 sps:$4 sm:$0xff]   ;;  %v10764_v40 = vld [vmem:[#allocation3 + $0x6ac] ss:$16 sps:$4 sm:$0xff]  }
 0x659   : > { %v6817_v13 = vadd.f32 %v6786_v48, %v6577_v3  ;;  %v8285_v28 = vpop.permute.xlu0 %8284  ;;  %v6548_v27 = vsel %vm1014_vm1, %v6534_v33, %v6536_v39  ;;  %v10747_v33 = vld [vmem:[#allocation3 + $0x660] ss:$16 sps:$4 sm:$0xff]   ;;  %v10761_v3 = vld [vmem:[#allocation3 + $0x6a4] ss:$16 sps:$4 sm:$0xff]   ;;  %v10770_v0 = vld [vmem:[#allocation3 + $0x6cc] ss:$16 sps:$4 sm:$0xff]  }
 0x65a   : > { %v8288_v44 = vsel %vm385_vm5, %v17736_v56, %v8285_v28  ;;  %v8298_v6 = vadd.f32 %v8285_v28, %v6808_v60  ;;  %v8303_v49 = vadd.f32 %v8285_v28, %v6813_v20  ;;  %v6578_v51 = vadd.f32 %v6548_v27, %v6244_v5  ;;  %v10762_v60 = vld [vmem:[#allocation3 + $0x6a8] ss:$16 sps:$4 sm:$0xff]   ;;  %v10767_v48 = vld [vmem:[#allocation3 + $0x6c4] ss:$16 sps:$4 sm:$0xff]   ;;  %v10776_v20 = vld [vmem:[#allocation3 + $0x6ec] ss:$16 sps:$4 sm:$0xff]  }
 0x65b   : > { %v8297_v19 = vadd.f32 %v8288_v44, %v6807_v46  ;;  %v8302_v57 = vadd.f32 %v8288_v44, %v6812_v11  ;;  %v8307_v4 = vadd.f32 %v8288_v44, %v6817_v13  ;;  %v10765_v46 = vld [vmem:[#allocation3 + $0x6c0] ss:$16 sps:$4 sm:$0xff]   ;;  %v10768_v11 = vld [vmem:[#allocation3 + $0x6c8] ss:$16 sps:$4 sm:$0xff]   ;;  %v10773_v13 = vld [vmem:[#allocation3 + $0x6e4] ss:$16 sps:$4 sm:$0xff]  }
 0x65c   : > { %v8313_v47 = vmax.f32 %v8298_v6, 0.0  ;;  %v8318_v21 = vmax.f32 %v8303_v49, 0.0  ;;  %v8514_v15 = vpop.permute.xlu1 %8513  ;;  %v6818_v62 = vadd.f32 %v6788_v61, %v6578_v51  ;;  %v10774_v39 = vld [vmem:[#allocation3 + $0x6e8] ss:$16 sps:$4 sm:$0xff]   ;;  %v10779_v5 = vld [vmem:[#allocation3 + $0x704] ss:$16 sps:$4 sm:$0xff]  }
 0x65d   : > { %v8312_v29 = vmax.f32 %v8297_v19, 0.0  ;;  %v8317_v24 = vmax.f32 %v8302_v57, 0.0  ;;  %v8322_v32 = vmax.f32 %v8307_v4, 0.0  ;;  %v18112_v10 = vpop.permute.xlu0 %8515  ;;  %v10782_v44 = vld [vmem:[#allocation3 + $0x70c] ss:$16 sps:$4 sm:$0xff]  }
 0x65e   : > { %v8522_v56 = vsel %vm385_vm5, %v8514_v15, %v18112_v10  ;;  %v8328_v42 = vpack.c.bf16 %v8318_v21, %v8313_v47  ;;  %v8308_v37 = vadd.f32 %v8285_v28, %v6818_v62  ;;  %v10771_v28 = vld [vmem:[#allocation3 + $0x6e0] ss:$16 sps:$4 sm:$0xff]   ;;  %v10780_v27 = vld [vmem:[#allocation3 + $0x708] ss:$16 sps:$4 sm:$0xff]   ;;  %v10785_v19 = vld [vmem:[#allocation3 + $0x724] ss:$16 sps:$4 sm:$0xff]  }
 0x65f   : > { %9201 = vmatprep.mubr.bf16.mxu0 %v8522_v56  ;;  %9287 = vmatprep.mubr.bf16.mxu1 %v8522_v56  ;;  %v8327_v8 = vpack.c.bf16 %v8317_v24, %v8312_v29  ;;  %v8332_v14 = vpack.c.bf16 %v8322_v32, %v8322_v32  ;;  %v10777_v6 = vld [vmem:[#allocation3 + $0x700] ss:$16 sps:$4 sm:$0xff]   ;;  %v10788_v57 = vld [vmem:[#allocation3 + $0x72c] ss:$16 sps:$4 sm:$0xff]   ;;  %v10786_v4 = vld [vmem:[#allocation3 + $0x728] ss:$16 sps:$4 sm:$0xff]  }
 0x660   : > { %v8512_v16 = vpop.permute.xlu1 %8511  ;;  %v8323_v41 = vmax.f32 %v8308_v37, 0.0  ;;  %v8508_v55 = vrot.slane %v8328_v42, 3  ;;  %v10783_v49 = vld [vmem:[#allocation3 + $0x720] ss:$16 sps:$4 sm:$0xff]   ;;  %v10791_v47 = vld [vmem:[#allocation3 + $0x744] ss:$16 sps:$4 sm:$0xff]  }
 0x661   : > { %v8505_v34 = vrot.slane %v8327_v8, 3  ;;  %v8506_v53 = vrot.slane %v8332_v14, 3  ;;  %v8521_v25 = vsel %vm385_vm5, %v8512_v16, %v8514_v15  ;;  %v10794_v61 = vld [vmem:[#allocation3 + $0x74c] ss:$16 sps:$4 sm:$0xff]   ;;  %v10789_v51 = vld [vmem:[#allocation3 + $0x740] ss:$16 sps:$4 sm:$0xff]  }
 0x662   : > { %9202 = vmatmul.mubr.bf16.vlgmr.msra.gmra.mrb[8].mxu0 %v8521_v25  ;;  %9288 = vmatmul.mubr.bf16.vlgmr.msra.gmra.mrb[8].mxu1 %v8521_v25  ;;  %v8333_v58 = vpack.c.bf16 %v8323_v41, %v8323_v41  ;;  %v10792_v29 = vld [vmem:[#allocation3 + $0x748] ss:$16 sps:$4 sm:$0xff]   ;;  %v10797_v24 = vld [vmem:[#allocation3 + $0x764] ss:$16 sps:$4 sm:$0xff]   ;;  %v10800_v21 = vld [vmem:[#allocation3 + $0x76c] ss:$16 sps:$4 sm:$0xff]  }
 0x663   : > { %v8507_v26 = vsel %vm4071_vm4, %v8505_v34, %v8506_v53  ;;  %9213 = vmatpush1.bf16.msra.mxu0 %v10729_v63  ;;  %9299 = vmatpush1.bf16.msra.mxu1 %v10732_v1  ;;  %v10795_v32 = vld [vmem:[#allocation3 + $0x760] ss:$16 sps:$4 sm:$0xff]   ;;  %v10798_v15 = vld [vmem:[#allocation3 + $0x768] ss:$16 sps:$4 sm:$0xff]   ;;  %v10803_v62 = vld [vmem:[#allocation3 + $0x784] ss:$16 sps:$4 sm:$0xff]  }
 0x664   : > { %8517 = vrot.lane.b32.xlu0 %v8507_v26, %s11290_s29  ;;  %9214 = vmatprep.subr.bf16.mxu0 %v10737_v43  ;;  %v8509_v36 = vrot.slane %v8333_v58, 3  ;;  %v10806_v56 = vld [vmem:[#allocation3 + $0x78c] ss:$16 sps:$4 sm:$0xff]   ;;  %v10801_v42 = vld [vmem:[#allocation3 + $0x780] ss:$16 sps:$4 sm:$0xff]  }
 0x665   : > { %9300 = vmatprep.subr.bf16.mxu1 %v10740_v59  ;;  %v10804_v8 = vld [vmem:[#allocation3 + $0x788] ss:$16 sps:$4 sm:$0xff]   ;;  %v10809_v14 = vld [vmem:[#allocation3 + $0x7a4] ss:$16 sps:$4 sm:$0xff]   ;;  %v10812_v37 = vld [vmem:[#allocation3 + $0x7ac] ss:$16 sps:$4 sm:$0xff]  }
 0x666   : > { %v8510_v31 = vsel %vm4071_vm4, %v8508_v55, %v8509_v36  ;;  %v10807_v63 = vld [vmem:[#allocation3 + $0x7a0] ss:$16 sps:$4 sm:$0xff]   ;;  %v10810_v16 = vld [vmem:[#allocation3 + $0x7a8] ss:$16 sps:$4 sm:$0xff]   ;;  %v10815_v34 = vld [vmem:[#allocation3 + $0x7c4] ss:$16 sps:$4 sm:$0xff]  }
 0x667   : > { %9215 = vmatpush1.bf16.msra.mxu0 %v10735_v38  ;;  %8519 = vrot.lane.b32.xlu1 %v8510_v31, %s11290_s29  ;;  %v10818_v53 = vld [vmem:[#allocation3 + $0x7cc] ss:$16 sps:$4 sm:$0xff]   ;;  %v10813_v1 = vld [vmem:[#allocation3 + $0x7c0] ss:$16 sps:$4 sm:$0xff]   ;;  %v10816_v43 = vld [vmem:[#allocation3 + $0x7c8] ss:$16 sps:$4 sm:$0xff]  }
 0x668   : > { %9301 = vmatpush1.bf16.msra.mxu1 %v10738_v7  ;;  %9216 = vmatprep.subr.bf16.mxu0 %v10743_v23  ;;  %v10821_v41 = vld [vmem:[#allocation3 + $0x7e4] ss:$16 sps:$4 sm:$0xff]   ;;  %v10824_v25 = vld [vmem:[#allocation3 + $0x7ec] ss:$16 sps:$4 sm:$0xff]   ;;  %v10819_v59 = vld [vmem:[#allocation3 + $0x7e0] ss:$16 sps:$4 sm:$0xff]  }
 0x669   : > { %9302 = vmatprep.subr.bf16.mxu1 %v10746_v22  ;;  %v10822_v26 = vld [vmem:[#allocation3 + $0x7e8] ss:$16 sps:$4 sm:$0xff]   ;;  %v10825_v58 = vld [vmem:[#allocation6 + $0x140] sm:$0xff]  }
 0x66a   : > { %v10826_v38 = vld [vmem:[#allocation6 + $0x1c0] sm:$0xff]   ;;  %v10829_v31 = vld [vmem:[#allocation6 + $0x148] sm:$0xff]  }
 0x66b   : > { %9217 = vmatpush1.bf16.msra.mxu0 %v10741_v12  ;;  %v10827_v36 = vld [vmem:[#allocation6 + $0x100] sm:$0xff]   ;;  %v10830_v12 = vld [vmem:[#allocation6 + $0x1c8] sm:$0xff]  }
 0x66c   : > { %9303 = vmatpush1.bf16.msra.mxu1 %v10744_v17  ;;  %9218 = vmatprep.subr.bf16.mxu0 %v10749_v52  ;;  %v10828_v23 = vld [vmem:[#allocation6 + $0x180] sm:$0xff]   ;;  %v10831_v52 = vld [vmem:[#allocation6 + $0x108] sm:$0xff]  }
 0x66d   : > { %9304 = vmatprep.subr.bf16.mxu1 %v10752_v2  ;;  %v10832_v2 = vld [vmem:[#allocation6 + $0x188] sm:$0xff]  }
 0x66f   : > { %9219 = vmatpush1.bf16.msra.mxu0 %v10747_v33  ;;  %v10833_v33 = vld [vmem:[#allocation6 + $0x150] sm:$0xff]  }
 0x670   : > { %9305 = vmatpush1.bf16.msra.mxu1 %v10750_v35  ;;  %9220 = vmatprep.subr.bf16.mxu0 %v10755_v54  ;;  %v10834_v35 = vld [vmem:[#allocation6 + $0x1d0] sm:$0xff]  }
 0x671   : > { %9306 = vmatprep.subr.bf16.mxu1 %v10758_v45  ;;  %v10835_v54 = vld [vmem:[#allocation6 + $0x110] sm:$0xff]  }
 0x672   : > { %v10836_v45 = vld [vmem:[#allocation6 + $0x190] sm:$0xff]  }
 0x673   : > { %9221 = vmatpush1.bf16.msra.mxu0 %v10753_v50  ;;  %v10837_v50 = vld [vmem:[#allocation6 + $0x158] sm:$0xff]  }
 0x674   : > { %9307 = vmatpush1.bf16.msra.mxu1 %v10756_v9  ;;  %9222 = vmatprep.subr.bf16.mxu0 %v10761_v3  ;;  %v10839_v9 = vld [vmem:[#allocation6 + $0x118] sm:$0xff]  }
 0x675   : > { %9308 = vmatprep.subr.bf16.mxu1 %v10764_v40  ;;  %v10840_v3 = vld [vmem:[#allocation6 + $0x198] sm:$0xff]   ;;  %v10841_v40 = vld [vmem:[#allocation6 + $0x160] sm:$0xff]  }
 0x677   : > { %9223 = vmatpush1.bf16.msra.mxu0 %v10759_v30  ;;  %v10842_v30 = vld [vmem:[#allocation6 + $0x1e0] sm:$0xff]  }
 0x678   : > { %9309 = vmatpush1.bf16.msra.mxu1 %v10762_v60  ;;  %9224 = vmatprep.subr.bf16.mxu0 %v10767_v48  ;;  %v10843_v60 = vld [vmem:[#allocation6 + $0x120] sm:$0xff]  }
 0x679   : > { %9310 = vmatprep.subr.bf16.mxu1 %v10770_v0  ;;  %v10844_v48 = vld [vmem:[#allocation6 + $0x1a0] sm:$0xff]   ;;  %v10845_v0 = vld [vmem:[#allocation6 + $0x168] sm:$0xff]  }
 0x67b   : > { %9225 = vmatpush1.bf16.msra.mxu0 %v10765_v46  ;;  %v10846_v46 = vld [vmem:[#allocation6 + $0x1e8] sm:$0xff]  }
 0x67c   : > { %9311 = vmatpush1.bf16.msra.mxu1 %v10768_v11  ;;  %9226 = vmatprep.subr.bf16.mxu0 %v10773_v13  ;;  %v10847_v11 = vld [vmem:[#allocation6 + $0x128] sm:$0xff]  }
 0x67d   : > { %9312 = vmatprep.subr.bf16.mxu1 %v10776_v20  ;;  %v10848_v13 = vld [vmem:[#allocation6 + $0x1a8] sm:$0xff]   ;;  %v10849_v20 = vld [vmem:[#allocation6 + $0x170] sm:$0xff]  }
 0x67f   : > { %9227 = vmatpush1.bf16.msra.mxu0 %v10771_v28  ;;  %v10850_v28 = vld [vmem:[#allocation6 + $0x1f0] sm:$0xff]  }
 0x680   : > { %9313 = vmatpush1.bf16.msra.mxu1 %v10774_v39  ;;  %9228 = vmatprep.subr.bf16.mxu0 %v10779_v5  ;;  %v10851_v39 = vld [vmem:[#allocation6 + $0x130] sm:$0xff]  }
 0x681   : > { %9314 = vmatprep.subr.bf16.mxu1 %v10782_v44  ;;  %v10852_v5 = vld [vmem:[#allocation6 + $0x1b0] sm:$0xff]   ;;  %v10853_v44 = vld [vmem:[#allocation6 + $0x178] sm:$0xff]  }
 0x683   : > { %9229 = vmatpush1.bf16.msra.mxu0 %v10777_v6  ;;  %v10854_v6 = vld [vmem:[#allocation6 + $0x1f8] sm:$0xff]  }
 0x684   : > { %9315 = vmatpush1.bf16.msra.mxu1 %v10780_v27  ;;  %9230 = vmatprep.subr.bf16.mxu0 %v10785_v19  ;;  %v10855_v27 = vld [vmem:[#allocation6 + $0x138] sm:$0xff]  }
 0x685   : > { %9316 = vmatprep.subr.bf16.mxu1 %v10788_v57  ;;  %v10856_v19 = vld [vmem:[#allocation6 + $0x1b8] sm:$0xff]   ;;  %v10047_v57 = vld [vmem:[%s18192_s4 + $0x4] sm:$0xf] }
 0x687   : > { %9231 = vmatpush1.bf16.msra.mxu0 %v10783_v49  ;;  %v19764_v49 = vld [vmem:[#allocation14_spill] sm:$0xff] }
 0x688   : > { %9317 = vmatpush1.bf16.msra.mxu1 %v10786_v4  ;;  %9232 = vmatprep.subr.bf16.mxu0 %v10791_v47  ;;  %v8469_v4 = vrot.slane %v10047_v57, %v19764_v49  ;;  %v19765_v47 = vld [vmem:[#allocation13_spill] sm:$0xff] }
 0x689   : > { %9318 = vmatprep.subr.bf16.mxu1 %v10794_v61  ;;  %v8477_v61 = vrot.slane %v10047_v57, %v19765_v47 }
 0x68b   : > { %9233 = vmatpush1.bf16.msra.mxu0 %v10789_v51  ;;  %v19766_v51 = vld [vmem:[#allocation16_spill] sm:$0xff] }
 0x68c   : > { %9319 = vmatpush1.bf16.msra.mxu1 %v10792_v29  ;;  %9234 = vmatprep.subr.bf16.mxu0 %v10797_v24  ;;  %v8473_v29 = vrot.slane %v10047_v57, %v19766_v51  ;;  %v8481_v24 = vrot.slane %v10047_v57, %v19415_v18 }
 0x68d   : > { %9320 = vmatprep.subr.bf16.mxu1 %v10800_v21 }
 0x68f   : > { %9235 = vmatpush1.bf16.msra.mxu0 %v10795_v32 }
 0x690   : > { %9321 = vmatpush1.bf16.msra.mxu1 %v10798_v15  ;;  %9236 = vmatprep.subr.bf16.mxu0 %v10803_v62 }
 0x691   : > { %9322 = vmatprep.subr.bf16.mxu1 %v10806_v56 }
 0x693   : > { %9237 = vmatpush1.bf16.msra.mxu0 %v10801_v42 }
 0x694   : > { %9323 = vmatpush1.bf16.msra.mxu1 %v10804_v8  ;;  %9238 = vmatprep.subr.bf16.mxu0 %v10809_v14 }
 0x695   : > { %9324 = vmatprep.subr.bf16.mxu1 %v10812_v37 }
 0x697   : > { %9239 = vmatpush1.bf16.msra.mxu0 %v10807_v63 }
 0x698   : > { %9325 = vmatpush1.bf16.msra.mxu1 %v10810_v16  ;;  %9240 = vmatprep.subr.bf16.mxu0 %v10815_v34 }
 0x699   : > { %9326 = vmatprep.subr.bf16.mxu1 %v10818_v53 }
 0x69b   : > { %9241 = vmatpush1.bf16.msra.mxu0 %v10813_v1 }
 0x69c   : > { %9327 = vmatpush1.bf16.msra.mxu1 %v10816_v43  ;;  %9242 = vmatprep.subr.bf16.mxu0 %v10821_v41 }
 0x69d   : > { %9328 = vmatprep.subr.bf16.mxu1 %v10824_v25 }
 0x69f   : > { %9243 = vmatpush1.bf16.msra.mxu0 %v10819_v59 }
 0x6a0   : > { %9329 = vmatpush1.bf16.msra.mxu1 %v10822_v26  ;;  %10263 = vmatprep.subr.bf16.mxu0 %v10825_v58 }
 0x6a1   : > { %10285 = vmatprep.subr.bf16.mxu1 %v10826_v38 }
 0x6d6   : > { %v8518_v7 = vpop.permute.xlu0 %8517 }
 0x6d7   : > { %v8523_v17 = vsel %vm385_vm5, %v18112_v10, %v8518_v7  ;;  %v10838_v10 = vld [vmem:[#allocation6 + $0x1d8] sm:$0xff]  }
 0x6d9   : > { %v8520_v55 = vpop.permute.xlu1 %8519 }
 0x6da   : > { %v8524_v22 = vsel %vm385_vm5, %v8518_v7, %v8520_v55 }
 0x6db   : > { %9244 = vmatprep.mubr.bf16.mxu0 %v8524_v22  ;;  %9330 = vmatprep.mubr.bf16.mxu1 %v8524_v22 }
 0x6dc   : > { %9245 = vmatmul.mubr.bf16.vlgmr.msra.gmra.mrb[8].mxu0 %v8523_v17  ;;  %9331 = vmatmul.mubr.bf16.vlgmr.msra.gmra.mrb[8].mxu1 %v8523_v17 }
 0x6dd   : > { %10264 = vmatpush3.bf16.msra.mxu0 %v10827_v36  ;;  %10286 = vmatpush3.bf16.msra.mxu1 %v10828_v23 }
 0x6de   : > { %10265 = vmatprep.subr.bf16.mxu0 %v10829_v31  ;;  %10287 = vmatprep.subr.bf16.mxu1 %v10830_v12 }
 0x6e1   : > { %10266 = vmatpush3.bf16.msra.mxu0 %v10831_v52  ;;  %10288 = vmatpush3.bf16.msra.mxu1 %v10832_v2  ;;  %v10177_v52 = vld [vmem:[%s18194_s6 + $0x1] ss:$0 sm:$0xff] }
 0x6e2   : > { %10267 = vmatprep.subr.bf16.mxu0 %v10833_v33  ;;  %10289 = vmatprep.subr.bf16.mxu1 %v10834_v35 }
 0x6e5   : > { %10268 = vmatpush3.bf16.msra.mxu0 %v10835_v54  ;;  %10290 = vmatpush3.bf16.msra.mxu1 %v10836_v45 }
 0x6e6   : > { %10269 = vmatprep.subr.bf16.mxu0 %v10837_v50  ;;  %10291 = vmatprep.subr.bf16.mxu1 %v10838_v10 }
 0x6e9   : > { %10270 = vmatpush3.bf16.msra.mxu0 %v10839_v9  ;;  %10292 = vmatpush3.bf16.msra.mxu1 %v10840_v3 }
 0x6ea   : > { %10271 = vmatprep.subr.bf16.mxu0 %v10841_v40  ;;  %10293 = vmatprep.subr.bf16.mxu1 %v10842_v30 }
 0x6ed   : > { %10272 = vmatpush3.bf16.msra.mxu0 %v10843_v60  ;;  %10294 = vmatpush3.bf16.msra.mxu1 %v10844_v48 }
 0x6ee   : > { %10273 = vmatprep.subr.bf16.mxu0 %v10845_v0  ;;  %10295 = vmatprep.subr.bf16.mxu1 %v10846_v46 }
 0x6f1   : > { %10274 = vmatpush3.bf16.msra.mxu0 %v10847_v11  ;;  %10296 = vmatpush3.bf16.msra.mxu1 %v10848_v13 }
 0x6f2   : > { %10275 = vmatprep.subr.bf16.mxu0 %v10849_v20  ;;  %10297 = vmatprep.subr.bf16.mxu1 %v10850_v28 }
 0x6f5   : > { %10276 = vmatpush3.bf16.msra.mxu0 %v10851_v39  ;;  %10298 = vmatpush3.bf16.msra.mxu1 %v10852_v5 }
 0x6f6   : > { %10277 = vmatprep.subr.bf16.mxu0 %v10853_v44  ;;  %10299 = vmatprep.subr.bf16.mxu1 %v10854_v6 }
 0x6f9   : > { %10278 = vmatpush3.bf16.msra.mxu0 %v10855_v27  ;;  %10300 = vmatpush3.bf16.msra.mxu1 %v10856_v19 }
 0x7af   : > { %v9246_v21 = vpop.f32.mrb[8].mxu0  ;;  %v9332_v32 = vpop.f32.mrb[8].mxu1 }
 0x7b0   : > { %v10315_v15 = vadd.f32 %v9246_v21, %v8469_v4  ;;  %v10319_v62 = vadd.f32 %v9332_v32, %v8477_v61  ;;  %v9248_v56 = vpop.f32.mrb[9].mxu0  ;;  %v9334_v42 = vpop.f32.mrb[9].mxu1 }
 0x7b1   : > { %v10316_v8 = vadd.f32 %v9248_v56, %v8473_v29  ;;  %v10320_v14 = vadd.f32 %v9334_v42, %v8481_v24  ;;  %v9250_v37 = vpop.f32.mrb[10].mxu0  ;;  %v9336_v63 = vpop.f32.mrb[10].mxu1 }
 0x7b2   : > { %v10317_v16 = vadd.f32 %v9250_v37, %v8469_v4  ;;  %v10321_v34 = vadd.f32 %v9336_v63, %v8477_v61  ;;  %v9252_v53 = vpop.f32.mrb[11].mxu0  ;;  %v9338_v1 = vpop.f32.mrb[11].mxu1  ;;  %v9341_v25 = vmax.f32 %v10315_v15, 0.0  ;;  %v9343_v59 = vmax.f32 %v10319_v62, 0.0 }
 0x7b3   : > { %v10318_v43 = vadd.f32 %v9252_v53, %v8473_v29  ;;  %v10322_v41 = vadd.f32 %v9338_v1, %v8481_v24  ;;  %v9342_v58 = vmax.f32 %v10316_v8, 0.0  ;;  %v9344_v38 = vmax.f32 %v10320_v14, 0.0 }
 0x7b4   : > { %v9345_v26 = vmax.f32 %v10317_v16, 0.0  ;;  %v9347_v18 = vmax.f32 %v10321_v34, 0.0 }
 0x7b5   : > { %v9346_v7 = vmax.f32 %v10318_v43, 0.0  ;;  %v9348_v55 = vmax.f32 %v10322_v41, 0.0 }
 0x7b6   : > { %v9349_v36 = vpack.c.bf16 %v9345_v26, %v9341_v25  ;;  %v9351_v23 = vpack.c.bf16 %v9347_v18, %v9343_v59 }
 0x7b7   : > { %v9350_v22 = vpack.c.bf16 %v9346_v7, %v9342_v58  ;;  %v9352_v31 = vpack.c.bf16 %v9348_v55, %v9344_v38 }
 0x7b9   : > { %9650 = vmatprep.mubr.bf16.mxu0 %v9350_v22  ;;  %9691 = vmatprep.mubr.bf16.mxu1 %v9352_v31 }
 0x7ba   : > { %9651 = vmatmul.mubr.bf16.vlgmr.msra.gmra.mrb[12].mxu0 %v9349_v36  ;;  %9692 = vmatmul.mubr.bf16.vlgmr.msra.gmra.mrb[12].mxu1 %v9351_v23 }
 0x88d   : > { %v10279_v12 = vpop.f32.mrb[12].mxu0  ;;  %v10301_v17 = vpop.f32.mrb[12].mxu1 }
 0x88e   : > { %v10280_v2 = vpop.f32.mrb[13].mxu0  ;;  %v10302_v33 = vpop.f32.mrb[13].mxu1 }
 0x88f   : > { %v10281_v35 = vadd.f32 %v10280_v2, %v10279_v12  ;;  %v10303_v54 = vadd.f32 %v10302_v33, %v10301_v17  ;;  %v10282_v45 = vpop.f32.mrb[14].mxu0  ;;  %v10304_v50 = vpop.f32.mrb[14].mxu1 }
 0x890   : > { %v10283_v10 = vpop.f32.mrb[15].mxu0  ;;  %v10305_v9 = vpop.f32.mrb[15].mxu1 }
 0x891   : > { %v9653_v3 = vadd.f32 %v10281_v35, %v10177_v52  ;;  %v10284_v40 = vadd.f32 %v10283_v10, %v10282_v45  ;;  %v10306_v30 = vadd.f32 %v10305_v9, %v10304_v50 }
 0x893   : > { %v9694_v60 = vadd.f32 %v10303_v54, %v9653_v3  ;;  %v9656_v48 = vadd.f32 %v10284_v40, %v10177_v52 }
 0x895   : > { %10210 = vst [vmem:[%s17742_s19 + $0x10] sm:$0xff] %v9694_v60  ;;  %v9697_v0 = vadd.f32 %v10306_v30, %v9656_v48 }
 0x897   : > { %10211 = vst [vmem:[%s17742_s19 + $0x18] sm:$0xff] %v9697_v0 }
 0x898   : > { %11224 = shalt.err (!%p11221_p11)
}
 0x899   : > { %s11225_s13 = scalar_lea.hbm %s18142_s14, 512  ;;  %s11229_s23 = scalar_lea.hbm %s18195_s7, 1024 }
 0x89a   : > { %p11226_p13 = scmp.ne.s32.totalorder %s18142_s14, %s11225_s13  ;;  %p11230_p6 = scmp.lt.u32.totalorder %s18142_s14, %s18195_s7 }
 0x89b   : > { %p11231_p9 = scmp.lt.u32.totalorder %s11229_s23, %s11225_s13  ;;  %p11233_p10 = scmp.lt.u32.totalorder %s11225_s13, %s18142_s14 }
 0x89c   : > { %p11227_p0 = pnand %p11226_p13, %p19767_p1 }
 0x89d   : > { %p11232_p12 = por %p11231_p9, %p11230_p6 }
 0x89e   : > { %p11228_p5 = pneg %p11227_p0 }
 0x89f   : > { %p11234_p2 = por %p11233_p10, %p11232_p12 }
 0x8a1   : > { %p11235_p3 = pnand %p11234_p2, %p11228_p5 }
 0x8a3   : > { %11238 = shalt.err (!%p11235_p3)
}
 0x8a4   : > { %s11294_s9 = smov 128   ;;  %s11295_s15 = smov 8  }
 0x8a5   : > { %10347 = dma.vmem_to_hbm [thread:$0]  (%p19767_p1), %s18136_s8, 512, %s18142_s14, %s18147_s17, %s11294_s9, %s11294_s9, %s11295_s15  }
 0x8a6 PF: > { %p10364_p4 = scmp.ge.s32.totalorder %s11281_s27, 2  ;;  %s9732_s10 = sand.u32 1, %s11269_s24  }
 0x8a7   : > { %p19768_p7 = scmp.ne.s32.totalorder %s18623_s12, 0  ;;  %s9733_s16 = scalar_lea.sflag [#allocation5], %s9732_s10 }
 0x8a9   : > { %p10357_p8 = pnand %p10364_p4, %p19768_p7 }
 0x8ab   : > { %11264 = dma.done.wait (!%p10357_p8), %s9733_s16, 512  }
 0x8ac   : > { %11266 = vsyncadd (!%p10357_p8), %s9733_s16, 4294966784  ;;  %s19769_s28 = sld [smem:[#allocation12_spill]]  ;;  %p19_p11 = scmp.ge.s32.totalorder %s11361_s30, 4  }
 0x8ad   : > { %s19770_s24 = smov %s11273_s25  ;;  %s19771_s25 = smov %s11277_s26 }
 0x8ae   : > { %s19773_s27 = smov %s11361_s30  ;;  %21 = sbr.rel (!%p19_p11) target bundleno = 5 (0x5), region = 147 }
 0x8b2   : > { %s19772_s26 = smov %s19769_s28 }
 0x8b5   :  { %9738 = vsyncpa [#allocation4], 1 }
 0x8b6   :  { %9740 = vsyncpa [#allocation4 + $0x1], 1 }
 0x8b7   :  { %9741 = vsyncpa [#allocation7], 1 }
 0x8b8   :  { %9742 = vsyncpa [#allocation5], 1 }
 0x8b9   :  { %9744 = vsyncpa [#allocation5 + $0x1], 1 }

</bundles_post_ra>
